<compile_context>
chip_gen: v7x
topology: tpu7x:2x2x1
jax: 0.10.0
libtpu: 0.0.40
codegen_flags: <defaults>
</compile_context>

<pallas_src>
import functools

import jax
import jax.numpy as jnp
from jax.experimental import pallas as pl
from jax.experimental.pallas import tpu as pltpu

_VMEM_LIMIT = 48 * 1024 * 1024        # below v7x 64 MiB physical; fine on v5e/v6e
_CONV_VMEM_BUDGET = 36 * 1024 * 1024  # per-step working-set target for conv3x3
_MM_VMEM_BUDGET = 24 * 1024 * 1024    # per-step working-set target for 1x1 matmul


def _rup(x, m):
    return ((x + m - 1) // m) * m


# ---------------------------------------------------------------------------
# Pallas kernel 1: fused matmul (+ReLU) — used for the 1x1 convs conv1/conv2
# ---------------------------------------------------------------------------
def _mm_kernel(a_ref, b_ref, o_ref, *, relu):
    acc = jnp.dot(a_ref[...], b_ref[...], preferred_element_type=jnp.float32)
    if relu:
        acc = jnp.maximum(acc, 0.0)
    o_ref[...] = acc.astype(o_ref.dtype)


_TM_CANDIDATES = (4096, 2048, 1024, 512, 256, 128, 64, 32, 16, 8)


def _mm_tile_bytes(tm, k, n):
    kl, nl = _rup(k, 128), _rup(n, 128)
    return (2 * tm * kl * 2      # A tile (bf16, double-buffered)
            + 2 * kl * nl * 2    # B weights (bf16)
            + 2 * tm * nl * 2    # output tile (double-buffered)
            + tm * nl * 4)       # f32 matmul result temp


def _pick_tm(m, k, n):
    fits = lambda tm: _mm_tile_bytes(tm, k, n) <= _MM_VMEM_BUDGET
    div = [c for c in _TM_CANDIDATES if m % c == 0 and fits(c)]
    if div:
        tm = div[0]
        if m // tm < 2:                       # single-step grid: prefer 2 steps
            multi = [c for c in div if m // c >= 2]
            if multi:
                tm = multi[0]
        return tm, 0
    if m <= _TM_CANDIDATES[0] and fits(m):    # awkward small M: one full block
        return m, 0
    tm = next((c for c in _TM_CANDIDATES if fits(c)), 8)
    return tm, (-m) % tm


def pallas_matmul(a, b, *, relu=False, out_dtype=jnp.bfloat16):
    """relu(a @ b) on the MXU. bf16 inputs, f32 accumulation."""
    m, k = a.shape
    k2, n = b.shape
    assert k == k2
    a = a.astype(jnp.bfloat16)
    b = b.astype(jnp.bfloat16)

    tm, pad = _pick_tm(m, k, n)
    if pad:
        a = jnp.pad(a, ((0, pad), (0, 0)))
    mp = m + pad

    out = pl.pallas_call(
        functools.partial(_mm_kernel, relu=relu),
        out_shape=jax.ShapeDtypeStruct((mp, n), out_dtype),
        grid=(mp // tm,),
        in_specs=[pl.BlockSpec((tm, k), lambda i: (i, 0)),
                  pl.BlockSpec((k, n), lambda i: (0, 0))],
        out_specs=pl.BlockSpec((tm, n), lambda i: (i, 0)),
        compiler_params=pltpu.CompilerParams(
            dimension_semantics=("parallel",),
            vmem_limit_bytes=_VMEM_LIMIT),
    )(a, b)
    return out[:m] if pad else out


# ---------------------------------------------------------------------------
# Pallas kernel 2: 3x3 conv (stride 1, pad 1) + ReLU as a single K=9*Cin
# matmul per row tile, with an optional fused 1x1 (+bias) epilogue.
# ---------------------------------------------------------------------------
def _conv3x3_kernel(*refs, th, wd, cin, relu, fused):
    if fused:
        xa_ref, xb0_ref, xb1_ref, w_ref, w2_ref, b2_ref, o_ref, patch_ref = refs
    else:
        xa_ref, xb0_ref, xb1_ref, w_ref, o_ref, patch_ref = refs

    # Build the (th, wd, 9*cin) im2col patch directly from the row tile and
    # the two halo rows (all already in VMEM) — no halo-tile scratch copy,
    # no per-tap f32 accumulator read-modify-write.
    for dy in range(3):
        for dx in range(3):
            t = 3 * dy + dx
            cs = slice(t * cin, (t + 1) * cin)
            na = th - dy                         # rows coming from the main tile
            if na > 0:
                patch_ref[0:na, :, cs] = xa_ref[dy:th, dx:dx + wd, :]
            if 1 <= dy <= th:                    # padded row `th` (1st halo row)
                patch_ref[th - dy, :, cs] = xb0_ref[dx:dx + wd, :]
            if 2 <= dy <= th + 1:                # padded row `th+1` (2nd halo row)
                patch_ref[th + 1 - dy, :, cs] = xb1_ref[dx:dx + wd, :]

    # One MXU push with K = 9*cin instead of 9 pushes with K = cin.
    acc = jnp.dot(patch_ref[...].reshape(th * wd, 9 * cin), w_ref[...],
                  preferred_element_type=jnp.float32)
    if relu:
        acc = jnp.maximum(acc, 0.0)

    if fused:
        # Fused final 1x1 conv (+bias, no ReLU): the 128-ch activation never
        # leaves VMEM, and the 64-ch result goes straight to HBM.
        acc = jnp.dot(acc.astype(jnp.bfloat16), w2_ref[...],
                      preferred_element_type=jnp.float32) + b2_ref[...]

    cout = o_ref.shape[-1]
    o_ref[...] = acc.astype(o_ref.dtype).reshape(th, wd, cout)


def _conv_tile_bytes(th, wd, cin, cout, out_ch, out_bytes, fused):
    cin_l, cout_l, out_l = _rup(cin, 128), _rup(cout, 128), _rup(out_ch, 128)
    v = 2 * th * (wd + 2) * cin_l * 2            # row tile (double-buffered)
    v += 2 * 2 * (wd + 2) * cin_l * 2            # two halo rows
    v += 2 * 9 * cin * cout_l * 2                # weights
    v += 2 * th * wd * out_l * out_bytes         # output tile (double-buffered)
    v += th * wd * _rup(9 * cin, 128) * 2        # im2col patch scratch
    v += th * wd * cout_l * 4                    # f32 matmul result temp
    if fused:
        v += 2 * cout * out_l * 2 + out_l * 4 + th * wd * out_l * 4
    return v


def _pick_row_tile(n, h, wd, cin, cout, out_ch, out_bytes, fused):
    divs = sorted((d for d in range(1, h + 1) if h % d == 0), reverse=True)
    feas = [d for d in divs
            if d * wd <= 2048
            and _conv_tile_bytes(d, wd, cin, cout, out_ch, out_bytes,
                                 fused) <= _CONV_VMEM_BUDGET]
    if not feas:
        return 1
    th = feas[0]
    if n * (h // th) < 2:     # avoid a 1-step grid (keeps both v7x TCs busy)
        multi = [d for d in feas if n * (h // d) >= 2]
        if multi:
            th = multi[0]
    return th


def conv3x3_pallas(x_nhwc, w_hwio, *, relu=True, epilogue_w=None, epilogue_b=None):
    """3x3 / stride 1 / pad 1 conv (+ReLU), optional fused 1x1 (+bias) epilogue.

    w_hwio: (3, 3, Cin, Cout).  epilogue_w: (Cout, Cout2), epilogue_b: (Cout2,).
    """
    n, h, wd, cin = x_nhwc.shape
    cout = w_hwio.shape[-1]
    fused = epilogue_w is not None
    out_ch = epilogue_w.shape[-1] if fused else cout
    out_dtype = jnp.float32 if fused else jnp.bfloat16
    out_bytes = 4 if fused else 2

    # Spatial zero-pad of the input (one small HBM copy; no HBM im2col).
    # TODO(synk): move the 1-px halo handling inside the kernel (pl.when
    # zero-fill on first/last row tile + zeroed edge columns in the patch) to
    # drop this extra HBM round trip of the largest activations.
    xp = jnp.pad(x_nhwc.astype(jnp.bfloat16), ((0, 0), (1, 1), (1, 1), (0, 0)))
    w = w_hwio.reshape(9 * cin, cout).astype(jnp.bfloat16)

    th = _pick_row_tile(n, h, wd, cin, cout, out_ch, out_bytes, fused)
    rt = h // th

    in_specs = [
        # row tile: padded rows [i*th, i*th + th)
        pl.BlockSpec((None, th, wd + 2, cin), lambda b, i: (b, i, 0, 0)),
        # the two halo rows below the tile: padded rows i*th+th, i*th+th+1
        pl.BlockSpec((None, None, wd + 2, cin),
                     lambda b, i: (b, (i + 1) * th, 0, 0)),
        pl.BlockSpec((None, None, wd + 2, cin),
                     lambda b, i: (b, (i + 1) * th + 1, 0, 0)),
        # full weight tensor, resident in VMEM
        pl.BlockSpec((9 * cin, cout), lambda b, i: (0, 0)),
    ]
    args = [xp, xp, xp, w]
    if fused:
        in_specs += [pl.BlockSpec((cout, out_ch), lambda b, i: (0, 0)),
                     pl.BlockSpec((1, out_ch), lambda b, i: (0, 0))]
        args += [epilogue_w.astype(jnp.bfloat16),
                 epilogue_b.reshape(1, out_ch).astype(jnp.float32)]

    return pl.pallas_call(
        functools.partial(_conv3x3_kernel, th=th, wd=wd, cin=cin,
                          relu=relu, fused=fused),
        out_shape=jax.ShapeDtypeStruct((n, h, wd, out_ch), out_dtype),
        grid=(n, rt),
        in_specs=in_specs,
        out_specs=pl.BlockSpec((None, th, wd, out_ch), lambda b, i: (b, i, 0, 0)),
        scratch_shapes=[pltpu.VMEM((th, wd, 9 * cin), jnp.bfloat16)],  # im2col
        compiler_params=pltpu.CompilerParams(
            dimension_semantics=("parallel", "parallel"),
            vmem_limit_bytes=_VMEM_LIMIT),
    )(*args)


# ---------------------------------------------------------------------------
# Glue helpers (plain JAX): bilinear align_corners upsample
# ---------------------------------------------------------------------------
def _interp_matrix(out_size, in_size):
    """Matches F.interpolate(mode='bilinear', align_corners=True) along one axis."""
    if in_size == 1:
        return jnp.ones((out_size, 1), jnp.float32)
    if out_size == 1:
        m = jnp.zeros((1, in_size), jnp.float32)
        return m.at[0, 0].set(1.0)
    idx = jnp.arange(out_size, dtype=jnp.float32)
    src = idx * (in_size - 1) / (out_size - 1)
    lo = jnp.clip(jnp.floor(src).astype(jnp.int32), 0, in_size - 2)
    frac = src - lo.astype(jnp.float32)
    rows = jnp.arange(out_size)
    m = jnp.zeros((out_size, in_size), jnp.float32)
    m = m.at[rows, lo].add(1.0 - frac)
    m = m.at[rows, lo + 1].add(frac)
    return m


def bilinear_align_corners(x_nhwc, out_h, out_w):
    n, h, w, c = x_nhwc.shape
    rh = _interp_matrix(out_h, h)
    rw = _interp_matrix(out_w, w)
    y = jnp.einsum('ph,nhwc->npwc', rh, x_nhwc)
    y = jnp.einsum('qw,npwc->npqc', rw, y)
    return y


# ---------------------------------------------------------------------------
# Parameter construction (kaiming-normal, like the module)
# ---------------------------------------------------------------------------
def init_decoder_params(key, c1, c2):
    ks = jax.random.split(key, 6)

    def kaiming(k, fan_in, shape):
        return jax.random.normal(k, shape, jnp.float32) * jnp.sqrt(2.0 / fan_in)

    cmid = (c1 + c2) // 2
    # NOTE: when porting a real PyTorch checkpoint, conv weights (Cout,Cin,kh,kw)
    # must be transposed to (kh,kw,Cin,Cout) for w3/w4 and (Cin,Cout) for 1x1s.
    return {
        'w1': kaiming(ks[0], c1, (c1, c1 // 2)),            # 1x1: (Cin, Cout)
        'w2': kaiming(ks[1], c2, (c2, c2 // 2)),
        'w3': kaiming(ks[2], 9 * cmid, (3, 3, cmid, 256)),  # 3x3: (kh, kw, Cin, Cout)
        'w4': kaiming(ks[3], 9 * 256, (3, 3, 256, 128)),
        'w5': kaiming(ks[4], 128, (128, 64)),               # final 1x1 (with bias)
        'b5': jax.random.uniform(ks[5], (64,), jnp.float32,
                                 -1.0 / jnp.sqrt(128.0), 1.0 / jnp.sqrt(128.0)),
    }


# ---------------------------------------------------------------------------
# Decoder forward
# ---------------------------------------------------------------------------
def decoder_forward(params, x_nchw, low_nchw, factor):
    if factor < 2:
        raise ValueError("factor must be >= 2 (factor // 2 == 0 gives empty output)")

    # NCHW -> NHWC so channels sit on the TPU lane dimension
    x = jnp.transpose(x_nchw, (0, 2, 3, 1))
    low = jnp.transpose(low_nchw, (0, 2, 3, 1))
    n, hl, wl, c1 = low.shape
    _, hx, wx, c2 = x.shape

    # conv1 / conv2 (1x1, no bias) + ReLU
    low = pallas_matmul(low.reshape(-1, c1), params['w1'], relu=True)
    low = low.reshape(n, hl, wl, c1 // 2)
    xh = pallas_matmul(x.reshape(-1, c2), params['w2'], relu=True)
    xh = xh.reshape(n, hx, wx, c2 // 2)

    # bilinear (align_corners=True) upsample to [hl*(factor//2), wl*(factor//2)]
    th_, tw_ = hl * (factor // 2), wl * (factor // 2)
    xu = bilinear_align_corners(xh, th_, tw_).astype(jnp.bfloat16)
    if factor > 1:   # mirrors the module; always taken since factor >= 2
        low = bilinear_align_corners(low, th_, tw_).astype(jnp.bfloat16)
    else:
        low = low.astype(jnp.bfloat16)

    # channel concat (small tensor).
    # TODO(synk): feed xu/low as two kernel inputs with w3 split along K to
    # avoid materializing the concatenated tensor in HBM.
    cat = jnp.concatenate([xu, low], axis=-1)

    # last_conv: 3x3 -> ReLU -> [3x3 -> ReLU -> 1x1(+bias)]  (last two fused)
    h1 = conv3x3_pallas(cat, params['w3'], relu=True)                 # (n,H,W,256)
    out = conv3x3_pallas(h1, params['w4'], relu=True,
                         epilogue_w=params['w5'], epilogue_b=params['b5'])
    # out: (n, H, W, 64) f32

    # NHWC -> NCHW to match the PyTorch module's output convention
    return jnp.transpose(out, (0, 3, 1, 2))


# ---------------------------------------------------------------------------
# Pure-JAX reference (same bf16 cast points) for a sanity check
# ---------------------------------------------------------------------------
def _reference_forward(params, x_nchw, low_nchw, factor):
    x = jnp.transpose(x_nchw, (0, 2, 3, 1))
    low = jnp.transpose(low_nchw, (0, 2, 3, 1))
    n, hl, wl, c1 = low.shape

    def conv1x1(t, w, bias=None):
        t = t.astype(jnp.bfloat16)
        w = w.astype(jnp.bfloat16)
        r = jnp.dot(t.reshape(-1, t.shape[-1]), w,
                    preferred_element_type=jnp.float32)
        if bias is not None:
            r = r + bias.astype(jnp.float32)
        return r.reshape(t.shape[:-1] + (w.shape[-1],))

    def conv3x3(t, w):
        return jax.lax.conv_general_dilated(
            t.astype(jnp.bfloat16), w.astype(jnp.bfloat16), (1, 1), 'SAME',
            dimension_numbers=('NHWC', 'HWIO', 'NHWC'),
            preferred_element_type=jnp.float32)

    low = jnp.maximum(conv1x1(low, params['w1']), 0.0).astype(jnp.bfloat16)
    xh = jnp.maximum(conv1x1(x, params['w2']), 0.0).astype(jnp.bfloat16)
    th_, tw_ = hl * (factor // 2), wl * (factor // 2)
    xu = bilinear_align_corners(xh, th_, tw_).astype(jnp.bfloat16)
    if factor > 1:
        low = bilinear_align_corners(low, th_, tw_).astype(jnp.bfloat16)
    cat = jnp.concatenate([xu, low], axis=-1)
    h1 = jnp.maximum(conv3x3(cat, params['w3']), 0.0).astype(jnp.bfloat16)
    h2 = jnp.maximum(conv3x3(h1, params['w4']), 0.0).astype(jnp.bfloat16)
    out = conv1x1(h2, params['w5'], params['b5']).astype(jnp.float32)
    return jnp.transpose(out, (0, 3, 1, 2))


# ---------------------------------------------------------------------------
if __name__ == "__main__":
    key = jax.random.PRNGKey(0)
    k_params, k_x, k_low = jax.random.split(key, 3)

    # small shapes: batch=2, c1=16 (low-level), c2=32 (high-level), factor=2
    c1, c2, factor = 16, 32, 2
    low_level_feat = jax.random.normal(k_low, (2, c1, 16, 16), jnp.float32)
    x = jax.random.normal(k_x, (2, c2, 8, 8), jnp.float32)

    params = init_decoder_params(k_params, c1, c2)

    fwd = jax.jit(decoder_forward, static_argnames=("factor",))
    out = fwd(params, x, low_level_feat, factor=factor)
    out = jax.block_until_ready(out)

    expected_shape = (2, 64, 16 * (factor // 2), 16 * (factor // 2))
    assert out.shape == expected_shape, (out.shape, expected_shape)
    assert jnp.isfinite(out).all()

    # loose numerical sanity check against an XLA reference (same bf16 casts)
    ref = jax.block_until_ready(_reference_forward(params, x, low_level_feat, factor))
    err = float(jnp.max(jnp.abs(out - ref)))
    scale = float(jnp.max(jnp.abs(ref))) + 1e-6
    assert err <= 5e-2 * scale + 1e-3, ("mismatch vs reference", err, scale)

    print("KERNEL_OK")
</pallas_src>

<mosaic_0001>
module attributes {stable_mosaic.version = 11 : i64} {
  func.func private @main(%arg0: i32) attributes {dimension_semantics = [#tpu.dimension_semantics<core_parallel>], iteration_bounds = array<i64: 2>, tpu.core_type = #tpu.core_type<sc_scalar_subcore>, window_params = []} {
    return
  }
}

module attributes {stable_mosaic.version = 11 : i64} {
  func.func private @main(%arg0: i32) attributes {dimension_semantics = [#tpu.dimension_semantics<core_parallel>], iteration_bounds = array<i64: 2>, tpu.core_type = #tpu.core_type<sc_scalar_subcore>, window_params = []} {
    return
  }
}

module attributes {stable_mosaic.version = 11 : i64} {
  func.func @_mm_kernel(%arg0: i32, %arg1: memref<256x16xbf16, #tpu.memory_space<vmem>>, %arg2: memref<16x8xbf16, #tpu.memory_space<vmem>>, %arg3: memref<256x8xbf16, #tpu.memory_space<vmem>>) attributes {dimension_semantics = [#tpu.dimension_semantics<parallel>], iteration_bounds = array<i64: 2>, scalar_prefetch = 0 : i64, scratch_operands = 0 : i64, tpu.core_type = #tpu.core_type<tc>, window_params = [{transform_indices = @transform_0, window_bounds = array<i64: 256, 16>}, {pipeline_mode = #tpu.pipeline_mode<synchronous>, transform_indices = @transform_1, window_bounds = array<i64: 16, 8>}, {transform_indices = @transform_2, window_bounds = array<i64: 256, 8>}]} {
    %c0 = arith.constant 0 : index
    %c0_0 = arith.constant 0 : index
    %0 = vector.load %arg1[%c0, %c0_0] : memref<256x16xbf16, #tpu.memory_space<vmem>>, vector<256x16xbf16>
    %c0_1 = arith.constant 0 : index
    %c0_2 = arith.constant 0 : index
    %1 = vector.load %arg2[%c0_1, %c0_2] : memref<16x8xbf16, #tpu.memory_space<vmem>>, vector<16x8xbf16>
    %cst = arith.constant dense<0.000000e+00> : vector<256x8xf32>
    %2 = tpu.matmul %0, %1, %cst {dimension_numbers = #tpu.dot_dimension_numbers<[1], [0], [0], [1], [0, 0, 1, 1], [], []>} : vector<256x16xbf16>, vector<16x8xbf16>, vector<256x8xf32> -> vector<256x8xf32>
    %cst_3 = arith.constant 0.000000e+00 : f32
    %3 = vector.broadcast %cst_3 : f32 to vector<256x8xf32>
    %4 = arith.maximumf %2, %3 : vector<256x8xf32>
    %5 = arith.truncf %4 : vector<256x8xf32> to vector<256x8xbf16>
    %c0_4 = arith.constant 0 : index
    %c0_5 = arith.constant 0 : index
    %6 = vector.load %arg3[%c0_4, %c0_5] : memref<256x8xbf16, #tpu.memory_space<vmem>>, vector<256x8xbf16>
    tpu.vector_store %arg3[%c0_4, %c0_5], %5 {strides = array<i32>} : memref<256x8xbf16, #tpu.memory_space<vmem>>, vector<256x8xbf16>,
    return
  }
  func.func @transform_0(%arg0: i32) -> (i32, i32) {
    %c0_i32 = arith.constant 0 : i32
    %c0_i32_0 = arith.constant 0 : i32
    return %arg0, %c0_i32 : i32, i32
  }
  func.func @transform_1(%arg0: i32) -> (i32, i32) {
    %c0_i32 = arith.constant 0 : i32
    %c0_i32_0 = arith.constant 0 : i32
    %c0_i32_1 = arith.constant 0 : i32
    return %c0_i32, %c0_i32_0 : i32, i32
  }
  func.func @transform_2(%arg0: i32) -> (i32, i32) {
    %c0_i32 = arith.constant 0 : i32
    %c0_i32_0 = arith.constant 0 : i32
    return %arg0, %c0_i32 : i32, i32
  }
}

module attributes {stable_mosaic.version = 11 : i64} {
  func.func @_mm_kernel(%arg0: i32, %arg1: memref<64x32xbf16, #tpu.memory_space<vmem>>, %arg2: memref<32x16xbf16, #tpu.memory_space<vmem>>, %arg3: memref<64x16xbf16, #tpu.memory_space<vmem>>) attributes {dimension_semantics = [#tpu.dimension_semantics<parallel>], iteration_bounds = array<i64: 2>, scalar_prefetch = 0 : i64, scratch_operands = 0 : i64, tpu.core_type = #tpu.core_type<tc>, window_params = [{transform_indices = @transform_0, window_bounds = array<i64: 64, 32>}, {pipeline_mode = #tpu.pipeline_mode<synchronous>, transform_indices = @transform_1, window_bounds = array<i64: 32, 16>}, {transform_indices = @transform_2, window_bounds = array<i64: 64, 16>}]} {
    %c0 = arith.constant 0 : index
    %c0_0 = arith.constant 0 : index
    %0 = vector.load %arg1[%c0, %c0_0] : memref<64x32xbf16, #tpu.memory_space<vmem>>, vector<64x32xbf16>
    %c0_1 = arith.constant 0 : index
    %c0_2 = arith.constant 0 : index
    %1 = vector.load %arg2[%c0_1, %c0_2] : memref<32x16xbf16, #tpu.memory_space<vmem>>, vector<32x16xbf16>
    %cst = arith.constant dense<0.000000e+00> : vector<64x16xf32>
    %2 = tpu.matmul %0, %1, %cst {dimension_numbers = #tpu.dot_dimension_numbers<[1], [0], [0], [1], [0, 0, 1, 1], [], []>} : vector<64x32xbf16>, vector<32x16xbf16>, vector<64x16xf32> -> vector<64x16xf32>
    %cst_3 = arith.constant 0.000000e+00 : f32
    %3 = vector.broadcast %cst_3 : f32 to vector<64x16xf32>
    %4 = arith.maximumf %2, %3 : vector<64x16xf32>
    %5 = arith.truncf %4 : vector<64x16xf32> to vector<64x16xbf16>
    %c0_4 = arith.constant 0 : index
    %c0_5 = arith.constant 0 : index
    %6 = vector.load %arg3[%c0_4, %c0_5] : memref<64x16xbf16, #tpu.memory_space<vmem>>, vector<64x16xbf16>
    tpu.vector_store %arg3[%c0_4, %c0_5], %5 {strides = array<i32>} : memref<64x16xbf16, #tpu.memory_space<vmem>>, vector<64x16xbf16>,
    return
  }
  func.func @transform_0(%arg0: i32) -> (i32, i32) {
    %c0_i32 = arith.constant 0 : i32
    %c0_i32_0 = arith.constant 0 : i32
    return %arg0, %c0_i32 : i32, i32
  }
  func.func @transform_1(%arg0: i32) -> (i32, i32) {
    %c0_i32 = arith.constant 0 : i32
    %c0_i32_0 = arith.constant 0 : i32
    %c0_i32_1 = arith.constant 0 : i32
    return %c0_i32, %c0_i32_0 : i32, i32
  }
  func.func @transform_2(%arg0: i32) -> (i32, i32) {
    %c0_i32 = arith.constant 0 : i32
    %c0_i32_0 = arith.constant 0 : i32
    return %arg0, %c0_i32 : i32, i32
  }
}

module attributes {stable_mosaic.version = 11 : i64} {
  func.func @_conv3x3_kernel(%arg0: i32, %arg1: i32, %arg2: memref<1x16x18x24xbf16, #tpu.memory_space<vmem>>, %arg3: memref<1x1x18x24xbf16, #tpu.memory_space<vmem>>, %arg4: memref<1x1x18x24xbf16, #tpu.memory_space<vmem>>, %arg5: memref<216x256xbf16, #tpu.memory_space<vmem>>, %arg6: memref<1x16x16x256xbf16, #tpu.memory_space<vmem>>, %arg7: memref<16x16x216xbf16, #tpu.memory_space<vmem>>) attributes {dimension_semantics = [#tpu.dimension_semantics<parallel>, #tpu.dimension_semantics<parallel>], iteration_bounds = array<i64: 2, 1>, scalar_prefetch = 0 : i64, scratch_operands = 1 : i64, tpu.core_type = #tpu.core_type<tc>, window_params = [{transform_indices = @transform_0, window_bounds = array<i64: 1, 16, 18, 24>}, {transform_indices = @transform_1, window_bounds = array<i64: 1, 1, 18, 24>}, {transform_indices = @transform_2, window_bounds = array<i64: 1, 1, 18, 24>}, {pipeline_mode = #tpu.pipeline_mode<synchronous>, transform_indices = @transform_3, window_bounds = array<i64: 216, 256>}, {transform_indices = @transform_4, window_bounds = array<i64: 1, 16, 16, 256>}]} {
    %c0 = arith.constant 0 : index
    %c0_0 = arith.constant 0 : index
    %c0_1 = arith.constant 0 : index
    %c0_2 = arith.constant 0 : index
    %0 = vector.load %arg2[%c0, %c0_0, %c0_1, %c0_2] : memref<1x16x18x24xbf16, #tpu.memory_space<vmem>>, vector<1x16x16x24xbf16>
    %1 = vector.shape_cast %0 : vector<1x16x16x24xbf16> to vector<16x16x24xbf16>
    %c0_3 = arith.constant 0 : index
    %c0_4 = arith.constant 0 : index
    %c0_5 = arith.constant 0 : index
    %2 = vector.load %arg7[%c0_3, %c0_4, %c0_5] : memref<16x16x216xbf16, #tpu.memory_space<vmem>>, vector<16x16x24xbf16>
    tpu.vector_store %arg7[%c0_3, %c0_4, %c0_5], %1 {strides = array<i32>} : memref<16x16x216xbf16, #tpu.memory_space<vmem>>, vector<16x16x24xbf16>,
    %c0_6 = arith.constant 0 : index
    %c0_7 = arith.constant 0 : index
    %c1 = arith.constant 1 : index
    %c0_8 = arith.constant 0 : index
    %3 = vector.load %arg2[%c0_6, %c0_7, %c1, %c0_8] : memref<1x16x18x24xbf16, #tpu.memory_space<vmem>>, vector<1x16x16x24xbf16>
    %4 = vector.shape_cast %3 : vector<1x16x16x24xbf16> to vector<16x16x24xbf16>
    %c0_9 = arith.constant 0 : index
    %c0_10 = arith.constant 0 : index
    %c24 = arith.constant 24 : index
    %5 = vector.load %arg7[%c0_9, %c0_10, %c24] : memref<16x16x216xbf16, #tpu.memory_space<vmem>>, vector<16x16x24xbf16>
    tpu.vector_store %arg7[%c0_9, %c0_10, %c24], %4 {strides = array<i32>} : memref<16x16x216xbf16, #tpu.memory_space<vmem>>, vector<16x16x24xbf16>,
    %c0_11 = arith.constant 0 : index
    %c0_12 = arith.constant 0 : index
    %c2 = arith.constant 2 : index
    %c0_13 = arith.constant 0 : index
    %6 = vector.load %arg2[%c0_11, %c0_12, %c2, %c0_13] : memref<1x16x18x24xbf16, #tpu.memory_space<vmem>>, vector<1x16x16x24xbf16>
    %7 = vector.shape_cast %6 : vector<1x16x16x24xbf16> to vector<16x16x24xbf16>
    %c0_14 = arith.constant 0 : index
    %c0_15 = arith.constant 0 : index
    %c48 = arith.constant 48 : index
    %8 = vector.load %arg7[%c0_14, %c0_15, %c48] : memref<16x16x216xbf16, #tpu.memory_space<vmem>>, vector<16x16x24xbf16>
    tpu.vector_store %arg7[%c0_14, %c0_15, %c48], %7 {strides = array<i32>} : memref<16x16x216xbf16, #tpu.memory_space<vmem>>, vector<16x16x24xbf16>,
    %c0_16 = arith.constant 0 : index
    %c1_17 = arith.constant 1 : index
    %c0_18 = arith.constant 0 : index
    %c0_19 = arith.constant 0 : index
    %9 = vector.load %arg2[%c0_16, %c1_17, %c0_18, %c0_19] : memref<1x16x18x24xbf16, #tpu.memory_space<vmem>>, vector<1x15x16x24xbf16>
    %10 = vector.shape_cast %9 : vector<1x15x16x24xbf16> to vector<15x16x24xbf16>
    %c0_20 = arith.constant 0 : index
    %c0_21 = arith.constant 0 : index
    %c72 = arith.constant 72 : index
    %11 = vector.load %arg7[%c0_20, %c0_21, %c72] : memref<16x16x216xbf16, #tpu.memory_space<vmem>>, vector<15x16x24xbf16>
    tpu.vector_store %arg7[%c0_20, %c0_21, %c72], %10 {strides = array<i32>} : memref<16x16x216xbf16, #tpu.memory_space<vmem>>, vector<15x16x24xbf16>,
    %c0_22 = arith.constant 0 : index
    %c0_23 = arith.constant 0 : index
    %c0_24 = arith.constant 0 : index
    %c0_25 = arith.constant 0 : index
    %12 = vector.load %arg3[%c0_22, %c0_23, %c0_24, %c0_25] : memref<1x1x18x24xbf16, #tpu.memory_space<vmem>>, vector<1x1x16x24xbf16>
    %13 = vector.shape_cast %12 : vector<1x1x16x24xbf16> to vector<16x24xbf16>
    %c15 = arith.constant 15 : index
    %c0_26 = arith.constant 0 : index
    %c72_27 = arith.constant 72 : index
    %14 = vector.load %arg7[%c15, %c0_26, %c72_27] : memref<16x16x216xbf16, #tpu.memory_space<vmem>>, vector<1x16x24xbf16>
    %15 = vector.shape_cast %14 : vector<1x16x24xbf16> to vector<16x24xbf16>
    %16 = vector.shape_cast %13 : vector<16x24xbf16> to vector<1x16x24xbf16>
    tpu.vector_store %arg7[%c15, %c0_26, %c72_27], %16 {strides = array<i32>} : memref<16x16x216xbf16, #tpu.memory_space<vmem>>, vector<1x16x24xbf16>,
    %c0_28 = arith.constant 0 : index
    %c1_29 = arith.constant 1 : index
    %c1_30 = arith.constant 1 : index
    %c0_31 = arith.constant 0 : index
    %17 = vector.load %arg2[%c0_28, %c1_29, %c1_30, %c0_31] : memref<1x16x18x24xbf16, #tpu.memory_space<vmem>>, vector<1x15x16x24xbf16>
    %18 = vector.shape_cast %17 : vector<1x15x16x24xbf16> to vector<15x16x24xbf16>
    %c0_32 = arith.constant 0 : index
    %c0_33 = arith.constant 0 : index
    %c96 = arith.constant 96 : index
    %19 = vector.load %arg7[%c0_32, %c0_33, %c96] : memref<16x16x216xbf16, #tpu.memory_space<vmem>>, vector<15x16x24xbf16>
    tpu.vector_store %arg7[%c0_32, %c0_33, %c96], %18 {strides = array<i32>} : memref<16x16x216xbf16, #tpu.memory_space<vmem>>, vector<15x16x24xbf16>,
    %c0_34 = arith.constant 0 : index
    %c0_35 = arith.constant 0 : index
    %c1_36 = arith.constant 1 : index
    %c0_37 = arith.constant 0 : index
    %20 = vector.load %arg3[%c0_34, %c0_35, %c1_36, %c0_37] : memref<1x1x18x24xbf16, #tpu.memory_space<vmem>>, vector<1x1x16x24xbf16>
    %21 = vector.shape_cast %20 : vector<1x1x16x24xbf16> to vector<16x24xbf16>
    %c15_38 = arith.constant 15 : index
    %c0_39 = arith.constant 0 : index
    %c96_40 = arith.constant 96 : index
    %22 = vector.load %arg7[%c15_38, %c0_39, %c96_40] : memref<16x16x216xbf16, #tpu.memory_space<vmem>>, vector<1x16x24xbf16>
    %23 = vector.shape_cast %22 : vector<1x16x24xbf16> to vector<16x24xbf16>
    %24 = vector.shape_cast %21 : vector<16x24xbf16> to vector<1x16x24xbf16>
    tpu.vector_store %arg7[%c15_38, %c0_39, %c96_40], %24 {strides = array<i32>} : memref<16x16x216xbf16, #tpu.memory_space<vmem>>, vector<1x16x24xbf16>,
    %c0_41 = arith.constant 0 : index
    %c1_42 = arith.constant 1 : index
    %c2_43 = arith.constant 2 : index
    %c0_44 = arith.constant 0 : index
    %25 = vector.load %arg2[%c0_41, %c1_42, %c2_43, %c0_44] : memref<1x16x18x24xbf16, #tpu.memory_space<vmem>>, vector<1x15x16x24xbf16>
    %26 = vector.shape_cast %25 : vector<1x15x16x24xbf16> to vector<15x16x24xbf16>
    %c0_45 = arith.constant 0 : index
    %c0_46 = arith.constant 0 : index
    %c120 = arith.constant 120 : index
    %27 = vector.load %arg7[%c0_45, %c0_46, %c120] : memref<16x16x216xbf16, #tpu.memory_space<vmem>>, vector<15x16x24xbf16>
    tpu.vector_store %arg7[%c0_45, %c0_46, %c120], %26 {strides = array<i32>} : memref<16x16x216xbf16, #tpu.memory_space<vmem>>, vector<15x16x24xbf16>,
    %c0_47 = arith.constant 0 : index
    %c0_48 = arith.constant 0 : index
    %c2_49 = arith.constant 2 : index
    %c0_50 = arith.constant 0 : index
    %28 = vector.load %arg3[%c0_47, %c0_48, %c2_49, %c0_50] : memref<1x1x18x24xbf16, #tpu.memory_space<vmem>>, vector<1x1x16x24xbf16>
    %29 = vector.shape_cast %28 : vector<1x1x16x24xbf16> to vector<16x24xbf16>
    %c15_51 = arith.constant 15 : index
    %c0_52 = arith.constant 0 : index
    %c120_53 = arith.constant 120 : index
    %30 = vector.load %arg7[%c15_51, %c0_52, %c120_53] : memref<16x16x216xbf16, #tpu.memory_space<vmem>>, vector<1x16x24xbf16>
    %31 = vector.shape_cast %30 : vector<1x16x24xbf16> to vector<16x24xbf16>
    %32 = vector.shape_cast %29 : vector<16x24xbf16> to vector<1x16x24xbf16>
    tpu.vector_store %arg7[%c15_51, %c0_52, %c120_53], %32 {strides = array<i32>} : memref<16x16x216xbf16, #tpu.memory_space<vmem>>, vector<1x16x24xbf16>,
    %c0_54 = arith.constant 0 : index
    %c2_55 = arith.constant 2 : index
    %c0_56 = arith.constant 0 : index
    %c0_57 = arith.constant 0 : index
    %33 = vector.load %arg2[%c0_54, %c2_55, %c0_56, %c0_57] : memref<1x16x18x24xbf16, #tpu.memory_space<vmem>>, vector<1x14x16x24xbf16>
    %34 = vector.shape_cast %33 : vector<1x14x16x24xbf16> to vector<14x16x24xbf16>
    %c0_58 = arith.constant 0 : index
    %c0_59 = arith.constant 0 : index
    %c144 = arith.constant 144 : index
    %35 = vector.load %arg7[%c0_58, %c0_59, %c144] : memref<16x16x216xbf16, #tpu.memory_space<vmem>>, vector<14x16x24xbf16>
    tpu.vector_store %arg7[%c0_58, %c0_59, %c144], %34 {strides = array<i32>} : memref<16x16x216xbf16, #tpu.memory_space<vmem>>, vector<14x16x24xbf16>,
    %c0_60 = arith.constant 0 : index
    %c0_61 = arith.constant 0 : index
    %c0_62 = arith.constant 0 : index
    %c0_63 = arith.constant 0 : index
    %36 = vector.load %arg3[%c0_60, %c0_61, %c0_62, %c0_63] : memref<1x1x18x24xbf16, #tpu.memory_space<vmem>>, vector<1x1x16x24xbf16>
    %37 = vector.shape_cast %36 : vector<1x1x16x24xbf16> to vector<16x24xbf16>
    %c14 = arith.constant 14 : index
    %c0_64 = arith.constant 0 : index
    %c144_65 = arith.constant 144 : index
    %38 = vector.load %arg7[%c14, %c0_64, %c144_65] : memref<16x16x216xbf16, #tpu.memory_space<vmem>>, vector<1x16x24xbf16>
    %39 = vector.shape_cast %38 : vector<1x16x24xbf16> to vector<16x24xbf16>
    %40 = vector.shape_cast %37 : vector<16x24xbf16> to vector<1x16x24xbf16>
    tpu.vector_store %arg7[%c14, %c0_64, %c144_65], %40 {strides = array<i32>} : memref<16x16x216xbf16, #tpu.memory_space<vmem>>, vector<1x16x24xbf16>,
    %c0_66 = arith.constant 0 : index
    %c0_67 = arith.constant 0 : index
    %c0_68 = arith.constant 0 : index
    %c0_69 = arith.constant 0 : index
    %41 = vector.load %arg4[%c0_66, %c0_67, %c0_68, %c0_69] : memref<1x1x18x24xbf16, #tpu.memory_space<vmem>>, vector<1x1x16x24xbf16>
    %42 = vector.shape_cast %41 : vector<1x1x16x24xbf16> to vector<16x24xbf16>
    %c15_70 = arith.constant 15 : index
    %c0_71 = arith.constant 0 : index
    %c144_72 = arith.constant 144 : index
    %43 = vector.load %arg7[%c15_70, %c0_71, %c144_72] : memref<16x16x216xbf16, #tpu.memory_space<vmem>>, vector<1x16x24xbf16>
    %44 = vector.shape_cast %43 : vector<1x16x24xbf16> to vector<16x24xbf16>
    %45 = vector.shape_cast %42 : vector<16x24xbf16> to vector<1x16x24xbf16>
    tpu.vector_store %arg7[%c15_70, %c0_71, %c144_72], %45 {strides = array<i32>} : memref<16x16x216xbf16, #tpu.memory_space<vmem>>, vector<1x16x24xbf16>,
    %c0_73 = arith.constant 0 : index
    %c2_74 = arith.constant 2 : index
    %c1_75 = arith.constant 1 : index
    %c0_76 = arith.constant 0 : index
    %46 = vector.load %arg2[%c0_73, %c2_74, %c1_75, %c0_76] : memref<1x16x18x24xbf16, #tpu.memory_space<vmem>>, vector<1x14x16x24xbf16>
    %47 = vector.shape_cast %46 : vector<1x14x16x24xbf16> to vector<14x16x24xbf16>
    %c0_77 = arith.constant 0 : index
    %c0_78 = arith.constant 0 : index
    %c168 = arith.constant 168 : index
    %48 = vector.load %arg7[%c0_77, %c0_78, %c168] : memref<16x16x216xbf16, #tpu.memory_space<vmem>>, vector<14x16x24xbf16>
    tpu.vector_store %arg7[%c0_77, %c0_78, %c168], %47 {strides = array<i32>} : memref<16x16x216xbf16, #tpu.memory_space<vmem>>, vector<14x16x24xbf16>,
    %c0_79 = arith.constant 0 : index
    %c0_80 = arith.constant 0 : index
    %c1_81 = arith.constant 1 : index
    %c0_82 = arith.constant 0 : index
    %49 = vector.load %arg3[%c0_79, %c0_80, %c1_81, %c0_82] : memref<1x1x18x24xbf16, #tpu.memory_space<vmem>>, vector<1x1x16x24xbf16>
    %50 = vector.shape_cast %49 : vector<1x1x16x24xbf16> to vector<16x24xbf16>
    %c14_83 = arith.constant 14 : index
    %c0_84 = arith.constant 0 : index
    %c168_85 = arith.constant 168 : index
    %51 = vector.load %arg7[%c14_83, %c0_84, %c168_85] : memref<16x16x216xbf16, #tpu.memory_space<vmem>>, vector<1x16x24xbf16>
    %52 = vector.shape_cast %51 : vector<1x16x24xbf16> to vector<16x24xbf16>
    %53 = vector.shape_cast %50 : vector<16x24xbf16> to vector<1x16x24xbf16>
    tpu.vector_store %arg7[%c14_83, %c0_84, %c168_85], %53 {strides = array<i32>} : memref<16x16x216xbf16, #tpu.memory_space<vmem>>, vector<1x16x24xbf16>,
    %c0_86 = arith.constant 0 : index
    %c0_87 = arith.constant 0 : index
    %c1_88 = arith.constant 1 : index
    %c0_89 = arith.constant 0 : index
    %54 = vector.load %arg4[%c0_86, %c0_87, %c1_88, %c0_89] : memref<1x1x18x24xbf16, #tpu.memory_space<vmem>>, vector<1x1x16x24xbf16>
    %55 = vector.shape_cast %54 : vector<1x1x16x24xbf16> to vector<16x24xbf16>
    %c15_90 = arith.constant 15 : index
    %c0_91 = arith.constant 0 : index
    %c168_92 = arith.constant 168 : index
    %56 = vector.load %arg7[%c15_90, %c0_91, %c168_92] : memref<16x16x216xbf16, #tpu.memory_space<vmem>>, vector<1x16x24xbf16>
    %57 = vector.shape_cast %56 : vector<1x16x24xbf16> to vector<16x24xbf16>
    %58 = vector.shape_cast %55 : vector<16x24xbf16> to vector<1x16x24xbf16>
    tpu.vector_store %arg7[%c15_90, %c0_91, %c168_92], %58 {strides = array<i32>} : memref<16x16x216xbf16, #tpu.memory_space<vmem>>, vector<1x16x24xbf16>,
    %c0_93 = arith.constant 0 : index
    %c2_94 = arith.constant 2 : index
    %c2_95 = arith.constant 2 : index
    %c0_96 = arith.constant 0 : index
    %59 = vector.load %arg2[%c0_93, %c2_94, %c2_95, %c0_96] : memref<1x16x18x24xbf16, #tpu.memory_space<vmem>>, vector<1x14x16x24xbf16>
    %60 = vector.shape_cast %59 : vector<1x14x16x24xbf16> to vector<14x16x24xbf16>
    %c0_97 = arith.constant 0 : index
    %c0_98 = arith.constant 0 : index
    %c192 = arith.constant 192 : index
    %61 = vector.load %arg7[%c0_97, %c0_98, %c192] : memref<16x16x216xbf16, #tpu.memory_space<vmem>>, vector<14x16x24xbf16>
    tpu.vector_store %arg7[%c0_97, %c0_98, %c192], %60 {strides = array<i32>} : memref<16x16x216xbf16, #tpu.memory_space<vmem>>, vector<14x16x24xbf16>,
    %c0_99 = arith.constant 0 : index
    %c0_100 = arith.constant 0 : index
    %c2_101 = arith.constant 2 : index
    %c0_102 = arith.constant 0 : index
    %62 = vector.load %arg3[%c0_99, %c0_100, %c2_101, %c0_102] : memref<1x1x18x24xbf16, #tpu.memory_space<vmem>>, vector<1x1x16x24xbf16>
    %63 = vector.shape_cast %62 : vector<1x1x16x24xbf16> to vector<16x24xbf16>
    %c14_103 = arith.constant 14 : index
    %c0_104 = arith.constant 0 : index
    %c192_105 = arith.constant 192 : index
    %64 = vector.load %arg7[%c14_103, %c0_104, %c192_105] : memref<16x16x216xbf16, #tpu.memory_space<vmem>>, vector<1x16x24xbf16>
    %65 = vector.shape_cast %64 : vector<1x16x24xbf16> to vector<16x24xbf16>
    %66 = vector.shape_cast %63 : vector<16x24xbf16> to vector<1x16x24xbf16>
    tpu.vector_store %arg7[%c14_103, %c0_104, %c192_105], %66 {strides = array<i32>} : memref<16x16x216xbf16, #tpu.memory_space<vmem>>, vector<1x16x24xbf16>,
    %c0_106 = arith.constant 0 : index
    %c0_107 = arith.constant 0 : index
    %c2_108 = arith.constant 2 : index
    %c0_109 = arith.constant 0 : index
    %67 = vector.load %arg4[%c0_106, %c0_107, %c2_108, %c0_109] : memref<1x1x18x24xbf16, #tpu.memory_space<vmem>>, vector<1x1x16x24xbf16>
    %68 = vector.shape_cast %67 : vector<1x1x16x24xbf16> to vector<16x24xbf16>
    %c15_110 = arith.constant 15 : index
    %c0_111 = arith.constant 0 : index
    %c192_112 = arith.constant 192 : index
    %69 = vector.load %arg7[%c15_110, %c0_111, %c192_112] : memref<16x16x216xbf16, #tpu.memory_space<vmem>>, vector<1x16x24xbf16>
    %70 = vector.shape_cast %69 : vector<1x16x24xbf16> to vector<16x24xbf16>
    %71 = vector.shape_cast %68 : vector<16x24xbf16> to vector<1x16x24xbf16>
    tpu.vector_store %arg7[%c15_110, %c0_111, %c192_112], %71 {strides = array<i32>} : memref<16x16x216xbf16, #tpu.memory_space<vmem>>, vector<1x16x24xbf16>,
    %c0_113 = arith.constant 0 : index
    %c0_114 = arith.constant 0 : index
    %c0_115 = arith.constant 0 : index
    %72 = vector.load %arg7[%c0_113, %c0_114, %c0_115] : memref<16x16x216xbf16, #tpu.memory_space<vmem>>, vector<16x16x216xbf16>
    %73 = vector.shape_cast %72 : vector<16x16x216xbf16> to vector<256x216xbf16>
    %c0_116 = arith.constant 0 : index
    %c0_117 = arith.constant 0 : index
    %74 = vector.load %arg5[%c0_116, %c0_117] : memref<216x256xbf16, #tpu.memory_space<vmem>>, vector<216x256xbf16>
    %cst = arith.constant dense<0.000000e+00> : vector<256x256xf32>
    %75 = tpu.matmul %73, %74, %cst {dimension_numbers = #tpu.dot_dimension_numbers<[1], [0], [0], [1], [0, 0, 1, 1], [], []>} : vector<256x216xbf16>, vector<216x256xbf16>, vector<256x256xf32> -> vector<256x256xf32>
    %cst_118 = arith.constant 0.000000e+00 : f32
    %76 = vector.broadcast %cst_118 : f32 to vector<256x256xf32>
    %77 = arith.maximumf %75, %76 : vector<256x256xf32>
    %78 = arith.truncf %77 : vector<256x256xf32> to vector<256x256xbf16>
    %79 = vector.shape_cast %78 : vector<256x256xbf16> to vector<16x16x256xbf16>
    %c0_119 = arith.constant 0 : index
    %c0_120 = arith.constant 0 : index
    %c0_121 = arith.constant 0 : index
    %c0_122 = arith.constant 0 : index
    %80 = vector.load %arg6[%c0_119, %c0_120, %c0_121, %c0_122] : memref<1x16x16x256xbf16, #tpu.memory_space<vmem>>, vector<1x16x16x256xbf16>
    %81 = vector.shape_cast %80 : vector<1x16x16x256xbf16> to vector<16x16x256xbf16>
    %82 = vector.shape_cast %79 : vector<16x16x256xbf16> to vector<1x16x16x256xbf16>
    tpu.vector_store %arg6[%c0_119, %c0_120, %c0_121, %c0_122], %82 {strides = array<i32>} : memref<1x16x16x256xbf16, #tpu.memory_space<vmem>>, vector<1x16x16x256xbf16>,
    return
  }
  func.func @transform_0(%arg0: i32, %arg1: i32) -> (i32, i32, i32, i32) {
    %c0_i32 = arith.constant 0 : i32
    %c0_i32_0 = arith.constant 0 : i32
    %c0_i32_1 = arith.constant 0 : i32
    return %arg0, %arg1, %c0_i32, %c0_i32_0 : i32, i32, i32, i32
  }
  func.func @transform_1(%arg0: i32, %arg1: i32) -> (i32, i32, i32, i32) {
    %c1_i32 = arith.constant 1 : i32
    %0 = arith.addi %arg1, %c1_i32 : i32
    %c16_i32 = arith.constant 16 : i32
    %1 = arith.muli %0, %c16_i32 : i32
    %c0_i32 = arith.constant 0 : i32
    %c0_i32_0 = arith.constant 0 : i32
    %c0_i32_1 = arith.constant 0 : i32
    return %arg0, %1, %c0_i32, %c0_i32_0 : i32, i32, i32, i32
  }
  func.func @transform_2(%arg0: i32, %arg1: i32) -> (i32, i32, i32, i32) {
    %c1_i32 = arith.constant 1 : i32
    %0 = arith.addi %arg1, %c1_i32 : i32
    %c16_i32 = arith.constant 16 : i32
    %1 = arith.muli %0, %c16_i32 : i32
    %c1_i32_0 = arith.constant 1 : i32
    %2 = arith.addi %1, %c1_i32_0 : i32
    %c0_i32 = arith.constant 0 : i32
    %c0_i32_1 = arith.constant 0 : i32
    %c0_i32_2 = arith.constant 0 : i32
    return %arg0, %2, %c0_i32, %c0_i32_1 : i32, i32, i32, i32
  }
  func.func @transform_3(%arg0: i32, %arg1: i32) -> (i32, i32) {
    %c0_i32 = arith.constant 0 : i32
    %c0_i32_0 = arith.constant 0 : i32
    %c0_i32_1 = arith.constant 0 : i32
    return %c0_i32, %c0_i32_0 : i32, i32
  }
  func.func @transform_4(%arg0: i32, %arg1: i32) -> (i32, i32, i32, i32) {
    %c0_i32 = arith.constant 0 : i32
    %c0_i32_0 = arith.constant 0 : i32
    %c0_i32_1 = arith.constant 0 : i32
    return %arg0, %arg1, %c0_i32, %c0_i32_0 : i32, i32, i32, i32
  }
}

module attributes {stable_mosaic.version = 11 : i64} {
  func.func @_conv3x3_kernel(%arg0: i32, %arg1: i32, %arg2: memref<1x16x18x256xbf16, #tpu.memory_space<vmem>>, %arg3: memref<1x1x18x256xbf16, #tpu.memory_space<vmem>>, %arg4: memref<1x1x18x256xbf16, #tpu.memory_space<vmem>>, %arg5: memref<2304x128xbf16, #tpu.memory_space<vmem>>, %arg6: memref<128x64xbf16, #tpu.memory_space<vmem>>, %arg7: memref<1x64xf32, #tpu.memory_space<vmem>>, %arg8: memref<1x16x16x64xf32, #tpu.memory_space<vmem>>, %arg9: memref<16x16x2304xbf16, #tpu.memory_space<vmem>>) attributes {dimension_semantics = [#tpu.dimension_semantics<parallel>, #tpu.dimension_semantics<parallel>], iteration_bounds = array<i64: 2, 1>, scalar_prefetch = 0 : i64, scratch_operands = 1 : i64, tpu.core_type = #tpu.core_type<tc>, window_params = [{transform_indices = @transform_0, window_bounds = array<i64: 1, 16, 18, 256>}, {transform_indices = @transform_1, window_bounds = array<i64: 1, 1, 18, 256>}, {transform_indices = @transform_2, window_bounds = array<i64: 1, 1, 18, 256>}, {pipeline_mode = #tpu.pipeline_mode<synchronous>, transform_indices = @transform_3, window_bounds = array<i64: 2304, 128>}, {pipeline_mode = #tpu.pipeline_mode<synchronous>, transform_indices = @transform_4, window_bounds = array<i64: 128, 64>}, {pipeline_mode = #tpu.pipeline_mode<synchronous>, transform_indices = @transform_5, window_bounds = array<i64: 1, 64>}, {transform_indices = @transform_6, window_bounds = array<i64: 1, 16, 16, 64>}]} {
    %c0 = arith.constant 0 : index
    %c0_0 = arith.constant 0 : index
    %c0_1 = arith.constant 0 : index
    %c0_2 = arith.constant 0 : index
    %0 = vector.load %arg2[%c0, %c0_0, %c0_1, %c0_2] : memref<1x16x18x256xbf16, #tpu.memory_space<vmem>>, vector<1x16x16x256xbf16>
    %1 = vector.shape_cast %0 : vector<1x16x16x256xbf16> to vector<16x16x256xbf16>
    %c0_3 = arith.constant 0 : index
    %c0_4 = arith.constant 0 : index
    %c0_5 = arith.constant 0 : index
    %2 = vector.load %arg9[%c0_3, %c0_4, %c0_5] : memref<16x16x2304xbf16, #tpu.memory_space<vmem>>, vector<16x16x256xbf16>
    tpu.vector_store %arg9[%c0_3, %c0_4, %c0_5], %1 {strides = array<i32>} : memref<16x16x2304xbf16, #tpu.memory_space<vmem>>, vector<16x16x256xbf16>,
    %c0_6 = arith.constant 0 : index
    %c0_7 = arith.constant 0 : index
    %c1 = arith.constant 1 : index
    %c0_8 = arith.constant 0 : index
    %3 = vector.load %arg2[%c0_6, %c0_7, %c1, %c0_8] : memref<1x16x18x256xbf16, #tpu.memory_space<vmem>>, vector<1x16x16x256xbf16>
    %4 = vector.shape_cast %3 : vector<1x16x16x256xbf16> to vector<16x16x256xbf16>
    %c0_9 = arith.constant 0 : index
    %c0_10 = arith.constant 0 : index
    %c256 = arith.constant 256 : index
    %5 = vector.load %arg9[%c0_9, %c0_10, %c256] : memref<16x16x2304xbf16, #tpu.memory_space<vmem>>, vector<16x16x256xbf16>
    tpu.vector_store %arg9[%c0_9, %c0_10, %c256], %4 {strides = array<i32>} : memref<16x16x2304xbf16, #tpu.memory_space<vmem>>, vector<16x16x256xbf16>,
    %c0_11 = arith.constant 0 : index
    %c0_12 = arith.constant 0 : index
    %c2 = arith.constant 2 : index
    %c0_13 = arith.constant 0 : index
    %6 = vector.load %arg2[%c0_11, %c0_12, %c2, %c0_13] : memref<1x16x18x256xbf16, #tpu.memory_space<vmem>>, vector<1x16x16x256xbf16>
    %7 = vector.shape_cast %6 : vector<1x16x16x256xbf16> to vector<16x16x256xbf16>
    %c0_14 = arith.constant 0 : index
    %c0_15 = arith.constant 0 : index
    %c512 = arith.constant 512 : index
    %8 = vector.load %arg9[%c0_14, %c0_15, %c512] : memref<16x16x2304xbf16, #tpu.memory_space<vmem>>, vector<16x16x256xbf16>
    tpu.vector_store %arg9[%c0_14, %c0_15, %c512], %7 {strides = array<i32>} : memref<16x16x2304xbf16, #tpu.memory_space<vmem>>, vector<16x16x256xbf16>,
    %c0_16 = arith.constant 0 : index
    %c1_17 = arith.constant 1 : index
    %c0_18 = arith.constant 0 : index
    %c0_19 = arith.constant 0 : index
    %9 = vector.load %arg2[%c0_16, %c1_17, %c0_18, %c0_19] : memref<1x16x18x256xbf16, #tpu.memory_space<vmem>>, vector<1x15x16x256xbf16>
    %10 = vector.shape_cast %9 : vector<1x15x16x256xbf16> to vector<15x16x256xbf16>
    %c0_20 = arith.constant 0 : index
    %c0_21 = arith.constant 0 : index
    %c768 = arith.constant 768 : index
    %11 = vector.load %arg9[%c0_20, %c0_21, %c768] : memref<16x16x2304xbf16, #tpu.memory_space<vmem>>, vector<15x16x256xbf16>
    tpu.vector_store %arg9[%c0_20, %c0_21, %c768], %10 {strides = array<i32>} : memref<16x16x2304xbf16, #tpu.memory_space<vmem>>, vector<15x16x256xbf16>,
    %c0_22 = arith.constant 0 : index
    %c0_23 = arith.constant 0 : index
    %c0_24 = arith.constant 0 : index
    %c0_25 = arith.constant 0 : index
    %12 = vector.load %arg3[%c0_22, %c0_23, %c0_24, %c0_25] : memref<1x1x18x256xbf16, #tpu.memory_space<vmem>>, vector<1x1x16x256xbf16>
    %13 = vector.shape_cast %12 : vector<1x1x16x256xbf16> to vector<16x256xbf16>
    %c15 = arith.constant 15 : index
    %c0_26 = arith.constant 0 : index
    %c768_27 = arith.constant 768 : index
    %14 = vector.load %arg9[%c15, %c0_26, %c768_27] : memref<16x16x2304xbf16, #tpu.memory_space<vmem>>, vector<1x16x256xbf16>
    %15 = vector.shape_cast %14 : vector<1x16x256xbf16> to vector<16x256xbf16>
    %16 = vector.shape_cast %13 : vector<16x256xbf16> to vector<1x16x256xbf16>
    tpu.vector_store %arg9[%c15, %c0_26, %c768_27], %16 {strides = array<i32>} : memref<16x16x2304xbf16, #tpu.memory_space<vmem>>, vector<1x16x256xbf16>,
    %c0_28 = arith.constant 0 : index
    %c1_29 = arith.constant 1 : index
    %c1_30 = arith.constant 1 : index
    %c0_31 = arith.constant 0 : index
    %17 = vector.load %arg2[%c0_28, %c1_29, %c1_30, %c0_31] : memref<1x16x18x256xbf16, #tpu.memory_space<vmem>>, vector<1x15x16x256xbf16>
    %18 = vector.shape_cast %17 : vector<1x15x16x256xbf16> to vector<15x16x256xbf16>
    %c0_32 = arith.constant 0 : index
    %c0_33 = arith.constant 0 : index
    %c1024 = arith.constant 1024 : index
    %19 = vector.load %arg9[%c0_32, %c0_33, %c1024] : memref<16x16x2304xbf16, #tpu.memory_space<vmem>>, vector<15x16x256xbf16>
    tpu.vector_store %arg9[%c0_32, %c0_33, %c1024], %18 {strides = array<i32>} : memref<16x16x2304xbf16, #tpu.memory_space<vmem>>, vector<15x16x256xbf16>,
    %c0_34 = arith.constant 0 : index
    %c0_35 = arith.constant 0 : index
    %c1_36 = arith.constant 1 : index
    %c0_37 = arith.constant 0 : index
    %20 = vector.load %arg3[%c0_34, %c0_35, %c1_36, %c0_37] : memref<1x1x18x256xbf16, #tpu.memory_space<vmem>>, vector<1x1x16x256xbf16>
    %21 = vector.shape_cast %20 : vector<1x1x16x256xbf16> to vector<16x256xbf16>
    %c15_38 = arith.constant 15 : index
    %c0_39 = arith.constant 0 : index
    %c1024_40 = arith.constant 1024 : index
    %22 = vector.load %arg9[%c15_38, %c0_39, %c1024_40] : memref<16x16x2304xbf16, #tpu.memory_space<vmem>>, vector<1x16x256xbf16>
    %23 = vector.shape_cast %22 : vector<1x16x256xbf16> to vector<16x256xbf16>
    %24 = vector.shape_cast %21 : vector<16x256xbf16> to vector<1x16x256xbf16>
    tpu.vector_store %arg9[%c15_38, %c0_39, %c1024_40], %24 {strides = array<i32>} : memref<16x16x2304xbf16, #tpu.memory_space<vmem>>, vector<1x16x256xbf16>,
    %c0_41 = arith.constant 0 : index
    %c1_42 = arith.constant 1 : index
    %c2_43 = arith.constant 2 : index
    %c0_44 = arith.constant 0 : index
    %25 = vector.load %arg2[%c0_41, %c1_42, %c2_43, %c0_44] : memref<1x16x18x256xbf16, #tpu.memory_space<vmem>>, vector<1x15x16x256xbf16>
    %26 = vector.shape_cast %25 : vector<1x15x16x256xbf16> to vector<15x16x256xbf16>
    %c0_45 = arith.constant 0 : index
    %c0_46 = arith.constant 0 : index
    %c1280 = arith.constant 1280 : index
    %27 = vector.load %arg9[%c0_45, %c0_46, %c1280] : memref<16x16x2304xbf16, #tpu.memory_space<vmem>>, vector<15x16x256xbf16>
    tpu.vector_store %arg9[%c0_45, %c0_46, %c1280], %26 {strides = array<i32>} : memref<16x16x2304xbf16, #tpu.memory_space<vmem>>, vector<15x16x256xbf16>,
    %c0_47 = arith.constant 0 : index
    %c0_48 = arith.constant 0 : index
    %c2_49 = arith.constant 2 : index
    %c0_50 = arith.constant 0 : index
    %28 = vector.load %arg3[%c0_47, %c0_48, %c2_49, %c0_50] : memref<1x1x18x256xbf16, #tpu.memory_space<vmem>>, vector<1x1x16x256xbf16>
    %29 = vector.shape_cast %28 : vector<1x1x16x256xbf16> to vector<16x256xbf16>
    %c15_51 = arith.constant 15 : index
    %c0_52 = arith.constant 0 : index
    %c1280_53 = arith.constant 1280 : index
    %30 = vector.load %arg9[%c15_51, %c0_52, %c1280_53] : memref<16x16x2304xbf16, #tpu.memory_space<vmem>>, vector<1x16x256xbf16>
    %31 = vector.shape_cast %30 : vector<1x16x256xbf16> to vector<16x256xbf16>
    %32 = vector.shape_cast %29 : vector<16x256xbf16> to vector<1x16x256xbf16>
    tpu.vector_store %arg9[%c15_51, %c0_52, %c1280_53], %32 {strides = array<i32>} : memref<16x16x2304xbf16, #tpu.memory_space<vmem>>, vector<1x16x256xbf16>,
    %c0_54 = arith.constant 0 : index
    %c2_55 = arith.constant 2 : index
    %c0_56 = arith.constant 0 : index
    %c0_57 = arith.constant 0 : index
    %33 = vector.load %arg2[%c0_54, %c2_55, %c0_56, %c0_57] : memref<1x16x18x256xbf16, #tpu.memory_space<vmem>>, vector<1x14x16x256xbf16>
    %34 = vector.shape_cast %33 : vector<1x14x16x256xbf16> to vector<14x16x256xbf16>
    %c0_58 = arith.constant 0 : index
    %c0_59 = arith.constant 0 : index
    %c1536 = arith.constant 1536 : index
    %35 = vector.load %arg9[%c0_58, %c0_59, %c1536] : memref<16x16x2304xbf16, #tpu.memory_space<vmem>>, vector<14x16x256xbf16>
    tpu.vector_store %arg9[%c0_58, %c0_59, %c1536], %34 {strides = array<i32>} : memref<16x16x2304xbf16, #tpu.memory_space<vmem>>, vector<14x16x256xbf16>,
    %c0_60 = arith.constant 0 : index
    %c0_61 = arith.constant 0 : index
    %c0_62 = arith.constant 0 : index
    %c0_63 = arith.constant 0 : index
    %36 = vector.load %arg3[%c0_60, %c0_61, %c0_62, %c0_63] : memref<1x1x18x256xbf16, #tpu.memory_space<vmem>>, vector<1x1x16x256xbf16>
    %37 = vector.shape_cast %36 : vector<1x1x16x256xbf16> to vector<16x256xbf16>
    %c14 = arith.constant 14 : index
    %c0_64 = arith.constant 0 : index
    %c1536_65 = arith.constant 1536 : index
    %38 = vector.load %arg9[%c14, %c0_64, %c1536_65] : memref<16x16x2304xbf16, #tpu.memory_space<vmem>>, vector<1x16x256xbf16>
    %39 = vector.shape_cast %38 : vector<1x16x256xbf16> to vector<16x256xbf16>
    %40 = vector.shape_cast %37 : vector<16x256xbf16> to vector<1x16x256xbf16>
    tpu.vector_store %arg9[%c14, %c0_64, %c1536_65], %40 {strides = array<i32>} : memref<16x16x2304xbf16, #tpu.memory_space<vmem>>, vector<1x16x256xbf16>,
    %c0_66 = arith.constant 0 : index
    %c0_67 = arith.constant 0 : index
    %c0_68 = arith.constant 0 : index
    %c0_69 = arith.constant 0 : index
    %41 = vector.load %arg4[%c0_66, %c0_67, %c0_68, %c0_69] : memref<1x1x18x256xbf16, #tpu.memory_space<vmem>>, vector<1x1x16x256xbf16>
    %42 = vector.shape_cast %41 : vector<1x1x16x256xbf16> to vector<16x256xbf16>
    %c15_70 = arith.constant 15 : index
    %c0_71 = arith.constant 0 : index
    %c1536_72 = arith.constant 1536 : index
    %43 = vector.load %arg9[%c15_70, %c0_71, %c1536_72] : memref<16x16x2304xbf16, #tpu.memory_space<vmem>>, vector<1x16x256xbf16>
    %44 = vector.shape_cast %43 : vector<1x16x256xbf16> to vector<16x256xbf16>
    %45 = vector.shape_cast %42 : vector<16x256xbf16> to vector<1x16x256xbf16>
    tpu.vector_store %arg9[%c15_70, %c0_71, %c1536_72], %45 {strides = array<i32>} : memref<16x16x2304xbf16, #tpu.memory_space<vmem>>, vector<1x16x256xbf16>,
    %c0_73 = arith.constant 0 : index
    %c2_74 = arith.constant 2 : index
    %c1_75 = arith.constant 1 : index
    %c0_76 = arith.constant 0 : index
    %46 = vector.load %arg2[%c0_73, %c2_74, %c1_75, %c0_76] : memref<1x16x18x256xbf16, #tpu.memory_space<vmem>>, vector<1x14x16x256xbf16>
    %47 = vector.shape_cast %46 : vector<1x14x16x256xbf16> to vector<14x16x256xbf16>
    %c0_77 = arith.constant 0 : index
    %c0_78 = arith.constant 0 : index
    %c1792 = arith.constant 1792 : index
    %48 = vector.load %arg9[%c0_77, %c0_78, %c1792] : memref<16x16x2304xbf16, #tpu.memory_space<vmem>>, vector<14x16x256xbf16>
    tpu.vector_store %arg9[%c0_77, %c0_78, %c1792], %47 {strides = array<i32>} : memref<16x16x2304xbf16, #tpu.memory_space<vmem>>, vector<14x16x256xbf16>,
    %c0_79 = arith.constant 0 : index
    %c0_80 = arith.constant 0 : index
    %c1_81 = arith.constant 1 : index
    %c0_82 = arith.constant 0 : index
    %49 = vector.load %arg3[%c0_79, %c0_80, %c1_81, %c0_82] : memref<1x1x18x256xbf16, #tpu.memory_space<vmem>>, vector<1x1x16x256xbf16>
    %50 = vector.shape_cast %49 : vector<1x1x16x256xbf16> to vector<16x256xbf16>
    %c14_83 = arith.constant 14 : index
    %c0_84 = arith.constant 0 : index
    %c1792_85 = arith.constant 1792 : index
    %51 = vector.load %arg9[%c14_83, %c0_84, %c1792_85] : memref<16x16x2304xbf16, #tpu.memory_space<vmem>>, vector<1x16x256xbf16>
    %52 = vector.shape_cast %51 : vector<1x16x256xbf16> to vector<16x256xbf16>
    %53 = vector.shape_cast %50 : vector<16x256xbf16> to vector<1x16x256xbf16>
    tpu.vector_store %arg9[%c14_83, %c0_84, %c1792_85], %53 {strides = array<i32>} : memref<16x16x2304xbf16, #tpu.memory_space<vmem>>, vector<1x16x256xbf16>,
    %c0_86 = arith.constant 0 : index
    %c0_87 = arith.constant 0 : index
    %c1_88 = arith.constant 1 : index
    %c0_89 = arith.constant 0 : index
    %54 = vector.load %arg4[%c0_86, %c0_87, %c1_88, %c0_89] : memref<1x1x18x256xbf16, #tpu.memory_space<vmem>>, vector<1x1x16x256xbf16>
    %55 = vector.shape_cast %54 : vector<1x1x16x256xbf16> to vector<16x256xbf16>
    %c15_90 = arith.constant 15 : index
    %c0_91 = arith.constant 0 : index
    %c1792_92 = arith.constant 1792 : index
    %56 = vector.load %arg9[%c15_90, %c0_91, %c1792_92] : memref<16x16x2304xbf16, #tpu.memory_space<vmem>>, vector<1x16x256xbf16>
    %57 = vector.shape_cast %56 : vector<1x16x256xbf16> to vector<16x256xbf16>
    %58 = vector.shape_cast %55 : vector<16x256xbf16> to vector<1x16x256xbf16>
    tpu.vector_store %arg9[%c15_90, %c0_91, %c1792_92], %58 {strides = array<i32>} : memref<16x16x2304xbf16, #tpu.memory_space<vmem>>, vector<1x16x256xbf16>,
    %c0_93 = arith.constant 0 : index
    %c2_94 = arith.constant 2 : index
    %c2_95 = arith.constant 2 : index
    %c0_96 = arith.constant 0 : index
    %59 = vector.load %arg2[%c0_93, %c2_94, %c2_95, %c0_96] : memref<1x16x18x256xbf16, #tpu.memory_space<vmem>>, vector<1x14x16x256xbf16>
    %60 = vector.shape_cast %59 : vector<1x14x16x256xbf16> to vector<14x16x256xbf16>
    %c0_97 = arith.constant 0 : index
    %c0_98 = arith.constant 0 : index
    %c2048 = arith.constant 2048 : index
    %61 = vector.load %arg9[%c0_97, %c0_98, %c2048] : memref<16x16x2304xbf16, #tpu.memory_space<vmem>>, vector<14x16x256xbf16>
    tpu.vector_store %arg9[%c0_97, %c0_98, %c2048], %60 {strides = array<i32>} : memref<16x16x2304xbf16, #tpu.memory_space<vmem>>, vector<14x16x256xbf16>,
    %c0_99 = arith.constant 0 : index
    %c0_100 = arith.constant 0 : index
    %c2_101 = arith.constant 2 : index
    %c0_102 = arith.constant 0 : index
    %62 = vector.load %arg3[%c0_99, %c0_100, %c2_101, %c0_102] : memref<1x1x18x256xbf16, #tpu.memory_space<vmem>>, vector<1x1x16x256xbf16>
    %63 = vector.shape_cast %62 : vector<1x1x16x256xbf16> to vector<16x256xbf16>
    %c14_103 = arith.constant 14 : index
    %c0_104 = arith.constant 0 : index
    %c2048_105 = arith.constant 2048 : index
    %64 = vector.load %arg9[%c14_103, %c0_104, %c2048_105] : memref<16x16x2304xbf16, #tpu.memory_space<vmem>>, vector<1x16x256xbf16>
    %65 = vector.shape_cast %64 : vector<1x16x256xbf16> to vector<16x256xbf16>
    %66 = vector.shape_cast %63 : vector<16x256xbf16> to vector<1x16x256xbf16>
    tpu.vector_store %arg9[%c14_103, %c0_104, %c2048_105], %66 {strides = array<i32>} : memref<16x16x2304xbf16, #tpu.memory_space<vmem>>, vector<1x16x256xbf16>,
    %c0_106 = arith.constant 0 : index
    %c0_107 = arith.constant 0 : index
    %c2_108 = arith.constant 2 : index
    %c0_109 = arith.constant 0 : index
    %67 = vector.load %arg4[%c0_106, %c0_107, %c2_108, %c0_109] : memref<1x1x18x256xbf16, #tpu.memory_space<vmem>>, vector<1x1x16x256xbf16>
    %68 = vector.shape_cast %67 : vector<1x1x16x256xbf16> to vector<16x256xbf16>
    %c15_110 = arith.constant 15 : index
    %c0_111 = arith.constant 0 : index
    %c2048_112 = arith.constant 2048 : index
    %69 = vector.load %arg9[%c15_110, %c0_111, %c2048_112] : memref<16x16x2304xbf16, #tpu.memory_space<vmem>>, vector<1x16x256xbf16>
    %70 = vector.shape_cast %69 : vector<1x16x256xbf16> to vector<16x256xbf16>
    %71 = vector.shape_cast %68 : vector<16x256xbf16> to vector<1x16x256xbf16>
    tpu.vector_store %arg9[%c15_110, %c0_111, %c2048_112], %71 {strides = array<i32>} : memref<16x16x2304xbf16, #tpu.memory_space<vmem>>, vector<1x16x256xbf16>,
    %c0_113 = arith.constant 0 : index
    %c0_114 = arith.constant 0 : index
    %c0_115 = arith.constant 0 : index
    %72 = vector.load %arg9[%c0_113, %c0_114, %c0_115] : memref<16x16x2304xbf16, #tpu.memory_space<vmem>>, vector<16x16x2304xbf16>
    %73 = vector.shape_cast %72 : vector<16x16x2304xbf16> to vector<256x2304xbf16>
    %c0_116 = arith.constant 0 : index
    %c0_117 = arith.constant 0 : index
    %74 = vector.load %arg5[%c0_116, %c0_117] : memref<2304x128xbf16, #tpu.memory_space<vmem>>, vector<2304x128xbf16>
    %cst = arith.constant dense<0.000000e+00> : vector<256x128xf32>
    %75 = tpu.matmul %73, %74, %cst {dimension_numbers = #tpu.dot_dimension_numbers<[1], [0], [0], [1], [0, 0, 1, 1], [], []>} : vector<256x2304xbf16>, vector<2304x128xbf16>, vector<256x128xf32> -> vector<256x128xf32>
    %cst_118 = arith.constant 0.000000e+00 : f32
    %76 = vector.broadcast %cst_118 : f32 to vector<256x128xf32>
    %77 = arith.maximumf %75, %76 : vector<256x128xf32>
    %78 = arith.truncf %77 : vector<256x128xf32> to vector<256x128xbf16>
    %c0_119 = arith.constant 0 : index
    %c0_120 = arith.constant 0 : index
    %79 = vector.load %arg6[%c0_119, %c0_120] : memref<128x64xbf16, #tpu.memory_space<vmem>>, vector<128x64xbf16>
    %cst_121 = arith.constant dense<0.000000e+00> : vector<256x64xf32>
    %80 = tpu.matmul %78, %79, %cst_121 {dimension_numbers = #tpu.dot_dimension_numbers<[1], [0], [0], [1], [0, 0, 1, 1], [], []>} : vector<256x128xbf16>, vector<128x64xbf16>, vector<256x64xf32> -> vector<256x64xf32>
    %c0_122 = arith.constant 0 : index
    %c0_123 = arith.constant 0 : index
    %81 = vector.load %arg7[%c0_122, %c0_123] : memref<1x64xf32, #tpu.memory_space<vmem>>, vector<1x64xf32>
    %82 = vector.broadcast %81 : vector<1x64xf32> to vector<256x64xf32>
    %83 = arith.addf %80, %82 : vector<256x64xf32>
    %84 = vector.shape_cast %83 : vector<256x64xf32> to vector<16x16x64xf32>
    %c0_124 = arith.constant 0 : index
    %c0_125 = arith.constant 0 : index
    %c0_126 = arith.constant 0 : index
    %c0_127 = arith.constant 0 : index
    %85 = vector.load %arg8[%c0_124, %c0_125, %c0_126, %c0_127] : memref<1x16x16x64xf32, #tpu.memory_space<vmem>>, vector<1x16x16x64xf32>
    %86 = vector.shape_cast %85 : vector<1x16x16x64xf32> to vector<16x16x64xf32>
    %87 = vector.shape_cast %84 : vector<16x16x64xf32> to vector<1x16x16x64xf32>
    tpu.vector_store %arg8[%c0_124, %c0_125, %c0_126, %c0_127], %87 {strides = array<i32>} : memref<1x16x16x64xf32, #tpu.memory_space<vmem>>, vector<1x16x16x64xf32>,
    return
  }
  func.func @transform_0(%arg0: i32, %arg1: i32) -> (i32, i32, i32, i32) {
    %c0_i32 = arith.constant 0 : i32
    %c0_i32_0 = arith.constant 0 : i32
    %c0_i32_1 = arith.constant 0 : i32
    return %arg0, %arg1, %c0_i32, %c0_i32_0 : i32, i32, i32, i32
  }
  func.func @transform_1(%arg0: i32, %arg1: i32) -> (i32, i32, i32, i32) {
    %c1_i32 = arith.constant 1 : i32
    %0 = arith.addi %arg1, %c1_i32 : i32
    %c16_i32 = arith.constant 16 : i32
    %1 = arith.muli %0, %c16_i32 : i32
    %c0_i32 = arith.constant 0 : i32
    %c0_i32_0 = arith.constant 0 : i32
    %c0_i32_1 = arith.constant 0 : i32
    return %arg0, %1, %c0_i32, %c0_i32_0 : i32, i32, i32, i32
  }
  func.func @transform_2(%arg0: i32, %arg1: i32) -> (i32, i32, i32, i32) {
    %c1_i32 = arith.constant 1 : i32
    %0 = arith.addi %arg1, %c1_i32 : i32
    %c16_i32 = arith.constant 16 : i32
    %1 = arith.muli %0, %c16_i32 : i32
    %c1_i32_0 = arith.constant 1 : i32
    %2 = arith.addi %1, %c1_i32_0 : i32
    %c0_i32 = arith.constant 0 : i32
    %c0_i32_1 = arith.constant 0 : i32
    %c0_i32_2 = arith.constant 0 : i32
    return %arg0, %2, %c0_i32, %c0_i32_1 : i32, i32, i32, i32
  }
  func.func @transform_3(%arg0: i32, %arg1: i32) -> (i32, i32) {
    %c0_i32 = arith.constant 0 : i32
    %c0_i32_0 = arith.constant 0 : i32
    %c0_i32_1 = arith.constant 0 : i32
    return %c0_i32, %c0_i32_0 : i32, i32
  }
  func.func @transform_4(%arg0: i32, %arg1: i32) -> (i32, i32) {
    %c0_i32 = arith.constant 0 : i32
    %c0_i32_0 = arith.constant 0 : i32
    %c0_i32_1 = arith.constant 0 : i32
    return %c0_i32, %c0_i32_0 : i32, i32
  }
  func.func @transform_5(%arg0: i32, %arg1: i32) -> (i32, i32) {
    %c0_i32 = arith.constant 0 : i32
    %c0_i32_0 = arith.constant 0 : i32
    %c0_i32_1 = arith.constant 0 : i32
    return %c0_i32, %c0_i32_0 : i32, i32
  }
  func.func @transform_6(%arg0: i32, %arg1: i32) -> (i32, i32, i32, i32) {
    %c0_i32 = arith.constant 0 : i32
    %c0_i32_0 = arith.constant 0 : i32
    %c0_i32_1 = arith.constant 0 : i32
    return %arg0, %arg1, %c0_i32, %c0_i32_0 : i32, i32, i32, i32
  }
}

</mosaic_0001>

<bundles_post_ra>
// kernel: decoder_forward.4
= control target key start
LH: loop header
LB: loop body
LE: loop exit
PB: predicated region body
PF: predicated region fallthrough
CT: control target
= control target key end

     0   :  { %s744_s9 = smov 0   ;;  %s836_s0 = inlined_call_operand.vmem [shape: bf16[512,16], index: 0, kind: input, shape index: {}]   ;;  %s837_s1 = inlined_call_operand.vmem [shape: bf16[16,8], index: 1, kind: input, shape index: {}]   ;;  %s838_s2 = inlined_call_operand.vmem [shape: bf16[512,8], index: 2, kind: output, shape index: {}]  }
   0x1 LB: > { %s599_s10 = sadd.s32 4294967295, %s727_s9   ;;  %p603_p0 = scmp.ge.s32.totalorder %s727_s9, 1  ;;  %s727_s9 = sphi %s744_s9, %s12_s9  }
   0x2   : > { %p113_p1 = scmp.lt.s32.totalorder %s727_s9, 3 }
   0x4   : > { %p114_p2 = pnand %p603_p0, %p113_p1 }
   0x5   : > { %v704_v0 = vld [vmem:[%s837_s1] sm:$0xff] (!%p114_p2)   ;;  %s604_s13 = sshll.u32 (!%p114_p2), %s599_s10, 5  ;;  %vm268_vm0 = vcmask (!%p114_p2), 130048   ;;  %s606_s18 = sshll.u32 (!%p114_p2), %s599_s10, 4  ;;  %vm526_vm1 = vcmask (!%p114_p2), 64512  }
   0x6   : > { %117 = sbr.rel (%p114_p2) target bundleno = 263 (0x107), region = 28  ;;  %p136_p3 = scmp.lt.s32.totalorder (!%p114_p2), %s604_s13, 63  ;;  %660 = vmatprep.subr.bf16.mxu0 (!%p114_p2), %v704_v0  ;;  %694 = vmatprep.subr.bf16.mxu1 (!%p114_p2), %v704_v0 }
   0x7   : > { %661 = vmatpush3.bf16.msra.mxu0 (!%p114_p2), %v704_v0  ;;  %695 = vmatpush3.bf16.msra.mxu1 (!%p114_p2), %v704_v0  ;;  %p142_p4 = scmp.lt.s32.totalorder (!%p114_p2), %s606_s18, 31 }
   0xd   : > { %s840_s13 = smov (!%p136_p3, %s604_s13), 63  ;;  %s842_s18 = smov (!%p142_p4, %s606_s18), 31 }
   0xe   : > { %s605_s14 = sshll.u32 %s840_s13, 2  ;;  %s607_s19 = sshll.u32 %s842_s18, 3 }
   0xf   : > { %s760_s17 = scalar_lea.vmem %s836_s0, %s605_s14  ;;  %s799_s22 = scalar_lea.vmem %s838_s2, %s607_s19 }
  0x10   : > { %v705_v1 = vld [vmem:[%s760_s17] sm:$0xff]   ;;  %v707_v3 = vld [vmem:[%s760_s17 + $0x8] sm:$0xff]   ;;  %v709_v5 = vld [vmem:[%s760_s17 + $0x10] sm:$0xff]  }
  0x11   : > { %v706_v2 = vld [vmem:[%s760_s17 + $0x40] sm:$0xff]   ;;  %662 = vmatprep.mubr.msk.bf16.mxu0 %vm268_vm0, %v705_v1  ;;  %v708_v4 = vld [vmem:[%s760_s17 + $0x48] sm:$0xff]   ;;  %v710_v6 = vld [vmem:[%s760_s17 + $0x50] sm:$0xff]  }
  0x12   : > { %678 = vmatprep.mubr.msk.bf16.mxu1 %vm268_vm0, %v706_v2  ;;  %663 = vmatmul.mubr.msk.bf16.vlgmr.msra.gmra.mrb[0].mxu0 %vm268_vm0, %v707_v3  ;;  %v711_v7 = vld [vmem:[%s760_s17 + $0x18] sm:$0xff]   ;;  %v713_v9 = vld [vmem:[%s760_s17 + $0x20] sm:$0xff]   ;;  %v715_v11 = vld [vmem:[%s760_s17 + $0x28] sm:$0xff]  }
  0x13   : > { %679 = vmatmul.mubr.msk.bf16.vlgmr.msra.gmra.mrb[0].mxu1 %vm268_vm0, %v708_v4  ;;  %666 = vmatprep.mubr.msk.bf16.mxu0 %vm268_vm0, %v709_v5  ;;  %v712_v8 = vld [vmem:[%s760_s17 + $0x58] sm:$0xff]   ;;  %v714_v10 = vld [vmem:[%s760_s17 + $0x60] sm:$0xff]   ;;  %v716_v12 = vld [vmem:[%s760_s17 + $0x68] sm:$0xff]  }
  0x14   : > { %682 = vmatprep.mubr.msk.bf16.mxu1 %vm268_vm0, %v710_v6  ;;  %v717_v13 = vld [vmem:[%s760_s17 + $0x30] sm:$0xff]   ;;  %v719_v15 = vld [vmem:[%s760_s17 + $0x38] sm:$0xff]  }
  0x15   : > { %v718_v14 = vld [vmem:[%s760_s17 + $0x70] sm:$0xff]   ;;  %v720_v16 = vld [vmem:[%s760_s17 + $0x78] sm:$0xff]  }
  0x1a   : > { %667 = vmatmul.mubr.msk.bf16.gmra.mrb[4].mxu0 %vm268_vm0, %v711_v7 }
  0x1b   : > { %683 = vmatmul.mubr.msk.bf16.gmra.mrb[4].mxu1 %vm268_vm0, %v712_v8  ;;  %670 = vmatprep.mubr.msk.bf16.mxu0 %vm268_vm0, %v713_v9 }
  0x1c   : > { %686 = vmatprep.mubr.msk.bf16.mxu1 %vm268_vm0, %v714_v10 }
  0x22   : > { %671 = vmatmul.mubr.msk.bf16.gmra.mrb[8].mxu0 %vm268_vm0, %v715_v11 }
  0x23   : > { %687 = vmatmul.mubr.msk.bf16.gmra.mrb[8].mxu1 %vm268_vm0, %v716_v12  ;;  %674 = vmatprep.mubr.msk.bf16.mxu0 %vm268_vm0, %v717_v13 }
  0x24   : > { %690 = vmatprep.mubr.msk.bf16.mxu1 %vm268_vm0, %v718_v14 }
  0x2a   : > { %675 = vmatmul.mubr.msk.bf16.gmra.mrb[12].mxu0 %vm268_vm0, %v719_v15 }
  0x2b   : > { %691 = vmatmul.mubr.msk.bf16.gmra.mrb[12].mxu1 %vm268_vm0, %v720_v16 }
  0xe5   : > { %v664_v17 = vpop.f32.mrb[0].mxu0 }
  0xe6   : > { %v680_v18 = vpop.f32.mrb[0].mxu1  ;;  %v351_v19 = vpop.f32.mrb[1].mxu0  ;;  %v480_v22 = vmax.f32 %v664_v17, 0.0 }
  0xe7   : > { %v415_v20 = vpop.f32.mrb[1].mxu1  ;;  %v665_v21 = vpop.f32.mrb[2].mxu0  ;;  %v496_v26 = vmax.f32 %v680_v18, 0.0  ;;  %v478_v27 = vmax.f32 %v351_v19, 0.0 }
  0xe8   : > { %v481_v23 = vmax.f32 %v665_v21, 0.0  ;;  %v681_v24 = vpop.f32.mrb[2].mxu1  ;;  %v354_v25 = vpop.f32.mrb[3].mxu0  ;;  %v494_v31 = vmax.f32 %v415_v20, 0.0 }
  0xe9   : > { %v497_v28 = vmax.f32 %v681_v24, 0.0  ;;  %v479_v29 = vmax.f32 %v354_v25, 0.0  ;;  %v418_v30 = vpop.f32.mrb[3].mxu1 }
  0xea   : > { %v511_v32 = vpack.c.bf16 %v481_v23, %v480_v22  ;;  %v495_v33 = vmax.f32 %v418_v30, 0.0 }
  0xeb   : > { %v519_v34 = vpack.c.bf16 %v497_v28, %v496_v26  ;;  %v510_v35 = vpack.c.bf16 %v479_v29, %v478_v27 }
  0xec   : > { %528 = vst.msk [vmem:[%s799_s22 + $0x8] sm:$0xff] %vm526_vm1, %v511_v32  ;;  %v518_v36 = vpack.c.bf16 %v495_v33, %v494_v31 }
  0xed   : > { %536 = vst.msk [vmem:[%s799_s22 + $0x48] sm:$0xff] %vm526_vm1, %v519_v34  ;;  %527 = vst.msk [vmem:[%s799_s22] sm:$0xff] %vm526_vm1, %v510_v35  ;;  %v668_v37 = vpop.f32.mrb[4].mxu0 }
  0xee   : > { %535 = vst.msk [vmem:[%s799_s22 + $0x40] sm:$0xff] %vm526_vm1, %v518_v36  ;;  %v684_v38 = vpop.f32.mrb[4].mxu1  ;;  %v367_v39 = vpop.f32.mrb[5].mxu0  ;;  %v484_v42 = vmax.f32 %v668_v37, 0.0 }
  0xef   : > { %v431_v40 = vpop.f32.mrb[5].mxu1  ;;  %v669_v41 = vpop.f32.mrb[6].mxu0  ;;  %v500_v46 = vmax.f32 %v684_v38, 0.0  ;;  %v482_v47 = vmax.f32 %v367_v39, 0.0 }
  0xf0   : > { %v485_v43 = vmax.f32 %v669_v41, 0.0  ;;  %v685_v44 = vpop.f32.mrb[6].mxu1  ;;  %v370_v45 = vpop.f32.mrb[7].mxu0  ;;  %v498_v51 = vmax.f32 %v431_v40, 0.0 }
  0xf1   : > { %v501_v48 = vmax.f32 %v685_v44, 0.0  ;;  %v483_v49 = vmax.f32 %v370_v45, 0.0  ;;  %v434_v50 = vpop.f32.mrb[7].mxu1 }
  0xf2   : > { %v513_v52 = vpack.c.bf16 %v485_v43, %v484_v42  ;;  %v499_v53 = vmax.f32 %v434_v50, 0.0 }
  0xf3   : > { %v521_v54 = vpack.c.bf16 %v501_v48, %v500_v46  ;;  %v512_v55 = vpack.c.bf16 %v483_v49, %v482_v47 }
  0xf4   : > { %530 = vst.msk [vmem:[%s799_s22 + $0x18] sm:$0xff] %vm526_vm1, %v513_v52  ;;  %v520_v56 = vpack.c.bf16 %v499_v53, %v498_v51 }
  0xf5   : > { %538 = vst.msk [vmem:[%s799_s22 + $0x58] sm:$0xff] %vm526_vm1, %v521_v54  ;;  %529 = vst.msk [vmem:[%s799_s22 + $0x10] sm:$0xff] %vm526_vm1, %v512_v55  ;;  %v672_v57 = vpop.f32.mrb[8].mxu0 }
  0xf6   : > { %537 = vst.msk [vmem:[%s799_s22 + $0x50] sm:$0xff] %vm526_vm1, %v520_v56  ;;  %v688_v58 = vpop.f32.mrb[8].mxu1  ;;  %v383_v59 = vpop.f32.mrb[9].mxu0  ;;  %v488_v62 = vmax.f32 %v672_v57, 0.0 }
  0xf7   : > { %v447_v60 = vpop.f32.mrb[9].mxu1  ;;  %v673_v61 = vpop.f32.mrb[10].mxu0  ;;  %v504_v2 = vmax.f32 %v688_v58, 0.0  ;;  %v486_v3 = vmax.f32 %v383_v59, 0.0 }
  0xf8   : > { %v489_v63 = vmax.f32 %v673_v61, 0.0  ;;  %v689_v0 = vpop.f32.mrb[10].mxu1  ;;  %v386_v1 = vpop.f32.mrb[11].mxu0  ;;  %v502_v7 = vmax.f32 %v447_v60, 0.0 }
  0xf9   : > { %v505_v4 = vmax.f32 %v689_v0, 0.0  ;;  %v487_v5 = vmax.f32 %v386_v1, 0.0  ;;  %v450_v6 = vpop.f32.mrb[11].mxu1 }
  0xfa   : > { %v515_v8 = vpack.c.bf16 %v489_v63, %v488_v62  ;;  %v503_v9 = vmax.f32 %v450_v6, 0.0 }
  0xfb   : > { %v523_v10 = vpack.c.bf16 %v505_v4, %v504_v2  ;;  %v514_v11 = vpack.c.bf16 %v487_v5, %v486_v3 }
  0xfc   : > { %532 = vst.msk [vmem:[%s799_s22 + $0x28] sm:$0xff] %vm526_vm1, %v515_v8  ;;  %v522_v12 = vpack.c.bf16 %v503_v9, %v502_v7 }
  0xfd   : > { %540 = vst.msk [vmem:[%s799_s22 + $0x68] sm:$0xff] %vm526_vm1, %v523_v10  ;;  %531 = vst.msk [vmem:[%s799_s22 + $0x20] sm:$0xff] %vm526_vm1, %v514_v11  ;;  %v676_v13 = vpop.f32.mrb[12].mxu0 }
  0xfe   : > { %539 = vst.msk [vmem:[%s799_s22 + $0x60] sm:$0xff] %vm526_vm1, %v522_v12  ;;  %v692_v14 = vpop.f32.mrb[12].mxu1  ;;  %v399_v15 = vpop.f32.mrb[13].mxu0  ;;  %v492_v18 = vmax.f32 %v676_v13, 0.0 }
  0xff   : > { %v463_v16 = vpop.f32.mrb[13].mxu1  ;;  %v677_v17 = vpop.f32.mrb[14].mxu0  ;;  %v508_v22 = vmax.f32 %v692_v14, 0.0  ;;  %v490_v23 = vmax.f32 %v399_v15, 0.0 }
 0x100   : > { %v493_v19 = vmax.f32 %v677_v17, 0.0  ;;  %v693_v20 = vpop.f32.mrb[14].mxu1  ;;  %v402_v21 = vpop.f32.mrb[15].mxu0  ;;  %v506_v27 = vmax.f32 %v463_v16, 0.0 }
 0x101   : > { %v509_v24 = vmax.f32 %v693_v20, 0.0  ;;  %v491_v25 = vmax.f32 %v402_v21, 0.0  ;;  %v466_v26 = vpop.f32.mrb[15].mxu1 }
 0x102   : > { %v517_v28 = vpack.c.bf16 %v493_v19, %v492_v18  ;;  %v507_v29 = vmax.f32 %v466_v26, 0.0 }
 0x103   : > { %v525_v30 = vpack.c.bf16 %v509_v24, %v508_v22  ;;  %v516_v31 = vpack.c.bf16 %v491_v25, %v490_v23 }
 0x104   : > { %534 = vst.msk [vmem:[%s799_s22 + $0x38] sm:$0xff] %vm526_vm1, %v517_v28  ;;  %v524_v32 = vpack.c.bf16 %v507_v29, %v506_v27 }
 0x105   : > { %542 = vst.msk [vmem:[%s799_s22 + $0x78] sm:$0xff] %vm526_vm1, %v525_v30  ;;  %533 = vst.msk [vmem:[%s799_s22 + $0x30] sm:$0xff] %vm526_vm1, %v516_v31 }
 0x106   : > { %541 = vst.msk [vmem:[%s799_s22 + $0x70] sm:$0xff] %vm526_vm1, %v524_v32 }
 0x107 PF: > { %s12_s9 = sadd.s32 1, %s727_s9  }
 0x108   : > { %p9_p5 = scmp.ge.s32.totalorder %s12_s9, 4  }
 0x10a   :  { %11 = sbr.rel (!%p9_p5) target bundleno = 1 (0x1), region = 58 }

// kernel: decoder_forward.5
= control target key start
LH: loop header
LB: loop body
LE: loop exit
PB: predicated region body
PF: predicated region fallthrough
CT: control target
= control target key end

     0   :  { %s471_s9 = smov 0   ;;  %s502_s0 = inlined_call_operand.vmem [shape: bf16[128,32], index: 0, kind: input, shape index: {}]   ;;  %s503_s1 = inlined_call_operand.vmem [shape: bf16[32,16], index: 1, kind: input, shape index: {}]   ;;  %s504_s2 = inlined_call_operand.vmem [shape: bf16[128,16], index: 2, kind: output, shape index: {}]  }
   0x1 LB: > { %s375_s10 = sadd.s32 4294967295, %s454_s9   ;;  %p379_p0 = scmp.ge.s32.totalorder %s454_s9, 1  ;;  %s454_s9 = sphi %s471_s9, %s12_s9  }
   0x2   : > { %p113_p1 = scmp.lt.s32.totalorder %s454_s9, 3 }
   0x4   : > { %p114_p2 = pnand %p379_p0, %p113_p1 }
   0x5   : > { %v442_v0 = vld [vmem:[%s503_s1] sm:$0xff] (!%p114_p2)   ;;  %s380_s13 = sshll.u32 (!%p114_p2), %s375_s10, 3  ;;  %v443_v1 = vld [vmem:[%s503_s1 + $0x8] sm:$0xff] (!%p114_p2)   ;;  %vm192_vm0 = vcmask (!%p114_p2), 261120   ;;  %vm310_vm1 = vcmask (!%p114_p2), 125952  }
   0x6   : > { %117 = sbr.rel (%p114_p2) target bundleno = 238 (0xee), region = 28  ;;  %p136_p3 = scmp.lt.s32.totalorder (!%p114_p2), %s380_s13, 15  ;;  %418 = vmatprep.subr.bf16.mxu0 (!%p114_p2), %v442_v0  ;;  %430 = vmatprep.subr.bf16.mxu1 (!%p114_p2), %v442_v0 }
   0x7   : > { %419 = vmatpush3.bf16.msra.mxu0 (!%p114_p2), %v442_v0  ;;  %432 = vmatpush3.bf16.msra.mxu1 (!%p114_p2), %v442_v0 }
   0x8   : > { %420 = vmatprep.subr.bf16.mxu0 (!%p114_p2), %v443_v1  ;;  %431 = vmatprep.subr.bf16.mxu1 (!%p114_p2), %v443_v1 }
   0xb   : > { %421 = vmatpush3.bf16.msra.mxu0 (!%p114_p2), %v443_v1  ;;  %433 = vmatpush3.bf16.msra.mxu1 (!%p114_p2), %v443_v1 }
   0xd   : > { %s506_s13 = smov (!%p136_p3, %s380_s13), 15 }
   0xe   : > { %s381_s16 = sshll.u32 %s506_s13, 2 }
   0xf   : > { %s139_s19 = scalar_lea.vmem %s502_s0, %s381_s16  ;;  %s145_s22 = scalar_lea.vmem %s504_s2, %s381_s16 }
  0x10   : > { %v444_v2 = vld [vmem:[%s139_s19] sm:$0xff]   ;;  %v445_v3 = vld [vmem:[%s139_s19 + $0x10] sm:$0xff]   ;;  %v446_v4 = vld [vmem:[%s139_s19 + $0x8] sm:$0xff]  }
  0x11   : > { %422 = vmatprep.mubr.msk.bf16.mxu0 %vm192_vm0, %v444_v2  ;;  %426 = vmatprep.mubr.msk.bf16.mxu1 %vm192_vm0, %v445_v3  ;;  %v447_v5 = vld [vmem:[%s139_s19 + $0x18] sm:$0xff]  }
  0x12   : > { %423 = vmatmul.mubr.msk.bf16.vlgmr.msra.gmra.mrb[0].mxu0 %vm192_vm0, %v446_v4  ;;  %427 = vmatmul.mubr.msk.bf16.vlgmr.msra.gmra.mrb[0].mxu1 %vm192_vm0, %v447_v5 }
  0xe5   : > { %v424_v6 = vpop.f32.mrb[0].mxu0  ;;  %v428_v8 = vpop.f32.mrb[0].mxu1 }
  0xe6   : > { %v272_v7 = vmax.f32 %v424_v6, 0.0  ;;  %v239_v9 = vpop.f32.mrb[1].mxu0  ;;  %v276_v10 = vmax.f32 %v428_v8, 0.0  ;;  %v255_v12 = vpop.f32.mrb[1].mxu1 }
  0xe7   : > { %v270_v11 = vmax.f32 %v239_v9, 0.0  ;;  %v425_v13 = vpop.f32.mrb[2].mxu0  ;;  %v274_v15 = vmax.f32 %v255_v12, 0.0  ;;  %v429_v17 = vpop.f32.mrb[2].mxu1 }
  0xe8   : > { %v406_v14 = vpack.c.bf16 %v272_v7, %v272_v7  ;;  %v273_v16 = vmax.f32 %v425_v13, 0.0  ;;  %v242_v18 = vpop.f32.mrb[3].mxu0  ;;  %v410_v19 = vpack.c.bf16 %v276_v10, %v276_v10  ;;  %v277_v21 = vmax.f32 %v429_v17, 0.0  ;;  %v258_v23 = vpop.f32.mrb[3].mxu1 }
  0xe9   : > { %v404_v20 = vpack.c.bf16 %v270_v11, %v270_v11  ;;  %v271_v22 = vmax.f32 %v242_v18, 0.0  ;;  %v408_v24 = vpack.c.bf16 %v274_v15, %v274_v15  ;;  %v275_v26 = vmax.f32 %v258_v23, 0.0 }
  0xea   : > { %313 = vst.msk [vmem:[%s145_s22 + $0x8] sm:$0xf] %vm310_vm1, %v406_v14  ;;  %v407_v25 = vpack.c.bf16 %v273_v16, %v273_v16  ;;  %317 = vst.msk [vmem:[%s145_s22 + $0x18] sm:$0xf] %vm310_vm1, %v410_v19  ;;  %v411_v27 = vpack.c.bf16 %v277_v21, %v277_v21 }
  0xeb   : > { %311 = vst.msk [vmem:[%s145_s22] sm:$0xf] %vm310_vm1, %v404_v20  ;;  %v405_v28 = vpack.c.bf16 %v271_v22, %v271_v22  ;;  %315 = vst.msk [vmem:[%s145_s22 + $0x10] sm:$0xf] %vm310_vm1, %v408_v24  ;;  %v409_v29 = vpack.c.bf16 %v275_v26, %v275_v26 }
  0xec   : > { %314 = vst.msk [vmem:[%s145_s22 + $0xc] sm:$0xf] %vm310_vm1, %v407_v25  ;;  %318 = vst.msk [vmem:[%s145_s22 + $0x1c] sm:$0xf] %vm310_vm1, %v411_v27 }
  0xed   : > { %312 = vst.msk [vmem:[%s145_s22 + $0x4] sm:$0xf] %vm310_vm1, %v405_v28  ;;  %316 = vst.msk [vmem:[%s145_s22 + $0x14] sm:$0xf] %vm310_vm1, %v409_v29 }
  0xee PF: > { %s12_s9 = sadd.s32 1, %s454_s9  }
  0xef   : > { %p9_p4 = scmp.ge.s32.totalorder %s12_s9, 4  }
  0xf1   :  { %11 = sbr.rel (!%p9_p4) target bundleno = 1 (0x1), region = 58 }

// kernel: decoder_forward.6
= control target key start
LH: loop header
LB: loop body
LE: loop exit
PB: predicated region body
PF: predicated region fallthrough
CT: control target
= control target key end

     0   :  { %s4927_s15 = smov 0   ;;  %s4929_s16 = smov 0   ;;  %s5788_s0 = inlined_call_operand.vmem [shape: bf16[2,18,18,24], index: 0, kind: input, shape index: {}, may-alias: {0,1,2}]   ;;  %s5789_s1 = inlined_call_operand.vmem [shape: bf16[2,18,18,24], index: 1, kind: input, shape index: {}, may-alias: {0,1,2}]   ;;  %s5790_s2 = inlined_call_operand.vmem [shape: bf16[2,18,18,24], index: 2, kind: input, shape index: {}, may-alias: {0,1,2}]   ;;  %s5791_s3 = inlined_call_operand.vmem [shape: bf16[216,256], index: 3, kind: input, shape index: {}]   ;;  %s5792_s4 = inlined_call_operand.vmem [shape: bf16[2,16,16,256], index: 4, kind: output, shape index: {}]  }
   0x1   :  { %s4931_s17 = smov 0  }
   0x2 LB: > { %s26_s18 = sadd.s32 1, %s4888_s16  ;;  %p3932_p0 = scmp.ge.s32.totalorder %s4892_s17, 1  ;;  %s4892_s17 = sphi %s4931_s17, %s14_s17   ;;  %s4888_s16 = sphi %s4929_s16, %s5794_s16   ;;  %s4884_s15 = sphi %s4927_s15, %s5793_s15  }
   0x3   : > { %p28_p1 = scmp.ge.s32.totalorder %s26_s18, 2  ;;  %p246_p2 = scmp.lt.s32.totalorder %s4892_s17, 3 }
   0x5   : > { %s5796_s18 = smov (%p28_p1, %s26_s18), 0  ;;  %p247_p3 = pnand %p3932_p0, %p246_p2 }
   0x6   : > { %p316_p4 = scmp.lt.s32.totalorder (!%p247_p3), %s4884_s15, 1  ;;  %v4673_v0 = vld [vmem:[%s5791_s3 + $0x4] ss:$8 sps:$4 sm:$0xff] (!%p247_p3)   ;;  %v4679_v1 = vld [vmem:[%s5791_s3] ss:$8 sps:$4 sm:$0xff] (!%p247_p3)   ;;  %vm1126_vm0 = vcmask (!%p247_p3), 1046528  }
   0x7   : > { %250 = sbr.rel (%p247_p3) target bundleno = 632 (0x278), region = 36  ;;  %v4680_v2 = vld [vmem:[%s5791_s3 + $0x14] ss:$8 sps:$4 sm:$0xff] (!%p247_p3)   ;;  %3309 = vmatprep.subr.bf16.mxu0 (!%p247_p3), %v4673_v0  ;;  %4526 = vmatprep.subr.bf16.mxu1 (!%p247_p3), %v4673_v0  ;;  %v4686_v3 = vld [vmem:[%s5791_s3 + $0x10] ss:$8 sps:$4 sm:$0xff] (!%p247_p3)   ;;  %s4894_s11 = smov (!%p247_p3), 16  }
   0x8   : > { %3310 = vmatpush1.bf16.msra.mxu0 (!%p247_p3), %v4679_v1  ;;  %4540 = vmatpush1.bf16.msra.mxu1 (!%p247_p3), %v4679_v1  ;;  %v4687_v4 = vld [vmem:[%s5791_s3 + $0x24] ss:$8 sps:$4 sm:$0xff] (!%p247_p3)   ;;  %v4693_v5 = vld [vmem:[%s5791_s3 + $0x20] ss:$8 sps:$4 sm:$0xff] (!%p247_p3)   ;;  %v4694_v7 = vld [vmem:[%s5791_s3 + $0x34] ss:$8 sps:$4 sm:$0xff] (!%p247_p3)  }
   0x9   : > { %3311 = vmatprep.subr.bf16.mxu0 (!%p247_p3), %v4680_v2  ;;  %4527 = vmatprep.subr.bf16.mxu1 (!%p247_p3), %v4680_v2  ;;  %v4698_v12 = vld [vmem:[%s5791_s3 + $0x30] ss:$8 sps:$4 sm:$0xff] (!%p247_p3)   ;;  %s4895_s14 = smov (!%p247_p3), 72   ;;  %s4896_s19 = smov (!%p247_p3), 120   ;;  %vm692_vm1 = vsmask.f32 (!%p247_p3), 7424 }
   0xa   : > { %s4897_s20 = smov (!%p247_p3), 48   ;;  %s4898_s21 = smov (!%p247_p3), 24   ;;  %vm2109_vm2 = vcmask (!%p247_p3), 130048   ;;  %vm499_vm3 = vcmask (!%p247_p3), 195584   ;;  %vm933_vm4 = vcmask (!%p247_p3), 392384   ;;  %vm1223_vm5 = vcmask (!%p247_p3), 589184  }
   0xb   : > { %s4899_s22 = smov (!%p247_p3), 40   ;;  %s4900_s23 = smov (!%p247_p3), 96   ;;  %vm2299_vm6 = vcmask (!%p247_p3), 326784   ;;  %vm2701_vm7 = vcmask (!%p247_p3), 523584   ;;  %vm1391_vm8 = vcmask (!%p247_p3), 785984   ;;  %vm1809_vm9 = vcmask (!%p247_p3), 982784  }
   0xc   : > { %3312 = vmatpush1.bf16.msra.mxu0 (!%p247_p3), %v4686_v3  ;;  %4541 = vmatpush1.bf16.msra.mxu1 (!%p247_p3), %v4686_v3  ;;  %s4901_s24 = smov (!%p247_p3), 64   ;;  %vm2107_vm10 = vcmask (!%p247_p3), 1048512   ;;  %vm3008_vm11 = vcmask (!%p247_p3), 720384   ;;  %vm3302_vm12 = vcmask (!%p247_p3), 1043456   ;;  %vm3253_vm13 = vcmask (!%p247_p3), 719872  }
   0xd   : > { %3313 = vmatprep.subr.bf16.mxu0 (!%p247_p3), %v4687_v4  ;;  %4528 = vmatprep.subr.bf16.mxu1 (!%p247_p3), %v4687_v4 }
   0xe   : > { %s5798_s15 = smov (!%p316_p4, %s4884_s15), 1 }
   0xf   : > { %s4957_s25 = smul.u32 216, %s5798_s15 }
  0x10   : > { %3314 = vmatpush1.bf16.msra.mxu0 %v4693_v5  ;;  %4542 = vmatpush1.bf16.msra.mxu1 %v4693_v5 }
  0x11   : > { %s4969_s6 = scalar_lea.vmem %s5788_s0, %s4957_s25  ;;  %3315 = vmatprep.subr.bf16.mxu0 %v4694_v7  ;;  %4529 = vmatprep.subr.bf16.mxu1 %v4694_v7  ;;  %s4490_s28 = sadd.s32 192, %s4957_s25 }
  0x12   : > { %v4589_v6 = vld [vmem:[%s4969_s6 + $0x78] sm:$0xff]   ;;  %v4591_v9 = vld [vmem:[%s4969_s6 + $0xc] sm:$0xfe]   ;;  %v4592_v10 = vld [vmem:[%s4969_s6 + $0x14] ss:$0 sps:$4 sm:$0x11]   ;;  %s5497_s5 = scalar_lea.vmem %s5789_s1, %s4490_s28 }
  0x13   : > { %v4590_v8 = vld [vmem:[%s4969_s6 + $0x18] sm:$0xff]   ;;  %2273 = vrot.lane.b32.xlu1 %v4589_v6, %s4894_s11  ;;  %v4593_v11 = vld [vmem:[%s4969_s6 + $0xc] sm:$0xff]   ;;  %v2017_v13 = vrot.slane %v4591_v9, 1  ;;  %v2018_v14 = vrot.slane %v4592_v10, 1  ;;  %v4600_v17 = vld [vmem:[%s4969_s6] sm:$0xff]   ;;  %s4492_s7 = sadd.s32 204, %s4957_s25 }
  0x14   : > { %2257 = vrot.lane.b32.xlu0 %v4590_v8, %s4894_s11  ;;  %v4594_v15 = vld [vmem:[%s4969_s6 + $0x6c] sm:$0xfe]   ;;  %v4595_v16 = vld [vmem:[%s4969_s6 + $0x74] ss:$0 sps:$4 sm:$0x11]   ;;  %v694_v23 = vshrl.u32 %v4600_v17, 16  ;;  %3316 = vmatpush1.bf16.msra.mxu0 %v4698_v12  ;;  %s5591_s9 = scalar_lea.vmem %s5790_s2, %s4492_s7 }
  0x15   : > { %v2019_v18 = vsel %vm1126_vm0, %v2017_v13, %v2018_v14  ;;  %v2041_v19 = vrot.slane %v4594_v15, 1  ;;  %v2042_v20 = vrot.slane %v4595_v16, 1  ;;  %v4596_v21 = vld [vmem:[%s4969_s6] sm:$0xfe]   ;;  %4543 = vmatpush1.bf16.msra.mxu1 %v4698_v12  ;;  %v696_v27 = vshll.u32 %v4600_v17, 16  ;;  %v4602_v35 = vld [vmem:[%s4969_s6 + $0x6c] sm:$0xff]  }
  0x16   : > { %v4597_v22 = vld [vmem:[%s4969_s6 + $0x8] ss:$0 sps:$4 sm:$0x11]   ;;  %v1127_v25 = vrot.slane %v4596_v21, 1  ;;  %v4598_v26 = vld [vmem:[%s4969_s6 + $0x60] sm:$0xfe]  }
  0x17   : > { %2062 = vrot.lane.b32.xlu1 %v2019_v18, %s4896_s19  ;;  %v2043_v24 = vsel %vm1126_vm0, %v2041_v19, %v2042_v20  ;;  %v1128_v28 = vrot.slane %v4597_v22, 1  ;;  %v4599_v29 = vld [vmem:[%s4969_s6 + $0x68] ss:$0 sps:$4 sm:$0x11]   ;;  %v1151_v30 = vrot.slane %v4598_v26, 1  ;;  %v698_v31 = vrot.slane %v696_v27, 1 }
  0x18   : > { %1346 = vrot.lane.b32.xlu0 %v4593_v11, %s4895_s14  ;;  %v1152_v33 = vrot.slane %v4599_v29, 1  ;;  %v4601_v34 = vld [vmem:[%s4969_s6 + $0x8] ss:$0 sps:$4 sm:$0x11]   ;;  %v4603_v39 = vld [vmem:[%s4969_s6 + $0x60] sm:$0xff]   ;;  %v4605_v41 = vld [vmem:[%s4969_s6 + $0x78] sm:$0xff]  }
  0x19   : > { %v1129_v32 = vsel %vm1126_vm0, %v1127_v25, %v1128_v28  ;;  %v699_v37 = vor.u32 %v698_v31, %v694_v23  ;;  %v701_v38 = vshll.u32 %v4601_v34, 16  ;;  %v4604_v40 = vld [vmem:[%s4969_s6 + $0x68] ss:$0 sps:$4 sm:$0x11]   ;;  %v790_v43 = vshrl.u32 %v4603_v39, 16  ;;  %v4607_v45 = vld [vmem:[%s4969_s6 + $0x18] sm:$0xff]  }
  0x1a   : > { %v1153_v36 = vsel %vm1126_vm0, %v1151_v30, %v1152_v33  ;;  %v792_v44 = vshll.u32 %v4603_v39, 16  ;;  %v797_v46 = vshll.u32 %v4604_v40, 16  ;;  %v4606_v47 = vld [vmem:[%s4969_s6 + $0x80] ss:$0 sps:$4 sm:$0x11]   ;;  %v2588_v50 = vshrl.u32 %v4605_v41, 16 }
  0x1b   : > { %2078 = vrot.lane.b32.xlu1 %v2043_v24, %s4896_s19  ;;  %v703_v42 = vrot.slane %v701_v38, 1  ;;  %v2590_v51 = vshll.u32 %v4605_v41, 16  ;;  %v4609_v52 = vld [vmem:[%s4969_s6 + $0x6c] sm:$0xff]   ;;  %v2595_v54 = vshll.u32 %v4606_v47, 16  ;;  %v2492_v58 = vshrl.u32 %v4607_v45, 16 }
  0x1c   : > { %1175 = vrot.lane.b32.xlu0 %v1129_v32, %s4897_s20  ;;  %v794_v49 = vrot.slane %v792_v44, 1  ;;  %v799_v53 = vrot.slane %v797_v46, 1  ;;  %v4608_v57 = vld [vmem:[%s4969_s6 + $0x20] ss:$0 sps:$4 sm:$0x11]   ;;  %v2494_v59 = vshll.u32 %v4607_v45, 16 }
  0x1d   : > { %v704_v48 = vsel %vm692_vm1, %v699_v37, %v703_v42  ;;  %v2592_v56 = vrot.slane %v2590_v51, 1  ;;  %v2597_v60 = vrot.slane %v2595_v54, 1  ;;  %v1681_v61 = vshrl.u32 %v4609_v52, 16  ;;  %v4610_v2 = vld [vmem:[%s4969_s6 + $0x74] ss:$0 sps:$4 sm:$0x11]  }
  0x1e   : > { %v795_v55 = vor.u32 %v794_v49, %v790_v43  ;;  %v2496_v0 = vrot.slane %v2494_v59, 1  ;;  %v2499_v1 = vshll.u32 %v4608_v57, 16  ;;  %v1683_v3 = vshll.u32 %v4609_v52, 16  ;;  %v4611_v7 = vld [vmem:[%s4969_s6 + $0xc] sm:$0xff]   ;;  %v4613_v18 = vld [vmem:[%s4969_s6 + $0x78] sm:$0xfe]  }
  0x1f   : > { %1191 = vrot.lane.b32.xlu1 %v1153_v36, %s4897_s20  ;;  %v2593_v63 = vor.u32 %v2592_v56, %v2588_v50  ;;  %v1688_v9 = vshll.u32 %v4610_v2, 16  ;;  %v4612_v10 = vld [vmem:[%s4969_s6 + $0x14] ss:$0 sps:$4 sm:$0x11]   ;;  %v1585_v12 = vshrl.u32 %v4611_v7, 16  ;;  %v1587_v13 = vshll.u32 %v4611_v7, 16 }
  0x20   : > { %885 = vrot.lane.b32.xlu0 %v704_v48, %s4898_s21  ;;  %v800_v62 = vsel %vm692_vm1, %v795_v55, %v799_v53  ;;  %v2497_v5 = vor.u32 %v2496_v0, %v2492_v58  ;;  %v2501_v6 = vrot.slane %v2499_v1, 1  ;;  %v1685_v8 = vrot.slane %v1683_v3, 1  ;;  %v4617_v14 = vld [vmem:[%s4969_s6 + $0x6c] sm:$0xff]   ;;  %v4614_v20 = vld [vmem:[%s4969_s6 + $0x80] ss:$0 sps:$4 sm:$0x11]  }
  0x21   : > { %v2598_v4 = vsel %vm692_vm1, %v2593_v63, %v2597_v60  ;;  %v1690_v16 = vrot.slane %v1688_v9, 1  ;;  %v1592_v17 = vshll.u32 %v4612_v10, 16  ;;  %v1589_v19 = vrot.slane %v1587_v13, 1  ;;  %v4615_v24 = vld [vmem:[%s4969_s6 + $0x18] sm:$0xfe]   ;;  %v4629_v3 = vld [vmem:[%s4969_s6 + $0x84] sm:$0xff]  }
  0x22   : > { %v2502_v11 = vsel %vm692_vm1, %v2497_v5, %v2501_v6  ;;  %v1686_v15 = vor.u32 %v1685_v8, %v1681_v61  ;;  %v2948_v23 = vrot.slane %v4613_v18, 1  ;;  %v2949_v26 = vrot.slane %v4614_v20, 1  ;;  %v4616_v27 = vld [vmem:[%s4969_s6 + $0x20] ss:$0 sps:$4 sm:$0x11]   ;;  %v4633_v6 = vld [vmem:[%s4969_s6 + $0x84] sm:$0xff]  }
  0x23   : > { %1362 = vrot.lane.b32.xlu1 %v4602_v35, %s4895_s14  ;;  %v1594_v22 = vrot.slane %v1592_v17, 1  ;;  %v1590_v25 = vor.u32 %v1589_v19, %v1585_v12  ;;  %v2924_v28 = vrot.slane %v4615_v24, 1  ;;  %v802_v29 = vshrl.u32 %v4617_v14, 16  ;;  %v4618_v33 = vld [vmem:[%s4969_s6 + $0x74] ss:$0 sps:$4 sm:$0x11]  }
  0x24   : > { %901 = vrot.lane.b32.xlu0 %v800_v62, %s4898_s21  ;;  %v1691_v21 = vsel %vm692_vm1, %v1686_v15, %v1690_v16  ;;  %v2950_v31 = vsel %vm1126_vm0, %v2948_v23, %v2949_v26  ;;  %v2925_v32 = vrot.slane %v4616_v27, 1  ;;  %v804_v34 = vshll.u32 %v4617_v14, 16  ;;  %v4619_v35 = vld [vmem:[%s4969_s6 + $0xc] sm:$0xff]   ;;  %v4620_v39 = vld [vmem:[%s4969_s6 + $0x14] ss:$0 sps:$4 sm:$0x11]  }
  0x25   : > { %v1595_v30 = vsel %vm692_vm1, %v1590_v25, %v1594_v22  ;;  %v809_v38 = vshll.u32 %v4618_v33, 16  ;;  %v706_v40 = vshrl.u32 %v4619_v35, 16  ;;  %v708_v41 = vshll.u32 %v4619_v35, 16  ;;  %v4621_v45 = vld [vmem:[%s4969_s6 + $0x78] sm:$0xfe]   ;;  %v4630_v8 = vld [vmem:[%s4969_s6 + $0x24] sm:$0xff]  }
  0x26   : > { %v2926_v36 = vsel %vm1126_vm0, %v2924_v28, %v2925_v32  ;;  %v806_v37 = vrot.slane %v804_v34, 1  ;;  %v713_v44 = vshll.u32 %v4620_v39, 16  ;;  %v4622_v47 = vld [vmem:[%s4969_s6 + $0x80] ss:$0 sps:$4 sm:$0x11]   ;;  %v2044_v50 = vrot.slane %v4621_v45, 1 }
  0x27   : > { %2675 = vrot.lane.b32.xlu1 %v2598_v4, %s4899_s22  ;;  %v811_v43 = vrot.slane %v809_v38, 1  ;;  %v710_v46 = vrot.slane %v708_v41, 1  ;;  %v2045_v52 = vrot.slane %v4622_v47, 1  ;;  %v4623_v53 = vld [vmem:[%s4969_s6 + $0x18] sm:$0xfe]   ;;  %v2602_v12 = vshll.u32 %v4633_v6, 16 }
  0x28   : > { %2659 = vrot.lane.b32.xlu0 %v2502_v11, %s4899_s22  ;;  %v807_v42 = vor.u32 %v806_v37, %v802_v29  ;;  %v715_v49 = vrot.slane %v713_v44, 1  ;;  %v4624_v54 = vld [vmem:[%s4969_s6 + $0x20] ss:$0 sps:$4 sm:$0x11]   ;;  %v2020_v57 = vrot.slane %v4623_v53, 1  ;;  %v4631_v9 = vld [vmem:[%s4969_s6 + $0x78] sm:$0xff]  }
  0x29   : > { %v711_v51 = vor.u32 %v710_v46, %v706_v40  ;;  %v2046_v56 = vsel %vm1126_vm0, %v2044_v50, %v2045_v52  ;;  %v2021_v58 = vrot.slane %v4624_v54, 1  ;;  %v4625_v59 = vld [vmem:[%s4969_s6 + $0x6c] sm:$0xfe]   ;;  %v4626_v60 = vld [vmem:[%s4969_s6 + $0x74] ss:$0 sps:$4 sm:$0x11]  }
  0x2a   : > { %v812_v48 = vsel %vm692_vm1, %v807_v42, %v811_v43  ;;  %v1154_v62 = vrot.slane %v4625_v59, 1  ;;  %v4627_v63 = vld [vmem:[%s4969_s6 + $0xc] sm:$0xfe]   ;;  %v1155_v0 = vrot.slane %v4626_v60, 1  ;;  %v2600_v11 = vshrl.u32 %v4633_v6, 16  ;;  %v4635_v13 = vld [vmem:[%s4969_s6 + $0x24] sm:$0xff]  }
  0x2b   : > { %1780 = vrot.lane.b32.xlu1 %v1691_v21, %s4900_s23  ;;  %v716_v55 = vsel %vm692_vm1, %v711_v51, %v715_v49  ;;  %v2022_v61 = vsel %vm1126_vm0, %v2020_v57, %v2021_v58  ;;  %v4628_v1 = vld [vmem:[%s4969_s6 + $0x14] ss:$0 sps:$4 sm:$0x11]   ;;  %v1130_v2 = vrot.slane %v4627_v63, 1  ;;  %v2604_v14 = vrot.slane %v2602_v12, 1  ;;  %v4632_v18 = vld [vmem:[%s4969_s6 + $0x18] sm:$0xff]  }
  0x2c   : > { %1764 = vrot.lane.b32.xlu0 %v1595_v30, %s4900_s23  ;;  %v1156_v4 = vsel %vm1126_vm0, %v1154_v62, %v1155_v0  ;;  %v1131_v5 = vrot.slane %v4628_v1, 1  ;;  %v4634_v10 = vld [vmem:[%s4969_s6 + $0x8c] ss:$0 sps:$4 sm:$0x11]   ;;  %v2504_v17 = vshrl.u32 %v4635_v13, 16  ;;  %v2506_v19 = vshll.u32 %v4635_v13, 16 }
  0x2d   : > { %v2607_v15 = vshll.u32 %v4634_v10, 16  ;;  %v4636_v16 = vld [vmem:[%s4969_s6 + $0x2c] ss:$0 sps:$4 sm:$0x11]   ;;  %v4637_v20 = vld [vmem:[%s4969_s6 + $0x78] sm:$0xff]   ;;  %v2605_v21 = vor.u32 %v2604_v14, %v2600_v11 }
  0x2e   : > { %v1132_v7 = vsel %vm1126_vm0, %v1130_v2, %v1131_v5  ;;  %v2511_v23 = vshll.u32 %v4636_v16, 16  ;;  %v2508_v24 = vrot.slane %v2506_v19, 1  ;;  %v4638_v25 = vld [vmem:[%s4969_s6 + $0x80] ss:$0 sps:$4 sm:$0x11]   ;;  %v1693_v26 = vshrl.u32 %v4637_v20, 16 }
  0x2f   : > { %2982 = vrot.lane.b32.xlu1 %v2950_v31, %s4901_s24  ;;  %v2609_v22 = vrot.slane %v2607_v15, 1  ;;  %v1695_v27 = vshll.u32 %v4637_v20, 16  ;;  %v4639_v29 = vld [vmem:[%s4969_s6 + $0x18] sm:$0xff]   ;;  %v1700_v33 = vshll.u32 %v4638_v25, 16  ;;  %v4641_v40 = vld [vmem:[%s4969_s6 + $0x84] sm:$0xfe]  }
  0x30   : > { %2966 = vrot.lane.b32.xlu0 %v2926_v36, %s4901_s24  ;;  %v2513_v28 = vrot.slane %v2511_v23, 1  ;;  %v2509_v31 = vor.u32 %v2508_v24, %v2504_v17  ;;  %v4640_v34 = vld [vmem:[%s4969_s6 + $0x20] ss:$0 sps:$4 sm:$0x11]   ;;  %v1597_v35 = vshrl.u32 %v4639_v29, 16  ;;  %v1599_v36 = vshll.u32 %v4639_v29, 16 }
  0x31   : > { %v2610_v30 = vsel %vm692_vm1, %v2605_v21, %v2609_v22  ;;  %v1697_v32 = vrot.slane %v1695_v27, 1  ;;  %v1702_v38 = vrot.slane %v1700_v33, 1  ;;  %v1604_v39 = vshll.u32 %v4640_v34, 16  ;;  %v4645_v41 = vld [vmem:[%s4969_s6 + $0x78] sm:$0xff]   ;;  %v4643_v50 = vld [vmem:[%s4969_s6 + $0x24] sm:$0xfe]  }
  0x32   : > { %v2514_v42 = vsel %vm692_vm1, %v2509_v31, %v2513_v28  ;;  %v1601_v43 = vrot.slane %v1599_v36, 1  ;;  %v4642_v44 = vld [vmem:[%s4969_s6 + $0x8c] ss:$0 sps:$4 sm:$0x11]   ;;  %v2951_v47 = vrot.slane %v4641_v40, 1  ;;  %v2927_v53 = vrot.slane %v4643_v50, 1 }
  0x33   : > { %903 = vrot.lane.b32.xlu1 %v812_v48, %s4898_s21  ;;  %v1698_v37 = vor.u32 %v1697_v32, %v1693_v26  ;;  %v1606_v46 = vrot.slane %v1604_v39, 1  ;;  %v2952_v49 = vrot.slane %v4642_v44, 1  ;;  %v4644_v51 = vld [vmem:[%s4969_s6 + $0x2c] ss:$0 sps:$4 sm:$0x11]   ;;  %v814_v58 = vshrl.u32 %v4645_v41, 16 }
  0x34   : > { %887 = vrot.lane.b32.xlu0 %v716_v55, %s4898_s21  ;;  %v1602_v48 = vor.u32 %v1601_v43, %v1597_v35  ;;  %v2928_v54 = vrot.slane %v4644_v51, 1  ;;  %v4646_v55 = vld [vmem:[%s4969_s6 + $0x80] ss:$0 sps:$4 sm:$0x11]   ;;  %v816_v59 = vshll.u32 %v4645_v41, 16  ;;  %v4661_v26 = vld [vmem:[%s4969_s6 + $0x90] sm:$0xff]  }
  0x35   : > { %v1703_v45 = vsel %vm692_vm1, %v1698_v37, %v1702_v38  ;;  %v2953_v57 = vsel %vm1126_vm0, %v2951_v47, %v2952_v49  ;;  %v821_v60 = vshll.u32 %v4646_v55, 16  ;;  %v4649_v6 = vld [vmem:[%s4969_s6 + $0x84] sm:$0xfe]   ;;  %v4652_v14 = vld [vmem:[%s4969_s6 + $0x2c] ss:$0 sps:$4 sm:$0x11]  }
  0x36   : > { %v1607_v52 = vsel %vm692_vm1, %v1602_v48, %v1606_v46  ;;  %v818_v62 = vrot.slane %v816_v59, 1  ;;  %v2929_v1 = vsel %vm1126_vm0, %v2927_v53, %v2928_v54  ;;  %v2047_v11 = vrot.slane %v4649_v6, 1  ;;  %v4651_v13 = vld [vmem:[%s4969_s6 + $0x24] sm:$0xfe]   ;;  %v4653_v19 = vld [vmem:[%s4969_s6 + $0x78] sm:$0xfe]  }
  0x37   : > { %2080 = vrot.lane.b32.xlu1 %v2046_v56, %s4896_s19  ;;  %v4647_v56 = vld [vmem:[%s4969_s6 + $0x18] sm:$0xff]   ;;  %v823_v2 = vrot.slane %v821_v60, 1  ;;  %v2023_v17 = vrot.slane %v4651_v13, 1  ;;  %v4654_v20 = vld [vmem:[%s4969_s6 + $0x80] ss:$0 sps:$4 sm:$0x11]  }
  0x38   : > { %2064 = vrot.lane.b32.xlu0 %v2022_v61, %s4896_s19  ;;  %v4648_v61 = vld [vmem:[%s4969_s6 + $0x20] ss:$0 sps:$4 sm:$0x11]   ;;  %v718_v63 = vshrl.u32 %v4647_v56, 16  ;;  %v720_v0 = vshll.u32 %v4647_v56, 16  ;;  %v1157_v22 = vrot.slane %v4653_v19, 1 }
  0x39   : > { %v1158_v23 = vrot.slane %v4654_v20, 1  ;;  %v4655_v24 = vld [vmem:[%s4969_s6 + $0x18] sm:$0xfe]   ;;  %v4656_v25 = vld [vmem:[%s4969_s6 + $0x20] ss:$0 sps:$4 sm:$0x11]  }
  0x3a   : > { %v722_v5 = vrot.slane %v720_v0, 1  ;;  %v1133_v28 = vrot.slane %v4655_v24, 1  ;;  %v4657_v29 = vld [vmem:[%s4969_s6 + $0x90] sm:$0xff]   ;;  %v1134_v31 = vrot.slane %v4656_v25, 1  ;;  %v2612_v32 = vshrl.u32 %v4661_v26, 16  ;;  %v4659_v37 = vld [vmem:[%s4969_s6 + $0x84] sm:$0xff]  }
  0x3b   : > { %1193 = vrot.lane.b32.xlu1 %v1156_v4, %s4897_s20  ;;  %v819_v4 = vor.u32 %v818_v62, %v814_v58  ;;  %v1159_v27 = vsel %vm1126_vm0, %v1157_v22, %v1158_v23  ;;  %v4658_v34 = vld [vmem:[%s4969_s6 + $0x30] sm:$0xff]   ;;  %v2614_v35 = vshll.u32 %v4661_v26, 16  ;;  %v4662_v38 = vld [vmem:[%s4969_s6 + $0x98] ss:$0 sps:$4 sm:$0x11]   ;;  %v4665_v41 = vld [vmem:[%s4969_s6 + $0x84] sm:$0xff]  }
  0x3c   : > { %1177 = vrot.lane.b32.xlu0 %v1132_v7, %s4897_s20  ;;  %v4650_v7 = vld [vmem:[%s4969_s6 + $0x8c] ss:$0 sps:$4 sm:$0x11]   ;;  %v723_v10 = vor.u32 %v722_v5, %v718_v63  ;;  %v1135_v33 = vsel %vm1126_vm0, %v1133_v28, %v1134_v31  ;;  %v4664_v43 = vld [vmem:[%s4969_s6 + $0x38] ss:$0 sps:$4 sm:$0x11]  }
  0x3d   : > { %v2048_v12 = vrot.slane %v4650_v7, 1  ;;  %v2616_v40 = vrot.slane %v2614_v35, 1  ;;  %v4660_v47 = vld [vmem:[%s4969_s6 + $0x24] sm:$0xff]   ;;  %v2523_v49 = vshll.u32 %v4664_v43, 16  ;;  %v1707_v53 = vshll.u32 %v4665_v41, 16 }
  0x3e   : > { %v4666_v50 = vld [vmem:[%s4969_s6 + $0x8c] ss:$0 sps:$4 sm:$0x11]   ;;  %v4683_v31 = vld [vmem:[%s4969_s6 + $0x98] ss:$0 sps:$4 sm:$0x11]  }
  0x3f   : > { %2275 = vrot.lane.b32.xlu1 %v4629_v3, %s4894_s11  ;;  %v725_v3 = vshll.u32 %v4648_v61, 16  ;;  %v2049_v16 = vsel %vm1126_vm0, %v2047_v11, %v2048_v12  ;;  %v2617_v46 = vor.u32 %v2616_v40, %v2612_v32  ;;  %v2525_v54 = vrot.slane %v2523_v49, 1  ;;  %v4668_v60 = vld [vmem:[%s4969_s6 + $0x2c] ss:$0 sps:$4 sm:$0x11]   ;;  %v4675_v61 = vld [vmem:[%s4969_s6 + $0x84] sm:$0xff]  }
  0x40   : > { %2259 = vrot.lane.b32.xlu0 %v4630_v8, %s4894_s11  ;;  %v1712_v55 = vshll.u32 %v4666_v50, 16  ;;  %v1709_v59 = vrot.slane %v1707_v53, 1  ;;  %v4677_v11 = vld [vmem:[%s4969_s6 + $0x24] sm:$0xff]   ;;  %v4672_v12 = vld [vmem:[%s4969_s6 + $0x38] ss:$0 sps:$4 sm:$0x11]  }
  0x41   : > { %v727_v8 = vrot.slane %v725_v3, 1  ;;  %v4670_v3 = vld [vmem:[%s4969_s6 + $0x98] ss:$0 sps:$4 sm:$0x11]   ;;  %v826_v13 = vshrl.u32 %v4675_v61, 16  ;;  %v730_v23 = vshrl.u32 %v4677_v11, 16 }
  0x42   : > { %v1714_v62 = vrot.slane %v1712_v55, 1  ;;  %v4678_v22 = vld [vmem:[%s4969_s6 + $0x2c] ss:$0 sps:$4 sm:$0x11]   ;;  %v732_v24 = vshll.u32 %v4677_v11, 16  ;;  %v4696_v53 = vld [vmem:[%s4969_s6 + $0x9c] sm:$0xff]  }
  0x43   : > { %1364 = vrot.lane.b32.xlu1 %v4631_v9, %s4895_s14  ;;  %v824_v9 = vsel %vm692_vm1, %v819_v4, %v823_v2  ;;  %v728_v15 = vsel %vm692_vm1, %v723_v10, %v727_v8  ;;  %v4669_v2 = vld [vmem:[%s4969_s6 + $0x90] sm:$0xfe]   ;;  %v4689_v43 = vld [vmem:[%s4969_s6 + $0x84] sm:$0xfe]   ;;  %v4706_v55 = vld [vmem:[%s4969_s6 + $0x9c] sm:$0xff]  }
  0x44   : > { %1348 = vrot.lane.b32.xlu0 %v4632_v18, %s4895_s14  ;;  %v2024_v18 = vrot.slane %v4652_v14, 1  ;;  %v2954_v8 = vrot.slane %v4669_v2, 1  ;;  %v4671_v10 = vld [vmem:[%s4969_s6 + $0x30] sm:$0xfe]   ;;  %v734_v28 = vrot.slane %v732_v24, 1 }
  0x45   : > { %v2930_v14 = vrot.slane %v4671_v10, 1  ;;  %v4692_v49 = vld [vmem:[%s4969_s6 + $0x2c] ss:$0 sps:$4 sm:$0x11]  }
  0x46   : > { %v2025_v21 = vsel %vm1126_vm0, %v2023_v17, %v2024_v18  ;;  %v2931_v17 = vrot.slane %v4672_v12, 1  ;;  %v4676_v18 = vld [vmem:[%s4969_s6 + $0x8c] ss:$0 sps:$4 sm:$0x11]  }
  0x47   : > { %2677 = vrot.lane.b32.xlu1 %v2610_v30, %s4899_s22  ;;  %v4663_v30 = vld [vmem:[%s4969_s6 + $0x30] sm:$0xff]  }
  0x48   : > { %2661 = vrot.lane.b32.xlu0 %v2514_v42, %s4899_s22  ;;  %v2516_v36 = vshrl.u32 %v4663_v30, 16  ;;  %v2518_v39 = vshll.u32 %v4663_v30, 16  ;;  %v2619_v42 = vshll.u32 %v4662_v38, 16  ;;  %v2932_v26 = vsel %vm1126_vm0, %v2930_v14, %v2931_v17  ;;  %v4682_v30 = vld [vmem:[%s4969_s6 + $0x90] sm:$0xfe]  }
  0x49   : > { %v2050_v35 = vrot.slane %v4682_v30, 1  ;;  %v4685_v38 = vld [vmem:[%s4969_s6 + $0x38] ss:$0 sps:$4 sm:$0x11]   ;;  %v4718_v30 = vld [vmem:[%s5791_s3 + $0x74] ss:$8 sps:$4 sm:$0xff]  }
  0x4a   : > { %v2520_v44 = vrot.slane %v2518_v39, 1  ;;  %v2621_v48 = vrot.slane %v2619_v42, 1  ;;  %v2027_v42 = vrot.slane %v4685_v38, 1  ;;  %v4714_v17 = vld [vmem:[%s4969_s6 + $0x98] ss:$0 sps:$4 sm:$0x11]  }
  0x4b   : > { %1782 = vrot.lane.b32.xlu1 %v1703_v45, %s4900_s23  ;;  %v4667_v45 = vld [vmem:[%s4969_s6 + $0x24] sm:$0xff]   ;;  %v1724_v24 = vshll.u32 %v4714_v17, 16 }
  0x4c   : > { %1766 = vrot.lane.b32.xlu0 %v1607_v52, %s4900_s23  ;;  %v2521_v51 = vor.u32 %v2520_v44, %v2516_v36  ;;  %v1705_v52 = vshrl.u32 %v4665_v41, 16  ;;  %v1609_v56 = vshrl.u32 %v4667_v45, 16  ;;  %v2622_v58 = vsel %vm692_vm1, %v2617_v46, %v2621_v48  ;;  %v4690_v44 = vld [vmem:[%s4969_s6 + $0x8c] ss:$0 sps:$4 sm:$0x11]  }
  0x4d   : > { %v2051_v36 = vrot.slane %v4683_v31, 1  ;;  %v4691_v46 = vld [vmem:[%s4969_s6 + $0x24] sm:$0xfe]   ;;  %v1161_v48 = vrot.slane %v4690_v44, 1  ;;  %v1726_v31 = vrot.slane %v1724_v24, 1 }
  0x4e   : > { %v1710_v0 = vor.u32 %v1709_v59, %v1705_v52  ;;  %v2526_v4 = vsel %vm692_vm1, %v2521_v51, %v2525_v54  ;;  %v1136_v50 = vrot.slane %v4691_v46, 1  ;;  %v1137_v52 = vrot.slane %v4692_v49, 1  ;;  %v4699_v54 = vld [vmem:[%s5791_s3 + $0x44] ss:$8 sps:$4 sm:$0xff]   ;;  %v4697_v59 = vld [vmem:[%s4969_s6 + $0x3c] sm:$0xff]  }
  0x4f   : > { %2984 = vrot.lane.b32.xlu1 %v2953_v57, %s4901_s24  ;;  %v1611_v57 = vshll.u32 %v4667_v45, 16  ;;  %v2052_v40 = vsel %vm1126_vm0, %v2050_v35, %v2051_v36  ;;  %v1160_v45 = vrot.slane %v4689_v43, 1  ;;  %3317 = vmatprep.subr.bf16.mxu0 %v4699_v54  ;;  %v4720_v36 = vld [vmem:[%s4969_s6 + $0x9c] sm:$0xfe]   ;;  %v4724_v49 = vld [vmem:[%s5791_s3 + $0x70] ss:$8 sps:$4 sm:$0xff]  }
  0x50   : > { %2968 = vrot.lane.b32.xlu0 %v2929_v1, %s4901_s24  ;;  %v1616_v1 = vshll.u32 %v4668_v60, 16  ;;  %v1715_v6 = vsel %vm692_vm1, %v1710_v0, %v1714_v62  ;;  %4530 = vmatprep.subr.bf16.mxu1 %v4699_v54  ;;  %v4707_v60 = vld [vmem:[%s4969_s6 + $0xa4] ss:$0 sps:$4 sm:$0x11]   ;;  %v2626_v62 = vshll.u32 %v4706_v55, 16  ;;  %v4701_v0 = vld [vmem:[%s4969_s6 + $0x90] sm:$0xff]  }
  0x51   : > { %v1613_v63 = vrot.slane %v1611_v57, 1  ;;  %v1162_v51 = vsel %vm1126_vm0, %v1160_v45, %v1161_v48  ;;  %v4703_v57 = vld [vmem:[%s5791_s3 + $0x40] ss:$8 sps:$4 sm:$0xff]   ;;  %v4723_v48 = vld [vmem:[%s4969_s6 + $0x44] ss:$0 sps:$4 sm:$0x11]  }
  0x52   : > { %v1618_v7 = vrot.slane %v1616_v1, 1  ;;  %3318 = vmatpush1.bf16.msra.mxu0 %v4703_v57  ;;  %4544 = vmatpush1.bf16.msra.mxu1 %v4703_v57  ;;  %v2628_v2 = vrot.slane %v2626_v62, 1  ;;  %v4725_v43 = vld [vmem:[%s4969_s6] sm:$0xff]   ;;  %v4728_v54 = vld [vmem:[%s4969_s6 + $0x90] sm:$0xff]  }
  0x53   : > { %905 = vrot.lane.b32.xlu1 %v824_v9, %s4898_s21  ;;  %v1614_v5 = vor.u32 %v1613_v63, %v1609_v56  ;;  %v2955_v9 = vrot.slane %v4670_v3, 1  ;;  %v1138_v56 = vsel %vm1126_vm0, %v1136_v50, %v1137_v52  ;;  %v4708_v63 = vld [vmem:[%s4969_s6 + $0x3c] sm:$0xff]   ;;  %v2631_v3 = vshll.u32 %v4707_v60, 16  ;;  %500 = vst.msk [vmem:[#allocation2] sm:$0xff] %vm499_vm3, %v4725_v43  ;;  %v4730_v57 = vld [vmem:[%s4969_s6 + $0x30] sm:$0xff]  }
  0x54   : > { %889 = vrot.lane.b32.xlu0 %v728_v15, %s4898_s21  ;;  %v828_v15 = vshll.u32 %v4675_v61, 16  ;;  %v2624_v61 = vshrl.u32 %v4706_v55, 16  ;;  %v2934_v55 = vrot.slane %v4723_v48, 1  ;;  %v742_v62 = vshrl.u32 %v4730_v57, 16 }
  0x55   : > { %v2956_v19 = vsel %vm1126_vm0, %v2954_v8, %v2955_v9  ;;  %v2530_v8 = vshll.u32 %v4708_v63, 16  ;;  %v4710_v9 = vld [vmem:[%s5791_s3 + $0x50] ss:$8 sps:$4 sm:$0xff]   ;;  %v2633_v11 = vrot.slane %v2631_v3, 1 }
  0x56   : > { %v830_v20 = vrot.slane %v828_v15, 1  ;;  %v2629_v10 = vor.u32 %v2628_v2, %v2624_v61  ;;  %v4713_v15 = vld [vmem:[%s4969_s6 + $0x90] sm:$0xff]   ;;  %v4729_v61 = vld [vmem:[%s4969_s6 + $0x98] ss:$0 sps:$4 sm:$0x11]   ;;  %v744_v2 = vshll.u32 %v4730_v57, 16 }
  0x57   : > { %2082 = vrot.lane.b32.xlu1 %v2049_v16, %s4896_s19  ;;  %v1619_v16 = vsel %vm692_vm1, %v1614_v5, %v1618_v7  ;;  %v4702_v5 = vld [vmem:[%s4969_s6 + $0x30] sm:$0xff]   ;;  %v2528_v7 = vshrl.u32 %v4708_v63, 16  ;;  %v2532_v14 = vrot.slane %v2530_v8, 1 }
  0x58   : > { %2066 = vrot.lane.b32.xlu0 %v2025_v21, %s4896_s19  ;;  %v833_v21 = vshll.u32 %v4676_v18, 16  ;;  %v831_v25 = vor.u32 %v830_v20, %v826_v13  ;;  %v4711_v13 = vld [vmem:[%s5791_s3 + $0x64] ss:$8 sps:$4 sm:$0xff]   ;;  %v2634_v18 = vsel %vm692_vm1, %v2629_v10, %v2633_v11  ;;  %v1717_v20 = vshrl.u32 %v4713_v15, 16 }
  0x59   : > { %v4733_v10 = vld [vmem:[%s4969_s6 + $0x60] sm:$0xff]  }
  0x5a   : > { %508 = vst.msk [vmem:[#allocation2 + $0x80] sm:$0xff] %vm499_vm3, %v4733_v10 }
  0x5b   : > { %1195 = vrot.lane.b32.xlu1 %v1159_v27, %s4897_s20  ;;  %v835_v27 = vrot.slane %v833_v21, 1  ;;  %v1719_v21 = vshll.u32 %v4713_v15, 16 }
  0x5c   : > { %1179 = vrot.lane.b32.xlu0 %v1135_v33, %s4897_s20  ;;  %v735_v33 = vor.u32 %v734_v28, %v730_v23 }
  0x5d   : > { %v836_v32 = vsel %vm692_vm1, %v831_v25, %v835_v27  ;;  %v4715_v25 = vld [vmem:[%s4969_s6 + $0x30] sm:$0xff]   ;;  %v1721_v28 = vrot.slane %v1719_v21, 1 }
  0x5f   : > { %2277 = vrot.lane.b32.xlu1 %v4657_v29, %s4894_s11  ;;  %v737_v29 = vshll.u32 %v4678_v22, 16  ;;  %v1722_v35 = vor.u32 %v1721_v28, %v1717_v20  ;;  %v4739_v28 = vld [vmem:[%s4969_s6 + $0x44] ss:$0 sps:$4 sm:$0x11]  }
  0x60   : > { %2261 = vrot.lane.b32.xlu0 %v4658_v34, %s4894_s11 }
  0x61   : > { %v739_v34 = vrot.slane %v737_v29, 1  ;;  %v4717_v29 = vld [vmem:[%s5791_s3 + $0x60] ss:$8 sps:$4 sm:$0xff]  }
  0x63   : > { %1366 = vrot.lane.b32.xlu1 %v4659_v37, %s4895_s14  ;;  %v4684_v37 = vld [vmem:[%s4969_s6 + $0x30] sm:$0xfe]   ;;  %v740_v39 = vsel %vm692_vm1, %v735_v33, %v739_v34  ;;  %v1623_v33 = vshll.u32 %v4715_v25, 16 }
  0x64   : > { %1350 = vrot.lane.b32.xlu0 %v4660_v47, %s4895_s14  ;;  %v2026_v41 = vrot.slane %v4684_v37, 1 }
  0x65   : > { %v1625_v37 = vrot.slane %v1623_v33, 1  ;;  %v2030_v33 = vrot.slane %v4739_v28, 1 }
  0x66   : > { %v2028_v47 = vsel %vm1126_vm0, %v2026_v41, %v2027_v42  ;;  %v1727_v41 = vsel %vm692_vm1, %v1722_v35, %v1726_v31  ;;  %v2957_v42 = vrot.slane %v4720_v36, 1 }
  0x67   : > { %2679 = vrot.lane.b32.xlu1 %v2622_v58, %s4899_s22  ;;  %v4704_v58 = vld [vmem:[%s5791_s3 + $0x54] ss:$8 sps:$4 sm:$0xff]  }
  0x68   : > { %2663 = vrot.lane.b32.xlu0 %v2526_v4, %s4899_s22  ;;  %3319 = vmatprep.subr.bf16.mxu0 %v4704_v58  ;;  %v4709_v4 = vld [vmem:[%s4969_s6 + $0x44] ss:$0 sps:$4 sm:$0x11]  }
  0x69   : > { %4531 = vmatprep.subr.bf16.mxu1 %v4704_v58  ;;  %v2535_v12 = vshll.u32 %v4709_v4, 16  ;;  %3320 = vmatpush1.bf16.msra.mxu0 %v4710_v9  ;;  %v838_v58 = vshrl.u32 %v4728_v54, 16  ;;  %v845_v4 = vshll.u32 %v4729_v61, 16  ;;  %v4762_v61 = vld [vmem:[%s4969_s6 + $0xb0] ss:$0 sps:$4 sm:$0x11]  }
  0x6a   : > { %4545 = vmatpush1.bf16.msra.mxu1 %v4710_v9  ;;  %3321 = vmatprep.subr.bf16.mxu0 %v4711_v13  ;;  %v746_v9 = vrot.slane %v744_v2, 1 }
  0x6b   : > { %1784 = vrot.lane.b32.xlu1 %v1715_v6, %s4900_s23  ;;  %4532 = vmatprep.subr.bf16.mxu1 %v4711_v13  ;;  %v847_v11 = vrot.slane %v845_v4, 1  ;;  %v4734_v13 = vld [vmem:[%s5791_s3 + $0x94] ss:$8 sps:$4 sm:$0xff]   ;;  %v4763_v4 = vld [vmem:[%s4969_s6 + $0x48] sm:$0xff]  }
  0x6c   : > { %1768 = vrot.lane.b32.xlu0 %v1619_v16, %s4900_s23  ;;  %v2537_v16 = vrot.slane %v2535_v12, 1 }
  0x6d   : > { %3322 = vmatpush1.bf16.msra.mxu0 %v4717_v29 }
  0x6e   : > { %4546 = vmatpush1.bf16.msra.mxu1 %v4717_v29  ;;  %3323 = vmatprep.subr.bf16.mxu0 %v4718_v30 }
  0x6f   : > { %2986 = vrot.lane.b32.xlu1 %v2956_v19, %s4901_s24  ;;  %v2533_v19 = vor.u32 %v2532_v14, %v2528_v7  ;;  %4533 = vmatprep.subr.bf16.mxu1 %v4718_v30  ;;  %v4732_v7 = vld [vmem:[%s5791_s3 + $0x80] ss:$8 sps:$4 sm:$0xff]   ;;  %v747_v14 = vor.u32 %v746_v9, %v742_v62 }
  0x70   : > { %2970 = vrot.lane.b32.xlu0 %v2932_v26, %s4901_s24  ;;  %v4716_v26 = vld [vmem:[%s4969_s6 + $0x38] ss:$0 sps:$4 sm:$0x11]  }
  0x71   : > { %v2538_v27 = vsel %vm692_vm1, %v2533_v19, %v2537_v16  ;;  %v1628_v34 = vshll.u32 %v4716_v26, 16  ;;  %3324 = vmatpush1.bf16.msra.mxu0 %v4724_v49  ;;  %v4737_v19 = vld [vmem:[%s4969_s6 + $0xa4] ss:$0 sps:$4 sm:$0x11]   ;;  %v4738_v26 = vld [vmem:[%s4969_s6 + $0x3c] sm:$0xfe]  }
  0x72   : > { %4547 = vmatpush1.bf16.msra.mxu1 %v4724_v49  ;;  %v2029_v31 = vrot.slane %v4738_v26, 1  ;;  %v4768_v26 = vld [vmem:[%s4969_s6 + $0x3c] sm:$0xff]  }
  0x73   : > { %907 = vrot.lane.b32.xlu1 %v836_v32, %s4898_s21  ;;  %v1621_v32 = vshrl.u32 %v4715_v25, 16  ;;  %v1630_v38 = vrot.slane %v1628_v34, 1  ;;  %v2054_v25 = vrot.slane %v4737_v19, 1  ;;  %v4744_v34 = vld [vmem:[%s4969_s6 + $0x98] ss:$0 sps:$4 sm:$0x11]  }
  0x74   : > { %891 = vrot.lane.b32.xlu0 %v740_v39, %s4898_s21  ;;  %v2031_v35 = vsel %vm1126_vm0, %v2029_v31, %v2030_v33  ;;  %v4769_v31 = vld [vmem:[%s4969_s6 + $0x44] ss:$0 sps:$4 sm:$0x11]  }
  0x75   : > { %v1626_v44 = vor.u32 %v1625_v37, %v1621_v32  ;;  %v4741_v32 = vld [vmem:[%s5791_s3 + $0xa4] ss:$8 sps:$4 sm:$0xff]   ;;  %v1164_v37 = vrot.slane %v4744_v34, 1 }
  0x77   : > { %2084 = vrot.lane.b32.xlu1 %v2052_v40, %s4896_s19  ;;  %v4721_v40 = vld [vmem:[%s4969_s6 + $0xa4] ss:$0 sps:$4 sm:$0x11]   ;;  %v1631_v50 = vsel %vm692_vm1, %v1626_v44, %v1630_v38  ;;  %v4745_v38 = vld [vmem:[%s4969_s6 + $0x30] sm:$0xfe]  }
  0x78   : > { %2068 = vrot.lane.b32.xlu0 %v2028_v47, %s4896_s19  ;;  %v2958_v46 = vrot.slane %v4721_v40, 1  ;;  %v4722_v47 = vld [vmem:[%s4969_s6 + $0x3c] sm:$0xfe]  }
  0x79   : > { %v2933_v52 = vrot.slane %v4722_v47, 1  ;;  %v4747_v40 = vld [vmem:[%s5791_s3 + $0xa0] ss:$8 sps:$4 sm:$0xff]   ;;  %v4748_v44 = vld [vmem:[%s5791_s3 + $0xb4] ss:$8 sps:$4 sm:$0xff]  }
  0x7a   : > { %v4750_v47 = vld [vmem:[%s4969_s6 + $0xa8] sm:$0xff]  }
  0x7b   : > { %1197 = vrot.lane.b32.xlu1 %v1162_v51, %s4897_s20  ;;  %v2959_v51 = vsel %vm1126_vm0, %v2957_v42, %v2958_v46  ;;  %v2935_v60 = vsel %vm1126_vm0, %v2933_v52, %v2934_v55  ;;  %v4757_v52 = vld [vmem:[%s5791_s3 + $0xc0] ss:$8 sps:$4 sm:$0xff]   ;;  %v4758_v55 = vld [vmem:[%s4969_s6 + $0x6c] sm:$0xff]  }
  0x7c   : > { %1181 = vrot.lane.b32.xlu0 %v1138_v56, %s4897_s20  ;;  %v4726_v56 = vld [vmem:[%s5791_s3 + $0x84] ss:$8 sps:$4 sm:$0xff]   ;;  %509 = vst.msk [vmem:[#allocation2 + $0x90] sm:$0xff] %vm499_vm3, %v4758_v55 }
  0x7d   : > { %3325 = vmatprep.subr.bf16.mxu0 %v4726_v56  ;;  %4534 = vmatprep.subr.bf16.mxu1 %v4726_v56  ;;  %v4759_v56 = vld [vmem:[%s4969_s6 + $0xc] sm:$0xff]  }
  0x7e   : > { %3326 = vmatpush1.bf16.msra.mxu0 %v4732_v7  ;;  %4548 = vmatpush1.bf16.msra.mxu1 %v4732_v7  ;;  %501 = vst.msk [vmem:[#allocation2 + $0x10] sm:$0xff] %vm499_vm3, %v4759_v56  ;;  %v4776_v56 = vld [vmem:[%s4969_s6 + $0x3c] sm:$0xff]  }
  0x7f   : > { %2279 = vrot.lane.b32.xlu1 %v4696_v53, %s4894_s11  ;;  %3327 = vmatprep.subr.bf16.mxu0 %v4734_v13 }
  0x80   : > { %2263 = vrot.lane.b32.xlu0 %v4697_v59, %s4894_s11  ;;  %v840_v59 = vshll.u32 %v4728_v54, 16  ;;  %4535 = vmatprep.subr.bf16.mxu1 %v4734_v13  ;;  %v4756_v54 = vld [vmem:[%s4969_s6 + $0x3c] sm:$0xff]   ;;  %v2540_v13 = vshrl.u32 %v4763_v4, 16 }
  0x83   : > { %1368 = vrot.lane.b32.xlu1 %v4701_v0, %s4895_s14  ;;  %v842_v0 = vrot.slane %v840_v59, 1 }
  0x84   : > { %1352 = vrot.lane.b32.xlu0 %v4702_v5, %s4895_s14  ;;  %v4731_v5 = vld [vmem:[%s4969_s6 + $0x38] ss:$0 sps:$4 sm:$0x11]  }
  0x85   : > { %v5188_v1 = vpop.permute.xlu1 %2273  ;;  %v843_v8 = vor.u32 %v842_v0, %v838_v58  ;;  %v749_v12 = vshll.u32 %v4731_v5, 16  ;;  %v3117_v58 = vld [vmem:[%s5791_s3 + $0xd0] sm:$0xff] }
  0x86   : > { %v5192_v6 = vpop.permute.xlu0 %2257  ;;  %v4437_v59 = vcombine.high %v3117_v58, %v3117_v58  ;;  %v4436_v62 = vcombine.low %v3117_v58, %v3117_v58 }
  0x87   : > { %2681 = vrot.lane.b32.xlu1 %v2634_v18, %s4899_s22  ;;  %v848_v16 = vsel %vm692_vm1, %v843_v8, %v847_v11  ;;  %v751_v17 = vrot.slane %v749_v12, 1  ;;  %v4736_v18 = vld [vmem:[%s4969_s6 + $0x9c] sm:$0xfe]   ;;  %v4764_v8 = vld [vmem:[%s4969_s6 + $0x50] ss:$0 sps:$4 sm:$0x11]  }
  0x88   : > { %2665 = vrot.lane.b32.xlu0 %v2538_v27, %s4899_s22  ;;  %v2053_v24 = vrot.slane %v4736_v18, 1  ;;  %v4740_v27 = vld [vmem:[%s5791_s3 + $0x90] ss:$8 sps:$4 sm:$0xff]   ;;  %v3304_v5 = vsel %vm3302_vm12, %v4436_v62, 0 }
  0x89   : > { %v5205_v22 = vpop.permute.xlu1 %2062  ;;  %v752_v21 = vsel %vm692_vm1, %v747_v14, %v751_v17  ;;  %3328 = vmatpush1.bf16.msra.mxu0 %v4740_v27  ;;  %4549 = vmatpush1.bf16.msra.mxu1 %v4740_v27  ;;  %v2542_v14 = vshll.u32 %v4763_v4, 16  ;;  %v4766_v17 = vld [vmem:[%s4969_s6 + $0x9c] sm:$0xff]   ;;  %v754_v4 = vshrl.u32 %v4776_v56, 16 }
  0x8a   : > { %v5207_v23 = vpop.permute.xlu0 %1346  ;;  %2110 = vst.msk [vmem:[#allocation2 + $0x8] sm:$0xff] %vm2109_vm2, %v5205_v22  ;;  %v2055_v30 = vsel %vm1126_vm0, %v2053_v24, %v2054_v25  ;;  %3329 = vmatprep.subr.bf16.mxu0 %v4741_v32  ;;  %4536 = vmatprep.subr.bf16.mxu1 %v4741_v32  ;;  %v1729_v24 = vshrl.u32 %v4766_v17, 16  ;;  %v1731_v25 = vshll.u32 %v4766_v17, 16 }
  0x8b   : > { %1786 = vrot.lane.b32.xlu1 %v1727_v41, %s4900_s23  ;;  %2300 = vst.msk [vmem:[#allocation2 + $0x8] sm:$0xff] %vm2299_vm6, %v5192_v6  ;;  %v4746_v41 = vld [vmem:[%s4969_s6 + $0x38] ss:$0 sps:$4 sm:$0x11]   ;;  %v2544_v19 = vrot.slane %v2542_v14, 1 }
  0x8c   : > { %1770 = vrot.lane.b32.xlu0 %v1631_v50, %s4900_s23  ;;  %v1140_v46 = vrot.slane %v4746_v41, 1  ;;  %v4751_v50 = vld [vmem:[%s4969_s6 + $0x48] sm:$0xff]   ;;  %v1733_v34 = vrot.slane %v1731_v25, 1  ;;  %v4779_v14 = vld [vmem:[%s4969_s6 + $0xb0] ss:$0 sps:$4 sm:$0x11]  }
  0x8d   : > { %v5223_v39 = vpop.permute.xlu1 %2078  ;;  %3330 = vmatpush1.bf16.msra.mxu0 %v4747_v40  ;;  %4550 = vmatpush1.bf16.msra.mxu1 %v4747_v40  ;;  %v1640_v40 = vshll.u32 %v4769_v31, 16 }
  0x8e   : > { %2126 = vst.msk [vmem:[#allocation2 + $0x88] sm:$0xff] %vm2109_vm2, %v5223_v39  ;;  %v1176_v45 = vpop.permute.xlu0 %1175  ;;  %3331 = vmatprep.subr.bf16.mxu0 %v4748_v44  ;;  %4537 = vmatprep.subr.bf16.mxu1 %v4748_v44  ;;  %v1734_v41 = vor.u32 %v1733_v34, %v1729_v24  ;;  %v4790_v34 = vld [vmem:[%s4969_s6 + $0x78] sm:$0xff]  }
  0x8f   : > { %2988 = vrot.lane.b32.xlu1 %v2959_v51, %s4901_s24  ;;  %2308 = vst.msk [vmem:[#allocation2 + $0x88] sm:$0xff] %vm2299_vm6, %v5188_v1  ;;  %v4743_v1 = vld [vmem:[%s4969_s6 + $0x90] sm:$0xfe]   ;;  %v4755_v51 = vld [vmem:[%s4969_s6 + $0x9c] sm:$0xff]  }
  0x90   : > { %2972 = vrot.lane.b32.xlu0 %v2935_v60, %s4901_s24  ;;  %v1163_v36 = vrot.slane %v4743_v1, 1  ;;  %v4761_v60 = vld [vmem:[%s4969_s6 + $0xa8] sm:$0xff]   ;;  %510 = vst.msk [vmem:[#allocation2 + $0xa0] sm:$0xff] %vm499_vm3, %v4790_v34 }
  0x91   : > { %v1192_v53 = vpop.permute.xlu1 %1191  ;;  %v2636_v0 = vshrl.u32 %v4761_v60, 16  ;;  %v2638_v2 = vshll.u32 %v4761_v60, 16 }
  0x92   : > { %v886_v63 = vpop.permute.xlu0 %885  ;;  %v1165_v43 = vsel %vm1126_vm0, %v1163_v36, %v1164_v37  ;;  %v4774_v36 = vld [vmem:[%s4969_s6 + $0x9c] sm:$0xff]  }
  0x93   : > { %934 = vst.msk [vmem:[#allocation2] sm:$0xff] %vm933_vm4, %v886_v63  ;;  %909 = vrot.lane.b32.xlu1 %v848_v16, %s4898_s21  ;;  %v2640_v11 = vrot.slane %v2638_v2, 1  ;;  %v2547_v16 = vshll.u32 %v4764_v8, 16 }
  0x94   : > { %1224 = vst.msk [vmem:[#allocation2] sm:$0xff] %vm1223_vm5, %v1176_v45  ;;  %893 = vrot.lane.b32.xlu0 %v752_v21, %s4898_s21 }
  0x95   : > { %v1363_v3 = vpop.permute.xlu1 %1362  ;;  %1392 = vst.msk [vmem:[#allocation2] sm:$0xff] %vm1391_vm8, %v5207_v23  ;;  %v1139_v23 = vrot.slane %v4745_v38, 1  ;;  %v2641_v18 = vor.u32 %v2640_v11, %v2636_v0  ;;  %v2549_v21 = vrot.slane %v2547_v16, 1  ;;  %v4778_v11 = vld [vmem:[%s4969_s6 + $0xa8] sm:$0xfe]  }
  0x96   : > { %v902_v15 = vpop.permute.xlu0 %901  ;;  %v2056_v17 = vrot.slane %v4778_v11, 1 }
  0x97   : > { %942 = vst.msk [vmem:[#allocation2 + $0x80] sm:$0xff] %vm933_vm4, %v902_v15  ;;  %2086 = vrot.lane.b32.xlu1 %v2055_v30, %s4896_s19  ;;  %v1141_v48 = vsel %vm1126_vm0, %v1139_v23, %v1140_v46  ;;  %v4771_v23 = vld [vmem:[%s4969_s6 + $0xb0] ss:$0 sps:$4 sm:$0x11]   ;;  %v850_v46 = vshrl.u32 %v4774_v36, 16 }
  0x98   : > { %1232 = vst.msk [vmem:[#allocation2 + $0x80] sm:$0xff] %vm1223_vm5, %v1192_v53  ;;  %2070 = vrot.lane.b32.xlu0 %v2031_v35, %s4896_s19  ;;  %v1635_v35 = vshll.u32 %v4768_v26, 16 }
  0x99   : > { %v2676_v20 = vpop.permute.xlu1 %2675  ;;  %1400 = vst.msk [vmem:[#allocation2 + $0x80] sm:$0xff] %vm1391_vm8, %v1363_v3  ;;  %v2643_v3 = vshll.u32 %v4762_v61, 16 }
  0x9a   : > { %v2660_v29 = vpop.permute.xlu0 %2659  ;;  %2710 = vst.msk [vmem:[#allocation2 + $0x88] sm:$0xff] %vm2701_vm7, %v2676_v20  ;;  %v4767_v20 = vld [vmem:[%s4969_s6 + $0xa4] ss:$0 sps:$4 sm:$0x11]  }
  0x9b   : > { %2702 = vst.msk [vmem:[#allocation2 + $0x8] sm:$0xff] %vm2701_vm7, %v2660_v29  ;;  %1199 = vrot.lane.b32.xlu1 %v1165_v43, %s4897_s20  ;;  %v2645_v12 = vrot.slane %v2643_v3, 1  ;;  %v2545_v29 = vor.u32 %v2544_v19, %v2540_v13  ;;  %v1736_v30 = vshll.u32 %v4767_v20, 16  ;;  %v4770_v43 = vld [vmem:[%s4969_s6 + $0xa8] sm:$0xfe]   ;;  %v2057_v19 = vrot.slane %v4779_v14, 1 }
  0x9c   : > { %1183 = vrot.lane.b32.xlu0 %v1141_v48, %s4897_s20  ;;  %v4777_v3 = vld [vmem:[%s4969_s6 + $0x44] ss:$0 sps:$4 sm:$0x11]   ;;  %v4780_v20 = vld [vmem:[%s4969_s6 + $0x48] sm:$0xfe]  }
  0x9d   : > { %v1781_v6 = vpop.permute.xlu1 %1780  ;;  %v2646_v28 = vsel %vm692_vm1, %v2641_v18, %v2645_v12  ;;  %v2550_v37 = vsel %vm692_vm1, %v2545_v29, %v2549_v21  ;;  %v1738_v38 = vrot.slane %v1736_v30, 1  ;;  %v4781_v21 = vld [vmem:[%s4969_s6 + $0x50] ss:$0 sps:$4 sm:$0x11]   ;;  %v4782_v29 = vld [vmem:[%s4969_s6 + $0x9c] sm:$0xfe]  }
  0x9e   : > { %1818 = vst.msk [vmem:[#allocation2 + $0x80] sm:$0xff] %vm1809_vm9, %v1781_v6  ;;  %v1765_v42 = vpop.permute.xlu0 %1764  ;;  %v1633_v6 = vshrl.u32 %v4768_v26, 16  ;;  %v4783_v30 = vld [vmem:[%s4969_s6 + $0xa4] ss:$0 sps:$4 sm:$0x11]  }
  0x9f   : > { %2125 = vst.msk [vmem:[#allocation2 + $0x80] sm:$0xff] %vm2107_vm10, %v5223_v39  ;;  %v4752_v39 = vld [vmem:[%s5791_s3 + $0xb0] ss:$8 sps:$4 sm:$0xff]   ;;  %2281 = vrot.lane.b32.xlu1 %v4750_v47, %s4894_s11 }
  0xa0   : > { %1810 = vst.msk [vmem:[#allocation2] sm:$0xff] %vm1809_vm9, %v1765_v42  ;;  %3332 = vmatpush1.bf16.msra.mxu0 %v4752_v39  ;;  %4551 = vmatpush1.bf16.msra.mxu1 %v4752_v39  ;;  %v1637_v42 = vrot.slane %v1635_v35, 1  ;;  %v1739_v39 = vsel %vm692_vm1, %v1734_v41, %v1738_v38  ;;  %v4785_v35 = vld [vmem:[%s4969_s6 + $0x44] ss:$0 sps:$4 sm:$0x11]   ;;  %v4791_v38 = vld [vmem:[%s4969_s6 + $0x18] sm:$0xff]  }
  0xa1   : > { %v2983_v45 = vpop.permute.xlu1 %2982  ;;  %2108 = vst.msk [vmem:[#allocation2] sm:$0xff] %vm2107_vm10, %v5205_v22  ;;  %v4753_v22 = vld [vmem:[%s5791_s3 + $0xc4] ss:$8 sps:$4 sm:$0xff]   ;;  %2265 = vrot.lane.b32.xlu0 %v4751_v50, %s4894_s11  ;;  %v1143_v41 = vrot.slane %v4785_v35, 1 }
  0xa2   : > { %3017 = vst.msk [vmem:[#allocation2 + $0x88] sm:$0xff] %vm3008_vm11, %v2983_v45  ;;  %v2967_v49 = vpop.permute.xlu0 %2966  ;;  %3333 = vmatprep.subr.bf16.mxu0 %v4753_v22  ;;  %4538 = vmatprep.subr.bf16.mxu1 %v4753_v22  ;;  %v1642_v45 = vrot.slane %v1640_v40, 1  ;;  %v1638_v48 = vor.u32 %v1637_v42, %v1633_v6  ;;  %v2961_v22 = vrot.slane %v4771_v23, 1  ;;  %v4772_v50 = vld [vmem:[%s4969_s6 + $0x48] sm:$0xfe]   ;;  %v1167_v6 = vrot.slane %v4783_v30, 1 }
  0xa3   : > { %3009 = vst.msk [vmem:[#allocation2 + $0x8] sm:$0xff] %vm3008_vm11, %v2967_v49  ;;  %1370 = vrot.lane.b32.xlu1 %v4755_v51, %s4895_s14  ;;  %v2960_v49 = vrot.slane %v4770_v43, 1  ;;  %v4773_v51 = vld [vmem:[%s4969_s6 + $0x50] ss:$0 sps:$4 sm:$0x11]   ;;  %v2936_v55 = vrot.slane %v4772_v50, 1 }
  0xa4   : > { %3334 = vmatpush1.bf16.msra.mxu0 %v4757_v52  ;;  %4552 = vmatpush1.bf16.msra.mxu1 %v4757_v52  ;;  %v852_v52 = vshll.u32 %v4774_v36, 16  ;;  %v2937_v58 = vrot.slane %v4773_v51, 1  ;;  %v4792_v42 = vld [vmem:[%s4969_s6 + $0xb4] sm:$0xff]   ;;  %502 = vst.msk [vmem:[#allocation2 + $0x20] sm:$0xff] %vm499_vm3, %v4791_v38  ;;  %v4789_v50 = vld [vmem:[%s4969_s6 + $0x48] sm:$0xff]  }
  0xa5   : > { %v904_v53 = vpop.permute.xlu1 %903  ;;  %4438 = vmatprep.subr.msk.bf16.mxu0 %vm3302_vm12, %v4437_v59  ;;  %4539 = vmatprep.subr.msk.bf16.mxu1 %vm3302_vm12, %v4437_v59  ;;  %v4775_v59 = vld [vmem:[%s4969_s6 + $0xa4] ss:$0 sps:$4 sm:$0x11]   ;;  %v4804_v30 = vld [vmem:[%s4969_s6 + $0xa8] sm:$0xff]  }
  0xa6   : > { %v888_v57 = vpop.permute.xlu0 %887  ;;  %943 = vst.msk [vmem:[#allocation2 + $0x90] sm:$0xff] %vm933_vm4, %v904_v53  ;;  %1354 = vrot.lane.b32.xlu0 %v4756_v54, %s4895_s14  ;;  %v3075_v33 = vld [vmem:[#allocation2 + $0x80] sm:$0xff]  ;;  %v1643_v53 = vsel %vm692_vm1, %v1638_v48, %v1642_v45  ;;  %v2962_v54 = vsel %vm1126_vm0, %v2960_v49, %v2961_v22  ;;  %v854_v60 = vrot.slane %v852_v52, 1  ;;  %v2938_v62 = vsel %vm1126_vm0, %v2936_v55, %v2937_v58  ;;  %v4794_v49 = vld [vmem:[%s4969_s6 + $0x54] sm:$0xff]  }
  0xa7   : > { %935 = vst.msk [vmem:[#allocation2 + $0x10] sm:$0xff] %vm933_vm4, %v888_v57  ;;  %2683 = vrot.lane.b32.xlu1 %v2646_v28, %s4899_s22  ;;  %v857_v2 = vshll.u32 %v4775_v59, 16  ;;  %v2032_v28 = vrot.slane %v4780_v20, 1  ;;  %v2650_v48 = vshll.u32 %v4792_v42, 16  ;;  %v2552_v55 = vshrl.u32 %v4794_v49, 16  ;;  %v4796_v59 = vld [vmem:[%s4969_s6 + $0xa8] sm:$0xff]  }
  0xa8   : > { %3336 = vmatpush1.bf16.msra.mxu0 %v3304_v5  ;;  %4553 = vmatpush1.bf16.msra.mxu1 %v3304_v5  ;;  %v3059_v32 = vld [vmem:[#allocation2] sm:$0xff]  ;;  %v855_v0 = vor.u32 %v854_v60, %v850_v46  ;;  %v756_v5 = vshll.u32 %v4776_v56, 16  ;;  %v4788_v46 = vld [vmem:[%s4969_s6 + $0xa8] sm:$0xff]   ;;  %v4795_v52 = vld [vmem:[%s4969_s6 + $0x5c] ss:$0 sps:$4 sm:$0x11]  }
  0xa9   : > { %v5338_v63 = vpop.permute.xlu1 %2080  ;;  %v3076_v10 = vld [vmem:[#allocation2 + $0x88] sm:$0xff]  ;;  %v859_v8 = vrot.slane %v857_v2, 1  ;;  %v2554_v56 = vshll.u32 %v4794_v49, 16  ;;  %v4797_v2 = vld [vmem:[%s4969_s6 + $0xb0] ss:$0 sps:$4 sm:$0x11]  }
  0xaa   : > { %2128 = vst.msk [vmem:[#allocation2 + $0x98] sm:$0xff] %vm2109_vm2, %v5338_v63  ;;  %v3060_v7 = vld [vmem:[#allocation2 + $0x8] sm:$0xff]  ;;  %v5349_v9 = vpop.permute.xlu0 %2064  ;;  %4447 = vmatprep.mubr.msk.bf16.mxu1 %vm3253_vm13, %v3076_v10  ;;  %2667 = vrot.lane.b32.xlu0 %v2550_v37, %s4899_s22  ;;  %v761_v10 = vshll.u32 %v4777_v3, 16  ;;  %v758_v13 = vrot.slane %v756_v5, 1  ;;  %v4786_v37 = vld [vmem:[%s4969_s6 + $0xb4] sm:$0xff]   ;;  %v1741_v5 = vshrl.u32 %v4796_v59, 16 }
  0xab   : > { %2112 = vst.msk [vmem:[#allocation2 + $0x18] sm:$0xff] %vm2109_vm2, %v5349_v9  ;;  %4439 = vmatprep.mubr.msk.bf16.mxu0 %vm3253_vm13, %v3060_v7  ;;  %3422 = vmatmul.mubr.bf16.vlgmr.msra.gmra.mrb[0].mxu1 %v3075_v33  ;;  %v4784_v33 = vld [vmem:[%s4969_s6 + $0x3c] sm:$0xfe]   ;;  %v4803_v35 = vld [vmem:[%s4969_s6 + $0x5c] ss:$0 sps:$4 sm:$0x11]  }
  0xac   : > { %3342 = vmatmul.mubr.bf16.vlgmr.msra.gmra.mrb[0].mxu0 %v3059_v32  ;;  %1788 = vrot.lane.b32.xlu1 %v1739_v39, %s4900_s23  ;;  %v763_v16 = vrot.slane %v761_v10, 1  ;;  %v759_v18 = vor.u32 %v758_v13, %v754_v4  ;;  %v1166_v32 = vrot.slane %v4782_v29, 1  ;;  %v1142_v36 = vrot.slane %v4784_v33, 1  ;;  %v4801_v29 = vld [vmem:[%s4969_s6 + $0xbc] ss:$0 sps:$4 sm:$0x11]  }
  0xad   : > { %v1194_v15 = vpop.permute.xlu1 %1193  ;;  %v2648_v39 = vshrl.u32 %v4792_v42, 16  ;;  %v1748_v13 = vshll.u32 %v4797_v2, 16  ;;  %v2964_v34 = vrot.slane %v4801_v29, 1  ;;  %v4805_v42 = vld [vmem:[%s4969_s6 + $0xb0] ss:$0 sps:$4 sm:$0x11]  }
  0xae   : > { %1233 = vst.msk [vmem:[#allocation2 + $0x90] sm:$0xff] %vm1223_vm5, %v1194_v15  ;;  %v1178_v27 = vpop.permute.xlu0 %1177  ;;  %1772 = vrot.lane.b32.xlu0 %v1643_v53, %s4900_s23  ;;  %v860_v15 = vsel %vm692_vm1, %v855_v0, %v859_v8  ;;  %v764_v26 = vsel %vm692_vm1, %v759_v18, %v763_v16  ;;  %v1168_v40 = vsel %vm1126_vm0, %v1166_v32, %v1167_v6  ;;  %v2556_v0 = vrot.slane %v2554_v56, 1  ;;  %v4798_v8 = vld [vmem:[%s4969_s6 + $0x48] sm:$0xff]   ;;  %v4799_v16 = vld [vmem:[%s4969_s6 + $0x50] ss:$0 sps:$4 sm:$0x11]  }
  0xaf   : > { %1225 = vst.msk [vmem:[#allocation2 + $0x10] sm:$0xff] %vm1223_vm5, %v1178_v27  ;;  %v2058_v27 = vsel %vm1126_vm0, %v2056_v17, %v2057_v19  ;;  %v1144_v23 = vsel %vm1126_vm0, %v1142_v36, %v1143_v41  ;;  %v1645_v17 = vshrl.u32 %v4798_v8, 16  ;;  %v1647_v18 = vshll.u32 %v4798_v8, 16  ;;  %v4802_v6 = vld [vmem:[%s4969_s6 + $0x54] sm:$0xfe]   ;;  %v4817_v29 = vld [vmem:[%s4969_s6 + $0x60] sm:$0xff]  }
  0xb0   : > { %2990 = vrot.lane.b32.xlu1 %v2962_v54, %s4901_s24  ;;  %v2652_v54 = vrot.slane %v2650_v48, 1  ;;  %v1750_v20 = vrot.slane %v1748_v13, 1  ;;  %v2940_v41 = vrot.slane %v4803_v35, 1 }
  0xb1   : > { %v2276_v1 = vpop.permute.xlu1 %2275 }
  0xb2   : > { %2309 = vst.msk [vmem:[#allocation2 + $0x98] sm:$0xff] %vm2299_vm6, %v2276_v1  ;;  %v2260_v44 = vpop.permute.xlu0 %2259  ;;  %2974 = vrot.lane.b32.xlu0 %v2938_v62, %s4901_s24  ;;  %v2653_v62 = vor.u32 %v2652_v54, %v2648_v39  ;;  %v4807_v39 = vld [vmem:[%s4969_s6 + $0x50] ss:$0 sps:$4 sm:$0x11]  }
  0xb3   : > { %2301 = vst.msk [vmem:[#allocation2 + $0x18] sm:$0xff] %vm2299_vm6, %v2260_v44  ;;  %v4787_v44 = vld [vmem:[%s4969_s6 + $0x54] sm:$0xff]   ;;  %v773_v54 = vshll.u32 %v4807_v39, 16 }
  0xb4   : > { %911 = vrot.lane.b32.xlu1 %v860_v15, %s4898_s21 }
  0xb5   : > { %v1365_v47 = vpop.permute.xlu1 %1364 }
  0xb6   : > { %1401 = vst.msk [vmem:[#allocation2 + $0x90] sm:$0xff] %vm1391_vm8, %v1365_v47  ;;  %v1349_v57 = vpop.permute.xlu0 %1348  ;;  %895 = vrot.lane.b32.xlu0 %v764_v26, %s4898_s21  ;;  %v4793_v47 = vld [vmem:[%s4969_s6 + $0xbc] ss:$0 sps:$4 sm:$0x11]   ;;  %v1649_v26 = vrot.slane %v1647_v18, 1 }
  0xb7   : > { %1393 = vst.msk [vmem:[#allocation2 + $0x10] sm:$0xff] %vm1391_vm8, %v1349_v57  ;;  %v2655_v51 = vshll.u32 %v4793_v47, 16  ;;  %v869_v47 = vshll.u32 %v4805_v42, 16  ;;  %v4815_v18 = vld [vmem:[%s4969_s6 + $0x50] ss:$0 sps:$4 sm:$0x11]  }
  0xb8   : > { %2088 = vrot.lane.b32.xlu1 %v2058_v27, %s4896_s19  ;;  %v1652_v27 = vshll.u32 %v4799_v16, 16  ;;  %v1650_v32 = vor.u32 %v1649_v26, %v1645_v17  ;;  %v4814_v17 = vld [vmem:[%s4969_s6 + $0x48] sm:$0xfe]  }
  0xb9   : > { %v2678_v61 = vpop.permute.xlu1 %2677  ;;  %v2657_v60 = vrot.slane %v2655_v51, 1  ;;  %v4821_v26 = vld [vmem:[%s4969_s6 + $0x24] sm:$0xff]  }
  0xba   : > { %2711 = vst.msk [vmem:[#allocation2 + $0x98] sm:$0xff] %vm2701_vm7, %v2678_v61  ;;  %v2662_v7 = vpop.permute.xlu0 %2661  ;;  %v2559_v61 = vshll.u32 %v4795_v52, 16  ;;  %v1654_v33 = vrot.slane %v1652_v27, 1  ;;  %v1146_v27 = vrot.slane %v4815_v18, 1 }
  0xbb   : > { %2703 = vst.msk [vmem:[#allocation2 + $0x18] sm:$0xff] %vm2701_vm7, %v2662_v7  ;;  %v1743_v7 = vshll.u32 %v4796_v59, 16  ;;  %v2658_v11 = vsel %vm692_vm1, %v2653_v62, %v2657_v60  ;;  %v775_v59 = vrot.slane %v773_v54, 1 }
  0xbc   : > { %1201 = vrot.lane.b32.xlu1 %v1168_v40, %s4897_s20  ;;  %v2561_v4 = vrot.slane %v2559_v61, 1  ;;  %v1655_v36 = vsel %vm692_vm1, %v1650_v32, %v1654_v33  ;;  %v2939_v40 = vrot.slane %v4802_v6, 1  ;;  %503 = vst.msk [vmem:[#allocation2 + $0x30] sm:$0xff] %vm499_vm3, %v4821_v26  ;;  %v4823_v33 = vld [vmem:[%s5497_s5 + $0x8] ss:$0 sps:$4 sm:$0x11]  }
  0xbd   : > { %v1783_v12 = vpop.permute.xlu1 %1782  ;;  %v1745_v15 = vrot.slane %v1743_v7, 1  ;;  %v4824_v6 = vld [vmem:[%s4969_s6 + $0x60] sm:$0xff]  }
  0xbe   : > { %1819 = vst.msk [vmem:[#allocation2 + $0x90] sm:$0xff] %vm1809_vm9, %v1783_v12  ;;  %v1767_v24 = vpop.permute.xlu0 %1766  ;;  %v2557_v12 = vor.u32 %v2556_v0, %v2552_v55 }
  0xbf   : > { %2127 = vst.msk [vmem:[#allocation2 + $0x90] sm:$0xff] %vm2107_vm10, %v5338_v63  ;;  %v2033_v63 = vrot.slane %v4781_v21, 1 }
  0xc0   : > { %1811 = vst.msk [vmem:[#allocation2 + $0x10] sm:$0xff] %vm1809_vm9, %v1767_v24  ;;  %2283 = vrot.lane.b32.xlu1 %v4786_v37, %s4894_s11  ;;  %v2562_v19 = vsel %vm692_vm1, %v2557_v12, %v2561_v4  ;;  %v4813_v12 = vld [vmem:[%s4969_s6 + $0xb0] ss:$0 sps:$4 sm:$0x11]  }
  0xc1   : > { %v2985_v25 = vpop.permute.xlu1 %2984  ;;  %2111 = vst.msk [vmem:[#allocation2 + $0x10] sm:$0xff] %vm2107_vm10, %v5349_v9  ;;  %v2034_v31 = vsel %vm1126_vm0, %v2032_v28, %v2033_v63  ;;  %v4800_v28 = vld [vmem:[%s4969_s6 + $0xb4] sm:$0xfe]   ;;  %v1170_v16 = vrot.slane %v4813_v12, 1 }
  0xc2   : > { %3018 = vst.msk [vmem:[#allocation2 + $0x98] sm:$0xff] %vm3008_vm11, %v2985_v25  ;;  %v2969_v1 = vpop.permute.xlu0 %2968  ;;  %2072 = vrot.lane.b32.xlu0 %v2034_v31, %s4896_s19  ;;  %v1746_v25 = vor.u32 %v1745_v15, %v1741_v5  ;;  %v4811_v5 = vld [vmem:[%s4969_s6 + $0x5c] ss:$0 sps:$4 sm:$0x11]  }
  0xc3   : > { %3010 = vst.msk [vmem:[#allocation2 + $0x18] sm:$0xff] %vm3008_vm11, %v2969_v1  ;;  %v2963_v1 = vrot.slane %v4800_v28, 1  ;;  %v4822_v28 = vld [vmem:[%s5497_s5] sm:$0xff]   ;;  %v4831_v12 = vld [vmem:[%s5497_s5 + $0x8] ss:$0 sps:$4 sm:$0x11]  }
  0xc4   : > { %1372 = vrot.lane.b32.xlu1 %v4788_v46, %s4895_s14  ;;  %v1751_v31 = vsel %vm692_vm1, %v1746_v25, %v1750_v20  ;;  %v2941_v46 = vsel %vm1126_vm0, %v2939_v40, %v2940_v41  ;;  %v2564_v40 = vshrl.u32 %v4824_v6, 16  ;;  %v2566_v41 = vshll.u32 %v4824_v6, 16  ;;  %v4836_v6 = vld [vmem:[%s4969_s6 + $0x54] sm:$0xff]  }
  0xc5   : > { %v906_v9 = vpop.permute.xlu1 %905  ;;  %v2965_v38 = vsel %vm1126_vm0, %v2963_v1, %v2964_v34  ;;  %v2728_v1 = vshrl.u32 %v4822_v28, 16  ;;  %v2730_v34 = vshll.u32 %v4822_v28, 16  ;;  %v4835_v28 = vld [vmem:[%s4969_s6 + $0xbc] ss:$0 sps:$4 sm:$0x11]  }
  0xc6   : > { %944 = vst.msk [vmem:[#allocation2 + $0xa0] sm:$0xff] %vm933_vm4, %v906_v9  ;;  %v890_v43 = vpop.permute.xlu0 %889  ;;  %1185 = vrot.lane.b32.xlu0 %v1144_v23, %s4897_s20  ;;  %v3077_v21 = vld [vmem:[#allocation2 + $0x90] sm:$0xff]  ;;  %v864_v23 = vshll.u32 %v4804_v30, 16 }
  0xc7   : > { %936 = vst.msk [vmem:[#allocation2 + $0x20] sm:$0xff] %vm933_vm4, %v890_v43  ;;  %v862_v43 = vshrl.u32 %v4804_v30, 16 }
  0xc8   : > { %v3061_v14 = vld [vmem:[#allocation2 + $0x10] sm:$0xff]  ;;  %2685 = vrot.lane.b32.xlu1 %v2658_v11, %s4899_s22  ;;  %v866_v49 = vrot.slane %v864_v23, 1  ;;  %v4812_v11 = vld [vmem:[%s4969_s6 + $0xa8] sm:$0xfe]  }
  0xc9   : > { %v5423_v45 = vpop.permute.xlu1 %2082  ;;  %v3078_v58 = vld [vmem:[#allocation2 + $0x98] sm:$0xff]  ;;  %v1169_v15 = vrot.slane %v4812_v11, 1 }
  0xca   : > { %2130 = vst.msk [vmem:[#allocation2 + $0xa8] sm:$0xff] %vm2109_vm2, %v5423_v45  ;;  %v5432_v22 = vpop.permute.xlu0 %2066  ;;  %v3062_v57 = vld [vmem:[#allocation2 + $0x18] sm:$0xff]  ;;  %2267 = vrot.lane.b32.xlu0 %v4787_v44, %s4894_s11  ;;  %4448 = vmatprep.mubr.msk.bf16.mxu1 %vm3253_vm13, %v3078_v58  ;;  %v4806_v44 = vld [vmem:[%s4969_s6 + $0x48] sm:$0xff]   ;;  %v867_v55 = vor.u32 %v866_v49, %v862_v43 }
  0xcb   : > { %2114 = vst.msk [vmem:[#allocation2 + $0x28] sm:$0xff] %vm2109_vm2, %v5432_v22  ;;  %4440 = vmatprep.mubr.msk.bf16.mxu0 %vm3253_vm13, %v3062_v57  ;;  %3432 = vmatmul.mubr.bf16.gmra.mrb[4].mxu1 %v3077_v21  ;;  %v768_v51 = vshll.u32 %v4806_v44, 16  ;;  %v4808_v57 = vld [vmem:[%s4969_s6 + $0xb4] sm:$0xfe]   ;;  %v1171_v20 = vsel %vm1126_vm0, %v1169_v15, %v1170_v16  ;;  %v1145_v21 = vrot.slane %v4814_v17, 1 }
  0xcc   : > { %3352 = vmatmul.mubr.bf16.gmra.mrb[4].mxu0 %v3061_v14  ;;  %1790 = vrot.lane.b32.xlu1 %v1751_v31, %s4900_s23  ;;  %v4809_v58 = vld [vmem:[%s4969_s6 + $0xbc] ss:$0 sps:$4 sm:$0x11]   ;;  %v2059_v0 = vrot.slane %v4808_v57, 1  ;;  %v4818_v31 = vld [vmem:[%s4969_s6 + $0xb4] sm:$0xff]  }
  0xcd   : > { %v1196_v53 = vpop.permute.xlu1 %1195  ;;  %v770_v56 = vrot.slane %v768_v51, 1  ;;  %v2060_v2 = vrot.slane %v4809_v58, 1  ;;  %v1147_v30 = vsel %vm1126_vm0, %v1145_v21, %v1146_v27  ;;  %v4826_v49 = vld [vmem:[%s4969_s6 + $0xb4] sm:$0xff]   ;;  %v4833_v21 = vld [vmem:[%s4969_s6 + $0x68] ss:$0 sps:$4 sm:$0x11]  }
  0xce   : > { %1234 = vst.msk [vmem:[#allocation2 + $0xa0] sm:$0xff] %vm1223_vm5, %v1196_v53  ;;  %v1180_v3 = vpop.permute.xlu0 %1179  ;;  %1356 = vrot.lane.b32.xlu0 %v4789_v50, %s4895_s14  ;;  %v766_v50 = vshrl.u32 %v4806_v44, 16  ;;  %v871_v53 = vrot.slane %v869_v47, 1  ;;  %v4828_v51 = vld [vmem:[%s4969_s6 + $0x54] sm:$0xff]   ;;  %v1755_v57 = vshll.u32 %v4826_v49, 16  ;;  %v2943_v27 = vrot.slane %v4833_v21, 1 }
  0xcf   : > { %1226 = vst.msk [vmem:[#allocation2 + $0x20] sm:$0xff] %vm1223_vm5, %v1180_v3  ;;  %v4810_v3 = vld [vmem:[%s4969_s6 + $0x54] sm:$0xfe]   ;;  %v2061_v7 = vsel %vm1126_vm0, %v2059_v0, %v2060_v2  ;;  %v1659_v0 = vshll.u32 %v4828_v51, 16 }
  0xd0   : > { %2992 = vrot.lane.b32.xlu1 %v2965_v38, %s4901_s24  ;;  %v872_v61 = vsel %vm692_vm1, %v867_v55, %v871_v53  ;;  %v771_v62 = vor.u32 %v770_v56, %v766_v50  ;;  %v2035_v8 = vrot.slane %v4810_v3, 1  ;;  %v4825_v38 = vld [vmem:[%s4969_s6 + $0x68] ss:$0 sps:$4 sm:$0x11]   ;;  %v1753_v56 = vshrl.u32 %v4826_v49, 16  ;;  %v4834_v2 = vld [vmem:[%s4969_s6 + $0xb4] sm:$0xff]  }
  0xd1   : > { %v2278_v10 = vpop.permute.xlu1 %2277  ;;  %v2571_v47 = vshll.u32 %v4825_v38, 16  ;;  %v4827_v50 = vld [vmem:[%s4969_s6 + $0xbc] ss:$0 sps:$4 sm:$0x11]   ;;  %v780_v38 = vshll.u32 %v4836_v6, 16 }
  0xd2   : > { %2310 = vst.msk [vmem:[#allocation2 + $0xa8] sm:$0xff] %vm2299_vm6, %v2278_v10  ;;  %v2262_v24 = vpop.permute.xlu0 %2261  ;;  %2669 = vrot.lane.b32.xlu0 %v2562_v19, %s4899_s22  ;;  %v2036_v10 = vrot.slane %v4811_v5, 1  ;;  %v4820_v19 = vld [vmem:[%s4969_s6 + $0x84] sm:$0xff]   ;;  %v1760_v58 = vshll.u32 %v4827_v50, 16  ;;  %v1757_v5 = vrot.slane %v1755_v57, 1 }
  0xd3   : > { %2302 = vst.msk [vmem:[#allocation2 + $0x28] sm:$0xff] %vm2299_vm6, %v2262_v24  ;;  %v4816_v24 = vld [vmem:[%s5497_s5] sm:$0xff]   ;;  %v2573_v53 = vrot.slane %v2571_v47, 1  ;;  %v4841_v50 = vld [vmem:[%s4969_s6 + $0x68] ss:$0 sps:$4 sm:$0x11]  }
  0xd4   : > { %913 = vrot.lane.b32.xlu1 %v872_v61, %s4898_s21  ;;  %v2037_v14 = vsel %vm1126_vm0, %v2035_v8, %v2036_v10  ;;  %511 = vst.msk [vmem:[#allocation2 + $0xb0] sm:$0xff] %vm499_vm3, %v4820_v19  ;;  %v4829_v61 = vld [vmem:[%s4969_s6 + $0x5c] ss:$0 sps:$4 sm:$0x11]   ;;  %v4830_v10 = vld [vmem:[%s5497_s5] sm:$0xfe]   ;;  %v1758_v11 = vor.u32 %v1757_v5, %v1753_v56 }
  0xd5   : > { %v1367_v63 = vpop.permute.xlu1 %1366  ;;  %v1664_v8 = vshll.u32 %v4829_v61, 16  ;;  %v3034_v16 = vrot.slane %v4830_v10, 1  ;;  %v3035_v19 = vrot.slane %v4831_v12, 1  ;;  %v4843_v56 = vld [vmem:[%s4969_s6 + $0xbc] ss:$0 sps:$4 sm:$0x11]  }
  0xd6   : > { %1402 = vst.msk [vmem:[#allocation2 + $0xa0] sm:$0xff] %vm1391_vm8, %v1367_v63  ;;  %v1351_v9 = vpop.permute.xlu0 %1350  ;;  %1774 = vrot.lane.b32.xlu0 %v1655_v36, %s4900_s23  ;;  %v2732_v36 = vrot.slane %v2730_v34, 1  ;;  %v881_v34 = vshll.u32 %v4835_v28, 16  ;;  %v4845_v61 = vld [vmem:[%s4969_s6 + $0x5c] ss:$0 sps:$4 sm:$0x11]  }
  0xd7   : > { %1394 = vst.msk [vmem:[#allocation2 + $0x20] sm:$0xff] %vm1391_vm8, %v1351_v9  ;;  %v4819_v9 = vld [vmem:[%s4969_s6 + $0x54] sm:$0xff]   ;;  %v1666_v15 = vrot.slane %v1664_v8, 1  ;;  %v4847_v10 = vld [vmem:[%s4969_s6 + $0x6c] sm:$0xff]  }
  0xd8   : > { %2090 = vrot.lane.b32.xlu1 %v2061_v7, %s4896_s19  ;;  %v2733_v44 = vor.u32 %v2732_v36, %v2728_v1  ;;  %v1661_v7 = vrot.slane %v1659_v0, 1  ;;  %v883_v36 = vrot.slane %v881_v34, 1  ;;  %v4850_v12 = vld [vmem:[%s4969_s6 + $0x90] sm:$0xff]   ;;  %v4857_v34 = vld [vmem:[%s5497_s5 + $0x8] ss:$0 sps:$4 sm:$0x11]  }
  0xd9   : > { %v2680_v37 = vpop.permute.xlu1 %2679  ;;  %512 = vst.msk [vmem:[#allocation2 + $0xc0] sm:$0xff] %vm499_vm3, %v4850_v12  ;;  %v4869_v12 = vld [vmem:[%s4969_s6 + $0x54] sm:$0xff]  }
  0xda   : > { %2712 = vst.msk [vmem:[#allocation2 + $0xa8] sm:$0xff] %vm2701_vm7, %v2680_v37  ;;  %v2664_v48 = vpop.permute.xlu0 %2663  ;;  %2976 = vrot.lane.b32.xlu0 %v2941_v46, %s4901_s24  ;;  %v2735_v37 = vshll.u32 %v4823_v33, 16 }
  0xdb   : > { %2704 = vst.msk [vmem:[#allocation2 + $0x28] sm:$0xff] %vm2701_vm7, %v2664_v48  ;;  %v2568_v48 = vrot.slane %v2566_v41, 1 }
  0xdc   : > { %1203 = vrot.lane.b32.xlu1 %v1171_v20, %s4897_s20  ;;  %v2737_v46 = vrot.slane %v2735_v37, 1  ;;  %v4832_v20 = vld [vmem:[%s4969_s6 + $0x60] sm:$0xfe]   ;;  %v778_v37 = vshrl.u32 %v4836_v6, 16  ;;  %507 = vst.msk [vmem:[#allocation2 + $0x70] sm:$0xff] %vm499_vm3, %v4869_v12 }
  0xdd   : > { %v1785_v52 = vpop.permute.xlu1 %1784  ;;  %v2569_v55 = vor.u32 %v2568_v48, %v2564_v40  ;;  %v2942_v26 = vrot.slane %v4832_v20, 1  ;;  %v4838_v40 = vld [vmem:[%s5497_s5] sm:$0xfe]  }
  0xde   : > { %1820 = vst.msk [vmem:[#allocation2 + $0xa0] sm:$0xff] %vm1809_vm9, %v1785_v52  ;;  %v1769_v60 = vpop.permute.xlu0 %1768  ;;  %v2738_v52 = vsel %vm692_vm1, %v2733_v44, %v2737_v46  ;;  %v2150_v46 = vrot.slane %v4838_v40, 1  ;;  %v4840_v48 = vld [vmem:[%s4969_s6 + $0x60] sm:$0xfe]  }
  0xdf   : > { %2129 = vst.msk [vmem:[#allocation2 + $0xa0] sm:$0xff] %vm2107_vm10, %v5423_v45  ;;  %v776_v45 = vsel %vm692_vm1, %v771_v62, %v775_v59  ;;  %v1657_v62 = vshrl.u32 %v4828_v51, 16  ;;  %v2944_v33 = vsel %vm1126_vm0, %v2942_v26, %v2943_v27 }
  0xe0   : > { %1812 = vst.msk [vmem:[#allocation2 + $0x20] sm:$0xff] %vm1809_vm9, %v1769_v60  ;;  %897 = vrot.lane.b32.xlu0 %v776_v45, %s4898_s21  ;;  %2321 = vrot.lane.b32.xlu1 %v4816_v24, %s4894_s11  ;;  %v1762_v45 = vrot.slane %v1760_v58, 1 }
  0xe1   : > { %v2987_v4 = vpop.permute.xlu1 %2986  ;;  %2113 = vst.msk [vmem:[#allocation2 + $0x20] sm:$0xff] %vm2107_vm10, %v5432_v22 }
  0xe2   : > { %3019 = vst.msk [vmem:[#allocation2 + $0xa8] sm:$0xff] %vm3008_vm11, %v2987_v4  ;;  %v2971_v13 = vpop.permute.xlu0 %2970  ;;  %v2574_v4 = vsel %vm692_vm1, %v2569_v55, %v2573_v53  ;;  %v1763_v18 = vsel %vm692_vm1, %v1758_v11, %v1762_v45  ;;  %v2038_v53 = vrot.slane %v4840_v48, 1  ;;  %v2039_v55 = vrot.slane %v4841_v50, 1  ;;  %v4848_v11 = vld [vmem:[%s5497_s5] sm:$0xff]  }
  0xe3   : > { %3011 = vst.msk [vmem:[#allocation2 + $0x28] sm:$0xff] %vm3008_vm11, %v2971_v13  ;;  %v874_v13 = vshrl.u32 %v4834_v2, 16 }
  0xe4   : > { %2074 = vrot.lane.b32.xlu0 %v2037_v14, %s4896_s19  ;;  %1374 = vrot.lane.b32.xlu1 %v4818_v31, %s4895_s14  ;;  %v1662_v14 = vor.u32 %v1661_v7, %v1657_v62  ;;  %v2040_v58 = vsel %vm1126_vm0, %v2038_v53, %v2039_v55  ;;  %v4846_v62 = vld [vmem:[%s5591_s9] sm:$0xff]   ;;  %v4861_v53 = vld [vmem:[%s5591_s9 + $0x8] ss:$0 sps:$4 sm:$0x11]  }
  0xe5   : > { %v908_v22 = vpop.permute.xlu1 %907 }
  0xe6   : > { %v892_v25 = vpop.permute.xlu0 %891  ;;  %945 = vst.msk [vmem:[#allocation2 + $0xb0] sm:$0xff] %vm933_vm4, %v908_v22  ;;  %v3079_v59 = vld [vmem:[#allocation2 + $0xa0] sm:$0xff]  ;;  %v1667_v24 = vsel %vm692_vm1, %v1662_v14, %v1666_v15 }
  0xe7   : > { %937 = vst.msk [vmem:[#allocation2 + $0x30] sm:$0xff] %vm933_vm4, %v892_v25  ;;  %v3036_v25 = vsel %vm1126_vm0, %v3034_v16, %v3035_v19  ;;  %v4852_v15 = vld [vmem:[%s5591_s9] sm:$0xff]   ;;  %v4853_v16 = vld [vmem:[%s5591_s9 + $0x8] ss:$0 sps:$4 sm:$0x11]   ;;  %v4854_v19 = vld [vmem:[%s4969_s6 + $0x6c] sm:$0xff]  }
  0xe8   : > { %1187 = vrot.lane.b32.xlu0 %v1147_v30, %s4897_s20  ;;  %v3063_v54 = vld [vmem:[#allocation2 + $0x20] sm:$0xff]  ;;  %2739 = vrot.lane.b32.xlu1 %v2738_v52, %s4899_s22  ;;  %v2755_v20 = vshrl.u32 %v4852_v15, 16  ;;  %v2757_v21 = vshll.u32 %v4852_v15, 16  ;;  %v2576_v26 = vshrl.u32 %v4854_v19, 16  ;;  %v2578_v27 = vshll.u32 %v4854_v19, 16 }
  0xe9   : > { %v5511_v63 = vpop.permute.xlu1 %2084  ;;  %v3080_v43 = vld [vmem:[#allocation2 + $0xa8] sm:$0xff] }
  0xea   : > { %2132 = vst.msk [vmem:[#allocation2 + $0xb8] sm:$0xff] %vm2109_vm2, %v5511_v63  ;;  %v5523_v32 = vpop.permute.xlu0 %2068  ;;  %v3064_v42 = vld [vmem:[#allocation2 + $0x28] sm:$0xff]  ;;  %4449 = vmatprep.mubr.msk.bf16.mxu1 %vm3253_vm13, %v3080_v43 }
  0xeb   : > { %2116 = vst.msk [vmem:[#allocation2 + $0x38] sm:$0xff] %vm2109_vm2, %v5523_v32  ;;  %4441 = vmatprep.mubr.msk.bf16.mxu0 %vm3253_vm13, %v3064_v42  ;;  %3442 = vmatmul.mubr.bf16.gmra.mrb[8].mxu1 %v3079_v59  ;;  %v4839_v43 = vld [vmem:[%s5497_s5 + $0x8] ss:$0 sps:$4 sm:$0x11]   ;;  %v1173_v59 = vrot.slane %v4843_v56, 1  ;;  %v4864_v56 = vld [vmem:[%s4969_s6 + $0x9c] sm:$0xff]  }
  0xec   : > { %2269 = vrot.lane.b32.xlu0 %v4817_v29, %s4894_s11  ;;  %3362 = vmatmul.mubr.bf16.gmra.mrb[8].mxu0 %v3063_v54  ;;  %v876_v29 = vshll.u32 %v4834_v2, 16  ;;  %v4842_v54 = vld [vmem:[%s4969_s6 + $0xb4] sm:$0xfe]   ;;  %513 = vst.msk [vmem:[#allocation2 + $0xd0] sm:$0xff] %vm499_vm3, %v4864_v56 }
  0xed   : > { %v1198_v35 = vpop.permute.xlu1 %1197  ;;  %1792 = vrot.lane.b32.xlu1 %v1763_v18, %s4900_s23  ;;  %v1172_v57 = vrot.slane %v4842_v54, 1  ;;  %v4849_v18 = vld [vmem:[%s4969_s6 + $0x60] sm:$0xff]  }
  0xee   : > { %1235 = vst.msk [vmem:[#allocation2 + $0xb0] sm:$0xff] %vm1223_vm5, %v1198_v35  ;;  %v1182_v23 = vpop.permute.xlu0 %1181  ;;  %v878_v1 = vrot.slane %v876_v29, 1  ;;  %v4837_v35 = vld [vmem:[%s4969_s6 + $0x5c] ss:$0 sps:$4 sm:$0x11]   ;;  %v2759_v29 = vrot.slane %v2757_v21, 1 }
  0xef   : > { %1227 = vst.msk [vmem:[#allocation2 + $0x30] sm:$0xff] %vm1223_vm5, %v1182_v23  ;;  %v785_v42 = vshll.u32 %v4837_v35, 16  ;;  %v1174_v2 = vsel %vm1126_vm0, %v1172_v57, %v1173_v59 }
  0xf0   : > { %1358 = vrot.lane.b32.xlu0 %v4819_v9, %s4895_s14  ;;  %v879_v9 = vor.u32 %v878_v1, %v874_v13  ;;  %v2580_v1 = vrot.slane %v2578_v27, 1  ;;  %v2760_v6 = vor.u32 %v2759_v29, %v2755_v20 }
  0xf1   : > { %v2280_v39 = vpop.permute.xlu1 %2279  ;;  %3037 = vrot.lane.b32.xlu1 %v3036_v25, %s4901_s24  ;;  %v787_v47 = vrot.slane %v785_v42, 1  ;;  %v4855_v25 = vld [vmem:[%s4969_s6 + $0x74] ss:$0 sps:$4 sm:$0x11]  }
  0xf2   : > { %2311 = vst.msk [vmem:[#allocation2 + $0xb8] sm:$0xff] %vm2299_vm6, %v2280_v39  ;;  %v2264_v60 = vpop.permute.xlu0 %2263  ;;  %v884_v44 = vsel %vm692_vm1, %v879_v9, %v883_v36  ;;  %v2151_v39 = vrot.slane %v4839_v43, 1  ;;  %v2581_v40 = vor.u32 %v2580_v1, %v2576_v26  ;;  %v4859_v42 = vld [vmem:[%s4969_s6 + $0x68] ss:$0 sps:$4 sm:$0x11]  }
  0xf3   : > { %2303 = vst.msk [vmem:[#allocation2 + $0x38] sm:$0xff] %vm2299_vm6, %v2264_v60  ;;  %v4844_v60 = vld [vmem:[%s4969_s6 + $0x54] sm:$0xfe]  }
  0xf4   : > { %2671 = vrot.lane.b32.xlu0 %v2574_v4, %s4899_s22  ;;  %v2152_v52 = vsel %vm1126_vm0, %v2150_v46, %v2151_v39  ;;  %v1149_v4 = vrot.slane %v4845_v61, 1  ;;  %v4862_v61 = vld [vmem:[%s4969_s6 + $0x6c] sm:$0xfe]  }
  0xf5   : > { %v1369_v3 = vpop.permute.xlu1 %1368  ;;  %915 = vrot.lane.b32.xlu1 %v884_v44, %s4898_s21 }
  0xf6   : > { %1403 = vst.msk [vmem:[#allocation2 + $0xb0] sm:$0xff] %vm1391_vm8, %v1369_v3  ;;  %v1353_v22 = vpop.permute.xlu0 %1352  ;;  %v1148_v3 = vrot.slane %v4844_v60, 1  ;;  %v3053_v60 = vrot.slane %v4861_v53, 1 }
  0xf7   : > { %1395 = vst.msk [vmem:[#allocation2 + $0x30] sm:$0xff] %vm1391_vm8, %v1353_v22  ;;  %v4851_v22 = vld [vmem:[%s4969_s6 + $0x30] sm:$0xff]  }
  0xf8   : > { %1776 = vrot.lane.b32.xlu0 %v1667_v24, %s4900_s23  ;;  %v1150_v7 = vsel %vm1126_vm0, %v1148_v3, %v1149_v4  ;;  %504 = vst.msk [vmem:[#allocation2 + $0x40] sm:$0xff] %vm499_vm3, %v4851_v22  ;;  %v2762_v24 = vshll.u32 %v4853_v16, 16  ;;  %v2945_v4 = vrot.slane %v4862_v61, 1 }
  0xf9   : > { %v2682_v17 = vpop.permute.xlu1 %2681  ;;  %2153 = vrot.lane.b32.xlu1 %v2152_v52, %s4896_s19  ;;  %v4860_v52 = vld [vmem:[%s5591_s9] sm:$0xfe]  }
  0xfa   : > { %2713 = vst.msk [vmem:[#allocation2 + $0xb8] sm:$0xff] %vm2701_vm7, %v2682_v17  ;;  %v2666_v30 = vpop.permute.xlu0 %2665  ;;  %v3052_v59 = vrot.slane %v4860_v52, 1 }
  0xfb   : > { %2705 = vst.msk [vmem:[#allocation2 + $0x38] sm:$0xff] %vm2701_vm7, %v2666_v30  ;;  %v2764_v30 = vrot.slane %v2762_v24, 1 }
  0xfc   : > { %2978 = vrot.lane.b32.xlu0 %v2944_v33, %s4901_s24  ;;  %v4856_v33 = vld [vmem:[%s5497_s5] sm:$0xff]   ;;  %v3054_v3 = vsel %vm1126_vm0, %v3052_v59, %v3053_v60 }
  0xfd   : > { %v1787_v31 = vpop.permute.xlu1 %1786  ;;  %1205 = vrot.lane.b32.xlu1 %v1174_v2, %s4897_s20  ;;  %v1837_v9 = vshrl.u32 %v4856_v33, 16  ;;  %v1839_v36 = vshll.u32 %v4856_v33, 16 }
  0xfe   : > { %1821 = vst.msk [vmem:[#allocation2 + $0xb0] sm:$0xff] %vm1809_vm9, %v1787_v31  ;;  %v1771_v41 = vpop.permute.xlu0 %1770  ;;  %v2583_v31 = vshll.u32 %v4855_v25, 16 }
  0xff   : > { %2131 = vst.msk [vmem:[#allocation2 + $0xb0] sm:$0xff] %vm2107_vm10, %v5511_v63  ;;  %v782_v63 = vrot.slane %v780_v38, 1  ;;  %v1841_v44 = vrot.slane %v1839_v36, 1 }
 0x100   : > { %1813 = vst.msk [vmem:[#allocation2 + $0x30] sm:$0xff] %vm1809_vm9, %v1771_v41  ;;  %v2585_v35 = vrot.slane %v2583_v31, 1  ;;  %v1844_v41 = vshll.u32 %v4857_v34, 16 }
 0x101   : > { %v2989_v23 = vpop.permute.xlu1 %2988  ;;  %2115 = vst.msk [vmem:[#allocation2 + $0x30] sm:$0xff] %vm2107_vm10, %v5523_v32  ;;  %v783_v49 = vor.u32 %v782_v63, %v778_v37  ;;  %2333 = vrot.lane.b32.xlu1 %v4846_v62, %s4894_s11  ;;  %v4858_v37 = vld [vmem:[%s4969_s6 + $0x60] sm:$0xff]   ;;  %v1842_v50 = vor.u32 %v1841_v44, %v1837_v9  ;;  %v4863_v62 = vld [vmem:[%s4969_s6 + $0x74] ss:$0 sps:$4 sm:$0x11]  }
 0x102   : > { %3020 = vst.msk [vmem:[#allocation2 + $0xb8] sm:$0xff] %vm3008_vm11, %v2989_v23  ;;  %v2973_v51 = vpop.permute.xlu0 %2972  ;;  %v2765_v23 = vsel %vm692_vm1, %v2760_v6, %v2764_v30  ;;  %v1669_v63 = vshrl.u32 %v4858_v37, 16  ;;  %v1671_v46 = vshll.u32 %v4858_v37, 16  ;;  %v2586_v39 = vsel %vm692_vm1, %v2581_v40, %v2585_v35 }
 0x103   : > { %3012 = vst.msk [vmem:[#allocation2 + $0x38] sm:$0xff] %vm3008_vm11, %v2973_v51  ;;  %v788_v32 = vsel %vm692_vm1, %v783_v49, %v787_v47  ;;  %v1846_v48 = vrot.slane %v1844_v41, 1  ;;  %v1676_v49 = vshll.u32 %v4859_v42, 16 }
 0x104   : > { %899 = vrot.lane.b32.xlu0 %v788_v32, %s4898_s21  ;;  %v1673_v51 = vrot.slane %v1671_v46, 1 }
 0x105   : > { %v910_v0 = vpop.permute.xlu1 %909  ;;  %1414 = vrot.lane.b32.xlu1 %v4848_v11, %s4895_s14  ;;  %v1678_v32 = vrot.slane %v1676_v49, 1  ;;  %v1847_v57 = vsel %vm692_vm1, %v1842_v50, %v1846_v48  ;;  %v4868_v11 = vld [vmem:[%s4969_s6 + $0xb4] sm:$0xff]  }
 0x106   : > { %v894_v5 = vpop.permute.xlu0 %893  ;;  %v3081_v8 = vld [vmem:[#allocation2 + $0xb0] sm:$0xff]  ;;  %946 = vst.msk [vmem:[#allocation2 + $0xc0] sm:$0xff] %vm933_vm4, %v910_v0  ;;  %v4865_v0 = vld [vmem:[%s4969_s6 + $0x3c] sm:$0xff]  }
 0x107   : > { %938 = vst.msk [vmem:[#allocation2 + $0x40] sm:$0xff] %vm933_vm4, %v894_v5 }
 0x108   : > { %2076 = vrot.lane.b32.xlu0 %v2040_v58, %s4896_s19  ;;  %v3065_v47 = vld [vmem:[#allocation2 + $0x30] sm:$0xff]  ;;  %v1674_v58 = vor.u32 %v1673_v51, %v1669_v63  ;;  %505 = vst.msk [vmem:[#allocation2 + $0x50] sm:$0xff] %vm499_vm3, %v4865_v0  ;;  %515 = vst.msk [vmem:[#allocation2 + $0xf0] sm:$0xff] %vm499_vm3, %v4868_v11 }
 0x109   : > { %v3082_v45 = vld [vmem:[#allocation2 + $0xb8] sm:$0xff]  ;;  %v5607_v13 = vpop.permute.xlu1 %2086  ;;  %2766 = vrot.lane.b32.xlu1 %v2765_v23, %s4899_s22 }
 0x10a   : > { %4450 = vmatprep.mubr.msk.bf16.mxu1 %vm3253_vm13, %v3082_v45  ;;  %2134 = vst.msk [vmem:[#allocation2 + $0xc8] sm:$0xff] %vm2109_vm2, %v5607_v13  ;;  %v3066_v14 = vld [vmem:[#allocation2 + $0x38] sm:$0xff]  ;;  %v5619_v17 = vpop.permute.xlu0 %2070  ;;  %v1679_v2 = vsel %vm692_vm1, %v1674_v58, %v1678_v32  ;;  %v4866_v45 = vld [vmem:[%s4969_s6 + $0xa8] sm:$0xff]  }
 0x10b   : > { %3452 = vmatmul.mubr.bf16.gmra.mrb[12].mxu1 %v3081_v8  ;;  %4442 = vmatprep.mubr.msk.bf16.mxu0 %vm3253_vm13, %v3066_v14  ;;  %2118 = vst.msk [vmem:[#allocation2 + $0x48] sm:$0xff] %vm2109_vm2, %v5619_v17  ;;  %v4867_v8 = vld [vmem:[%s4969_s6 + $0x48] sm:$0xff]   ;;  %s4493_s6 = sshll.u32 %s5798_s15, 8 }
 0x10c   : > { %1189 = vrot.lane.b32.xlu0 %v1150_v7, %s4897_s20  ;;  %3372 = vmatmul.mubr.bf16.gmra.mrb[12].mxu0 %v3065_v47  ;;  %v2946_v7 = vrot.slane %v4863_v62, 1  ;;  %514 = vst.msk [vmem:[#allocation2 + $0xe0] sm:$0xff] %vm499_vm3, %v4866_v45  ;;  %506 = vst.msk [vmem:[#allocation2 + $0x60] sm:$0xff] %vm499_vm3, %v4867_v8  ;;  %s5734_s19 = scalar_lea.vmem %s5792_s4, %s4493_s6 }
 0x10d   : > { %v1200_v28 = vpop.permute.xlu1 %1199  ;;  %1848 = vrot.lane.b32.xlu1 %v1847_v57, %s4900_s23 }
 0x10e   : > { %1236 = vst.msk [vmem:[#allocation2 + $0xc0] sm:$0xff] %vm1223_vm5, %v1200_v28  ;;  %v1184_v38 = vpop.permute.xlu0 %1183 }
 0x10f   : > { %1228 = vst.msk [vmem:[#allocation2 + $0x40] sm:$0xff] %vm1223_vm5, %v1184_v38 }
 0x110   : > { %2271 = vrot.lane.b32.xlu0 %v4847_v10, %s4894_s11  ;;  %v2947_v10 = vsel %vm1126_vm0, %v2945_v4, %v2946_v7 }
 0x111   : > { %v2282_v43 = vpop.permute.xlu1 %2281  ;;  %3055 = vrot.lane.b32.xlu1 %v3054_v3, %s4901_s24 }
 0x112   : > { %2312 = vst.msk [vmem:[#allocation2 + $0xc8] sm:$0xff] %vm2299_vm6, %v2282_v43 }
 0x113   : > { %v2266_v54 = vpop.permute.xlu0 %2265 }
 0x114   : > { %1360 = vrot.lane.b32.xlu0 %v4849_v18, %s4895_s14  ;;  %2304 = vst.msk [vmem:[#allocation2 + $0x48] sm:$0xff] %vm2299_vm6, %v2266_v54 }
 0x115   : > { %v1371_v55 = vpop.permute.xlu1 %1370 }
 0x116   : > { %1404 = vst.msk [vmem:[#allocation2 + $0xc0] sm:$0xff] %vm1391_vm8, %v1371_v55 }
 0x118   : > { %2673 = vrot.lane.b32.xlu0 %v2586_v39, %s4899_s22  ;;  %v1355_v5 = vpop.permute.xlu0 %1354 }
 0x119   : > { %1396 = vst.msk [vmem:[#allocation2 + $0x40] sm:$0xff] %vm1391_vm8, %v1355_v5  ;;  %v2684_v22 = vpop.permute.xlu1 %2683 }
 0x11a   : > { %2714 = vst.msk [vmem:[#allocation2 + $0xc8] sm:$0xff] %vm2701_vm7, %v2684_v22 }
 0x11c   : > { %1778 = vrot.lane.b32.xlu0 %v1679_v2, %s4900_s23  ;;  %v2668_v14 = vpop.permute.xlu0 %2667 }
 0x11d   : > { %2706 = vst.msk [vmem:[#allocation2 + $0x48] sm:$0xff] %vm2701_vm7, %v2668_v14 }
 0x11e   : > { %v1789_v15 = vpop.permute.xlu1 %1788 }
 0x11f   : > { %1822 = vst.msk [vmem:[#allocation2 + $0xc0] sm:$0xff] %vm1809_vm9, %v1789_v15 }
 0x120   : > { %2980 = vrot.lane.b32.xlu0 %v2947_v10, %s4901_s24  ;;  %2133 = vst.msk [vmem:[#allocation2 + $0xc0] sm:$0xff] %vm2107_vm10, %v5607_v13  ;;  %v1773_v16 = vpop.permute.xlu0 %1772 }
 0x121   : > { %1814 = vst.msk [vmem:[#allocation2 + $0x40] sm:$0xff] %vm1809_vm9, %v1773_v16 }
 0x122   : > { %2117 = vst.msk [vmem:[#allocation2 + $0x40] sm:$0xff] %vm2107_vm10, %v5619_v17  ;;  %v2991_v18 = vpop.permute.xlu1 %2990 }
 0x123   : > { %3021 = vst.msk [vmem:[#allocation2 + $0xc8] sm:$0xff] %vm3008_vm11, %v2991_v18 }
 0x124   : > { %v2975_v19 = vpop.permute.xlu0 %2974 }
 0x125   : > { %3013 = vst.msk [vmem:[#allocation2 + $0x48] sm:$0xff] %vm3008_vm11, %v2975_v19 }
 0x126   : > { %v912_v20 = vpop.permute.xlu1 %911 }
 0x127   : > { %947 = vst.msk [vmem:[#allocation2 + $0xd0] sm:$0xff] %vm933_vm4, %v912_v20  ;;  %v3083_v25 = vld [vmem:[#allocation2 + $0xc0] sm:$0xff] }
 0x128   : > { %v896_v21 = vpop.permute.xlu0 %895 }
 0x129   : > { %939 = vst.msk [vmem:[#allocation2 + $0x50] sm:$0xff] %vm933_vm4, %v896_v21  ;;  %v3067_v26 = vld [vmem:[#allocation2 + $0x40] sm:$0xff] }
 0x12a   : > { %v3084_v24 = vld [vmem:[#allocation2 + $0xc8] sm:$0xff]  ;;  %v2089_v13 = vpop.permute.xlu1 %2088 }
 0x12b   : > { %4451 = vmatprep.mubr.msk.bf16.mxu1 %vm3253_vm13, %v3084_v24  ;;  %2136 = vst.msk [vmem:[#allocation2 + $0xd8] sm:$0xff] %vm2109_vm2, %v2089_v13 }
 0x12c   : > { %v3068_v17 = vld [vmem:[#allocation2 + $0x48] sm:$0xff]  ;;  %3462 = vmatmul.mubr.bf16.gmra.mrb[16].mxu1 %v3083_v25 }
 0x12d   : > { %4443 = vmatprep.mubr.msk.bf16.mxu0 %vm3253_vm13, %v3068_v17 }
 0x12e   : > { %3382 = vmatmul.mubr.bf16.gmra.mrb[16].mxu0 %v3067_v26  ;;  %v1202_v28 = vpop.permute.xlu1 %1201 }
 0x12f   : > { %1237 = vst.msk [vmem:[#allocation2 + $0xd0] sm:$0xff] %vm1223_vm5, %v1202_v28 }
 0x132   : > { %v2284_v30 = vpop.permute.xlu1 %2283 }
 0x133   : > { %2313 = vst.msk [vmem:[#allocation2 + $0xd8] sm:$0xff] %vm2299_vm6, %v2284_v30 }
 0x134   : > { %v2073_v27 = vpop.permute.xlu0 %2072 }
 0x135   : > { %2120 = vst.msk [vmem:[#allocation2 + $0x58] sm:$0xff] %vm2109_vm2, %v2073_v27 }
 0x136   : > { %v1373_v33 = vpop.permute.xlu1 %1372 }
 0x137   : > { %1405 = vst.msk [vmem:[#allocation2 + $0xd0] sm:$0xff] %vm1391_vm8, %v1373_v33 }
 0x138   : > { %v1186_v29 = vpop.permute.xlu0 %1185 }
 0x139   : > { %1229 = vst.msk [vmem:[#allocation2 + $0x50] sm:$0xff] %vm1223_vm5, %v1186_v29 }
 0x13a   : > { %v2686_v34 = vpop.permute.xlu1 %2685 }
 0x13b   : > { %2715 = vst.msk [vmem:[#allocation2 + $0xd8] sm:$0xff] %vm2701_vm7, %v2686_v34 }
 0x13c   : > { %v2268_v31 = vpop.permute.xlu0 %2267 }
 0x13d   : > { %2305 = vst.msk [vmem:[#allocation2 + $0x58] sm:$0xff] %vm2299_vm6, %v2268_v31 }
 0x13e   : > { %v1791_v35 = vpop.permute.xlu1 %1790 }
 0x13f   : > { %1823 = vst.msk [vmem:[#allocation2 + $0xd0] sm:$0xff] %vm1809_vm9, %v1791_v35 }
 0x140   : > { %v1357_v1 = vpop.permute.xlu0 %1356  ;;  %2135 = vst.msk [vmem:[#allocation2 + $0xd0] sm:$0xff] %vm2107_vm10, %v2089_v13 }
 0x141   : > { %1397 = vst.msk [vmem:[#allocation2 + $0x50] sm:$0xff] %vm1391_vm8, %v1357_v1 }
 0x142   : > { %v2993_v36 = vpop.permute.xlu1 %2992 }
 0x143   : > { %3022 = vst.msk [vmem:[#allocation2 + $0xd8] sm:$0xff] %vm3008_vm11, %v2993_v36 }
 0x144   : > { %v2670_v6 = vpop.permute.xlu0 %2669 }
 0x145   : > { %2707 = vst.msk [vmem:[#allocation2 + $0x58] sm:$0xff] %vm2701_vm7, %v2670_v6 }
 0x146   : > { %v914_v38 = vpop.permute.xlu1 %913 }
 0x147   : > { %948 = vst.msk [vmem:[#allocation2 + $0xe0] sm:$0xff] %vm933_vm4, %v914_v38  ;;  %v3085_v42 = vld [vmem:[#allocation2 + $0xd0] sm:$0xff] }
 0x148   : > { %v1775_v9 = vpop.permute.xlu0 %1774 }
 0x149   : > { %1815 = vst.msk [vmem:[#allocation2 + $0x50] sm:$0xff] %vm1809_vm9, %v1775_v9 }
 0x14a   : > { %2119 = vst.msk [vmem:[#allocation2 + $0x50] sm:$0xff] %vm2107_vm10, %v2073_v27  ;;  %v3086_v41 = vld [vmem:[#allocation2 + $0xd8] sm:$0xff]  ;;  %v2091_v43 = vpop.permute.xlu1 %2090 }
 0x14b   : > { %4452 = vmatprep.mubr.msk.bf16.mxu1 %vm3253_vm13, %v3086_v41  ;;  %2138 = vst.msk [vmem:[#allocation2 + $0xe8] sm:$0xff] %vm2109_vm2, %v2091_v43 }
 0x14c   : > { %v2977_v37 = vpop.permute.xlu0 %2976  ;;  %3472 = vmatmul.mubr.bf16.gmra.mrb[20].mxu1 %v3085_v42 }
 0x14d   : > { %3014 = vst.msk [vmem:[#allocation2 + $0x58] sm:$0xff] %vm3008_vm11, %v2977_v37 }
 0x14e   : > { %v1204_v46 = vpop.permute.xlu1 %1203 }
 0x14f   : > { %1238 = vst.msk [vmem:[#allocation2 + $0xe0] sm:$0xff] %vm1223_vm5, %v1204_v46 }
 0x151   : > { %v3069_v63 = vld [vmem:[#allocation2 + $0x50] sm:$0xff] }
 0x152   : > { %v898_v40 = vpop.permute.xlu0 %897  ;;  %v2322_v39 = vpop.permute.xlu1 %2321 }
 0x153   : > { %940 = vst.msk [vmem:[#allocation2 + $0x60] sm:$0xff] %vm933_vm4, %v898_v40 }
 0x154   : > { %v3070_v23 = vld [vmem:[#allocation2 + $0x58] sm:$0xff]  ;;  %2325 = vst.msk [vmem:[#allocation2 + $0xe8] sm:$0xff] %vm2299_vm6, %v2322_v39 }
 0x155   : > { %4444 = vmatprep.mubr.msk.bf16.mxu0 %vm3253_vm13, %v3070_v23 }
 0x156   : > { %v2075_v44 = vpop.permute.xlu0 %2074  ;;  %3392 = vmatmul.mubr.bf16.gmra.mrb[20].mxu0 %v3069_v63  ;;  %v1375_v49 = vpop.permute.xlu1 %1374 }
 0x157   : > { %2122 = vst.msk [vmem:[#allocation2 + $0x68] sm:$0xff] %vm2109_vm2, %v2075_v44 }
 0x158   : > { %1406 = vst.msk [vmem:[#allocation2 + $0xe0] sm:$0xff] %vm1391_vm8, %v1375_v49 }
 0x15a   : > { %v1188_v47 = vpop.permute.xlu0 %1187  ;;  %v2740_v51 = vpop.permute.xlu1 %2739 }
 0x15b   : > { %1230 = vst.msk [vmem:[#allocation2 + $0x60] sm:$0xff] %vm1223_vm5, %v1188_v47 }
 0x15c   : > { %2742 = vst.msk [vmem:[#allocation2 + $0xe8] sm:$0xff] %vm2701_vm7, %v2740_v51 }
 0x15e   : > { %v2270_v48 = vpop.permute.xlu0 %2269 }
 0x15f   : > { %2306 = vst.msk [vmem:[#allocation2 + $0x68] sm:$0xff] %vm2299_vm6, %v2270_v48  ;;  %v1793_v53 = vpop.permute.xlu1 %1792 }
 0x160   : > { %1824 = vst.msk [vmem:[#allocation2 + $0xe0] sm:$0xff] %vm1809_vm9, %v1793_v53 }
 0x161   : > { %2137 = vst.msk [vmem:[#allocation2 + $0xe0] sm:$0xff] %vm2107_vm10, %v2091_v43 }
 0x162   : > { %v1359_v50 = vpop.permute.xlu0 %1358 }
 0x163   : > { %1398 = vst.msk [vmem:[#allocation2 + $0x60] sm:$0xff] %vm1391_vm8, %v1359_v50  ;;  %v3038_v32 = vpop.permute.xlu1 %3037 }
 0x164   : > { %3040 = vst.msk [vmem:[#allocation2 + $0xe8] sm:$0xff] %vm3008_vm11, %v3038_v32 }
 0x166   : > { %v2672_v52 = vpop.permute.xlu0 %2671 }
 0x167   : > { %2708 = vst.msk [vmem:[#allocation2 + $0x68] sm:$0xff] %vm2701_vm7, %v2672_v52  ;;  %v916_v56 = vpop.permute.xlu1 %915 }
 0x168   : > { %949 = vst.msk [vmem:[#allocation2 + $0xf0] sm:$0xff] %vm933_vm4, %v916_v56  ;;  %v3087_v61 = vld [vmem:[#allocation2 + $0xe0] sm:$0xff] }
 0x16a   : > { %v1777_v54 = vpop.permute.xlu0 %1776 }
 0x16b   : > { %1816 = vst.msk [vmem:[#allocation2 + $0x60] sm:$0xff] %vm1809_vm9, %v1777_v54  ;;  %v2154_v58 = vpop.permute.xlu1 %2153  ;;  %v3088_v59 = vld [vmem:[#allocation2 + $0xe8] sm:$0xff] }
 0x16c   : > { %2121 = vst.msk [vmem:[#allocation2 + $0x60] sm:$0xff] %vm2107_vm10, %v2075_v44  ;;  %4453 = vmatprep.mubr.msk.bf16.mxu1 %vm3253_vm13, %v3088_v59 }
 0x16d   : > { %2157 = vst.msk [vmem:[#allocation2 + $0xf8] sm:$0xff] %vm2109_vm2, %v2154_v58  ;;  %3482 = vmatmul.mubr.bf16.gmra.mrb[24].mxu1 %v3087_v61 }
 0x16e   : > { %v2979_v55 = vpop.permute.xlu0 %2978 }
 0x16f   : > { %3015 = vst.msk [vmem:[#allocation2 + $0x68] sm:$0xff] %vm3008_vm11, %v2979_v55  ;;  %v1206_v2 = vpop.permute.xlu1 %1205 }
 0x170   : > { %1239 = vst.msk [vmem:[#allocation2 + $0xf0] sm:$0xff] %vm1223_vm5, %v1206_v2 }
 0x173   : > { %v3071_v62 = vld [vmem:[#allocation2 + $0x60] sm:$0xff]  ;;  %v2334_v4 = vpop.permute.xlu1 %2333 }
 0x174   : > { %2336 = vst.msk [vmem:[#allocation2 + $0xf8] sm:$0xff] %vm2299_vm6, %v2334_v4 }
 0x176   : > { %v900_v57 = vpop.permute.xlu0 %899  ;;  %v3072_v60 = vld [vmem:[#allocation2 + $0x68] sm:$0xff] }
 0x177   : > { %941 = vst.msk [vmem:[#allocation2 + $0x70] sm:$0xff] %vm933_vm4, %v900_v57  ;;  %4445 = vmatprep.mubr.msk.bf16.mxu0 %vm3253_vm13, %v3072_v60  ;;  %v1415_v45 = vpop.permute.xlu1 %1414 }
 0x178   : > { %3402 = vmatmul.mubr.bf16.gmra.mrb[24].mxu0 %v3071_v62  ;;  %1418 = vst.msk [vmem:[#allocation2 + $0xf0] sm:$0xff] %vm1391_vm8, %v1415_v45 }
 0x17a   : > { %v2077_v0 = vpop.permute.xlu0 %2076 }
 0x17b   : > { %2124 = vst.msk [vmem:[#allocation2 + $0x78] sm:$0xff] %vm2109_vm2, %v2077_v0  ;;  %v2767_v27 = vpop.permute.xlu1 %2766 }
 0x17c   : > { %2769 = vst.msk [vmem:[#allocation2 + $0xf8] sm:$0xff] %vm2701_vm7, %v2767_v27 }
 0x17e   : > { %v1190_v3 = vpop.permute.xlu0 %1189  ;;  %v3423_v8 = vpop.f32.mrb[0].mxu1 }
 0x17f   : > { %1231 = vst.msk [vmem:[#allocation2 + $0x70] sm:$0xff] %vm1223_vm5, %v1190_v3  ;;  %v3343_v7 = vpop.f32.mrb[0].mxu0  ;;  %v3534_v11 = vmax.f32 %v3423_v8, 0.0  ;;  %v3425_v22 = vpop.f32.mrb[1].mxu1 }
 0x180   : > { %v3502_v10 = vmax.f32 %v3343_v7, 0.0  ;;  %v3345_v12 = vpop.f32.mrb[1].mxu0  ;;  %v3535_v15 = vmax.f32 %v3425_v22, 0.0  ;;  %v3427_v18 = vpop.f32.mrb[2].mxu1 }
 0x181   : > { %v3503_v14 = vmax.f32 %v3345_v12, 0.0  ;;  %v3347_v16 = vpop.f32.mrb[2].mxu0  ;;  %v3536_v21 = vmax.f32 %v3427_v18, 0.0  ;;  %v3429_v26 = vpop.f32.mrb[3].mxu1 }
 0x182   : > { %v2272_v5 = vpop.permute.xlu0 %2271  ;;  %v3504_v20 = vmax.f32 %v3347_v16, 0.0  ;;  %v3349_v24 = vpop.f32.mrb[3].mxu0  ;;  %v4510_v25 = vpack.c.bf16 %v3535_v15, %v3534_v11  ;;  %v3537_v28 = vmax.f32 %v3429_v26, 0.0 }
 0x183   : > { %2307 = vst.msk [vmem:[#allocation2 + $0x78] sm:$0xff] %vm2299_vm6, %v2272_v5  ;;  %v4494_v13 = vpack.c.bf16 %v3503_v14, %v3502_v10  ;;  %v3505_v17 = vmax.f32 %v3349_v24, 0.0  ;;  %v1849_v33 = vpop.permute.xlu1 %1848 }
 0x184   : > { %3774 = vst [vmem:[%s5734_s19 + $0x80] sm:$0xff] %v4510_v25  ;;  %v4511_v31 = vpack.c.bf16 %v3537_v28, %v3536_v21  ;;  %1851 = vst.msk [vmem:[#allocation2 + $0xf0] sm:$0xff] %vm1809_vm9, %v1849_v33 }
 0x185   : > { %3758 = vst [vmem:[%s5734_s19] sm:$0xff] %v4494_v13  ;;  %v4495_v29 = vpack.c.bf16 %v3505_v17, %v3504_v20  ;;  %2156 = vst.msk [vmem:[#allocation2 + $0xf0] sm:$0xff] %vm2107_vm10, %v2154_v58 }
 0x186   : > { %v1361_v19 = vpop.permute.xlu0 %1360  ;;  %3775 = vst [vmem:[%s5734_s19 + $0x88] sm:$0xff] %v4511_v31 }
 0x187   : > { %1399 = vst.msk [vmem:[#allocation2 + $0x70] sm:$0xff] %vm1391_vm8, %v1361_v19  ;;  %3759 = vst [vmem:[%s5734_s19 + $0x8] sm:$0xff] %v4495_v29  ;;  %v3056_v34 = vpop.permute.xlu1 %3055 }
 0x188   : > { %3058 = vst.msk [vmem:[#allocation2 + $0xf8] sm:$0xff] %vm3008_vm11, %v3056_v34 }
 0x18a   : > { %v2674_v30 = vpop.permute.xlu0 %2673 }
 0x18b   : > { %2709 = vst.msk [vmem:[#allocation2 + $0x78] sm:$0xff] %vm2701_vm7, %v2674_v30 }
 0x18c   : > { %v3089_v9 = vld [vmem:[#allocation2 + $0xf0] sm:$0xff] }
 0x18e   : > { %v1779_v1 = vpop.permute.xlu0 %1778 }
 0x18f   : > { %1817 = vst.msk [vmem:[#allocation2 + $0x70] sm:$0xff] %vm1809_vm9, %v1779_v1  ;;  %v3090_v35 = vld [vmem:[#allocation2 + $0xf8] sm:$0xff] }
 0x190   : > { %2123 = vst.msk [vmem:[#allocation2 + $0x70] sm:$0xff] %vm2107_vm10, %v2077_v0  ;;  %4454 = vmatprep.mubr.msk.bf16.mxu1 %vm3253_vm13, %v3090_v35 }
 0x191   : > { %3492 = vmatmul.mubr.bf16.gmra.mrb[28].mxu1 %v3089_v9 }
 0x192   : > { %v2981_v6 = vpop.permute.xlu0 %2980 }
 0x193   : > { %3016 = vst.msk [vmem:[#allocation2 + $0x78] sm:$0xff] %vm3008_vm11, %v2981_v6 }
 0x197   : > { %v3073_v37 = vld [vmem:[#allocation2 + $0x70] sm:$0xff] }
 0x19a   : > { %v3074_v36 = vld [vmem:[#allocation2 + $0x78] sm:$0xff] }
 0x19b   : > { %4446 = vmatprep.mubr.msk.bf16.mxu0 %vm3253_vm13, %v3074_v36 }
 0x19c   : > { %3412 = vmatmul.mubr.bf16.gmra.mrb[28].mxu0 %v3073_v37 }
 0x19e   : > { %v3433_v42 = vpop.f32.mrb[4].mxu1 }
 0x19f   : > { %v3353_v38 = vpop.f32.mrb[4].mxu0  ;;  %v3538_v44 = vmax.f32 %v3433_v42, 0.0  ;;  %v3435_v63 = vpop.f32.mrb[5].mxu1 }
 0x1a0   : > { %v3506_v40 = vmax.f32 %v3353_v38, 0.0  ;;  %v3355_v41 = vpop.f32.mrb[5].mxu0  ;;  %v3539_v48 = vmax.f32 %v3435_v63, 0.0  ;;  %v3437_v49 = vpop.f32.mrb[6].mxu1 }
 0x1a1   : > { %v3507_v43 = vmax.f32 %v3355_v41, 0.0  ;;  %v3357_v23 = vpop.f32.mrb[6].mxu0  ;;  %v3540_v51 = vmax.f32 %v3437_v49, 0.0  ;;  %v3439_v52 = vpop.f32.mrb[7].mxu1 }
 0x1a2   : > { %v3508_v46 = vmax.f32 %v3357_v23, 0.0  ;;  %v3359_v47 = vpop.f32.mrb[7].mxu0  ;;  %v4512_v53 = vpack.c.bf16 %v3539_v48, %v3538_v44  ;;  %v3541_v32 = vmax.f32 %v3439_v52, 0.0 }
 0x1a3   : > { %v4496_v39 = vpack.c.bf16 %v3507_v43, %v3506_v40  ;;  %v3509_v50 = vmax.f32 %v3359_v47, 0.0 }
 0x1a4   : > { %3776 = vst [vmem:[%s5734_s19 + $0x90] sm:$0xff] %v4512_v53  ;;  %v4513_v55 = vpack.c.bf16 %v3541_v32, %v3540_v51 }
 0x1a5   : > { %3760 = vst [vmem:[%s5734_s19 + $0x10] sm:$0xff] %v4496_v39  ;;  %v4497_v54 = vpack.c.bf16 %v3509_v50, %v3508_v46 }
 0x1a6   : > { %3777 = vst [vmem:[%s5734_s19 + $0x98] sm:$0xff] %v4513_v55 }
 0x1a7   : > { %3761 = vst [vmem:[%s5734_s19 + $0x18] sm:$0xff] %v4497_v54 }
 0x1be   : > { %v3443_v58 = vpop.f32.mrb[8].mxu1 }
 0x1bf   : > { %v3363_v56 = vpop.f32.mrb[8].mxu0  ;;  %v3542_v60 = vmax.f32 %v3443_v58, 0.0  ;;  %v3445_v62 = vpop.f32.mrb[9].mxu1 }
 0x1c0   : > { %v3510_v57 = vmax.f32 %v3363_v56, 0.0  ;;  %v3365_v59 = vpop.f32.mrb[9].mxu0  ;;  %v3543_v2 = vmax.f32 %v3445_v62, 0.0  ;;  %v3447_v4 = vpop.f32.mrb[10].mxu1 }
 0x1c1   : > { %v3511_v61 = vmax.f32 %v3365_v59, 0.0  ;;  %v3367_v0 = vpop.f32.mrb[10].mxu0  ;;  %v3544_v7 = vmax.f32 %v3447_v4, 0.0  ;;  %v3449_v10 = vpop.f32.mrb[11].mxu1 }
 0x1c2   : > { %v3512_v3 = vmax.f32 %v3367_v0, 0.0  ;;  %v3369_v5 = vpop.f32.mrb[11].mxu0  ;;  %v4514_v11 = vpack.c.bf16 %v3543_v2, %v3542_v60  ;;  %v3545_v12 = vmax.f32 %v3449_v10, 0.0 }
 0x1c3   : > { %v4498_v45 = vpack.c.bf16 %v3511_v61, %v3510_v57  ;;  %v3513_v8 = vmax.f32 %v3369_v5, 0.0 }
 0x1c4   : > { %3778 = vst [vmem:[%s5734_s19 + $0xa0] sm:$0xff] %v4514_v11  ;;  %v4515_v14 = vpack.c.bf16 %v3545_v12, %v3544_v7 }
 0x1c5   : > { %3762 = vst [vmem:[%s5734_s19 + $0x20] sm:$0xff] %v4498_v45  ;;  %v4499_v22 = vpack.c.bf16 %v3513_v8, %v3512_v3 }
 0x1c6   : > { %3779 = vst [vmem:[%s5734_s19 + $0xa8] sm:$0xff] %v4515_v14 }
 0x1c7   : > { %3763 = vst [vmem:[%s5734_s19 + $0x28] sm:$0xff] %v4499_v22 }
 0x1de   : > { %v3453_v15 = vpop.f32.mrb[12].mxu1 }
 0x1df   : > { %v3546_v16 = vmax.f32 %v3453_v15, 0.0  ;;  %v3455_v18 = vpop.f32.mrb[13].mxu1  ;;  %v3373_v26 = vpop.f32.mrb[12].mxu0 }
 0x1e0   : > { %v3547_v19 = vmax.f32 %v3455_v18, 0.0  ;;  %v3457_v20 = vpop.f32.mrb[14].mxu1  ;;  %v3514_v27 = vmax.f32 %v3373_v26, 0.0  ;;  %v3375_v28 = vpop.f32.mrb[13].mxu0 }
 0x1e1   : > { %v3548_v21 = vmax.f32 %v3457_v20, 0.0  ;;  %v3459_v24 = vpop.f32.mrb[15].mxu1  ;;  %v3515_v29 = vmax.f32 %v3375_v28, 0.0  ;;  %v3377_v30 = vpop.f32.mrb[14].mxu0 }
 0x1e2   : > { %v4516_v13 = vpack.c.bf16 %v3547_v19, %v3546_v16  ;;  %v3549_v25 = vmax.f32 %v3459_v24, 0.0  ;;  %v3516_v31 = vmax.f32 %v3377_v30, 0.0  ;;  %v3379_v33 = vpop.f32.mrb[15].mxu0 }
 0x1e3   : > { %v4500_v1 = vpack.c.bf16 %v3515_v29, %v3514_v27  ;;  %v3517_v34 = vmax.f32 %v3379_v33, 0.0 }
 0x1e4   : > { %3780 = vst [vmem:[%s5734_s19 + $0xb0] sm:$0xff] %v4516_v13  ;;  %v4517_v17 = vpack.c.bf16 %v3549_v25, %v3548_v21 }
 0x1e5   : > { %3764 = vst [vmem:[%s5734_s19 + $0x30] sm:$0xff] %v4500_v1  ;;  %v4501_v6 = vpack.c.bf16 %v3517_v34, %v3516_v31 }
 0x1e6   : > { %3781 = vst [vmem:[%s5734_s19 + $0xb8] sm:$0xff] %v4517_v17 }
 0x1e7   : > { %3765 = vst [vmem:[%s5734_s19 + $0x38] sm:$0xff] %v4501_v6 }
 0x1ff   : > { %v3463_v35 = vpop.f32.mrb[16].mxu1 }
 0x200   : > { %v3550_v9 = vmax.f32 %v3463_v35, 0.0  ;;  %v3465_v36 = vpop.f32.mrb[17].mxu1 }
 0x201   : > { %v3383_v37 = vpop.f32.mrb[16].mxu0  ;;  %v3551_v38 = vmax.f32 %v3465_v36, 0.0  ;;  %v3467_v40 = vpop.f32.mrb[18].mxu1 }
 0x202   : > { %v3518_v41 = vmax.f32 %v3383_v37, 0.0  ;;  %v3385_v42 = vpop.f32.mrb[17].mxu0  ;;  %v3552_v43 = vmax.f32 %v3467_v40, 0.0  ;;  %v3469_v23 = vpop.f32.mrb[19].mxu1 }
 0x203   : > { %v3519_v44 = vmax.f32 %v3385_v42, 0.0  ;;  %v4518_v63 = vpack.c.bf16 %v3551_v38, %v3550_v9  ;;  %v3387_v46 = vpop.f32.mrb[18].mxu0  ;;  %v3553_v47 = vmax.f32 %v3469_v23, 0.0 }
 0x204   : > { %v3520_v39 = vmax.f32 %v3387_v46, 0.0  ;;  %v3389_v48 = vpop.f32.mrb[19].mxu0 }
 0x205   : > { %v4502_v49 = vpack.c.bf16 %v3519_v44, %v3518_v41  ;;  %3782 = vst [vmem:[%s5734_s19 + $0xc0] sm:$0xff] %v4518_v63  ;;  %v3521_v50 = vmax.f32 %v3389_v48, 0.0  ;;  %v4519_v51 = vpack.c.bf16 %v3553_v47, %v3552_v43 }
 0x207   : > { %3766 = vst [vmem:[%s5734_s19 + $0x40] sm:$0xff] %v4502_v49  ;;  %v4503_v52 = vpack.c.bf16 %v3521_v50, %v3520_v39  ;;  %3783 = vst [vmem:[%s5734_s19 + $0xc8] sm:$0xff] %v4519_v51 }
 0x209   : > { %3767 = vst [vmem:[%s5734_s19 + $0x48] sm:$0xff] %v4503_v52 }
 0x21f   : > { %v3473_v53 = vpop.f32.mrb[20].mxu1 }
 0x220   : > { %v3554_v54 = vmax.f32 %v3473_v53, 0.0  ;;  %v3475_v32 = vpop.f32.mrb[21].mxu1 }
 0x221   : > { %v3555_v55 = vmax.f32 %v3475_v32, 0.0  ;;  %v3477_v56 = vpop.f32.mrb[22].mxu1 }
 0x222   : > { %v3556_v58 = vmax.f32 %v3477_v56, 0.0  ;;  %v3479_v59 = vpop.f32.mrb[23].mxu1 }
 0x223   : > { %v4520_v62 = vpack.c.bf16 %v3555_v55, %v3554_v54  ;;  %v3557_v0 = vmax.f32 %v3479_v59, 0.0 }
 0x225   : > { %3784 = vst [vmem:[%s5734_s19 + $0xd0] sm:$0xff] %v4520_v62  ;;  %v4521_v45 = vpack.c.bf16 %v3557_v0, %v3556_v58 }
 0x227   : > { %3785 = vst [vmem:[%s5734_s19 + $0xd8] sm:$0xff] %v4521_v45 }
 0x229   : > { %v3393_v57 = vpop.f32.mrb[20].mxu0 }
 0x22a   : > { %v3522_v60 = vmax.f32 %v3393_v57, 0.0  ;;  %v3395_v61 = vpop.f32.mrb[21].mxu0 }
 0x22b   : > { %v3523_v2 = vmax.f32 %v3395_v61, 0.0  ;;  %v3397_v3 = vpop.f32.mrb[22].mxu0 }
 0x22c   : > { %v3524_v4 = vmax.f32 %v3397_v3, 0.0  ;;  %v3399_v5 = vpop.f32.mrb[23].mxu0 }
 0x22d   : > { %v4504_v7 = vpack.c.bf16 %v3523_v2, %v3522_v60  ;;  %v3525_v8 = vmax.f32 %v3399_v5, 0.0 }
 0x22f   : > { %3768 = vst [vmem:[%s5734_s19 + $0x50] sm:$0xff] %v4504_v7  ;;  %v4505_v10 = vpack.c.bf16 %v3525_v8, %v3524_v4 }
 0x231   : > { %3769 = vst [vmem:[%s5734_s19 + $0x58] sm:$0xff] %v4505_v10 }
 0x240   : > { %v3483_v11 = vpop.f32.mrb[24].mxu1 }
 0x241   : > { %v3558_v22 = vmax.f32 %v3483_v11, 0.0  ;;  %v3485_v14 = vpop.f32.mrb[25].mxu1 }
 0x242   : > { %v3559_v18 = vmax.f32 %v3485_v14, 0.0  ;;  %v3487_v19 = vpop.f32.mrb[26].mxu1 }
 0x243   : > { %v3560_v24 = vmax.f32 %v3487_v19, 0.0  ;;  %v3489_v13 = vpop.f32.mrb[27].mxu1 }
 0x244   : > { %v4522_v25 = vpack.c.bf16 %v3559_v18, %v3558_v22  ;;  %v3561_v27 = vmax.f32 %v3489_v13, 0.0 }
 0x246   : > { %3786 = vst [vmem:[%s5734_s19 + $0xe0] sm:$0xff] %v4522_v25  ;;  %v4523_v30 = vpack.c.bf16 %v3561_v27, %v3560_v24 }
 0x248   : > { %3787 = vst [vmem:[%s5734_s19 + $0xe8] sm:$0xff] %v4523_v30 }
 0x24b   : > { %v3403_v12 = vpop.f32.mrb[24].mxu0 }
 0x24c   : > { %v3526_v15 = vmax.f32 %v3403_v12, 0.0  ;;  %v3405_v16 = vpop.f32.mrb[25].mxu0 }
 0x24d   : > { %v3527_v20 = vmax.f32 %v3405_v16, 0.0  ;;  %v3407_v21 = vpop.f32.mrb[26].mxu0 }
 0x24e   : > { %v3528_v17 = vmax.f32 %v3407_v21, 0.0  ;;  %v3409_v26 = vpop.f32.mrb[27].mxu0 }
 0x24f   : > { %v4506_v28 = vpack.c.bf16 %v3527_v20, %v3526_v15  ;;  %v3529_v29 = vmax.f32 %v3409_v26, 0.0 }
 0x251   : > { %3770 = vst [vmem:[%s5734_s19 + $0x60] sm:$0xff] %v4506_v28  ;;  %v4507_v31 = vpack.c.bf16 %v3529_v29, %v3528_v17 }
 0x253   : > { %3771 = vst [vmem:[%s5734_s19 + $0x68] sm:$0xff] %v4507_v31 }
 0x264   : > { %v3493_v33 = vpop.f32.mrb[28].mxu1 }
 0x265   : > { %v3562_v1 = vmax.f32 %v3493_v33, 0.0  ;;  %v3495_v34 = vpop.f32.mrb[29].mxu1 }
 0x266   : > { %v3563_v35 = vmax.f32 %v3495_v34, 0.0  ;;  %v3497_v9 = vpop.f32.mrb[30].mxu1 }
 0x267   : > { %v3564_v38 = vmax.f32 %v3497_v9, 0.0  ;;  %v3499_v40 = vpop.f32.mrb[31].mxu1 }
 0x268   : > { %v4524_v42 = vpack.c.bf16 %v3563_v35, %v3562_v1  ;;  %v3565_v23 = vmax.f32 %v3499_v40, 0.0 }
 0x26a   : > { %3788 = vst [vmem:[%s5734_s19 + $0xf0] sm:$0xff] %v4524_v42  ;;  %v4525_v39 = vpack.c.bf16 %v3565_v23, %v3564_v38 }
 0x26c   : > { %3789 = vst [vmem:[%s5734_s19 + $0xf8] sm:$0xff] %v4525_v39 }
 0x26f   : > { %v3413_v6 = vpop.f32.mrb[28].mxu0 }
 0x270   : > { %v3530_v36 = vmax.f32 %v3413_v6, 0.0  ;;  %v3415_v37 = vpop.f32.mrb[29].mxu0 }
 0x271   : > { %v3531_v41 = vmax.f32 %v3415_v37, 0.0  ;;  %v3417_v43 = vpop.f32.mrb[30].mxu0 }
 0x272   : > { %v3532_v44 = vmax.f32 %v3417_v43, 0.0  ;;  %v3419_v63 = vpop.f32.mrb[31].mxu0 }
 0x273   : > { %v4508_v46 = vpack.c.bf16 %v3531_v41, %v3530_v36  ;;  %v3533_v47 = vmax.f32 %v3419_v63, 0.0 }
 0x275   : > { %3772 = vst [vmem:[%s5734_s19 + $0x70] sm:$0xff] %v4508_v46  ;;  %v4509_v48 = vpack.c.bf16 %v3533_v47, %v3532_v44 }
 0x277   : > { %3773 = vst [vmem:[%s5734_s19 + $0x78] sm:$0xff] %v4509_v48 }
 0x278 PF: > { %s14_s17 = sadd.s32 1, %s4892_s17   ;;  %s5793_s15 = smov %s4888_s16 }
 0x279   : > { %p11_p5 = scmp.ge.s32.totalorder %s14_s17, 4   ;;  %s5794_s16 = smov %s5796_s18 }
 0x27b   :  { %13 = sbr.rel (!%p11_p5) target bundleno = 2 (0x2), region = 76 }

// kernel: decoder_forward.7
= control target key start
LH: loop header
LB: loop body
LE: loop exit
PB: predicated region body
PF: predicated region fallthrough
CT: control target
= control target key end

     0   :  { %11 = vsyncpa [#allocation4], 0  ;;  %s13741_s0 = inlined_call_operand.vmem [shape: bf16[2,18,18,256], index: 0, kind: input, shape index: {}, may-alias: {0,1,2}]   ;;  %s13742_s1 = inlined_call_operand.vmem [shape: bf16[2,18,18,256], index: 1, kind: input, shape index: {}, may-alias: {0,1,2}]   ;;  %s13743_s2 = inlined_call_operand.vmem [shape: bf16[2,18,18,256], index: 2, kind: input, shape index: {}, may-alias: {0,1,2}]   ;;  %s13744_s3 = inlined_call_operand.vmem [shape: bf16[2304,128], index: 3, kind: input, shape index: {}]   ;;  %s13745_s4 = inlined_call_operand.vmem [shape: bf16[128,64], index: 4, kind: input, shape index: {}]   ;;  %s13746_s5 = inlined_call_operand.vmem [shape: f32[1,64], index: 5, kind: input, shape index: {}]   ;;  %s13747_s6 = inlined_call_operand.hbm [shape: f32[2,16,16,64], index: 6, kind: output, shape index: {}]  }
   0x1   :  { %13 = vsyncpa [#allocation4 + $0x1], 0  ;;  %s10569_s21 = smov 0   ;;  %s10571_s22 = smov 0  }
   0x2   :  { %s10573_s23 = smov 0   ;;  %s10575_s24 = smov 0  }
   0x3   :  { %s10577_s25 = smov 0   ;;  %s10579_s26 = smov 0  }
   0x4 LB: > { %s7799_s27 = sadd.s32 4294967295, %s10529_s26   ;;  %s7800_s28 = sadd.s32 4294967294, %s10529_s26   ;;  %s10529_s26 = sphi %s10579_s26, %s19_s26   ;;  %s10525_s25 = sphi %s10577_s25, %s13887_s25   ;;  %s10521_s24 = sphi %s10575_s24, %s13886_s24   ;;  %s10517_s23 = sphi %s10573_s23, %s13885_s23   ;;  %s10513_s22 = sphi %s10571_s22, %s13884_s22   ;;  %s10509_s21 = sphi %s10569_s21, %s13883_s21  }
   0x5   : > { %s31_s29 = sadd.s32 1, %s10525_s25  ;;  %s197_s30 = sadd.s32 1, %s10517_s23 }
   0x6   : > { %p33_p0 = scmp.ge.s32.totalorder %s31_s29, 2  ;;  %p207_p1 = scmp.ne.s32.totalorder %s10517_s23, %s10513_s22 }
   0x7   : > { %p208_p2 = scmp.eq.s32.totalorder %s7799_s27, 1  ;;  %p213_p3 = scmp.ne.s32.totalorder %s10513_s22, %s10509_s21 }
   0x8   : > { %s13889_s29 = smov (%p33_p0, %s31_s29), 0  ;;  %p214_p5 = scmp.eq.s32.totalorder %s7800_s28, 1 }
   0x9   : > { %p10609_p4 = por %p208_p2, %p207_p1  ;;  %s192_s8 = ssub.s32 %s10525_s25, %s13889_s29 }
   0xa   : > { %p7803_p6 = scmp.ge.s32.totalorder %s10529_s26, 1  ;;  %p195_p7 = scmp.eq.s32.totalorder %s192_s8, 0 }
   0xb   : > { %p10616_p8 = por %p214_p5, %p213_p3  ;;  %p301_p9 = scmp.lt.s32.totalorder %s10529_s26, 3 }
   0xc   : > { %s10622_s10 = scalar_select %p195_p7, %s10517_s23, %s197_s30  }
   0xd   : > { %p302_p10 = pnand %p7803_p6, %p301_p9 }
   0xf   : > { %305 = sbr.rel (%p302_p10) target bundleno = 1110 (0x456), region = 44 }
  0x16   : > { %v9839_v0 = vld [vmem:[%s13744_s3 + $0x40] sm:$0xff]   ;;  %p372_p11 = scmp.lt.s32.totalorder %s10521_s24, 1  ;;  %v9841_v2 = vld [vmem:[%s13744_s3 + $0x48] sm:$0xff]   ;;  %v9843_v4 = vld [vmem:[%s13744_s3 + $0x50] sm:$0xff]   ;;  %vm898_vm0 = vsmask.f32 7424 }
  0x17   : > { %v9840_v1 = vld [vmem:[%s13744_s3] sm:$0xff]   ;;  %8683 = vmatprep.subr.bf16.mxu0 %v9839_v0  ;;  %9763 = vmatprep.subr.bf16.mxu1 %v9839_v0  ;;  %v9842_v3 = vld [vmem:[%s13744_s3 + $0x8] sm:$0xff]   ;;  %v9844_v5 = vld [vmem:[%s13744_s3 + $0x10] sm:$0xff]   ;;  %vm1603_vm1 = vcmask 1046528   ;;  %vm7625_vm2 = vcmask 523264   ;;  %s8682_s15 = sshll.u32 %s10521_s24, 12 }
  0x18   : > { %8684 = vmatpush3.bf16.msra.mxu0 %v9840_v1  ;;  %9771 = vmatpush3.bf16.msra.mxu1 %v9840_v1  ;;  %s373_s19 = scalar_select %p372_p11, %s10521_s24, 1  ;;  %v9845_v6 = vld [vmem:[%s13744_s3 + $0x58] sm:$0xff]   ;;  %v9847_v8 = vld [vmem:[%s13744_s3 + $0x60] sm:$0xff]   ;;  %v9849_v10 = vld [vmem:[%s13744_s3 + $0x68] sm:$0xff]  }
  0x19   : > { %8685 = vmatprep.subr.bf16.mxu0 %v9841_v2  ;;  %9764 = vmatprep.subr.bf16.mxu1 %v9841_v2  ;;  %v9846_v7 = vld [vmem:[%s13744_s3 + $0x18] sm:$0xff]   ;;  %v9848_v9 = vld [vmem:[%s13744_s3 + $0x20] sm:$0xff]   ;;  %v9850_v15 = vld [vmem:[%s13744_s3 + $0x28] sm:$0xff]   ;;  %s13682_s18 = scalar_lea.hbm %s13747_s6, %s8682_s15  ;;  %s10531_s27 = smov [#allocation3]  }
  0x1a   : > { %s10647_s12 = smul.u32 432, %s373_s19  ;;  %v9851_v16 = vld [vmem:[%s13744_s3 + $0x70] sm:$0xff]   ;;  %v9853_v18 = vld [vmem:[%s13744_s3 + $0x78] sm:$0xff]   ;;  %v9860_v20 = vld [vmem:[%s13744_s3 + $0xc0] sm:$0xff]  }
  0x1b   : > { %v9852_v17 = vld [vmem:[%s13744_s3 + $0x30] sm:$0xff]   ;;  %v9854_v19 = vld [vmem:[%s13744_s3 + $0x38] sm:$0xff]   ;;  %v9861_v21 = vld [vmem:[%s13744_s3 + $0x140] sm:$0xff]  }
  0x1c   : > { %8686 = vmatpush3.bf16.msra.mxu0 %v9842_v3  ;;  %9772 = vmatpush3.bf16.msra.mxu1 %v9842_v3  ;;  %s10659_s20 = scalar_lea.vmem %s13741_s0, %s10647_s12  ;;  %v9862_v26 = vld [vmem:[%s13744_s3 + $0x80] sm:$0xff]   ;;  %v9864_v28 = vld [vmem:[%s13744_s3 + $0xc8] sm:$0xff]   ;;  %v9871_v33 = vld [vmem:[%s13744_s3 + $0xd0] sm:$0xff]   ;;  %s8679_s28 = sadd.s32 384, %s10647_s12 }
  0x1d   : > { %8687 = vmatprep.subr.bf16.mxu0 %v9843_v4  ;;  %9765 = vmatprep.subr.bf16.mxu1 %v9843_v4  ;;  %v418_v11 = vld [vmem:[%s10659_s20] sm:$0xff]  ;;  %v10669_v12 = vld [vmem:[%s10659_s20 + $0x8] sm:$0xff]  ;;  %v420_v23 = vld [vmem:[%s10659_s20 + $0x18] sm:$0xff]  ;;  %s11327_s11 = scalar_lea.vmem %s13742_s1, %s8679_s28  ;;  %s8681_s19 = sadd.s32 408, %s10647_s12 }
  0x1e   : > { %v10672_v13 = vcombine.high %v418_v11, %v10669_v12  ;;  %v9859_v14 = vld [vmem:[%s10659_s20 + $0x124] ss:$8 sps:$4 sm:$0xff]   ;;  %v9857_v22 = vld [vmem:[%s10659_s20 + $0x120] ss:$8 sps:$4 sm:$0xff]   ;;  %v10703_v25 = vcombine.low %v418_v11, %v10669_v12  ;;  %v422_v35 = vld [vmem:[%s10659_s20 + $0x30] sm:$0xff]  ;;  %s12222_s30 = scalar_lea.vmem %s13743_s2, %s8681_s19 }
  0x1f   : > { %6024 = vmatprep.mubr.bf16.mxu1 %v9859_v14  ;;  %v10700_v24 = vld [vmem:[%s10659_s20 + $0x20] sm:$0xff]  ;;  %v9865_v30 = vld [vmem:[%s13744_s3 + $0x88] sm:$0xff]   ;;  %v10734_v36 = vld [vmem:[%s10659_s20 + $0x38] sm:$0xff] }
  0x20   : > { %8688 = vmatpush3.bf16.msra.mxu0 %v9844_v5  ;;  %9773 = vmatpush3.bf16.msra.mxu1 %v9844_v5  ;;  %v9863_v27 = vld [vmem:[%s13744_s3 + $0x100] sm:$0xff]   ;;  %v10715_v29 = vcombine.high %v420_v23, %v10700_v24  ;;  %v9874_v32 = vld [vmem:[%s13744_s3 + $0x148] sm:$0xff]   ;;  %v10737_v37 = vcombine.low %v420_v23, %v10700_v24  ;;  %v9872_v39 = vld [vmem:[%s13744_s3 + $0x90] sm:$0xff]   ;;  %v10747_v41 = vcombine.high %v422_v35, %v10734_v36  ;;  %v914_v49 = vshll.u32 %v10672_v13, 16 }
  0x21   : > { %8689 = vmatprep.subr.bf16.mxu0 %v9845_v6  ;;  %9766 = vmatprep.subr.bf16.mxu1 %v9845_v6  ;;  %v9867_v31 = vld [vmem:[%s10659_s20 + $0x13c] ss:$8 sps:$4 sm:$0xff]   ;;  %v9876_v34 = vld [vmem:[%s13744_s3 + $0x108] sm:$0xff]   ;;  %v9870_v38 = vld [vmem:[%s10659_s20 + $0x138] ss:$8 sps:$4 sm:$0xff]   ;;  %v10771_v51 = vcombine.low %v422_v35, %v10734_v36  ;;  %v912_v59 = vshrl.u32 %v10672_v13, 16 }
  0x22   : > { %5928 = vmatprep.mubr.bf16.mxu0 %v10672_v13  ;;  %v9873_v40 = vld [vmem:[%s13744_s3 + $0xd8] sm:$0xff]   ;;  %v9892_v44 = vld [vmem:[%s13744_s3 + $0x150] sm:$0xff]   ;;  %v9882_v45 = vld [vmem:[%s13744_s3 + $0xe0] sm:$0xff]   ;;  %v916_v60 = vrot.slane %v914_v49, 1  ;;  %v902_v3 = vshll.u32 %v10703_v25, 16  ;;  %v938_v6 = vshll.u32 %v10715_v29, 16 }
  0x23   : > { %v9878_v42 = vld [vmem:[%s10659_s20 + $0x154] ss:$8 sps:$4 sm:$0xff]   ;;  %v424_v46 = vld [vmem:[%s10659_s20 + $0x48] sm:$0xff]  ;;  %v9881_v50 = vld [vmem:[%s10659_s20 + $0x150] ss:$8 sps:$4 sm:$0xff]  }
  0x24   : > { %8690 = vmatpush3.bf16.msra.mxu0 %v9846_v7  ;;  %9774 = vmatpush3.bf16.msra.mxu1 %v9846_v7  ;;  %v9875_v43 = vld [vmem:[%s13744_s3 + $0x98] sm:$0xff]   ;;  %v9894_v47 = vld [vmem:[%s13744_s3 + $0x110] sm:$0xff]   ;;  %v9883_v52 = vld [vmem:[%s13744_s3 + $0xa0] sm:$0xff]  }
  0x25   : > { %8691 = vmatprep.subr.bf16.mxu0 %v9847_v8  ;;  %9767 = vmatprep.subr.bf16.mxu1 %v9847_v8  ;;  %v10766_v48 = vld [vmem:[%s10659_s20 + $0x50] sm:$0xff]  ;;  %v9884_v53 = vld [vmem:[%s13744_s3 + $0xe8] sm:$0xff]   ;;  %v9901_v57 = vld [vmem:[%s13744_s3 + $0x158] sm:$0xff]  }
  0x26   : > { %v644_v54 = vld [vmem:[%s10659_s20 + $0x10] sm:$0x11]  ;;  %v10781_v55 = vcombine.high %v424_v46, %v10766_v48  ;;  %v9902_v62 = vld [vmem:[%s13744_s3 + $0x118] sm:$0xff]   ;;  %v10792_v63 = vld [vmem:[%s10659_s20 + $0x28] sm:$0x11]  ;;  %v10817_v13 = vcombine.low %v424_v46, %v10766_v48 }
  0x27   : > { %v7843_v56 = vcombine.high %v644_v54, %v644_v54  ;;  %v9887_v58 = vld [vmem:[%s10659_s20 + $0x16c] ss:$8 sps:$4 sm:$0xff]   ;;  %v426_v2 = vld [vmem:[%s10659_s20 + $0x60] sm:$0xff]  ;;  %v7842_v5 = vcombine.low %v644_v54, %v644_v54  ;;  %v7847_v7 = vcombine.high %v10792_v63, %v10792_v63  ;;  %v9890_v14 = vld [vmem:[%s10659_s20 + $0x168] ss:$8 sps:$4 sm:$0xff]  }
  0x28   : > { %8692 = vmatpush3.bf16.msra.mxu0 %v9848_v9  ;;  %9775 = vmatpush3.bf16.msra.mxu1 %v9848_v9  ;;  %v9885_v0 = vld [vmem:[%s13744_s3 + $0xa8] sm:$0xff]   ;;  %v9891_v1 = vld [vmem:[%s13744_s3 + $0xf0] sm:$0xff]   ;;  %v9911_v8 = vld [vmem:[%s13744_s3 + $0x160] sm:$0xff]   ;;  %v917_v9 = vor.u32 %v916_v60, %v912_v59 }
  0x29   : > { %8693 = vmatprep.subr.bf16.mxu0 %v9849_v10  ;;  %9768 = vmatprep.subr.bf16.mxu1 %v9849_v10  ;;  %v919_v61 = vshll.u32 %v7843_v56, 16  ;;  %v10805_v4 = vld [vmem:[%s10659_s20 + $0x68] sm:$0xff]  ;;  %v9912_v11 = vld [vmem:[%s13744_s3 + $0x120] sm:$0xff]  }
  0x2a   : > { %v10832_v23 = vld [vmem:[%s10659_s20 + $0x40] sm:$0x11] }
  0x2b   : > { %v921_v10 = vrot.slane %v919_v61, 1  ;;  %v10851_v35 = vld [vmem:[%s10659_s20 + $0x80] sm:$0xff]  ;;  %v430_v61 = vld [vmem:[%s10659_s20 + $0x90] sm:$0xff] }
  0x2c   : > { %8694 = vmatpush3.bf16.msra.mxu0 %v9850_v15  ;;  %9776 = vmatpush3.bf16.msra.mxu1 %v9850_v15  ;;  %v900_v15 = vshrl.u32 %v10703_v25, 16 }
  0x2d   : > { %8695 = vmatprep.subr.bf16.mxu0 %v9851_v16  ;;  %9769 = vmatprep.subr.bf16.mxu1 %v9851_v16  ;;  %v904_v16 = vrot.slane %v902_v3, 1 }
  0x30   : > { %8696 = vmatpush3.bf16.msra.mxu0 %v9852_v17  ;;  %9777 = vmatpush3.bf16.msra.mxu1 %v9852_v17  ;;  %v936_v17 = vshrl.u32 %v10715_v29, 16 }
  0x31   : > { %8697 = vmatprep.subr.bf16.mxu0 %v9853_v18  ;;  %9770 = vmatprep.subr.bf16.mxu1 %v9853_v18  ;;  %v9893_v18 = vld [vmem:[%s13744_s3 + $0xb0] sm:$0xff]  }
  0x34   : > { %8698 = vmatpush3.bf16.msra.mxu0 %v9854_v19  ;;  %9778 = vmatpush3.bf16.msra.mxu1 %v9854_v19  ;;  %v9895_v19 = vld [vmem:[%s13744_s3 + $0xf8] sm:$0xff]  }
  0x35   : > { %8795 = vmatprep.subr.bf16.mxu1 %v9860_v20  ;;  %8907 = vmatprep.subr.bf16.mxu0 %v9861_v21  ;;  %v10829_v20 = vcombine.high %v426_v2, %v10805_v4  ;;  %v907_v21 = vshll.u32 %v7842_v5, 16  ;;  %v9938_v5 = vld [vmem:[%s13744_s3 + $0x138] sm:$0xff]  }
  0x37   : > { %5929 = vmatmul.mubr.bf16.vlgmr.msra.gmra.mrb[0].mxu0 %v10703_v25  ;;  %6025 = vmatmul.mubr.bf16.vlgmr.msra.gmra.mrb[0].mxu1 %v9857_v22  ;;  %v940_v22 = vrot.slane %v938_v6, 1  ;;  %v943_v25 = vshll.u32 %v7847_v7, 16  ;;  %v948_v7 = vshrl.u32 %v10771_v51, 16 }
  0x38   : > { %8796 = vmatpush3.bf16.msra.mxu1 %v9862_v26  ;;  %8908 = vmatpush3.bf16.msra.mxu0 %v9863_v27  ;;  %v9918_v26 = vld [vmem:[%s13744_s3 + $0x168] sm:$0xff]   ;;  %v922_v27 = vsel %vm898_vm0, %v917_v9, %v921_v10 }
  0x39   : > { %8797 = vmatprep.subr.bf16.mxu1 %v9864_v28  ;;  %5936 = vmatprep.mubr.bf16.mxu0 %v10715_v29  ;;  %v9919_v28 = vld [vmem:[%s13744_s3 + $0x128] sm:$0xff]   ;;  %v9896_v29 = vld [vmem:[%s13744_s3 + $0xb8] sm:$0xff]  }
  0x3a   : > { %6032 = vmatprep.mubr.bf16.mxu1 %v9867_v31  ;;  %8909 = vmatprep.subr.bf16.mxu0 %v9874_v32  ;;  %v909_v31 = vrot.slane %v907_v21, 1  ;;  %v7846_v32 = vcombine.low %v10792_v63, %v10792_v63  ;;  %v9937_v63 = vld [vmem:[%s13744_s3 + $0x178] sm:$0xff]   ;;  %v974_v21 = vshll.u32 %v10817_v13, 16 }
  0x3c   : > { %8798 = vmatpush3.bf16.msra.mxu1 %v9865_v30  ;;  %8910 = vmatpush3.bf16.msra.mxu0 %v9876_v34  ;;  %v905_v30 = vor.u32 %v904_v16, %v900_v15  ;;  %v428_v34 = vld [vmem:[%s10659_s20 + $0x78] sm:$0xff]  ;;  %v984_v16 = vshrl.u32 %v10781_v55, 16 }
  0x3d   : > { %8799 = vmatprep.subr.bf16.mxu1 %v9871_v33  ;;  %8911 = vmatprep.subr.bf16.mxu0 %v9892_v44  ;;  %v926_v33 = vshll.u32 %v10737_v37, 16  ;;  %v10860_v44 = vcombine.low %v426_v2, %v10805_v4  ;;  %v10890_v6 = vcombine.low %v428_v34, %v10851_v35 }
  0x3e   : > { %v910_v46 = vsel %vm898_vm0, %v905_v30, %v909_v31  ;;  %v9959_v30 = vld [vmem:[%s13744_s3 + $0x1c8] sm:$0xff]  }
  0x3f   : > { %5937 = vmatmul.mubr.bf16.gmra.mrb[4].mxu0 %v10737_v37  ;;  %6033 = vmatmul.mubr.bf16.gmra.mrb[4].mxu1 %v9870_v38  ;;  %v941_v38 = vor.u32 %v940_v22, %v936_v17  ;;  %v928_v49 = vrot.slane %v926_v33, 1  ;;  %v9951_v22 = vld [vmem:[%s13744_s3 + $0x240] sm:$0xff]   ;;  %v976_v33 = vrot.slane %v974_v21, 1 }
  0x40   : > { %8800 = vmatpush3.bf16.msra.mxu1 %v9872_v39  ;;  %5944 = vmatprep.mubr.bf16.mxu0 %v10747_v41  ;;  %v945_v39 = vrot.slane %v943_v25, 1 }
  0x41   : > { %8801 = vmatprep.subr.bf16.mxu1 %v9873_v40  ;;  %6040 = vmatprep.mubr.bf16.mxu1 %v9878_v42  ;;  %v7851_v40 = vcombine.high %v10832_v23, %v10832_v23  ;;  %v962_v42 = vshll.u32 %v10747_v41, 16 }
  0x42   : > { %8912 = vmatpush3.bf16.msra.mxu0 %v9894_v47  ;;  %v10865_v47 = vcombine.high %v428_v34, %v10851_v35 }
  0x43   : > { %8913 = vmatprep.subr.bf16.mxu0 %v9901_v57  ;;  %v964_v54 = vrot.slane %v962_v42, 1  ;;  %v967_v56 = vshll.u32 %v7851_v40, 16  ;;  %v653_v57 = vld [vmem:[%s10659_s20 + $0x58] sm:$0x11]  ;;  %v9963_v40 = vld [vmem:[%s13744_s3 + $0x188] sm:$0xff]  }
  0x44   : > { %8802 = vmatpush3.bf16.msra.mxu1 %v9875_v43  ;;  %v9930_v43 = vld [vmem:[%s13744_s3 + $0x170] sm:$0xff]   ;;  %v7855_v3 = vcombine.high %v653_v57, %v653_v57  ;;  %v7854_v25 = vcombine.low %v653_v57, %v653_v57 }
  0x45   : > { %8803 = vmatprep.subr.bf16.mxu1 %v9882_v45  ;;  %v924_v45 = vshrl.u32 %v10737_v37, 16  ;;  %v9931_v37 = vld [vmem:[%s13744_s3 + $0x130] sm:$0xff]   ;;  %v969_v2 = vrot.slane %v967_v56, 1 }
  0x46   : > { %8914 = vmatpush3.bf16.msra.mxu0 %v9902_v62  ;;  %v986_v62 = vshll.u32 %v10781_v55, 16  ;;  %v10935_v57 = vld [vmem:[%s10659_s20 + $0xa8] ss:$8 sps:$4 sm:$0xff]  }
  0x47   : > { %5945 = vmatmul.mubr.bf16.gmra.mrb[8].mxu0 %v10771_v51  ;;  %6041 = vmatmul.mubr.bf16.gmra.mrb[8].mxu1 %v9881_v50  ;;  %v931_v50 = vshll.u32 %v7846_v32, 16  ;;  %v929_v59 = vor.u32 %v928_v49, %v924_v45  ;;  %v972_v32 = vshrl.u32 %v10817_v13, 16 }
  0x48   : > { %8804 = vmatpush3.bf16.msra.mxu1 %v9883_v52  ;;  %5952 = vmatprep.mubr.bf16.mxu0 %v10781_v55  ;;  %v946_v52 = vsel %vm898_vm0, %v941_v38, %v945_v39  ;;  %v988_v17 = vrot.slane %v986_v62, 1  ;;  %v10922_v38 = vld [vmem:[%s10659_s20 + $0xac] ss:$8 sps:$4 sm:$0xff]   ;;  %v979_v39 = vshll.u32 %v7854_v25, 16 }
  0x49   : > { %8805 = vmatprep.subr.bf16.mxu1 %v9884_v53  ;;  %6048 = vmatprep.mubr.bf16.mxu1 %v9887_v58  ;;  %v960_v53 = vshrl.u32 %v10747_v41, 16  ;;  %v950_v58 = vshll.u32 %v10771_v51, 16  ;;  %v933_v60 = vrot.slane %v931_v50, 1  ;;  %v7850_v41 = vcombine.low %v10832_v23, %v10832_v23  ;;  %v9949_v51 = vld [vmem:[%s13744_s3 + $0x180] sm:$0xff]  }
  0x4a   : > { %8915 = vmatprep.subr.bf16.mxu0 %v9911_v8  ;;  %v977_v49 = vor.u32 %v976_v33, %v972_v32  ;;  %v981_v50 = vrot.slane %v979_v39, 1 }
  0x4b   : > { %8916 = vmatpush3.bf16.msra.mxu0 %v9912_v11  ;;  %v952_v8 = vrot.slane %v950_v58, 1  ;;  %v934_v9 = vsel %vm898_vm0, %v929_v59, %v933_v60  ;;  %v955_v11 = vshll.u32 %v7850_v41, 16  ;;  %v10938_v58 = vld [vmem:[%s10659_s20 + $0xc4] ss:$8 sps:$4 sm:$0xff]   ;;  %v9975_v59 = vld [vmem:[%s13744_s3 + $0x1d0] sm:$0xff]  }
  0x4c   : > { %8806 = vmatpush3.bf16.msra.mxu1 %v9885_v0  ;;  %8917 = vmatprep.subr.bf16.mxu0 %v9918_v26  ;;  %v10884_v0 = vld [vmem:[%s10659_s20 + $0x98] sm:$0xff]  ;;  %v989_v26 = vor.u32 %v988_v17, %v984_v16  ;;  %v982_v60 = vsel %vm898_vm0, %v977_v49, %v981_v50  ;;  %v10956_v17 = vld [vmem:[%s10659_s20 + $0xc0] ss:$8 sps:$4 sm:$0xff]  }
  0x4d   : > { %8807 = vmatprep.subr.bf16.mxu1 %v9891_v1  ;;  %v965_v1 = vor.u32 %v964_v54, %v960_v53  ;;  %v10895_v10 = vcombine.high %v430_v61, %v10884_v0  ;;  %v953_v55 = vor.u32 %v952_v8, %v948_v7  ;;  %v957_v23 = vrot.slane %v955_v11, 1  ;;  %v9980_v7 = vld [vmem:[%s13744_s3 + $0x190] sm:$0xff]   ;;  %v10005_v49 = vld [vmem:[%s13744_s3 + $0x1e0] sm:$0xff]  }
  0x4e   : > { %v10917_v31 = vcombine.low %v430_v61, %v10884_v0  ;;  %v998_v53 = vshll.u32 %v10860_v44, 16  ;;  %v996_v61 = vshrl.u32 %v10860_v44, 16 }
  0x4f   : > { %5953 = vmatmul.mubr.bf16.gmra.mrb[12].mxu0 %v10817_v13  ;;  %6049 = vmatmul.mubr.bf16.gmra.mrb[12].mxu1 %v9890_v14  ;;  %v9943_v14 = vld [vmem:[%s13744_s3 + $0x1c0] sm:$0xff]   ;;  %v970_v15 = vsel %vm898_vm0, %v965_v1, %v969_v2  ;;  %v958_v34 = vsel %vm898_vm0, %v953_v55, %v957_v23  ;;  %v659_v13 = vld [vmem:[%s10659_s20 + $0x88] sm:$0x11]  ;;  %v1032_v1 = vshrl.u32 %v10865_v47, 16  ;;  %v1058_v16 = vshll.u32 %v10895_v10, 16 }
  0x50   : > { %8808 = vmatpush3.bf16.msra.mxu1 %v9893_v18  ;;  %5960 = vmatprep.mubr.bf16.mxu0 %v10829_v20  ;;  %v991_v18 = vshll.u32 %v7855_v3, 16  ;;  %v7863_v56 = vcombine.high %v659_v13, %v659_v13  ;;  %v1000_v41 = vrot.slane %v998_v53, 1  ;;  %v1056_v23 = vshrl.u32 %v10895_v10, 16 }
  0x51   : > { %8809 = vmatprep.subr.bf16.mxu1 %v9895_v19  ;;  %6089 = vmatprep.mubr.bf16.mxu1 %v922_v27  ;;  %v656_v19 = vld [vmem:[%s10659_s20 + $0x70] sm:$0x11]  ;;  %v1060_v25 = vrot.slane %v1058_v16, 1  ;;  %v1104_v16 = vshrl.u32 %v10938_v58, 16 }
  0x52   : > { %8918 = vmatpush3.bf16.msra.mxu0 %v9919_v28  ;;  %v993_v27 = vrot.slane %v991_v18, 1  ;;  %v7859_v28 = vcombine.high %v656_v19, %v656_v19  ;;  %v1039_v3 = vshll.u32 %v7863_v56, 16  ;;  %v10990_v56 = vld [vmem:[%s10659_s20 + $0xd0] sm:$0x11] }
  0x53   : > { %8919 = vmatprep.subr.bf16.mxu0 %v9930_v43  ;;  %v1008_v43 = vshrl.u32 %v10829_v20, 16  ;;  %v1061_v33 = vor.u32 %v1060_v25, %v1056_v23  ;;  %v11022_v23 = vld [vmem:[%s10659_s20 + $0xe8] sm:$0x11]  ;;  %v10019_v25 = vld [vmem:[%s13744_s3 + $0x1f0] sm:$0xff]  }
  0x54   : > { %8810 = vmatpush3.bf16.msra.mxu1 %v9896_v29  ;;  %v1010_v29 = vshll.u32 %v10829_v20, 16  ;;  %v994_v42 = vsel %vm898_vm0, %v989_v26, %v993_v27  ;;  %v9995_v27 = vld [vmem:[%s13744_s3 + $0x1d8] sm:$0xff]  }
  0x55   : > { %9019 = vmatprep.subr.bf16.mxu1 %v9943_v14  ;;  %v1041_v14 = vrot.slane %v1039_v3, 1  ;;  %v10009_v3 = vld [vmem:[%s13744_s3 + $0x1e8] sm:$0xff]  }
  0x56   : > { %8920 = vmatpush3.bf16.msra.mxu0 %v9931_v37  ;;  %v1012_v45 = vrot.slane %v1010_v29, 1  ;;  %v1034_v37 = vshll.u32 %v10865_v47, 16  ;;  %v9996_v29 = vld [vmem:[%s13744_s3 + $0x198] sm:$0xff]  }
  0x57   : > { %5961 = vmatmul.mubr.bf16.gmra.mrb[16].mxu0 %v10860_v44  ;;  %6090 = vmatmul.mubr.bf16.vlgmr.msra.gmra.mrb[16].mxu1 %v910_v46  ;;  %v1015_v46 = vshll.u32 %v7859_v28, 16  ;;  %v1001_v44 = vor.u32 %v1000_v41, %v996_v61  ;;  %v665_v28 = vld [vmem:[%s10659_s20 + $0xb8] sm:$0x11]  ;;  %v1070_v41 = vshll.u32 %v10935_v57, 16 }
  0x58   : > { %5968 = vmatprep.mubr.bf16.mxu0 %v10865_v47  ;;  %6097 = vmatprep.mubr.bf16.mxu1 %v946_v52  ;;  %v7858_v52 = vcombine.low %v656_v19, %v656_v19  ;;  %v1013_v54 = vor.u32 %v1012_v45, %v1008_v43  ;;  %v1036_v2 = vrot.slane %v1034_v37, 1  ;;  %v1022_v47 = vshll.u32 %v10890_v6, 16  ;;  %v10960_v19 = vld [vmem:[%s10659_s20 + $0xdc] ss:$8 sps:$4 sm:$0xff]  }
  0x59   : > { %8921 = vmatprep.subr.bf16.mxu0 %v9937_v63  ;;  %9020 = vmatpush3.bf16.msra.mxu1 %v9949_v51  ;;  %v1017_v20 = vrot.slane %v1015_v46, 1  ;;  %v1020_v51 = vshrl.u32 %v10890_v6, 16  ;;  %v7871_v39 = vcombine.high %v665_v28, %v665_v28  ;;  %v10980_v43 = vld [vmem:[%s10659_s20 + $0xf4] ss:$8 sps:$4 sm:$0xff]   ;;  %v1044_v45 = vshrl.u32 %v10917_v31, 16 }
  0x5a   : > { %8922 = vmatpush3.bf16.msra.mxu0 %v9938_v5  ;;  %9021 = vmatprep.subr.bf16.mxu1 %v9959_v30  ;;  %v1003_v62 = vshll.u32 %v7858_v52, 16  ;;  %v662_v5 = vld [vmem:[%s10659_s20 + $0xa0] sm:$0x11]  ;;  %v1037_v11 = vor.u32 %v1036_v2, %v1032_v1  ;;  %v1024_v21 = vrot.slane %v1022_v47, 1  ;;  %v1046_v30 = vshll.u32 %v10917_v31, 16 }
  0x5b   : > { %9131 = vmatprep.subr.bf16.mxu0 %v9951_v22  ;;  %v1018_v63 = vsel %vm898_vm0, %v1013_v54, %v1017_v20  ;;  %v1080_v52 = vshrl.u32 %v10922_v38, 16  ;;  %v1087_v20 = vshll.u32 %v7871_v39, 16  ;;  %v7870_v61 = vcombine.low %v665_v28, %v665_v28  ;;  %v10021_v28 = vld [vmem:[%s13744_s3 + $0x1f8] sm:$0xff]  }
  0x5c   : > { %v1005_v8 = vrot.slane %v1003_v62, 1  ;;  %v1042_v55 = vsel %vm898_vm0, %v1037_v11, %v1041_v14  ;;  %v1048_v46 = vrot.slane %v1046_v30, 1  ;;  %v1106_v62 = vshll.u32 %v10938_v58, 16 }
  0x5d   : > { %9022 = vmatpush3.bf16.msra.mxu1 %v9963_v40  ;;  %v1082_v40 = vshll.u32 %v10922_v38, 16  ;;  %v1089_v1 = vrot.slane %v1087_v20, 1  ;;  %v7875_v2 = vcombine.high %v10990_v56, %v10990_v56  ;;  %v1068_v11 = vshrl.u32 %v10935_v57, 16 }
  0x5e   : > { %9023 = vmatprep.subr.bf16.mxu1 %v9975_v59  ;;  %v1006_v18 = vsel %vm898_vm0, %v1001_v44, %v1005_v8  ;;  %v1049_v37 = vor.u32 %v1048_v46, %v1044_v45  ;;  %v1349_v44 = vld [vmem:[%s10659_s20 + $0x10] sm:$0x11]  ;;  %v1072_v14 = vrot.slane %v1070_v41, 1  ;;  %v7879_v30 = vcombine.high %v11022_v23, %v11022_v23  ;;  %v10022_v45 = vld [vmem:[%s13744_s3 + $0x1b8] sm:$0xff]  }
  0x5f   : > { %5969 = vmatmul.mubr.bf16.gmra.mrb[20].mxu0 %v10890_v6  ;;  %6098 = vmatmul.mubr.bf16.gmra.mrb[20].mxu1 %v934_v9  ;;  %v7862_v9 = vcombine.low %v659_v13, %v659_v13  ;;  %v7866_v6 = vcombine.low %v662_v5, %v662_v5  ;;  %v1084_v54 = vrot.slane %v1082_v40, 1  ;;  %v11012_v8 = vld [vmem:[%s10659_s20 + $0xf0] ss:$8 sps:$4 sm:$0xff]   ;;  %v7906_v46 = vcombine.low %v1349_v44, %v1349_v44 }
  0x60   : > { %5976 = vmatprep.mubr.bf16.mxu0 %v10895_v10  ;;  %6105 = vmatprep.mubr.bf16.mxu1 %v970_v15  ;;  %v7867_v15 = vcombine.high %v662_v5, %v662_v5  ;;  %v1025_v10 = vor.u32 %v1024_v21, %v1020_v51  ;;  %v10010_v5 = vld [vmem:[%s13744_s3 + $0x1a8] sm:$0xff]   ;;  %v1111_v21 = vshll.u32 %v7875_v2, 16  ;;  %v1350_v40 = vld [vmem:[%s10659_s20 + $0x18] sm:$0xee] }
  0x61   : > { %9024 = vmatpush3.bf16.msra.mxu1 %v9980_v7  ;;  %v1027_v22 = vshll.u32 %v7862_v9, 16  ;;  %v1051_v13 = vshll.u32 %v7866_v6, 16  ;;  %v1347_v7 = vld [vmem:[%s10659_s20] sm:$0xee] }
  0x62   : > { %v1063_v26 = vshll.u32 %v7867_v15, 16  ;;  %9025 = vmatprep.subr.bf16.mxu1 %v9995_v27  ;;  %v1075_v15 = vshll.u32 %v7870_v61, 16  ;;  %v1094_v27 = vshll.u32 %v10956_v17, 16  ;;  %v7878_v61 = vcombine.low %v11022_v23, %v11022_v23 }
  0x63   : > { %v1029_v32 = vrot.slane %v1027_v22, 1  ;;  %v1053_v59 = vrot.slane %v1051_v13, 1  ;;  %v7905_v22 = vcombine.high %v1347_v7, %v10669_v12  ;;  %v1092_v13 = vshrl.u32 %v10956_v17, 16 }
  0x64   : > { %v1077_v6 = vrot.slane %v1075_v15, 1 }
  0x65   : > { %9026 = vmatpush3.bf16.msra.mxu1 %v9996_v29  ;;  %v1030_v50 = vsel %vm898_vm0, %v1025_v10, %v1029_v32  ;;  %v1054_v9 = vsel %vm898_vm0, %v1049_v37, %v1053_v59  ;;  %v1073_v29 = vor.u32 %v1072_v14, %v1068_v11  ;;  %v1113_v32 = vrot.slane %v1111_v21, 1  ;;  %v11068_v11 = vld [vmem:[%s10659_s20 + $0x30] sm:$0xee] }
  0x66   : > { %9027 = vmatprep.subr.bf16.mxu1 %v10005_v49  ;;  %v1096_v49 = vrot.slane %v1094_v27, 1  ;;  %v7913_v27 = vcombine.high %v11068_v11, %v10734_v36 }
  0x67   : > { %5977 = vmatmul.mubr.bf16.gmra.mrb[24].mxu0 %v10917_v31  ;;  %6106 = vmatmul.mubr.bf16.gmra.mrb[24].mxu1 %v958_v34  ;;  %v1065_v34 = vrot.slane %v1063_v26, 1  ;;  %v10007_v31 = vld [vmem:[%s13744_s3 + $0x1a0] sm:$0xff]   ;;  %v7874_v26 = vcombine.low %v10990_v56, %v10990_v56  ;;  %v1135_v56 = vshll.u32 %v7879_v30, 16 }
  0x68   : > { %5984 = vmatprep.mubr.bf16.mxu0 %v10922_v38  ;;  %6113 = vmatprep.mubr.bf16.mxu1 %v994_v42  ;;  %v10977_v42 = vld [vmem:[%s10659_s20 + $0xd8] ss:$8 sps:$4 sm:$0xff]   ;;  %v440_v38 = vld [vmem:[%s10659_s20 + $0x108] sm:$0xff] }
  0x69   : > { %v1066_v53 = vsel %vm898_vm0, %v1061_v33, %v1065_v34  ;;  %9028 = vmatpush3.bf16.msra.mxu1 %v10007_v31  ;;  %v1607_v33 = vrot.slane %v7905_v22, 1  ;;  %v1118_v41 = vshll.u32 %v10977_v42, 16  ;;  %v9952_v22 = vld [vmem:[%s13744_s3 + $0x200] sm:$0xff]  }
  0x6a   : > { %9029 = vmatprep.subr.bf16.mxu1 %v10009_v3  ;;  %v1137_v3 = vrot.slane %v1135_v56, 1 }
  0x6d   : > { %9030 = vmatpush3.bf16.msra.mxu1 %v10010_v5 }
  0x6e   : > { %9031 = vmatprep.subr.bf16.mxu1 %v10019_v25 }
  0x6f   : > { %5985 = vmatmul.mubr.bf16.gmra.mrb[28].mxu0 %v10935_v57  ;;  %6114 = vmatmul.mubr.bf16.gmra.mrb[28].mxu1 %v982_v60  ;;  %v441_v60 = vld [vmem:[%s10659_s20 + $0x110] sm:$0xff] }
  0x70   : > { %5992 = vmatprep.mubr.bf16.mxu0 %v10938_v58  ;;  %6121 = vmatprep.mubr.bf16.mxu1 %v1018_v63  ;;  %v1085_v63 = vor.u32 %v1084_v54, %v1080_v52  ;;  %v11015_v47 = vcombine.high %v440_v38, %v441_v60  ;;  %v10020_v57 = vld [vmem:[%s13744_s3 + $0x1b0] sm:$0xff]   ;;  %v7904_v58 = vcombine.low %v1347_v7, %v10669_v12  ;;  %v1130_v12 = vshll.u32 %v10960_v19, 16  ;;  %v1352_v52 = vld [vmem:[%s10659_s20 + $0x28] sm:$0x11] }
  0x71   : > { %v11042_v39 = vcombine.low %v440_v38, %v441_v60  ;;  %9032 = vmatpush3.bf16.msra.mxu1 %v10020_v57  ;;  %v1128_v54 = vshrl.u32 %v10960_v19, 16  ;;  %v11055_v38 = vld [vmem:[%s10659_s20 + $0x100] sm:$0x11]  ;;  %v7909_v60 = vcombine.high %v1350_v40, %v10700_v24  ;;  %v7910_v5 = vcombine.low %v1352_v52, %v1352_v52  ;;  %v9967_v57 = vld [vmem:[%s13744_s3 + $0x248] sm:$0xff]  }
  0x72   : > { %v1090_v51 = vsel %vm898_vm0, %v1085_v63, %v1089_v1  ;;  %9033 = vmatprep.subr.bf16.mxu1 %v10021_v28  ;;  %v1132_v20 = vrot.slane %v1130_v12, 1  ;;  %v1604_v37 = vrot.slane %v7904_v58, 1  ;;  %v7908_v1 = vcombine.low %v1350_v40, %v10700_v24  ;;  %v1355_v24 = vld [vmem:[%s10659_s20 + $0x40] sm:$0x11] }
  0x73   : > { %v7883_v7 = vcombine.high %v11055_v38, %v11055_v38  ;;  %v1613_v14 = vrot.slane %v7909_v60, 1  ;;  %v1611_v23 = vrot.slane %v7910_v5, 1  ;;  %v1152_v58 = vshrl.u32 %v10980_v43, 16 }
  0x74   : > { %v1133_v2 = vor.u32 %v1132_v20, %v1128_v54  ;;  %v7915_v28 = vcombine.high %v1355_v24, %v1355_v24  ;;  %v11103_v54 = vld [vmem:[%s10659_s20 + $0x128] sm:$0xff]  ;;  %v9985_v20 = vld [vmem:[%s13744_s3 + $0x250] sm:$0xff]  }
  0x75   : > { %9034 = vmatpush3.bf16.msra.mxu1 %v10022_v45  ;;  %v1159_v25 = vshll.u32 %v7883_v7, 16  ;;  %v11093_v45 = vld [vmem:[%s10659_s20 + $0x48] sm:$0xee] }
  0x77   : > { %5993 = vmatmul.mubr.bf16.gmra.mrb[32].mxu0 %v10956_v17  ;;  %6122 = vmatmul.mubr.bf16.gmra.mrb[32].mxu1 %v1006_v18  ;;  %v1108_v18 = vrot.slane %v1106_v62, 1  ;;  %v7911_v17 = vcombine.high %v1352_v52, %v1352_v52  ;;  %v1097_v62 = vor.u32 %v1096_v49, %v1092_v13  ;;  %v11099_v13 = vld [vmem:[%s10659_s20 + $0x120] sm:$0xff]  ;;  %v1620_v52 = vrot.slane %v7915_v28, 1 }
  0x78   : > { %6000 = vmatprep.mubr.bf16.mxu0 %v10960_v19  ;;  %6129 = vmatprep.mubr.bf16.mxu1 %v1042_v55  ;;  %v7907_v55 = vcombine.high %v1349_v44, %v1349_v44  ;;  %v1605_v19 = vrot.slane %v7906_v46, 1  ;;  %v1116_v44 = vshrl.u32 %v10977_v42, 16  ;;  %v11096_v46 = vld [vmem:[%s10659_s20 + $0x58] sm:$0x11] }
  0x79   : > { %v1109_v10 = vor.u32 %v1108_v18, %v1104_v16  ;;  %v1614_v15 = vrot.slane %v7911_v17, 1  ;;  %v1120_v16 = vrot.slane %v1118_v41, 1  ;;  %v1123_v18 = vshll.u32 %v7878_v61, 16  ;;  %v11117_v41 = vld [vmem:[%s10659_s20 + $0x130] sm:$0x11] }
  0x7a   : > { %v1608_v34 = vrot.slane %v7907_v55, 1  ;;  %v1606_v21 = vsel %vm1603_vm1, %v1604_v37, %v1605_v19  ;;  %v1610_v55 = vrot.slane %v7908_v1, 1  ;;  %v7912_v37 = vcombine.low %v11068_v11, %v10734_v36  ;;  %v9986_v36 = vld [vmem:[%s13744_s3 + $0x210] sm:$0xff]  }
  0x7b   : > { %v1114_v31 = vsel %vm898_vm0, %v1109_v10, %v1113_v32  ;;  %v1121_v30 = vor.u32 %v1120_v16, %v1116_v44  ;;  %v1125_v12 = vrot.slane %v1123_v18, 1  ;;  %v7882_v10 = vcombine.low %v11055_v38, %v11055_v38  ;;  %v9968_v32 = vld [vmem:[%s13744_s3 + $0x208] sm:$0xff]   ;;  %v10006_v44 = vld [vmem:[%s13744_s3 + $0x258] sm:$0xff]   ;;  %v11136_v16 = vld [vmem:[%s10659_s20 + $0x60] sm:$0xee] }
  0x7c   : > { %v1609_v59 = vsel %vm1603_vm1, %v1607_v33, %v1608_v34  ;;  %v1612_v33 = vsel %vm1603_vm1, %v1610_v55, %v1611_v23  ;;  %v1161_v34 = vrot.slane %v1159_v25, 1  ;;  %v7917_v17 = vcombine.high %v11093_v45, %v10766_v48  ;;  %v10444_v23 = vld [vmem:[%s10659_s20 + $0x50] sm:$0xff] }
  0x7d   : > { %v1126_v56 = vsel %vm898_vm0, %v1121_v30, %v1125_v12  ;;  %v1147_v60 = vshll.u32 %v7882_v10, 16  ;;  %v7919_v61 = vcombine.high %v11096_v46, %v11096_v46  ;;  %v1176_v19 = vshrl.u32 %v11015_v47, 16 }
  0x7e   : > { %v7891_v7 = vcombine.high %v11117_v41, %v11117_v41  ;;  %v7916_v25 = vcombine.low %v11093_v45, %v10444_v23  ;;  %v10077_v23 = vld [vmem:[%s13744_s3 + $0x278] sm:$0xff]  }
  0x7f   : > { %6001 = vmatmul.mubr.bf16.gmra.mrb[36].mxu0 %v10977_v42  ;;  %6130 = vmatmul.mubr.bf16.gmra.mrb[36].mxu1 %v1030_v50  ;;  %v1099_v50 = vshll.u32 %v7874_v26, 16  ;;  %v1138_v42 = vsel %vm898_vm0, %v1133_v2, %v1137_v3  ;;  %v1166_v3 = vshll.u32 %v11042_v39, 16  ;;  %v1149_v11 = vrot.slane %v1147_v60, 1  ;;  %v11192_v60 = vld [vmem:[%s10659_s20 + $0x150] sm:$0xff] }
  0x80   : > { %6008 = vmatprep.mubr.bf16.mxu0 %v10980_v43  ;;  %6137 = vmatprep.mubr.bf16.mxu1 %v1066_v53  ;;  %v1078_v53 = vsel %vm898_vm0, %v1073_v29, %v1077_v6  ;;  %v677_v29 = vld [vmem:[%s10659_s20 + $0x118] sm:$0x11]  ;;  %v1615_v6 = vsel %vm1603_vm1, %v1613_v14, %v1614_v15  ;;  %v1625_v14 = vrot.slane %v7917_v17, 1  ;;  %v1626_v15 = vrot.slane %v7919_v61, 1 }
  0x81   : > { %v1101_v63 = vrot.slane %v1099_v50, 1  ;;  %v7887_v40 = vcombine.high %v677_v29, %v677_v29  ;;  %v1619_v50 = vrot.slane %v7913_v27, 1  ;;  %v1168_v55 = vrot.slane %v1166_v3, 1  ;;  %v11211_v3 = vld [vmem:[%s10659_s20 + $0x88] sm:$0x11] }
  0x82   : > { %v1207_v28 = vshll.u32 %v7891_v7, 16  ;;  %v1627_v12 = vsel %vm1603_vm1, %v1625_v14, %v1626_v15 }
  0x83   : > { %v1621_v1 = vsel %vm1603_vm1, %v1619_v50, %v1620_v52 }
  0x87   : > { %6009 = vmatmul.mubr.bf16.gmra.mrb[40].mxu0 %v11012_v8  ;;  %6138 = vmatmul.mubr.bf16.gmra.mrb[40].mxu1 %v1054_v9  ;;  %v1154_v9 = vshll.u32 %v10980_v43, 16  ;;  %v1142_v43 = vshll.u32 %v11012_v8, 16 }
  0x88   : > { %6016 = vmatprep.mubr.bf16.mxu0 %v11015_v47  ;;  %6145 = vmatprep.mubr.bf16.mxu1 %v1090_v51  ;;  %v1102_v51 = vsel %vm898_vm0, %v1097_v62, %v1101_v63  ;;  %v1183_v62 = vshll.u32 %v7887_v40, 16  ;;  %v7886_v63 = vcombine.low %v677_v29, %v677_v29  ;;  %v7921_v29 = vcombine.high %v11136_v16, %v10805_v4 }
  0x89   : > { %v1156_v26 = vrot.slane %v1154_v9, 1  ;;  %v1144_v38 = vrot.slane %v1142_v43, 1  ;;  %v11166_v43 = vcombine.low %v11099_v13, %v11103_v54 }
  0x8a   : > { %v1185_v18 = vrot.slane %v1183_v62, 1  ;;  %v11200_v62 = vld [vmem:[%s10659_s20 + $0x158] sm:$0xff] }
  0x8b   : > { %v1157_v49 = vor.u32 %v1156_v26, %v1152_v58  ;;  %v681_v58 = vld [vmem:[%s10659_s20 + $0x138] sm:$0xff]  ;;  %v11149_v26 = vld [vmem:[%s10659_s20 + $0x140] sm:$0xff] }
  0x8c   : > { %v11175_v40 = vcombine.high %v681_v58, %v11149_v26 }
  0x8d   : > { %v1162_v48 = vsel %vm898_vm0, %v1157_v49, %v1161_v34  ;;  %v11172_v34 = vld [vmem:[%s10659_s20 + $0x148] sm:$0x11]  ;;  %v1622_v49 = vrot.slane %v7916_v25, 1 }
  0x8f   : > { %6017 = vmatmul.mubr.bf16.gmra.mrb[44].mxu0 %v11042_v39  ;;  %6146 = vmatmul.mubr.bf16.gmra.mrb[44].mxu1 %v1078_v53  ;;  %v1178_v53 = vshll.u32 %v11015_v47, 16  ;;  %v1616_v47 = vrot.slane %v7912_v37, 1  ;;  %v10085_v37 = vld [vmem:[%s13744_s3 + $0x2c0] sm:$0xff]  }
  0x90   : > { %6153 = vmatprep.mubr.bf16.mxu1 %v1114_v31  ;;  %6250 = vmatprep.mubr.bf16.mxu0 %v1609_v59  ;;  %v1140_v31 = vshrl.u32 %v11012_v8, 16  ;;  %v7914_v59 = vcombine.low %v1355_v24, %v1355_v24  ;;  %v11122_v8 = vcombine.high %v11099_v13, %v11103_v54  ;;  %v1164_v24 = vshrl.u32 %v11042_v39, 16  ;;  %v10008_v39 = vld [vmem:[%s13744_s3 + $0x218] sm:$0xff]   ;;  %v10031_v13 = vld [vmem:[%s13744_s3 + $0x220] sm:$0xff]  }
  0x91   : > { %v1180_v2 = vrot.slane %v1178_v53, 1  ;;  %v1209_v53 = vrot.slane %v1207_v28, 1  ;;  %9243 = vmatprep.subr.bf16.mxu1 %v10085_v37  ;;  %v11249_v28 = vld [vmem:[%s10659_s20 + $0xa0] sm:$0x11] }
  0x92   : > { %v1617_v5 = vrot.slane %v7914_v59, 1  ;;  %v1145_v9 = vor.u32 %v1144_v38, %v1140_v31  ;;  %v1169_v52 = vor.u32 %v1168_v55, %v1164_v24  ;;  %v10046_v31 = vld [vmem:[%s13744_s3 + $0x268] sm:$0xff]   ;;  %v1190_v38 = vshll.u32 %v11166_v43, 16 }
  0x93   : > { %v1224_v24 = vshrl.u32 %v11175_v40, 16 }
  0x94   : > { %v1618_v27 = vsel %vm1603_vm1, %v1616_v47, %v1617_v5  ;;  %v1150_v30 = vsel %vm898_vm0, %v1145_v9, %v1149_v11  ;;  %v11214_v47 = vcombine.low %v681_v58, %v11149_v26  ;;  %v10062_v5 = vld [vmem:[%s13744_s3 + $0x270] sm:$0xff]  }
  0x96   : > { %v1214_v55 = vshll.u32 %v11214_v47, 16 }
  0x97   : > { %6154 = vmatmul.mubr.bf16.gmra.mrb[48].mxu1 %v1102_v51  ;;  %6251 = vmatmul.mubr.bf16.vlgmr.msra.gmra.mrb[48].mxu0 %v1606_v21  ;;  %v1171_v51 = vshll.u32 %v7886_v63, 16  ;;  %v1202_v21 = vshll.u32 %v11122_v8, 16  ;;  %v10047_v63 = vld [vmem:[%s13744_s3 + $0x228] sm:$0xff]  }
  0x98   : > { %9132 = vmatpush3.bf16.msra.mxu0 %v9952_v22  ;;  %6161 = vmatprep.mubr.bf16.mxu1 %v1138_v42  ;;  %v11141_v22 = vld [vmem:[%s10659_s20 + $0x70] sm:$0x11]  ;;  %v1181_v42 = vor.u32 %v1180_v2, %v1176_v19  ;;  %v1226_v19 = vshll.u32 %v11175_v40, 16  ;;  %v10091_v40 = vld [vmem:[%s13744_s3 + $0x340] sm:$0xff]  }
  0x99   : > { %6258 = vmatprep.mubr.bf16.mxu0 %v1615_v6  ;;  %9133 = vmatprep.subr.bf16.mxu0 %v9967_v57  ;;  %v7918_v57 = vcombine.low %v11096_v46, %v11096_v46  ;;  %v10030_v6 = vld [vmem:[%s13744_s3 + $0x260] sm:$0xff]   ;;  %v7923_v10 = vcombine.high %v11141_v22, %v11141_v22  ;;  %v1204_v4 = vrot.slane %v1202_v21, 1  ;;  %v1173_v46 = vrot.slane %v1171_v51, 1 }
  0x9a   : > { %v1186_v45 = vsel %vm898_vm0, %v1181_v42, %v1185_v18  ;;  %v7922_v9 = vcombine.low %v11141_v22, %v11141_v22  ;;  %v11228_v18 = vcombine.high %v11192_v60, %v11200_v62  ;;  %v1228_v51 = vrot.slane %v1226_v19, 1  ;;  %v11236_v22 = vld [vmem:[%s10659_s20 + $0x160] sm:$0x11]  ;;  %v10063_v42 = vld [vmem:[%s13744_s3 + $0x230] sm:$0xff]  }
  0x9b   : > { %v1623_v50 = vrot.slane %v7918_v57, 1  ;;  %v1632_v59 = vrot.slane %v7923_v10, 1  ;;  %v7927_v21 = vcombine.high %v11211_v3, %v11211_v3 }
  0x9c   : > { %9134 = vmatpush3.bf16.msra.mxu0 %v9968_v32  ;;  %v1200_v32 = vshrl.u32 %v11122_v8, 16  ;;  %v1629_v58 = vrot.slane %v7922_v9, 1  ;;  %v1229_v10 = vor.u32 %v1228_v51, %v1224_v24  ;;  %v10447_v24 = vld [vmem:[%s10659_s20 + $0x98] sm:$0xff] }
  0x9d   : > { %9135 = vmatprep.subr.bf16.mxu0 %v9985_v20  ;;  %v1631_v20 = vrot.slane %v7921_v29, 1  ;;  %v1624_v8 = vsel %vm1603_vm1, %v1622_v49, %v1623_v50  ;;  %v7926_v50 = vcombine.low %v11211_v3, %v11211_v3 }
  0x9e   : > { %v1205_v17 = vor.u32 %v1204_v4, %v1200_v32  ;;  %v1212_v32 = vshrl.u32 %v11214_v47, 16 }
  0x9f   : > { %6162 = vmatmul.mubr.bf16.gmra.mrb[52].mxu1 %v1126_v56  ;;  %6259 = vmatmul.mubr.bf16.gmra.mrb[52].mxu0 %v1612_v33  ;;  %v7890_v33 = vcombine.low %v11117_v41, %v11117_v41  ;;  %v11182_v56 = vld [vmem:[%s10659_s20 + $0x78] sm:$0xee]  ;;  %v7895_v41 = vcombine.high %v11172_v34, %v11172_v34  ;;  %v1633_v7 = vsel %vm1603_vm1, %v1631_v20, %v1632_v59 }
  0xa0   : > { %6169 = vmatprep.mubr.bf16.mxu1 %v1162_v48  ;;  %6266 = vmatprep.mubr.bf16.mxu0 %v1621_v1  ;;  %v1188_v48 = vshrl.u32 %v11166_v43, 16  ;;  %v10445_v1 = vld [vmem:[%s10659_s20 + $0x68] sm:$0xff]  ;;  %v7925_v11 = vcombine.high %v11182_v56, %v10851_v35  ;;  %v1210_v14 = vsel %vm898_vm0, %v1205_v17, %v1209_v53  ;;  %v7894_v35 = vcombine.low %v11172_v34, %v11172_v34  ;;  %v10078_v34 = vld [vmem:[%s13744_s3 + $0x238] sm:$0xff]  }
  0xa1   : > { %9136 = vmatpush3.bf16.msra.mxu0 %v9986_v36  ;;  %v11194_v61 = vshll.u32 %v7890_v33, 16  ;;  %v1174_v36 = vsel %vm898_vm0, %v1169_v52, %v1173_v46  ;;  %v7920_v2 = vcombine.low %v11136_v16, %v10445_v1  ;;  %v1231_v16 = vshll.u32 %v7895_v41, 16  ;;  %v11257_v33 = vld [vmem:[%s10659_s20 + $0x170] sm:$0xff]  ;;  %v10446_v46 = vld [vmem:[%s10659_s20 + $0x80] sm:$0xff] }
  0xa2   : > { %9137 = vmatprep.subr.bf16.mxu0 %v10006_v44  ;;  %v1192_v44 = vrot.slane %v1190_v38, 1  ;;  %v1638_v43 = vrot.slane %v7927_v21, 1  ;;  %v1219_v4 = vshll.u32 %v7894_v35, 16  ;;  %v7924_v49 = vcombine.low %v11182_v56, %v10446_v46 }
  0xa3   : > { %v1197_v15 = vrot.slane %v11194_v61, 1  ;;  %v1628_v57 = vrot.slane %v7920_v2, 1  ;;  %v1233_v29 = vrot.slane %v1231_v16, 1  ;;  %v1248_v53 = vshrl.u32 %v11228_v18, 16  ;;  %v689_v61 = vld [vmem:[%s10659_s20 + $0x178] sm:$0x11] }
  0xa4   : > { %v1193_v25 = vor.u32 %v1192_v44, %v1188_v48  ;;  %v7896_v20 = vcombine.low %v11192_v60, %v11200_v62  ;;  %v7931_v56 = vcombine.high %v11249_v28, %v11249_v28  ;;  %v1634_v60 = vrot.slane %v7924_v49, 1 }
  0xa5   : > { %9138 = vmatpush3.bf16.msra.mxu0 %v10008_v39  ;;  %v1637_v39 = vrot.slane %v7925_v11, 1  ;;  %v1630_v52 = vsel %vm1603_vm1, %v1628_v57, %v1629_v58  ;;  %v1234_v38 = vsel %vm898_vm0, %v1229_v10, %v1233_v29  ;;  %v7903_v47 = vcombine.high %v689_v61, %v689_v61 }
  0xa6   : > { %9139 = vmatprep.subr.bf16.mxu0 %v10030_v6  ;;  %v7899_v6 = vcombine.high %v11236_v22, %v11236_v22  ;;  %v1644_v3 = vrot.slane %v7931_v56, 1  ;;  %v1236_v11 = vshrl.u32 %v7896_v20, 16  ;;  %v7930_v21 = vcombine.low %v11249_v28, %v11249_v28 }
  0xa7   : > { %6170 = vmatmul.mubr.bf16.gmra.mrb[56].mxu1 %v1150_v30  ;;  %6267 = vmatmul.mubr.bf16.gmra.mrb[56].mxu0 %v1618_v27  ;;  %v11246_v27 = vld [vmem:[%s10659_s20 + $0x90] sm:$0xee]  ;;  %v1250_v30 = vshll.u32 %v11228_v18, 16  ;;  %v1639_v17 = vsel %vm1603_vm1, %v1637_v39, %v1638_v43 }
  0xa8   : > { %6177 = vmatprep.mubr.bf16.mxu1 %v1186_v45  ;;  %6274 = vmatprep.mubr.bf16.mxu0 %v1627_v12  ;;  %v687_v12 = vld [vmem:[%s10659_s20 + $0x168] sm:$0xff]  ;;  %v1216_v45 = vrot.slane %v1214_v55, 1  ;;  %v1255_v37 = vshll.u32 %v7899_v6, 16  ;;  %v7929_v59 = vcombine.high %v11246_v27, %v10884_v0  ;;  %v7898_v0 = vcombine.low %v11236_v22, %v11236_v22 }
  0xa9   : > { %9140 = vmatpush3.bf16.msra.mxu0 %v10031_v13  ;;  %v1198_v13 = vsel %vm898_vm0, %v1193_v25, %v1197_v15  ;;  %v7901_v41 = vcombine.high %v687_v12, %v11257_v33  ;;  %v1370_v15 = vld [vmem:[%s10659_s20 + $0xb8] sm:$0x11]  ;;  %v7928_v51 = vcombine.low %v11246_v27, %v10447_v24  ;;  %v7900_v55 = vcombine.low %v687_v12, %v11257_v33 }
  0xaa   : > { %9141 = vmatprep.subr.bf16.mxu0 %v10046_v31  ;;  %v1252_v31 = vrot.slane %v1250_v30, 1  ;;  %v1217_v19 = vor.u32 %v1216_v45, %v1212_v32  ;;  %v1257_v1 = vrot.slane %v1255_v37, 1  ;;  %v1643_v2 = vrot.slane %v7929_v59, 1  ;;  %v11336_v24 = vld [vmem:[%s10659_s20 + $0x18] ss:$8 sps:$4 sm:$0xff]  }
  0xab   : > { %v1243_v18 = vshll.u32 %v7898_v0, 16  ;;  %v1279_v25 = vshll.u32 %v7903_v47, 16  ;;  %v7935_v58 = vcombine.high %v1370_v15, %v1370_v15  ;;  %v1640_v28 = vrot.slane %v7928_v51, 1 }
  0xac   : > { %v1253_v48 = vor.u32 %v1252_v31, %v1248_v53  ;;  %v1645_v22 = vsel %vm1603_vm1, %v1643_v2, %v1644_v3  ;;  %v1641_v29 = vrot.slane %v7930_v21, 1  ;;  %v7902_v6 = vcombine.low %v689_v61, %v689_v61  ;;  %v11340_v21 = vld [vmem:[%s10659_s20 + $0x34] ss:$8 sps:$4 sm:$0xff]  }
  0xad   : > { %9142 = vmatpush3.bf16.msra.mxu0 %v10047_v63  ;;  %v1221_v63 = vrot.slane %v1219_v4, 1  ;;  %v1245_v27 = vrot.slane %v1243_v18, 1  ;;  %v1262_v30 = vshll.u32 %v7900_v55, 16  ;;  %v1281_v12 = vrot.slane %v1279_v25, 1  ;;  %v11300_v4 = vld [vmem:[%s10659_s20 + $0xc8] sm:$0xff]  ;;  %v10089_v25 = vld [vmem:[%s13744_s3 + $0x280] sm:$0xff]  }
  0xae   : > { %9143 = vmatprep.subr.bf16.mxu0 %v10062_v5  ;;  %v1274_v5 = vshll.u32 %v7901_v41, 16  ;;  %v1258_v35 = vsel %vm898_vm0, %v1253_v48, %v1257_v1  ;;  %v1650_v32 = vrot.slane %v7935_v58, 1  ;;  %v1642_v46 = vsel %vm1603_vm1, %v1640_v28, %v1641_v29  ;;  %v11318_v48 = vld [vmem:[%s10659_s20 + $0x1c] ss:$8 sps:$4 sm:$0xff]   ;;  %v10101_v29 = vld [vmem:[%s13744_s3 + $0x288] sm:$0xff]  }
  0xaf   : > { %6178 = vmatmul.mubr.bf16.gmra.mrb[60].mxu1 %v1174_v36  ;;  %6275 = vmatmul.mubr.bf16.gmra.mrb[60].mxu0 %v1624_v8  ;;  %v1635_v8 = vrot.slane %v7926_v50, 1  ;;  %v1238_v36 = vshll.u32 %v7896_v20, 16  ;;  %v1222_v44 = vsel %vm898_vm0, %v1217_v19, %v1221_v63  ;;  %v1260_v49 = vshrl.u32 %v7900_v55, 16  ;;  %v11312_v19 = vld [vmem:[%s10659_s20 + $0xe0] sm:$0xff] }
  0xb0   : > { %6185 = vmatprep.mubr.bf16.mxu1 %v1210_v14  ;;  %6282 = vmatprep.mubr.bf16.mxu0 %v1633_v7  ;;  %v1368_v7 = vld [vmem:[%s10659_s20 + $0xa8] sm:$0xee]  ;;  %v11288_v14 = vld [vmem:[%s10659_s20 + $0xb0] sm:$0xff]  ;;  %v1264_v50 = vrot.slane %v1262_v30, 1  ;;  %v7934_v53 = vcombine.low %v1370_v15, %v1370_v15  ;;  %v1379_v18 = vld [vmem:[%s10659_s20 + $0x100] sm:$0x11] }
  0xb1   : > { %9144 = vmatpush3.bf16.msra.mxu0 %v10063_v42  ;;  %v1636_v9 = vsel %vm1603_vm1, %v1634_v60, %v1635_v8  ;;  %v1240_v16 = vrot.slane %v1238_v36, 1  ;;  %v1272_v42 = vshrl.u32 %v7901_v41, 16  ;;  %v7933_v57 = vcombine.high %v1368_v7, %v11288_v14  ;;  %v1374_v41 = vld [vmem:[%s10659_s20 + $0xd8] sm:$0xee]  ;;  %v1376_v8 = vld [vmem:[%s10659_s20 + $0xe8] sm:$0x11] }
  0xb2   : > { %9145 = vmatprep.subr.bf16.mxu0 %v10077_v23  ;;  %v1276_v23 = vrot.slane %v1274_v5, 1  ;;  %v1265_v56 = vor.u32 %v1264_v50, %v1260_v49  ;;  %v1647_v61 = vrot.slane %v7934_v53, 1  ;;  %v7941_v47 = vcombine.high %v1374_v41, %v11312_v19  ;;  %v1382_v30 = vld [vmem:[%s10659_s20 + $0x118] sm:$0x11] }
  0xb3   : > { %v1241_v39 = vor.u32 %v1240_v16, %v1236_v11  ;;  %v1649_v43 = vrot.slane %v7933_v57, 1  ;;  %v7943_v5 = vcombine.high %v1376_v8, %v1376_v8  ;;  %v11332_v16 = vld [vmem:[%s10659_s20 + $0xf8] sm:$0xff]  ;;  %v10097_v57 = vld [vmem:[%s13744_s3 + $0x2c8] sm:$0xff]   ;;  %v7951_v50 = vcombine.high %v1382_v30, %v1382_v30 }
  0xb4   : > { %v1277_v10 = vor.u32 %v1276_v23, %v1272_v42  ;;  %v1661_v11 = vrot.slane %v7941_v47, 1  ;;  %v7947_v23 = vcombine.high %v1379_v18, %v1379_v18 }
  0xb5   : > { %9146 = vmatpush3.bf16.msra.mxu0 %v10078_v34  ;;  %v1371_v34 = vld [vmem:[%s10659_s20 + $0xc0] sm:$0xee]  ;;  %v1246_v45 = vsel %vm898_vm0, %v1241_v39, %v1245_v27  ;;  %v1651_v31 = vsel %vm1603_vm1, %v1649_v43, %v1650_v32  ;;  %v1662_v15 = vrot.slane %v7943_v5, 1  ;;  %v11366_v32 = vld [vmem:[%s10659_s20 + $0x4c] ss:$8 sps:$4 sm:$0xff]  }
  0xb6   : > { %9355 = vmatprep.subr.bf16.mxu0 %v10091_v40  ;;  %v1373_v40 = vld [vmem:[%s10659_s20 + $0xd0] sm:$0x11]  ;;  %v1282_v20 = vsel %vm898_vm0, %v1277_v10, %v1281_v12  ;;  %v7937_v37 = vcombine.high %v1371_v34, %v11300_v4  ;;  %v7936_v1 = vcombine.low %v1371_v34, %v11300_v4  ;;  %v1668_v28 = vrot.slane %v7947_v23, 1 }
  0xb7   : > { %6186 = vmatmul.mubr.bf16.gmra.mrb[64].mxu1 %v1198_v13  ;;  %6283 = vmatmul.mubr.bf16.gmra.mrb[64].mxu0 %v1630_v52  ;;  %v1267_v13 = vshll.u32 %v7902_v6, 16  ;;  %v7932_v52 = vcombine.low %v1368_v7, %v11288_v14  ;;  %v7939_v59 = vcombine.high %v1373_v40, %v1373_v40  ;;  %v7938_v2 = vcombine.low %v1373_v40, %v1373_v40  ;;  %v1380_v6 = vld [vmem:[%s10659_s20 + $0x108] sm:$0xee]  ;;  %v10111_v10 = vld [vmem:[%s13744_s3 + $0x2d0] sm:$0xff]  }
  0xb8   : > { %6193 = vmatprep.mubr.bf16.mxu1 %v1234_v38  ;;  %6290 = vmatprep.mubr.bf16.mxu0 %v1639_v17  ;;  %v1655_v63 = vrot.slane %v7937_v37, 1  ;;  %v1652_v7 = vrot.slane %v7936_v1, 1  ;;  %v1663_v42 = vsel %vm1603_vm1, %v1661_v11, %v1662_v15  ;;  %v11362_v12 = vld [vmem:[%s10659_s20 + $0x30] ss:$8 sps:$4 sm:$0xff]   ;;  %v7946_v40 = vcombine.low %v1379_v18, %v1379_v18  ;;  %v10139_v15 = vld [vmem:[%s13744_s3 + $0x2a8] sm:$0xff]  }
  0xb9   : > { %v1269_v38 = vrot.slane %v1267_v13, 1  ;;  %v1646_v17 = vrot.slane %v7932_v52, 1  ;;  %v1656_v60 = vrot.slane %v7939_v59, 1  ;;  %v10115_v13 = vld [vmem:[%s13744_s3 + $0x290] sm:$0xff]   ;;  %v10125_v52 = vld [vmem:[%s13744_s3 + $0x2d8] sm:$0xff]  }
  0xba   : > { %v1385_v37 = vld [vmem:[%s10659_s20 + $0x130] sm:$0x11] }
  0xbb   : > { %v1270_v0 = vsel %vm898_vm0, %v1265_v56, %v1269_v38  ;;  %v1648_v36 = vsel %vm1603_vm1, %v1646_v17, %v1647_v61  ;;  %v1657_v3 = vsel %vm1603_vm1, %v1655_v63, %v1656_v60  ;;  %v11382_v59 = vld [vmem:[%s10659_s20 + $0x48] ss:$8 sps:$4 sm:$0xff]   ;;  %v1674_v38 = vrot.slane %v7951_v50, 1  ;;  %v10126_v17 = vld [vmem:[%s13744_s3 + $0x298] sm:$0xff]   ;;  %v10134_v61 = vld [vmem:[%s13744_s3 + $0x2e0] sm:$0xff]  }
  0xbc   : > { %v10147_v18 = vld [vmem:[%s13744_s3 + $0x2f0] sm:$0xff]  }
  0xbf   : > { %6194 = vmatmul.mubr.bf16.gmra.mrb[68].mxu1 %v1222_v44  ;;  %6291 = vmatmul.mubr.bf16.gmra.mrb[68].mxu0 %v1636_v9  ;;  %v1653_v44 = vrot.slane %v7938_v2, 1  ;;  %v1377_v9 = vld [vmem:[%s10659_s20 + $0xf0] sm:$0xee]  ;;  %v7955_v2 = vcombine.high %v1385_v37, %v1385_v37 }
  0xc0   : > { %6201 = vmatprep.mubr.bf16.mxu1 %v1258_v35  ;;  %6298 = vmatprep.mubr.bf16.mxu0 %v1645_v22  ;;  %v7940_v35 = vcombine.low %v1374_v41, %v11312_v19  ;;  %v7942_v22 = vcombine.low %v1376_v8, %v1376_v8  ;;  %v7945_v55 = vcombine.high %v1377_v9, %v11332_v16  ;;  %v11391_v41 = vld [vmem:[%s10659_s20 + $0x64] ss:$8 sps:$4 sm:$0xff]  }
  0xc1   : > { %v1654_v51 = vsel %vm1603_vm1, %v1652_v7, %v1653_v44  ;;  %v7944_v34 = vcombine.low %v1377_v9, %v11332_v16  ;;  %v7950_v8 = vcombine.low %v1382_v30, %v1382_v30  ;;  %v1386_v44 = vld [vmem:[%s10659_s20 + $0x138] sm:$0xee]  ;;  %v1388_v9 = vld [vmem:[%s10659_s20 + $0x148] sm:$0x11]  ;;  %v1680_v11 = vrot.slane %v7955_v2, 1 }
  0xc2   : > { %v1658_v58 = vrot.slane %v7940_v35, 1  ;;  %v1659_v39 = vrot.slane %v7942_v22, 1  ;;  %v1667_v27 = vrot.slane %v7945_v55, 1  ;;  %v11416_v35 = vld [vmem:[%s10659_s20 + $0x7c] ss:$8 sps:$4 sm:$0xff]   ;;  %v7954_v55 = vcombine.low %v1385_v37, %v1385_v37 }
  0xc3   : > { %v1664_v53 = vrot.slane %v7944_v34, 1  ;;  %v1671_v5 = vrot.slane %v7950_v8, 1  ;;  %v10150_v30 = vld [vmem:[%s13744_s3 + $0x2b8] sm:$0xff]   ;;  %v1392_v37 = vld [vmem:[%s10659_s20 + $0x168] sm:$0xee] }
  0xc4   : > { %v1660_v43 = vsel %vm1603_vm1, %v1658_v58, %v1659_v39  ;;  %v10148_v58 = vld [vmem:[%s13744_s3 + $0x2b0] sm:$0xff]   ;;  %v10149_v39 = vld [vmem:[%s13744_s3 + $0x2f8] sm:$0xff]  }
  0xc7   : > { %6202 = vmatmul.mubr.bf16.gmra.mrb[72].mxu1 %v1246_v45  ;;  %6299 = vmatmul.mubr.bf16.gmra.mrb[72].mxu0 %v1642_v46  ;;  %v1669_v45 = vsel %vm1603_vm1, %v1667_v27, %v1668_v28  ;;  %v10448_v46 = vld [vmem:[%s10659_s20 + $0x110] sm:$0xff]  ;;  %v1677_v27 = vrot.slane %v7954_v55, 1 }
  0xc8   : > { %6209 = vmatprep.mubr.bf16.mxu1 %v1282_v20  ;;  %6306 = vmatprep.mubr.bf16.mxu0 %v1651_v31  ;;  %v7949_v49 = vcombine.high %v1380_v6, %v10448_v46  ;;  %v1665_v20 = vrot.slane %v7946_v40, 1  ;;  %v1383_v31 = vld [vmem:[%s10659_s20 + $0x120] sm:$0xee]  ;;  %v7948_v60 = vcombine.low %v1380_v6, %v10448_v46  ;;  %v1389_v28 = vld [vmem:[%s10659_s20 + $0x150] sm:$0xee]  ;;  %v7958_v46 = vcombine.low %v1388_v9, %v1388_v9 }
  0xc9   : > { %v11440_v40 = vld [vmem:[%s10659_s20 + $0x94] ss:$8 sps:$4 sm:$0xff]   ;;  %v7961_v50 = vcombine.high %v1389_v28, %v11200_v62 }
  0xca   : > { %v1673_v56 = vrot.slane %v7949_v49, 1  ;;  %v1666_v63 = vsel %vm1603_vm1, %v1664_v53, %v1665_v20  ;;  %v1670_v47 = vrot.slane %v7948_v60, 1  ;;  %v1683_v53 = vrot.slane %v7958_v46, 1 }
  0xcb   : > { %v1691_v20 = vrot.slane %v7961_v50, 1  ;;  %v2231_v50 = vshrl.u32 %v11336_v24, 16 }
  0xcc   : > { %v1675_v1 = vsel %vm1603_vm1, %v1673_v56, %v1674_v38  ;;  %v1672_v22 = vsel %vm1603_vm1, %v1670_v47, %v1671_v5  ;;  %v1394_v56 = vld [vmem:[%s10659_s20 + $0x178] sm:$0x11] }
  0xcd   : > { %v11453_v38 = vld [vmem:[%s10659_s20 + $0x90] ss:$8 sps:$4 sm:$0xff]  }
  0xcf   : > { %6210 = vmatmul.mubr.bf16.gmra.mrb[76].mxu1 %v1270_v0  ;;  %6307 = vmatmul.mubr.bf16.gmra.mrb[76].mxu0 %v1648_v36  ;;  %v7953_v0 = vcombine.high %v1383_v31, %v11103_v54  ;;  %v10136_v36 = vld [vmem:[%s13744_s3 + $0x2a0] sm:$0xff]  }
  0xd0   : > { %6314 = vmatprep.mubr.bf16.mxu0 %v1657_v3  ;;  %6411 = vmatprep.mubr.bf16.mxu1 %v11318_v48  ;;  %v10138_v3 = vld [vmem:[%s13744_s3 + $0x2e8] sm:$0xff]  }
  0xd1   : > { %v1679_v7 = vrot.slane %v7953_v0, 1  ;;  %v7965_v0 = vcombine.high %v1392_v37, %v11257_v33 }
  0xd3   : > { %v1681_v23 = vsel %vm1603_vm1, %v1679_v7, %v1680_v11  ;;  %v1697_v47 = vrot.slane %v7965_v0, 1  ;;  %v11464_v7 = vld [vmem:[%s10659_s20 + $0xc0] sm:$0xff]  ;;  %v11494_v0 = vld [vmem:[%s10659_s20 + $0xf0] sm:$0xff] }
  0xd7   : > { %6315 = vmatmul.mubr.bf16.gmra.mrb[80].mxu0 %v1654_v51  ;;  %6412 = vmatmul.mubr.bf16.vlgmr.msra.gmra.mrb[80].mxu1 %v11336_v24  ;;  %v11413_v51 = vld [vmem:[%s10659_s20 + $0x60] ss:$8 sps:$4 sm:$0xff]  }
  0xd8   : > { %6322 = vmatprep.mubr.bf16.mxu0 %v1663_v42  ;;  %6419 = vmatprep.mubr.bf16.mxu1 %v11340_v21  ;;  %v7952_v42 = vcombine.low %v1383_v31, %v11103_v54  ;;  %v11448_v31 = vld [vmem:[%s10659_s20 + $0xa8] sm:$0xff] }
  0xd9   : > { %9244 = vmatpush3.bf16.msra.mxu1 %v10089_v25  ;;  %v7957_v25 = vcombine.high %v1386_v44, %v11149_v26  ;;  %v8010_v11 = vcombine.low %v11448_v31, %v11288_v14 }
  0xda   : > { %9245 = vmatprep.subr.bf16.mxu1 %v10097_v57  ;;  %v7959_v57 = vcombine.high %v1388_v9, %v1388_v9  ;;  %v1676_v54 = vrot.slane %v7952_v42, 1  ;;  %v7964_v9 = vcombine.low %v1392_v37, %v11257_v33  ;;  %v8013_v42 = vcombine.high %v11464_v7, %v11300_v4 }
  0xdc   : > { %v1686_v6 = vrot.slane %v7959_v57, 1  ;;  %v1678_v34 = vsel %vm1603_vm1, %v1676_v54, %v1677_v27  ;;  %v11477_v54 = vld [vmem:[%s10659_s20 + $0xd8] sm:$0xff] }
  0xdd   : > { %9246 = vmatpush3.bf16.msra.mxu1 %v10101_v29  ;;  %v1685_v29 = vrot.slane %v7957_v25, 1 }
  0xde   : > { %9247 = vmatprep.subr.bf16.mxu1 %v10111_v10  ;;  %v1391_v10 = vld [vmem:[%s10659_s20 + $0x160] sm:$0x11] }
  0xdf   : > { %6323 = vmatmul.mubr.bf16.gmra.mrb[84].mxu0 %v1660_v43  ;;  %6420 = vmatmul.mubr.bf16.gmra.mrb[84].mxu1 %v11362_v12  ;;  %v11436_v43 = vld [vmem:[%s10659_s20 + $0x78] ss:$8 sps:$4 sm:$0xff]   ;;  %v1687_v49 = vsel %vm1603_vm1, %v1685_v29, %v1686_v6  ;;  %v7962_v60 = vcombine.low %v1391_v10, %v1391_v10  ;;  %v2269_v6 = vshll.u32 %v11340_v21, 16 }
  0xe0   : > { %6330 = vmatprep.mubr.bf16.mxu0 %v1669_v45  ;;  %6427 = vmatprep.mubr.bf16.mxu1 %v11366_v32  ;;  %v7956_v45 = vcombine.low %v1386_v44, %v11149_v26  ;;  %v2245_v44 = vshll.u32 %v11318_v48, 16 }
  0xe1   : > { %9248 = vmatpush3.bf16.msra.mxu1 %v10115_v13  ;;  %v7963_v13 = vcombine.high %v1391_v10, %v1391_v10  ;;  %v8012_v10 = vcombine.low %v11464_v7, %v11300_v4 }
  0xe2   : > { %9249 = vmatprep.subr.bf16.mxu1 %v10125_v52  ;;  %v1682_v52 = vrot.slane %v7956_v45, 1  ;;  %v2247_v57 = vrot.slane %v2245_v44, 1  ;;  %v2255_v44 = vshrl.u32 %v11362_v12, 16 }
  0xe3   : > { %v1692_v26 = vrot.slane %v7963_v13, 1 }
  0xe5   : > { %9250 = vmatpush3.bf16.msra.mxu1 %v10126_v17  ;;  %v1684_v17 = vsel %vm1603_vm1, %v1682_v52, %v1683_v53  ;;  %v1693_v8 = vsel %vm1603_vm1, %v1691_v20, %v1692_v26  ;;  %v8038_v20 = vld [vmem:[%s10659_s20 + $0x58] sm:$0x11] }
  0xe6   : > { %9251 = vmatprep.subr.bf16.mxu1 %v10134_v61  ;;  %v8011_v61 = vcombine.high %v11448_v31, %v11288_v14  ;;  %v2233_v14 = vshll.u32 %v11336_v24, 16  ;;  %v2267_v24 = vshrl.u32 %v11340_v21, 16  ;;  %v2293_v21 = vshll.u32 %v11366_v32, 16 }
  0xe7   : > { %6331 = vmatmul.mubr.bf16.gmra.mrb[88].mxu0 %v1666_v63  ;;  %6428 = vmatmul.mubr.bf16.gmra.mrb[88].mxu1 %v11382_v59  ;;  %v7960_v63 = vcombine.low %v1389_v28, %v11200_v62 }
  0xe8   : > { %6338 = vmatprep.mubr.bf16.mxu0 %v1675_v1  ;;  %6435 = vmatprep.mubr.bf16.mxu1 %v11391_v41  ;;  %v8032_v1 = vld [vmem:[%s10659_s20 + $0x28] sm:$0x11]  ;;  %v2235_v13 = vrot.slane %v2233_v14, 1  ;;  %v2291_v14 = vshrl.u32 %v11366_v32, 16 }
  0xe9   : > { %9252 = vmatpush3.bf16.msra.mxu1 %v10136_v36  ;;  %v7967_v36 = vcombine.high %v1394_v56, %v1394_v56  ;;  %v1688_v2 = vrot.slane %v7960_v63, 1  ;;  %v8078_v62 = vcombine.high %v8032_v1, %v8032_v1  ;;  %v8077_v55 = vcombine.low %v8032_v1, %v8032_v1 }
  0xea   : > { %9253 = vmatprep.subr.bf16.mxu1 %v10138_v3  ;;  %v1689_v3 = vrot.slane %v7962_v60, 1 }
  0xeb   : > { %v1698_v5 = vrot.slane %v7967_v36, 1  ;;  %v2271_v36 = vrot.slane %v2269_v6, 1 }
  0xed   : > { %9254 = vmatpush3.bf16.msra.mxu1 %v10139_v15  ;;  %v7966_v15 = vcombine.low %v1394_v56, %v1394_v56  ;;  %v1699_v25 = vsel %vm1603_vm1, %v1697_v47, %v1698_v5  ;;  %v2257_v47 = vshll.u32 %v11362_v12, 16 }
  0xee   : > { %9255 = vmatprep.subr.bf16.mxu1 %v10147_v18  ;;  %v2243_v18 = vshrl.u32 %v11318_v48, 16  ;;  %v2238_v48 = vshll.u32 %v8077_v55, 16  ;;  %v8017_v55 = vcombine.high %v11494_v0, %v11332_v16 }
  0xef   : > { %6339 = vmatmul.mubr.bf16.gmra.mrb[92].mxu0 %v1672_v22  ;;  %6436 = vmatmul.mubr.bf16.gmra.mrb[92].mxu1 %v11413_v51  ;;  %v1690_v22 = vsel %vm1603_vm1, %v1688_v2, %v1689_v3  ;;  %v1695_v33 = vrot.slane %v7966_v15, 1  ;;  %v2236_v3 = vor.u32 %v2235_v13, %v2231_v50 }
  0xf0   : > { %6346 = vmatprep.mubr.bf16.mxu0 %v1681_v23  ;;  %6443 = vmatprep.mubr.bf16.mxu1 %v11416_v35  ;;  %v8035_v23 = vld [vmem:[%s10659_s20 + $0x40] sm:$0x11]  ;;  %v2248_v28 = vor.u32 %v2247_v57, %v2243_v18  ;;  %v2240_v56 = vrot.slane %v2238_v48, 1  ;;  %v8014_v18 = vcombine.low %v11477_v54, %v11312_v19 }
  0xf1   : > { %9256 = vmatpush3.bf16.msra.mxu1 %v10148_v58  ;;  %v2250_v58 = vshll.u32 %v8078_v62, 16  ;;  %v8082_v27 = vcombine.high %v8035_v23, %v8035_v23  ;;  %v8081_v53 = vcombine.low %v8035_v23, %v8035_v23  ;;  %v2272_v23 = vor.u32 %v2271_v36, %v2267_v24  ;;  %v11546_v36 = vld [vmem:[%s10659_s20 + $0x10c] ss:$8 sps:$4 sm:$0xff]  }
  0xf2   : > { %9257 = vmatprep.subr.bf16.mxu1 %v10149_v39  ;;  %v1694_v39 = vrot.slane %v7964_v9, 1  ;;  %v8086_v9 = vcombine.high %v8038_v20, %v8038_v20  ;;  %v2241_v57 = vsel %vm898_vm0, %v2236_v3, %v2240_v56  ;;  %v10212_v56 = vld [vmem:[%s13744_s3 + $0x3c0] sm:$0xff]  }
  0xf3   : > { %v2252_v29 = vrot.slane %v2250_v58, 1  ;;  %v2262_v5 = vshll.u32 %v8081_v53, 16  ;;  %v2279_v53 = vshrl.u32 %v11382_v59, 16 }
  0xf4   : > { %v2298_v6 = vshll.u32 %v8086_v9, 16 }
  0xf5   : > { %9258 = vmatpush3.bf16.msra.mxu1 %v10150_v30  ;;  %v2253_v60 = vsel %vm898_vm0, %v2248_v28, %v2252_v29 }
  0xf6   : > { %9467 = vmatprep.subr.bf16.mxu1 %v10212_v56 }
  0xf7   : > { %6347 = vmatmul.mubr.bf16.gmra.mrb[96].mxu0 %v1678_v34  ;;  %6444 = vmatmul.mubr.bf16.gmra.mrb[96].mxu1 %v11436_v43  ;;  %v8015_v34 = vcombine.high %v11477_v54, %v11312_v19  ;;  %v10104_v19 = vld [vmem:[%s13744_s3 + $0x348] sm:$0xff]  }
  0xf8   : > { %6354 = vmatprep.mubr.bf16.mxu0 %v1687_v49  ;;  %6451 = vmatprep.mubr.bf16.mxu1 %v11440_v40  ;;  %v1696_v49 = vsel %vm1603_vm1, %v1694_v39, %v1695_v33  ;;  %v2259_v39 = vrot.slane %v2257_v47, 1  ;;  %v2264_v33 = vrot.slane %v2262_v5, 1  ;;  %v8016_v47 = vcombine.low %v11494_v0, %v11332_v16 }
  0xfa   : > { %v2260_v13 = vor.u32 %v2259_v39, %v2255_v44 }
  0xfc   : > { %v2265_v5 = vsel %vm898_vm0, %v2260_v13, %v2264_v33 }
  0xff   : > { %6355 = vmatmul.mubr.bf16.gmra.mrb[100].mxu0 %v1684_v17  ;;  %6452 = vmatmul.mubr.bf16.gmra.mrb[100].mxu1 %v11453_v38 }
 0x100   : > { %6362 = vmatprep.mubr.bf16.mxu0 %v1693_v8  ;;  %6459 = vmatprep.mubr.bf16.mxu1 %v8011_v61  ;;  %v2274_v61 = vshll.u32 %v8082_v27, 16 }
 0x102   : > { %v2276_v62 = vrot.slane %v2274_v61, 1  ;;  %v2300_v61 = vrot.slane %v2298_v6, 1  ;;  %v2341_v6 = vshll.u32 %v11416_v35, 16 }
 0x104   : > { %v2277_v32 = vsel %vm898_vm0, %v2272_v23, %v2276_v62 }
 0x107   : > { %6363 = vmatmul.mubr.bf16.gmra.mrb[104].mxu0 %v1690_v22  ;;  %6460 = vmatmul.mubr.bf16.gmra.mrb[104].mxu1 %v8010_v11  ;;  %v8085_v11 = vcombine.low %v8038_v20, %v8038_v20  ;;  %v10092_v22 = vld [vmem:[%s13744_s3 + $0x300] sm:$0xff]   ;;  %v10105_v20 = vld [vmem:[%s13744_s3 + $0x308] sm:$0xff]  }
 0x108   : > { %6370 = vmatprep.mubr.bf16.mxu0 %v1699_v25  ;;  %6467 = vmatprep.mubr.bf16.mxu1 %v8013_v42  ;;  %v11512_v25 = vld [vmem:[%s10659_s20 + $0x70] sm:$0x11] }
 0x10a   : > { %v8699_v30 = vpop.f32.mrb[0].mxu0  ;;  %v8771_v45 = vpop.f32.mrb[0].mxu1 }
 0x10b   : > { %v8700_v46 = vpop.f32.mrb[1].mxu0  ;;  %v8772_v52 = vpop.f32.mrb[1].mxu1 }
 0x10c   : > { %v11488_v26 = vadd.f32 %v8700_v46, %v8699_v30  ;;  %v8702_v37 = vpop.f32.mrb[2].mxu0  ;;  %v11490_v17 = vadd.f32 %v8772_v52, %v8771_v45  ;;  %v8774_v4 = vpop.f32.mrb[2].mxu1  ;;  %v2281_v30 = vshll.u32 %v11382_v59, 16  ;;  %v2295_v45 = vrot.slane %v2293_v21, 1  ;;  %v10118_v59 = vld [vmem:[%s13744_s3 + $0x350] sm:$0xff]  }
 0x10d   : > { %v8703_v63 = vpop.f32.mrb[3].mxu0  ;;  %v8775_v8 = vpop.f32.mrb[3].mxu1  ;;  %v11524_v46 = vshll.u32 %v8085_v11, 16  ;;  %v8090_v52 = vcombine.high %v11512_v25, %v11512_v25 }
 0x10e   : > { %13768 = vst [vmem:[#allocation6_spill] sm:$0xff] %v11490_v17  ;;  %v11497_v1 = vadd.f32 %v8703_v63, %v8702_v37  ;;  %v11499_v2 = vadd.f32 %v8775_v8, %v8774_v4  ;;  %v2317_v37 = vshll.u32 %v11391_v41, 16  ;;  %v2296_v4 = vor.u32 %v2295_v45, %v2291_v14  ;;  %v11581_v45 = vld [vmem:[%s10659_s20 + $0x108] ss:$8 sps:$4 sm:$0xff]   ;;  %v11792_v17 = vld [vmem:[%s10659_s20 + $0x40] sm:$0x11] }
 0x10f   : > { %6371 = vmatmul.mubr.bf16.gmra.mrb[108].mxu0 %v1696_v49  ;;  %6468 = vmatmul.mubr.bf16.gmra.mrb[108].mxu1 %v8012_v10  ;;  %v2283_v63 = vrot.slane %v2281_v30, 1  ;;  %v2288_v44 = vrot.slane %v11524_v46, 1  ;;  %v2322_v9 = vshll.u32 %v8090_v52, 16  ;;  %v8089_v14 = vcombine.low %v11512_v25, %v11512_v25  ;;  %v10137_v30 = vld [vmem:[%s13744_s3 + $0x318] sm:$0xff]   ;;  %v10160_v25 = vld [vmem:[%s13744_s3 + $0x360] sm:$0xff]  }
 0x110   : > { %13769 = vst [vmem:[#allocation7_spill] sm:$0xff] %v11499_v2  ;;  %6475 = vmatprep.mubr.bf16.mxu1 %v8015_v34  ;;  %6572 = vmatprep.mubr.bf16.mxu0 %v2253_v60  ;;  %v2315_v60 = vshrl.u32 %v11391_v41, 16  ;;  %v11553_v41 = vld [vmem:[%s10659_s20 + $0x88] sm:$0x11]  ;;  %v2301_v23 = vsel %vm898_vm0, %v2296_v4, %v2300_v61  ;;  %v2303_v52 = vshrl.u32 %v11413_v51, 16  ;;  %v11789_v2 = vld [vmem:[%s10659_s20 + $0x38] sm:$0xff] }
 0x111   : > { %v2284_v33 = vor.u32 %v2283_v63, %v2279_v53  ;;  %v11593_v63 = vld [vmem:[%s10659_s20 + $0x124] ss:$8 sps:$4 sm:$0xff]  }
 0x112   : > { %v8705_v15 = vpop.f32.mrb[4].mxu0  ;;  %v8777_v42 = vpop.f32.mrb[4].mxu1 }
 0x113   : > { %v8706_v12 = vpop.f32.mrb[5].mxu0  ;;  %v8778_v58 = vpop.f32.mrb[5].mxu1  ;;  %v2289_v13 = vsel %vm898_vm0, %v2284_v33, %v2288_v44  ;;  %v11622_v33 = vld [vmem:[%s10659_s20 + $0x120] ss:$8 sps:$4 sm:$0xff]  }
 0x114   : > { %v11519_v48 = vadd.f32 %v8706_v12, %v8705_v15  ;;  %v8708_v27 = vpop.f32.mrb[6].mxu0  ;;  %v11521_v28 = vadd.f32 %v8778_v58, %v8777_v42  ;;  %v8780_v29 = vpop.f32.mrb[6].mxu1  ;;  %v2305_v42 = vshll.u32 %v11413_v51, 16  ;;  %v10119_v12 = vld [vmem:[%s13744_s3 + $0x310] sm:$0xff]   ;;  %v10161_v51 = vld [vmem:[%s13744_s3 + $0x320] sm:$0xff]  }
 0x115   : > { %v8709_v10 = vpop.f32.mrb[7].mxu0  ;;  %v8781_v34 = vpop.f32.mrb[7].mxu1 }
 0x116   : > { %13770 = vst [vmem:[#allocation8_spill] sm:$0xff] %v11521_v28  ;;  %v11526_v49 = vadd.f32 %v8709_v10, %v8708_v27  ;;  %v11529_v50 = vadd.f32 %v8781_v34, %v8780_v29  ;;  %v2324_v29 = vrot.slane %v2322_v9, 1  ;;  %v2307_v53 = vrot.slane %v2305_v42, 1 }
 0x117   : > { %6476 = vmatmul.mubr.bf16.gmra.mrb[112].mxu1 %v8014_v18  ;;  %6573 = vmatmul.mubr.bf16.vlgmr.msra.gmra.mrb[112].mxu0 %v2241_v57  ;;  %v10135_v57 = vld [vmem:[%s13744_s3 + $0x358] sm:$0xff]   ;;  %v8093_v9 = vcombine.low %v11553_v41, %v11553_v41 }
 0x118   : > { %13771 = vst [vmem:[#allocation9_spill] sm:$0xff] %v11529_v50  ;;  %9356 = vmatpush3.bf16.msra.mxu0 %v10092_v22  ;;  %6483 = vmatprep.mubr.bf16.mxu1 %v8017_v55  ;;  %v2319_v22 = vrot.slane %v2317_v37, 1 }
 0x119   : > { %6580 = vmatprep.mubr.bf16.mxu0 %v2277_v32  ;;  %9357 = vmatprep.subr.bf16.mxu0 %v10104_v19  ;;  %v8094_v19 = vcombine.high %v11553_v41, %v11553_v41 }
 0x11a   : > { %v8711_v8 = vpop.f32.mrb[8].mxu0  ;;  %v8783_v24 = vpop.f32.mrb[8].mxu1  ;;  %v2320_v27 = vor.u32 %v2319_v22, %v2315_v60  ;;  %v2339_v60 = vshrl.u32 %v11416_v35, 16  ;;  %v10176_v35 = vld [vmem:[%s13744_s3 + $0x368] sm:$0xff]  }
 0x11b   : > { %v8712_v3 = vpop.f32.mrb[9].mxu0  ;;  %v8784_v62 = vpop.f32.mrb[9].mxu1 }
 0x11c   : > { %v11555_v21 = vadd.f32 %v8712_v3, %v8711_v8  ;;  %v8714_v11 = vpop.f32.mrb[10].mxu0  ;;  %v11557_v15 = vadd.f32 %v8784_v62, %v8783_v24  ;;  %v8786_v18 = vpop.f32.mrb[10].mxu1  ;;  %9358 = vmatpush3.bf16.msra.mxu0 %v10105_v20  ;;  %v2310_v20 = vshll.u32 %v8089_v14, 16  ;;  %v2325_v3 = vsel %vm898_vm0, %v2320_v27, %v2324_v29  ;;  %v11625_v14 = vld [vmem:[%s10659_s20 + $0xb0] sm:$0xff] }
 0x11d   : > { %v8715_v55 = vpop.f32.mrb[11].mxu0  ;;  %v8787_v16 = vpop.f32.mrb[11].mxu1  ;;  %9359 = vmatprep.subr.bf16.mxu0 %v10118_v59  ;;  %v2346_v59 = vshll.u32 %v8094_v19, 16  ;;  %v10190_v19 = vld [vmem:[%s13744_s3 + $0x370] sm:$0xff]  }
 0x11e   : > { %13772 = vst [vmem:[#allocation10_spill] sm:$0xff] %v11557_v15  ;;  %v11567_v58 = vadd.f32 %v8715_v55, %v8714_v11  ;;  %v11569_v39 = vadd.f32 %v8787_v16, %v8786_v18  ;;  %v2329_v11 = vshll.u32 %v11436_v43, 16  ;;  %v2308_v18 = vor.u32 %v2307_v53, %v2303_v52  ;;  %v11635_v52 = vld [vmem:[%s10659_s20 + $0x13c] ss:$8 sps:$4 sm:$0xff]  }
 0x11f   : > { %6484 = vmatmul.mubr.bf16.gmra.mrb[116].mxu1 %v8016_v47  ;;  %6581 = vmatmul.mubr.bf16.gmra.mrb[116].mxu0 %v2265_v5  ;;  %v2343_v47 = vrot.slane %v2341_v6, 1  ;;  %v11598_v5 = vld [vmem:[%s10659_s20 + $0xa0] sm:$0x11]  ;;  %v2312_v22 = vrot.slane %v2310_v20, 1  ;;  %v2348_v16 = vrot.slane %v2346_v59, 1  ;;  %v2327_v6 = vshrl.u32 %v11436_v43, 16 }
 0x120   : > { %13773 = vst [vmem:[#allocation11_spill] sm:$0xff] %v11569_v39  ;;  %6491 = vmatprep.mubr.bf16.mxu1 %v11546_v36  ;;  %6588 = vmatprep.mubr.bf16.mxu0 %v2301_v23  ;;  %v8098_v42 = vcombine.high %v11598_v5, %v11598_v5  ;;  %v2365_v23 = vshll.u32 %v11440_v40, 16  ;;  %v11641_v59 = vcombine.high %v11448_v31, %v11625_v14 }
 0x121   : > { %9360 = vmatpush3.bf16.msra.mxu0 %v10119_v12  ;;  %v2344_v55 = vor.u32 %v2343_v47, %v2339_v60  ;;  %v10177_v12 = vld [vmem:[%s13744_s3 + $0x328] sm:$0xff]   ;;  %v2363_v60 = vshrl.u32 %v11440_v40, 16  ;;  %v11649_v47 = vld [vmem:[%s10659_s20 + $0xb8] sm:$0x11] }
 0x122   : > { %v8717_v10 = vpop.f32.mrb[12].mxu0  ;;  %v8789_v34 = vpop.f32.mrb[12].mxu1  ;;  %9361 = vmatprep.subr.bf16.mxu0 %v10135_v57  ;;  %v2370_v53 = vshll.u32 %v8098_v42, 16  ;;  %v2367_v43 = vrot.slane %v2365_v23, 1  ;;  %v10204_v40 = vld [vmem:[%s13744_s3 + $0x378] sm:$0xff]   ;;  %v2389_v23 = vshll.u32 %v11641_v59, 16 }
 0x123   : > { %v8718_v46 = vpop.f32.mrb[13].mxu0  ;;  %v8790_v32 = vpop.f32.mrb[13].mxu1 }
 0x124   : > { %v11588_v37 = vadd.f32 %v8718_v46, %v8717_v10  ;;  %v8720_v56 = vpop.f32.mrb[14].mxu0  ;;  %v11590_v4 = vadd.f32 %v8790_v32, %v8789_v34  ;;  %v8792_v61 = vpop.f32.mrb[14].mxu1  ;;  %v2334_v10 = vshll.u32 %v8093_v9, 16 }
 0x125   : > { %v8721_v8 = vpop.f32.mrb[15].mxu0  ;;  %v8793_v24 = vpop.f32.mrb[15].mxu1  ;;  %9362 = vmatpush3.bf16.msra.mxu0 %v10137_v30  ;;  %v2331_v30 = vrot.slane %v2329_v11, 1  ;;  %v8097_v11 = vcombine.low %v11598_v5, %v11598_v5  ;;  %v11673_v5 = vcombine.low %v11448_v31, %v11625_v14 }
 0x126   : > { %13774 = vst [vmem:[#allocation12_spill] sm:$0xff] %v11590_v4  ;;  %v11603_v62 = vadd.f32 %v8721_v8, %v8720_v56  ;;  %v11605_v44 = vadd.f32 %v8793_v24, %v8792_v61  ;;  %9363 = vmatprep.subr.bf16.mxu0 %v10160_v25  ;;  %v2349_v61 = vsel %vm898_vm0, %v2344_v55, %v2348_v16  ;;  %v10191_v8 = vld [vmem:[%s13744_s3 + $0x330] sm:$0xff]   ;;  %v2336_v9 = vrot.slane %v2334_v10, 1 }
 0x127   : > { %6492 = vmatmul.mubr.bf16.gmra.mrb[120].mxu1 %v11581_v45  ;;  %6589 = vmatmul.mubr.bf16.gmra.mrb[120].mxu0 %v2289_v13  ;;  %v2313_v13 = vsel %vm898_vm0, %v2308_v18, %v2312_v22  ;;  %v2353_v18 = vshll.u32 %v11453_v38, 16  ;;  %v11663_v22 = vld [vmem:[%s10659_s20 + $0xc8] sm:$0xff]  ;;  %v2368_v55 = vor.u32 %v2367_v43, %v2363_v60  ;;  %v8102_v16 = vcombine.high %v11649_v47, %v11649_v47 }
 0x128   : > { %13775 = vst [vmem:[#allocation13_spill] sm:$0xff] %v11605_v44  ;;  %6499 = vmatprep.mubr.bf16.mxu1 %v11593_v63  ;;  %6596 = vmatprep.mubr.bf16.mxu0 %v2325_v3  ;;  %13776 = vst [vmem:[#allocation14_spill] sm:$0xff] %v11663_v22  ;;  %v2358_v10 = vshll.u32 %v8097_v11, 16 }
 0x129   : > { %9364 = vmatpush3.bf16.msra.mxu0 %v10161_v51 }
 0x12a   : > { %v8723_v41 = vpop.f32.mrb[16].mxu0  ;;  %v8811_v57 = vpop.f32.mrb[16].mxu1  ;;  %9365 = vmatprep.subr.bf16.mxu0 %v10176_v35  ;;  %v2332_v35 = vor.u32 %v2331_v30, %v2327_v6  ;;  %v2355_v30 = vrot.slane %v2353_v18, 1 }
 0x12b   : > { %v8724_v27 = vpop.f32.mrb[17].mxu0  ;;  %v8812_v29 = vpop.f32.mrb[17].mxu1 }
 0x12c   : > { %v11631_v34 = vadd.f32 %v8724_v27, %v8723_v41  ;;  %v8813_v25 = vadd.f32 %v8812_v29, %v8811_v57  ;;  %v8726_v46 = vpop.f32.mrb[18].mxu0  ;;  %v8814_v32 = vpop.f32.mrb[18].mxu1  ;;  %v10220_v27 = vld [vmem:[%s13744_s3 + $0x440] sm:$0xff]   ;;  %v2337_v6 = vsel %vm898_vm0, %v2332_v35, %v2336_v9  ;;  %v2377_v35 = vshll.u32 %v11673_v5, 16 }
 0x12d   : > { %v8727_v20 = vpop.f32.mrb[19].mxu0  ;;  %v8815_v56 = vpop.f32.mrb[19].mxu1  ;;  %9366 = vmatpush3.bf16.msra.mxu0 %v10177_v12  ;;  %v10205_v12 = vld [vmem:[%s13744_s3 + $0x338] sm:$0xff]   ;;  %v11702_v9 = vld [vmem:[%s10659_s20 + $0xe0] sm:$0xff] }
 0x12e   : > { %v11646_v24 = vadd.f32 %v8727_v20, %v8726_v46  ;;  %v8816_v3 = vadd.f32 %v8815_v56, %v8814_v32  ;;  %v11652_v51 = vadd.f32 %v8813_v25, %v11488_v26  ;;  %9367 = vmatprep.subr.bf16.mxu0 %v10190_v19  ;;  %v2372_v26 = vrot.slane %v2370_v53, 1  ;;  %v8053_v25 = vld [vmem:[%s10659_s20 + $0xd0] sm:$0x11]  ;;  %13777 = vst [vmem:[#allocation15_spill] sm:$0xff] %v11702_v9 }
 0x12f   : > { %6500 = vmatmul.mubr.bf16.gmra.mrb[124].mxu1 %v11622_v33  ;;  %6597 = vmatmul.mubr.bf16.gmra.mrb[124].mxu0 %v2313_v13  ;;  %v2351_v19 = vshrl.u32 %v11453_v38, 16  ;;  %v11689_v46 = vcombine.high %v11464_v7, %v11663_v22  ;;  %v11694_v20 = vld [vmem:[%s10659_s20 + $0x154] ss:$8 sps:$4 sm:$0xff]   ;;  %v2387_v56 = vshrl.u32 %v11641_v59, 16 }
 0x130   : > { %6507 = vmatprep.mubr.bf16.mxu1 %v11635_v52  ;;  %6604 = vmatprep.mubr.bf16.mxu0 %v2349_v61  ;;  %v11666_v42 = vadd.f32 %v8816_v3, %v11497_v1  ;;  %v11679_v1 = vld [vmem:[%s10659_s20 + $0x138] ss:$8 sps:$4 sm:$0xff]   ;;  %v8101_v61 = vcombine.low %v11649_v47, %v11649_v47  ;;  %v2391_v3 = vrot.slane %v2389_v23, 1  ;;  %v2375_v23 = vshrl.u32 %v11673_v5, 16 }
 0x131   : > { %9368 = vmatpush3.bf16.msra.mxu0 %v10191_v8  ;;  %v2373_v8 = vsel %vm898_vm0, %v2368_v55, %v2372_v26  ;;  %v2356_v47 = vor.u32 %v2355_v30, %v2351_v19  ;;  %v2360_v26 = vrot.slane %v2358_v10, 1  ;;  %v2413_v55 = vshll.u32 %v11689_v46, 16  ;;  %v11725_v19 = vld [vmem:[%s10659_s20 + $0x150] ss:$8 sps:$4 sm:$0xff]   ;;  %v11728_v10 = vld [vmem:[%s10659_s20 + $0x16c] ss:$8 sps:$4 sm:$0xff]  }
 0x132   : > { %v8729_v41 = vpop.f32.mrb[20].mxu0  ;;  %v8817_v57 = vpop.f32.mrb[20].mxu1  ;;  %9369 = vmatprep.subr.bf16.mxu0 %v10204_v40  ;;  %v2394_v40 = vshll.u32 %v8102_v16, 16  ;;  %v11713_v16 = vcombine.low %v11464_v7, %v11663_v22  ;;  %v8105_v7 = vcombine.low %v8053_v25, %v8053_v25 }
 0x133   : > { %v8730_v29 = vpop.f32.mrb[21].mxu0  ;;  %v8818_v31 = vpop.f32.mrb[21].mxu1 }
 0x134   : > { %v11691_v32 = vadd.f32 %v8730_v29, %v8729_v41  ;;  %v8819_v38 = vadd.f32 %v8818_v31, %v8817_v57  ;;  %v8732_v13 = vpop.f32.mrb[22].mxu0  ;;  %v8820_v53 = vpop.f32.mrb[22].mxu1  ;;  %v8106_v41 = vcombine.high %v8053_v25, %v8053_v25  ;;  %v2396_v29 = vrot.slane %v2394_v40, 1  ;;  %v8056_v40 = vld [vmem:[%s10659_s20 + $0xe8] sm:$0x11] }
 0x135   : > { %v8733_v60 = vpop.f32.mrb[23].mxu0  ;;  %v8821_v43 = vpop.f32.mrb[23].mxu1  ;;  %9370 = vmatpush3.bf16.msra.mxu0 %v10205_v12  ;;  %v11719_v12 = vcombine.high %v11477_v54, %v11702_v9  ;;  %v2379_v31 = vrot.slane %v2377_v35, 1 }
 0x136   : > { %v11704_v11 = vadd.f32 %v8733_v60, %v8732_v13  ;;  %v8822_v18 = vadd.f32 %v8821_v43, %v8820_v53  ;;  %v11707_v59 = vadd.f32 %v8819_v38, %v11519_v48  ;;  %9579 = vmatprep.subr.bf16.mxu0 %v10220_v27  ;;  %v2382_v48 = vshll.u32 %v8101_v61, 16 }
 0x137   : > { %6508 = vmatmul.mubr.bf16.gmra.mrb[128].mxu1 %v11679_v1  ;;  %6605 = vmatmul.mubr.bf16.gmra.mrb[128].mxu0 %v2337_v6  ;;  %v2392_v27 = vor.u32 %v2391_v3, %v2387_v56  ;;  %v2418_v5 = vshll.u32 %v8106_v41, 16  ;;  %v2361_v53 = vsel %vm898_vm0, %v2356_v47, %v2360_v26  ;;  %v2411_v61 = vshrl.u32 %v11689_v46, 16 }
 0x138   : > { %6515 = vmatprep.mubr.bf16.mxu1 %v11694_v20  ;;  %6612 = vmatprep.mubr.bf16.mxu0 %v2373_v8  ;;  %v11722_v57 = vadd.f32 %v8822_v18, %v11526_v49  ;;  %v2415_v49 = vrot.slane %v2413_v55, 1  ;;  %v2401_v60 = vshll.u32 %v11713_v16, 16  ;;  %v2384_v3 = vrot.slane %v2382_v48, 1 }
 0x139   : > { %v2437_v35 = vshll.u32 %v11719_v12, 16  ;;  %v2397_v47 = vsel %vm898_vm0, %v2392_v27, %v2396_v29  ;;  %v2380_v26 = vor.u32 %v2379_v31, %v2375_v23  ;;  %v2399_v46 = vshrl.u32 %v11713_v16, 16  ;;  %v11753_v31 = vld [vmem:[%s10659_s20 + $0xf8] sm:$0xff] }
 0x13a   : > { %v8735_v6 = vpop.f32.mrb[24].mxu0  ;;  %v8823_v30 = vpop.f32.mrb[24].mxu1  ;;  %v11739_v55 = vshll.u32 %v8105_v7, 16  ;;  %v2416_v27 = vor.u32 %v2415_v49, %v2411_v61  ;;  %v2403_v23 = vrot.slane %v2401_v60, 1  ;;  %v8110_v29 = vcombine.high %v8056_v40, %v8056_v40  ;;  %13779 = vst [vmem:[#allocation17_spill] sm:$0xff] %v11753_v31 }
 0x13b   : > { %v8736_v38 = vpop.f32.mrb[25].mxu0  ;;  %v8824_v13 = vpop.f32.mrb[25].mxu1  ;;  %v11750_v16 = vcombine.low %v11477_v54, %v11702_v9  ;;  %v2439_v7 = vrot.slane %v2437_v35, 1  ;;  %v11761_v61 = vld [vmem:[%s10659_s20 + $0x168] ss:$8 sps:$4 sm:$0xff]  }
 0x13c   : > { %v11733_v43 = vadd.f32 %v8736_v38, %v8735_v6  ;;  %v8825_v56 = vadd.f32 %v8824_v13, %v8823_v30  ;;  %v8738_v25 = vpop.f32.mrb[26].mxu0  ;;  %v8826_v8 = vpop.f32.mrb[26].mxu1  ;;  %v2420_v30 = vrot.slane %v2418_v5, 1  ;;  %v8141_v13 = vld [vmem:[%s10659_s20 + $0x28] sm:$0x11]  ;;  %v8109_v5 = vcombine.low %v8056_v40, %v8056_v40 }
 0x13d   : > { %v8739_v18 = vpop.f32.mrb[27].mxu0  ;;  %v8827_v41 = vpop.f32.mrb[27].mxu1  ;;  %v10153_v49 = vld [vmem:[%s10659_s20 + $0x18] ss:$8 sps:$4 sm:$0xfe]   ;;  %v8186_v54 = vcombine.low %v8141_v13, %v8141_v13  ;;  %v2442_v44 = vshll.u32 %v8110_v29, 16 }
 0x13e   : > { %v11741_v6 = vadd.f32 %v8739_v18, %v8738_v25  ;;  %v8828_v38 = vadd.f32 %v8827_v41, %v8826_v8  ;;  %v11745_v48 = vadd.f32 %v8825_v56, %v11555_v21  ;;  %v2435_v21 = vshrl.u32 %v11719_v12, 16  ;;  %v11765_v60 = vld [vmem:[%s10659_s20 + $0x1c] ss:$8 sps:$4 sm:$0xfe]  }
 0x13f   : > { %6516 = vmatmul.mubr.bf16.gmra.mrb[132].mxu1 %v11725_v19  ;;  %6613 = vmatmul.mubr.bf16.gmra.mrb[132].mxu0 %v2361_v53  ;;  %v8187_v56 = vcombine.high %v8141_v13, %v8141_v13  ;;  %v2385_v18 = vsel %vm898_vm0, %v2380_v26, %v2384_v3  ;;  %v11769_v41 = vld [vmem:[%s11327_s11 + $0x4] ss:$8 sps:$4 sm:$0xff]   ;;  %v2408_v12 = vrot.slane %v11739_v55, 1  ;;  %v2404_v13 = vor.u32 %v2403_v23, %v2399_v46  ;;  %v11782_v26 = vld [vmem:[%s10659_s20 + $0x30] sm:$0xee] }
 0x140   : > { %13778 = vst [vmem:[#allocation16_spill] sm:$0xff] %v11745_v48  ;;  %6523 = vmatprep.mubr.bf16.mxu1 %v11728_v10  ;;  %6620 = vmatprep.mubr.bf16.mxu0 %v2397_v47  ;;  %v11758_v53 = vadd.f32 %v8828_v38, %v11567_v58  ;;  %v11773_v40 = vld [vmem:[%s10659_s20 + $0x100] sm:$0x11]  ;;  %v11777_v58 = vcombine.high %v11494_v0, %v11753_v31  ;;  %v2425_v3 = vshll.u32 %v11750_v16, 16  ;;  %v11786_v28 = vshll.u32 %v8109_v5, 16 }
 0x141   : > { %v2421_v38 = vsel %vm898_vm0, %v2416_v27, %v2420_v30  ;;  %v2440_v50 = vor.u32 %v2439_v7, %v2435_v21  ;;  %v2934_v30 = vrot.slane %v10153_v49, 1  ;;  %v2935_v27 = vrot.slane %v8186_v54, 1  ;;  %v11847_v48 = vld [vmem:[%s10659_s20 + $0x58] sm:$0x11] }
 0x142   : > { %13780 = vst [vmem:[#allocation18_spill] sm:$0xff] %v11758_v53  ;;  %v8741_v25 = vpop.f32.mrb[28].mxu0  ;;  %v8829_v8 = vpop.f32.mrb[28].mxu1  ;;  %v2938_v23 = vrot.slane %v8187_v56, 1  ;;  %v8114_v29 = vcombine.high %v11773_v40, %v11773_v40  ;;  %v2461_v21 = vshll.u32 %v11777_v58, 16  ;;  %v2444_v5 = vrot.slane %v2442_v44, 1 }
 0x143   : > { %v8742_v35 = vpop.f32.mrb[29].mxu0  ;;  %v8830_v47 = vpop.f32.mrb[29].mxu1  ;;  %v2937_v49 = vrot.slane %v11765_v60, 1  ;;  %v8189_v54 = vcombine.high %v11782_v26, %v11789_v2  ;;  %v11815_v56 = vcombine.low %v11494_v0, %v11753_v31  ;;  %v11821_v60 = vld [vmem:[%s11327_s11] ss:$8 sps:$4 sm:$0xff]   ;;  %v2459_v0 = vshrl.u32 %v11777_v58, 16 }
 0x144   : > { %v11784_v4 = vadd.f32 %v8742_v35, %v8741_v25  ;;  %v8831_v55 = vadd.f32 %v8830_v47, %v8829_v8  ;;  %v8744_v39 = vpop.f32.mrb[30].mxu0  ;;  %v8832_v15 = vpop.f32.mrb[30].mxu1  ;;  %v2432_v35 = vrot.slane %v11786_v28, 1  ;;  %v11826_v47 = vsel %vm1603_vm1, %v2934_v30, %v2935_v27  ;;  %v11844_v53 = vld [vmem:[%s10659_s20 + $0x50] sm:$0xff] }
 0x145   : > { %v8745_v9 = vpop.f32.mrb[31].mxu0  ;;  %v8833_v46 = vpop.f32.mrb[31].mxu1  ;;  %v2939_v30 = vsel %vm1603_vm1, %v2937_v49, %v2938_v23  ;;  %v2943_v27 = vrot.slane %v8189_v54, 1  ;;  %v8188_v23 = vcombine.low %v11782_v26, %v11789_v2  ;;  %v8190_v49 = vcombine.low %v11792_v17, %v11792_v17 }
 0x146   : > { %v11796_v25 = vadd.f32 %v8745_v9, %v8744_v39  ;;  %v8834_v8 = vadd.f32 %v8833_v46, %v8832_v15  ;;  %v11800_v7 = vadd.f32 %v8831_v55, %v11588_v37  ;;  %v8191_v39 = vcombine.high %v11792_v17, %v11792_v17  ;;  %v11809_v9 = vld [vmem:[%s10659_s20 + $0x118] sm:$0x11] }
 0x147   : > { %6524 = vmatmul.mubr.bf16.gmra.mrb[136].mxu1 %v11761_v61  ;;  %6621 = vmatmul.mubr.bf16.gmra.mrb[136].mxu0 %v2385_v18  ;;  %v2423_v15 = vshrl.u32 %v11750_v16, 16  ;;  %v2427_v37 = vrot.slane %v2425_v3, 1  ;;  %v2409_v18 = vsel %vm898_vm0, %v2404_v13, %v2408_v12  ;;  %v8113_v16 = vcombine.low %v11773_v40, %v11773_v40 }
 0x148   : > { %13781 = vst [vmem:[#allocation19_spill] sm:$0xff] %v11800_v7  ;;  %6531 = vmatprep.mubr.bf16.mxu1 %v11769_v41  ;;  %6628 = vmatprep.mubr.bf16.mxu0 %v2421_v38  ;;  %v11818_v44 = vadd.f32 %v8834_v8, %v11603_v62  ;;  %v2463_v55 = vrot.slane %v2461_v21, 1  ;;  %v11831_v62 = vshll.u32 %v8114_v29, 16  ;;  %v8118_v12 = vcombine.high %v11809_v9, %v11809_v9  ;;  %v11838_v8 = vld [vmem:[%s10659_s20 + $0x48] sm:$0xee] }
 0x149   : > { %v2445_v46 = vsel %vm898_vm0, %v2440_v50, %v2444_v5  ;;  %v2944_v40 = vrot.slane %v8191_v39, 1  ;;  %v2449_v7 = vshll.u32 %v11815_v56, 16  ;;  %v11849_v5 = vshll.u32 %v8113_v16, 16 }
 0x14a   : > { %13782 = vst [vmem:[#allocation20_spill] sm:$0xff] %v11818_v44  ;;  %v8747_v38 = vpop.f32.mrb[32].mxu0  ;;  %v8835_v3 = vpop.f32.mrb[32].mxu1  ;;  %v2428_v44 = vor.u32 %v2427_v37, %v2423_v15  ;;  %v2485_v54 = vshll.u32 %v11546_v36, 16  ;;  %v11858_v37 = vshll.u32 %v8118_v12, 16  ;;  %v2468_v16 = vrot.slane %v11831_v62, 1 }
 0x14b   : > { %v8748_v13 = vpop.f32.mrb[33].mxu0  ;;  %v8836_v28 = vpop.f32.mrb[33].mxu1  ;;  %v2447_v26 = vshrl.u32 %v11815_v56, 16  ;;  %v8193_v17 = vcombine.high %v11838_v8, %v11844_v53  ;;  %v2451_v12 = vrot.slane %v2449_v7, 1  ;;  %v2940_v62 = vrot.slane %v8188_v23, 1 }
 0x14c   : > { %v11840_v31 = vadd.f32 %v8748_v13, %v8747_v38  ;;  %v8837_v58 = vadd.f32 %v8836_v28, %v8835_v3  ;;  %v8750_v21 = vpop.f32.mrb[34].mxu0  ;;  %v8838_v29 = vpop.f32.mrb[34].mxu1  ;;  %v2464_v3 = vor.u32 %v2463_v55, %v2459_v0  ;;  %v11873_v13 = vld [vmem:[%s10659_s20 + $0x130] sm:$0x11]  ;;  %v2941_v56 = vrot.slane %v8190_v49, 1 }
 0x14d   : > { %v8751_v22 = vpop.f32.mrb[35].mxu0  ;;  %v8839_v50 = vpop.f32.mrb[35].mxu1  ;;  %v2483_v28 = vshrl.u32 %v11546_v36, 16  ;;  %v2945_v0 = vsel %vm1603_vm1, %v2943_v27, %v2944_v40  ;;  %v2456_v7 = vrot.slane %v11849_v5, 1  ;;  %v2473_v23 = vshll.u32 %v11581_v45, 16 }
 0x14e   : > { %v11856_v39 = vadd.f32 %v8751_v22, %v8750_v21  ;;  %v8840_v15 = vadd.f32 %v8839_v50, %v8838_v29  ;;  %v11861_v38 = vadd.f32 %v8837_v58, %v11631_v34  ;;  %v8195_v22 = vcombine.high %v11847_v48, %v11847_v48 }
 0x14f   : > { %6532 = vmatmul.mubr.bf16.gmra.mrb[140].mxu1 %v11821_v60  ;;  %6629 = vmatmul.mubr.bf16.gmra.mrb[140].mxu0 %v2409_v18  ;;  %v8117_v34 = vcombine.low %v11809_v9, %v11809_v9  ;;  %v2487_v58 = vrot.slane %v2485_v54, 1  ;;  %v2492_v9 = vrot.slane %v11858_v37, 1  ;;  %v2949_v50 = vrot.slane %v8193_v17, 1 }
 0x150   : > { %13783 = vst [vmem:[#allocation21_spill] sm:$0xff] %v11861_v38  ;;  %6636 = vmatprep.mubr.bf16.mxu0 %v2445_v46  ;;  %6733 = vmatprep.mubr.bf16.mxu1 %v2939_v30  ;;  %v11876_v18 = vadd.f32 %v8840_v15, %v11646_v24  ;;  %v2433_v46 = vsel %vm898_vm0, %v2428_v44, %v2432_v35  ;;  %v2950_v24 = vrot.slane %v8195_v22, 1  ;;  %v2509_v5 = vshll.u32 %v11593_v63, 16  ;;  %v11896_v38 = vld [vmem:[%s10659_s20 + $0x60] sm:$0xee] }
 0x151   : > { %v8122_v36 = vcombine.high %v11873_v13, %v11873_v13  ;;  %v11888_v40 = vshll.u32 %v8117_v34, 16  ;;  %v2469_v37 = vsel %vm898_vm0, %v2464_v3, %v2468_v16  ;;  %v2452_v17 = vor.u32 %v2451_v12, %v2447_v26  ;;  %v10217_v34 = vld [vmem:[%s13744_s3 + $0x380] sm:$0xff]   ;;  %v11909_v16 = vld [vmem:[%s10659_s20 + $0x70] sm:$0x11]  ;;  %v10228_v3 = vld [vmem:[%s13744_s3 + $0x3c8] sm:$0xff]  }
 0x152   : > { %13784 = vst [vmem:[#allocation22_spill] sm:$0xff] %v11876_v18  ;;  %v8753_v21 = vpop.f32.mrb[36].mxu0  ;;  %v8841_v29 = vpop.f32.mrb[36].mxu1  ;;  %v11893_v22 = vsel %vm1603_vm1, %v2940_v62, %v2941_v56  ;;  %v2488_v18 = vor.u32 %v2487_v58, %v2483_v28  ;;  %v2471_v12 = vshrl.u32 %v11581_v45, 16  ;;  %v2475_v62 = vrot.slane %v2473_v23, 1 }
 0x153   : > { %v8754_v55 = vpop.f32.mrb[37].mxu0  ;;  %v8842_v30 = vpop.f32.mrb[37].mxu1  ;;  %v8194_v56 = vcombine.low %v11847_v48, %v11847_v48  ;;  %v11921_v28 = vshll.u32 %v8122_v36, 16  ;;  %v2480_v45 = vrot.slane %v11888_v40, 1  ;;  %v8199_v48 = vcombine.high %v11909_v16, %v11909_v16 }
 0x154   : > { %v11886_v49 = vadd.f32 %v8754_v55, %v8753_v21  ;;  %v8843_v44 = vadd.f32 %v8842_v30, %v8841_v29  ;;  %v8756_v35 = vpop.f32.mrb[38].mxu0  ;;  %v8844_v27 = vpop.f32.mrb[38].mxu1  ;;  %v11899_v21 = vld [vmem:[%s10659_s20 + $0x68] sm:$0xff]  ;;  %v8192_v30 = vcombine.low %v11838_v8, %v11844_v53  ;;  %v8121_v8 = vcombine.low %v11873_v13, %v11873_v13 }
 0x155   : > { %v8757_v54 = vpop.f32.mrb[39].mxu0  ;;  %v8845_v15 = vpop.f32.mrb[39].mxu1  ;;  %v2457_v13 = vsel %vm898_vm0, %v2452_v17, %v2456_v7  ;;  %v2497_v7 = vshll.u32 %v11622_v33, 16 }
 0x156   : > { %v11904_v29 = vadd.f32 %v8757_v54, %v8756_v35  ;;  %v8846_v55 = vadd.f32 %v8845_v15, %v8844_v27  ;;  %v11912_v26 = vadd.f32 %v8843_v44, %v11691_v32  ;;  %v8197_v32 = vcombine.high %v11896_v38, %v11899_v21  ;;  %v11941_v27 = vld [vmem:[%s10659_s20 + $0x148] sm:$0x11] }
 0x157   : > { %6637 = vmatmul.mubr.bf16.gmra.mrb[144].mxu0 %v2433_v46  ;;  %6734 = vmatmul.mubr.bf16.vlgmr.msra.gmra.mrb[144].mxu1 %v11826_v47  ;;  %v2507_v47 = vshrl.u32 %v11593_v63, 16  ;;  %v2511_v46 = vrot.slane %v2509_v5, 1  ;;  %v2951_v44 = vsel %vm1603_vm1, %v2949_v50, %v2950_v24  ;;  %v2946_v35 = vrot.slane %v8192_v30, 1  ;;  %v10244_v63 = vld [vmem:[%s13744_s3 + $0x3d0] sm:$0xff]  }
 0x158   : > { %6644 = vmatprep.mubr.bf16.mxu0 %v2469_v37  ;;  %6741 = vmatprep.mubr.bf16.mxu1 %v2945_v0  ;;  %v11928_v58 = vadd.f32 %v8846_v55, %v11704_v11  ;;  %v10232_v0 = vld [vmem:[%s13744_s3 + $0x388] sm:$0xff]   ;;  %v2493_v11 = vsel %vm898_vm0, %v2488_v18, %v2492_v9  ;;  %v2476_v54 = vor.u32 %v2475_v62, %v2471_v12  ;;  %v2947_v15 = vrot.slane %v8194_v56, 1  ;;  %v10248_v56 = vld [vmem:[%s13744_s3 + $0x390] sm:$0xff]  }
 0x159   : > { %9468 = vmatpush3.bf16.msra.mxu1 %v10217_v34  ;;  %v2516_v37 = vrot.slane %v11921_v28, 1  ;;  %v2955_v24 = vrot.slane %v8197_v32, 1  ;;  %v11950_v34 = vshll.u32 %v8121_v8, 16  ;;  %v8126_v12 = vcombine.high %v11941_v27, %v11941_v27 }
 0x15a   : > { %13785 = vst [vmem:[#allocation23_spill] sm:$0xff] %v11928_v58  ;;  %v8759_v23 = vpop.f32.mrb[40].mxu0  ;;  %v8847_v36 = vpop.f32.mrb[40].mxu1  ;;  %9469 = vmatprep.subr.bf16.mxu1 %v10228_v3  ;;  %v2512_v3 = vor.u32 %v2511_v46, %v2507_v47  ;;  %v2956_v58 = vrot.slane %v8199_v48, 1  ;;  %v2533_v62 = vshll.u32 %v11635_v52, 16  ;;  %v8196_v8 = vcombine.low %v11896_v38, %v11899_v21  ;;  %v10261_v46 = vld [vmem:[%s13744_s3 + $0x3d8] sm:$0xff]  }
 0x15b   : > { %v8760_v40 = vpop.f32.mrb[41].mxu0  ;;  %v8848_v5 = vpop.f32.mrb[41].mxu1  ;;  %v2495_v48 = vshrl.u32 %v11622_v33, 16  ;;  %v2481_v38 = vsel %vm898_vm0, %v2476_v54, %v2480_v45  ;;  %v11989_v45 = vshll.u32 %v8126_v12, 16 }
 0x15c   : > { %v11948_v17 = vadd.f32 %v8760_v40, %v8759_v23  ;;  %v8849_v18 = vadd.f32 %v8848_v5, %v8847_v36  ;;  %v8762_v9 = vpop.f32.mrb[42].mxu0  ;;  %v8850_v50 = vpop.f32.mrb[42].mxu1  ;;  %v8198_v23 = vcombine.low %v11909_v16, %v11909_v16  ;;  %v11975_v36 = vld [vmem:[%s10659_s20 + $0x78] sm:$0xee]  ;;  %v2504_v16 = vrot.slane %v11950_v34, 1 }
 0x15d   : > { %v8763_v55 = vpop.f32.mrb[43].mxu0  ;;  %v8851_v30 = vpop.f32.mrb[43].mxu1  ;;  %9470 = vmatpush3.bf16.msra.mxu1 %v10232_v0  ;;  %v2499_v0 = vrot.slane %v2497_v7, 1  ;;  %v2517_v54 = vsel %vm898_vm0, %v2512_v3, %v2516_v37  ;;  %v8125_v7 = vcombine.low %v11941_v27, %v11941_v27 }
 0x15e   : > { %v11958_v28 = vadd.f32 %v8763_v55, %v8762_v9  ;;  %v8852_v32 = vadd.f32 %v8851_v30, %v8850_v50  ;;  %v11963_v47 = vadd.f32 %v8849_v18, %v11733_v43  ;;  %9471 = vmatprep.subr.bf16.mxu1 %v10244_v63  ;;  %v2948_v43 = vsel %vm1603_vm1, %v2946_v35, %v2947_v15  ;;  %v11978_v63 = vld [vmem:[%s10659_s20 + $0x80] sm:$0xff]  ;;  %v10262_v35 = vld [vmem:[%s13744_s3 + $0x398] sm:$0xff]  }
 0x15f   : > { %6645 = vmatmul.mubr.bf16.gmra.mrb[148].mxu0 %v2457_v13  ;;  %6742 = vmatmul.mubr.bf16.gmra.mrb[148].mxu1 %v11893_v22  ;;  %v11981_v13 = vld [vmem:[%s10659_s20 + $0x88] sm:$0x11]  ;;  %v2521_v22 = vshll.u32 %v11679_v1, 16  ;;  %v2957_v15 = vsel %vm1603_vm1, %v2955_v24, %v2956_v58  ;;  %v11999_v18 = vld [vmem:[%s10659_s20 + $0x160] sm:$0x11]  ;;  %v2500_v55 = vor.u32 %v2499_v0, %v2495_v48  ;;  %v2953_v30 = vrot.slane %v8198_v23, 1 }
 0x160   : > { %6652 = vmatprep.mubr.bf16.mxu0 %v2493_v11  ;;  %6749 = vmatprep.mubr.bf16.mxu1 %v2951_v44  ;;  %v11985_v33 = vadd.f32 %v8852_v32, %v11741_v6  ;;  %v2531_v11 = vshrl.u32 %v11635_v52, 16  ;;  %v2535_v44 = vrot.slane %v2533_v62, 1  ;;  %v2952_v6 = vrot.slane %v8196_v8, 1  ;;  %v10270_v52 = vld [vmem:[%s13744_s3 + $0x3e0] sm:$0xff]  }
 0x161   : > { %9472 = vmatpush3.bf16.msra.mxu1 %v10248_v56  ;;  %v8201_v37 = vcombine.high %v11975_v36, %v11978_v63  ;;  %v8203_v58 = vcombine.high %v11981_v13, %v11981_v13  ;;  %v2519_v62 = vshrl.u32 %v11679_v1, 16  ;;  %v2523_v56 = vrot.slane %v2521_v22, 1 }
 0x162   : > { %v8765_v40 = vpop.f32.mrb[44].mxu0  ;;  %v8853_v5 = vpop.f32.mrb[44].mxu1  ;;  %9473 = vmatprep.subr.bf16.mxu1 %v10261_v46  ;;  %v2536_v46 = vor.u32 %v2535_v44, %v2531_v11  ;;  %v2540_v48 = vrot.slane %v11989_v45, 1  ;;  %v8130_v0 = vcombine.high %v11999_v18, %v11999_v18  ;;  %v2557_v23 = vshll.u32 %v11694_v20, 16  ;;  %v10274_v44 = vld [vmem:[%s13744_s3 + $0x3e8] sm:$0xff]  }
 0x163   : > { %v8766_v9 = vpop.f32.mrb[45].mxu0  ;;  %v8854_v50 = vpop.f32.mrb[45].mxu1  ;;  %v12020_v22 = vshll.u32 %v8125_v7, 16  ;;  %v2961_v45 = vrot.slane %v8201_v37, 1  ;;  %v8202_v7 = vcombine.low %v11981_v13, %v11981_v13  ;;  %v2555_v37 = vshrl.u32 %v11694_v20, 16 }
 0x164   : > { %v12008_v24 = vadd.f32 %v8766_v9, %v8765_v40  ;;  %v8855_v27 = vadd.f32 %v8854_v50, %v8853_v5  ;;  %v8768_v3 = vpop.f32.mrb[46].mxu0  ;;  %v8856_v12 = vpop.f32.mrb[46].mxu1  ;;  %v10272_v40 = vld [vmem:[%s13744_s3 + $0x3a0] sm:$0xff]   ;;  %v8200_v9 = vcombine.low %v11975_v36, %v11978_v63  ;;  %v12037_v50 = vld [vmem:[%s10659_s20 + $0x98] sm:$0xff]  ;;  %v2562_v36 = vshll.u32 %v8130_v0, 16 }
 0x165   : > { %v8769_v32 = vpop.f32.mrb[47].mxu0  ;;  %v8857_v8 = vpop.f32.mrb[47].mxu1  ;;  %9474 = vmatpush3.bf16.msra.mxu1 %v10262_v35  ;;  %v2962_v35 = vrot.slane %v8203_v58, 1  ;;  %v2559_v58 = vrot.slane %v2557_v23, 1  ;;  %v8129_v13 = vcombine.low %v11999_v18, %v11999_v18  ;;  %v2541_v20 = vsel %vm898_vm0, %v2536_v46, %v2540_v48  ;;  %v10283_v18 = vld [vmem:[%s13744_s3 + $0x3f0] sm:$0xff]  }
 0x166   : > { %v12018_v5 = vadd.f32 %v8769_v32, %v8768_v3  ;;  %v8858_v1 = vadd.f32 %v8857_v8, %v8856_v12  ;;  %v12023_v11 = vadd.f32 %v8855_v27, %v11784_v4  ;;  %9475 = vmatprep.subr.bf16.mxu1 %v10270_v52  ;;  %v2954_v4 = vsel %vm1603_vm1, %v2952_v6, %v2953_v30  ;;  %v12034_v52 = vld [vmem:[%s10659_s20 + $0x90] sm:$0xee]  ;;  %v12045_v27 = vld [vmem:[%s10659_s20 + $0xa0] sm:$0x11] }
 0x167   : > { %6653 = vmatmul.mubr.bf16.gmra.mrb[152].mxu0 %v2481_v38  ;;  %6750 = vmatmul.mubr.bf16.gmra.mrb[152].mxu1 %v2948_v43  ;;  %v2545_v38 = vshll.u32 %v11725_v19, 16  ;;  %v2524_v30 = vor.u32 %v2523_v56, %v2519_v62  ;;  %v2528_v3 = vrot.slane %v12020_v22, 1  ;;  %v2963_v8 = vsel %vm1603_vm1, %v2961_v45, %v2962_v35 }
 0x168   : > { %6660 = vmatprep.mubr.bf16.mxu0 %v2517_v54  ;;  %6757 = vmatprep.mubr.bf16.mxu1 %v2957_v15  ;;  %v12041_v43 = vadd.f32 %v8858_v1, %v11796_v25  ;;  %v10275_v54 = vld [vmem:[%s13744_s3 + $0x3a8] sm:$0xff]   ;;  %v2505_v25 = vsel %vm898_vm0, %v2500_v55, %v2504_v16  ;;  %v2958_v0 = vrot.slane %v8200_v9, 1  ;;  %v2959_v23 = vrot.slane %v8202_v7, 1  ;;  %v10284_v7 = vld [vmem:[%s13744_s3 + $0x3b0] sm:$0xff]  }
 0x169   : > { %9476 = vmatpush3.bf16.msra.mxu1 %v10272_v40  ;;  %v8205_v34 = vcombine.high %v12034_v52, %v12037_v50  ;;  %v8207_v46 = vcombine.high %v12045_v27, %v12045_v27  ;;  %v2543_v48 = vshrl.u32 %v11725_v19, 16  ;;  %v12067_v40 = vld [vmem:[%s10659_s20 + $0x178] sm:$0x11]  ;;  %v2564_v45 = vrot.slane %v2562_v36, 1 }
 0x16a   : > { %v8859_v15 = vpop.f32.mrb[48].mxu1  ;;  %v8923_v6 = vpop.f32.mrb[48].mxu0  ;;  %9477 = vmatprep.subr.bf16.mxu1 %v10274_v44  ;;  %v2560_v44 = vor.u32 %v2559_v58, %v2555_v37  ;;  %v2547_v35 = vrot.slane %v2545_v38, 1  ;;  %v12069_v9 = vshll.u32 %v8129_v13, 16  ;;  %v10285_v38 = vld [vmem:[%s13744_s3 + $0x3f8] sm:$0xff]   ;;  %v8134_v37 = vcombine.high %v12067_v40, %v12067_v40 }
 0x16b   : > { %v8860_v12 = vpop.f32.mrb[49].mxu1  ;;  %v8924_v32 = vpop.f32.mrb[49].mxu0  ;;  %v2967_v36 = vrot.slane %v8205_v34, 1  ;;  %v2529_v13 = vsel %vm898_vm0, %v2524_v30, %v2528_v3  ;;  %v2960_v30 = vsel %vm1603_vm1, %v2958_v0, %v2959_v23 }
 0x16c   : > { %v8861_v16 = vadd.f32 %v8860_v12, %v8859_v15  ;;  %v8925_v55 = vadd.f32 %v8924_v32, %v8923_v6  ;;  %v8862_v62 = vpop.f32.mrb[50].mxu1  ;;  %v8926_v56 = vpop.f32.mrb[50].mxu0  ;;  %v12101_v32 = vld [vmem:[%s10659_s20 + $0xb8] sm:$0x11]  ;;  %v2565_v3 = vsel %vm898_vm0, %v2560_v44, %v2564_v45 }
 0x16d   : > { %v8863_v1 = vpop.f32.mrb[51].mxu1  ;;  %v8927_v22 = vpop.f32.mrb[51].mxu0  ;;  %9478 = vmatpush3.bf16.msra.mxu1 %v10275_v54  ;;  %v2968_v54 = vrot.slane %v8207_v46, 1  ;;  %v8211_v23 = vcombine.high %v12101_v32, %v12101_v32 }
 0x16e   : > { %v12075_v15 = vadd.f32 %v8861_v16, %v11840_v31  ;;  %v12078_v6 = vadd.f32 %v8925_v55, %v11652_v51  ;;  %v8864_v19 = vadd.f32 %v8863_v1, %v8862_v62  ;;  %v8928_v12 = vadd.f32 %v8927_v22, %v8926_v56  ;;  %9479 = vmatprep.subr.bf16.mxu1 %v10283_v18  ;;  %v12098_v18 = vld [vmem:[%s10659_s20 + $0xa8] sm:$0xee] }
 0x16f   : > { %6661 = vmatmul.mubr.bf16.gmra.mrb[156].mxu0 %v2505_v25  ;;  %6758 = vmatmul.mubr.bf16.gmra.mrb[156].mxu1 %v2954_v4  ;;  %v2581_v31 = vshll.u32 %v11728_v10, 16  ;;  %v8204_v4 = vcombine.low %v12034_v52, %v12037_v50  ;;  %v8206_v25 = vcombine.low %v12045_v27, %v12045_v27  ;;  %v2552_v52 = vrot.slane %v12069_v9, 1 }
 0x170   : > { %v12087_v58 = vadd.f32 %v8864_v19, %v11856_v39  ;;  %v12090_v51 = vadd.f32 %v8928_v12, %v11666_v42  ;;  %6668 = vmatprep.mubr.bf16.mxu0 %v2541_v20  ;;  %6765 = vmatprep.mubr.bf16.mxu1 %v2963_v8  ;;  %v10286_v42 = vld [vmem:[%s13744_s3 + $0x3b8] sm:$0xff]   ;;  %v2548_v8 = vor.u32 %v2547_v35, %v2543_v48  ;;  %v2579_v16 = vshrl.u32 %v11728_v10, 16 }
 0x171   : > { %9480 = vmatpush3.bf16.msra.mxu1 %v10284_v7  ;;  %v2583_v55 = vrot.slane %v2581_v31, 1  ;;  %v2586_v62 = vshll.u32 %v8134_v37, 16  ;;  %v2569_v56 = vshll.u32 %v11761_v61, 16  ;;  %v8209_v0 = vcombine.high %v12098_v18, %v11625_v14  ;;  %v12125_v31 = vld [vmem:[%s11327_s11 + $0x10] sm:$0x11] }
 0x172   : > { %v8865_v39 = vpop.f32.mrb[52].mxu1  ;;  %v8929_v20 = vpop.f32.mrb[52].mxu0  ;;  %9481 = vmatprep.subr.bf16.mxu1 %v10285_v38  ;;  %v2969_v45 = vsel %vm1603_vm1, %v2967_v36, %v2968_v54  ;;  %v2964_v10 = vrot.slane %v8204_v4, 1  ;;  %v2965_v35 = vrot.slane %v8206_v25, 1  ;;  %v8133_v9 = vcombine.low %v12067_v40, %v12067_v40 }
 0x173   : > { %v8866_v27 = vpop.f32.mrb[53].mxu1  ;;  %v8930_v34 = vpop.f32.mrb[53].mxu0  ;;  %v2588_v36 = vrot.slane %v2586_v62, 1  ;;  %v2567_v54 = vshrl.u32 %v11761_v61, 16  ;;  %v2571_v40 = vrot.slane %v2569_v56, 1  ;;  %v2974_v25 = vrot.slane %v8211_v23, 1 }
 0x174   : > { %v8867_v46 = vadd.f32 %v8866_v27, %v8865_v39  ;;  %v8931_v1 = vadd.f32 %v8930_v34, %v8929_v20  ;;  %v8868_v22 = vpop.f32.mrb[54].mxu1  ;;  %v8932_v7 = vpop.f32.mrb[54].mxu0  ;;  %v2584_v39 = vor.u32 %v2583_v55, %v2579_v16  ;;  %v2681_v20 = vshll.u32 %v11769_v41, 16  ;;  %v12142_v34 = vld [vmem:[%s10659_s20 + $0xc0] sm:$0xee] }
 0x175   : > { %v8869_v48 = vpop.f32.mrb[55].mxu1  ;;  %v8933_v44 = vpop.f32.mrb[55].mxu0  ;;  %9482 = vmatpush3.bf16.msra.mxu1 %v10286_v42  ;;  %v12134_v42 = vshll.u32 %v8133_v9, 16  ;;  %v2553_v27 = vsel %vm898_vm0, %v2548_v8, %v2552_v52  ;;  %v2572_v62 = vor.u32 %v2571_v40, %v2567_v54  ;;  %v8208_v56 = vcombine.low %v12098_v18, %v11625_v14  ;;  %v13788_v40 = vld [vmem:[#allocation18_spill] sm:$0xff] }
 0x176   : > { %v12119_v19 = vadd.f32 %v8867_v46, %v11886_v49  ;;  %v12122_v12 = vadd.f32 %v8931_v1, %v11707_v59  ;;  %v8870_v38 = vadd.f32 %v8869_v48, %v8868_v22  ;;  %v8934_v37 = vadd.f32 %v8933_v44, %v8932_v7 }
 0x177   : > { %6669 = vmatmul.mubr.bf16.gmra.mrb[160].mxu0 %v2529_v13  ;;  %6766 = vmatmul.mubr.bf16.gmra.mrb[160].mxu1 %v2960_v30  ;;  %v2973_v59 = vrot.slane %v8209_v0, 1  ;;  %v8138_v13 = vcombine.high %v12125_v31, %v12125_v31  ;;  %v2589_v55 = vsel %vm898_vm0, %v2584_v39, %v2588_v36  ;;  %v8210_v46 = vcombine.low %v12101_v32, %v12101_v32  ;;  %v13787_v32 = vld [vmem:[#allocation16_spill] sm:$0xff] }
 0x178   : > { %v12129_v4 = vadd.f32 %v8870_v38, %v11904_v29  ;;  %v12132_v49 = vadd.f32 %v8934_v37, %v11722_v57  ;;  %6676 = vmatprep.mubr.bf16.mxu0 %v2565_v3  ;;  %6773 = vmatprep.mubr.bf16.mxu1 %v2969_v45  ;;  %v2966_v29 = vsel %vm1603_vm1, %v2964_v10, %v2965_v35  ;;  %v12145_v57 = vld [vmem:[%s10659_s20 + $0xd0] sm:$0x11]  ;;  %v2679_v0 = vshrl.u32 %v11769_v41, 16  ;;  %v13786_v10 = vld [vmem:[#allocation14_spill] sm:$0xff] }
 0x179   : > { %v2975_v7 = vsel %vm1603_vm1, %v2973_v59, %v2974_v25  ;;  %v2683_v44 = vrot.slane %v2681_v20, 1  ;;  %v2686_v45 = vshll.u32 %v8138_v13, 16  ;;  %v8213_v35 = vcombine.high %v12142_v34, %v13786_v10 }
 0x17a   : > { %v8871_v61 = vpop.f32.mrb[56].mxu1  ;;  %v8935_v30 = vpop.f32.mrb[56].mxu0  ;;  %v8215_v14 = vcombine.high %v12145_v57, %v12145_v57  ;;  %v2576_v41 = vrot.slane %v12134_v42, 1  ;;  %v2970_v39 = vrot.slane %v8208_v56, 1  ;;  %v8137_v36 = vcombine.low %v12125_v31, %v12125_v31 }
 0x17b   : > { %v8872_v3 = vpop.f32.mrb[57].mxu1  ;;  %v8936_v16 = vpop.f32.mrb[57].mxu0  ;;  %v2669_v54 = vshll.u32 %v11821_v60, 16  ;;  %v2971_v25 = vrot.slane %v8210_v46, 1  ;;  %v2667_v42 = vshrl.u32 %v11821_v60, 16  ;;  %v2684_v13 = vor.u32 %v2683_v44, %v2679_v0 }
 0x17c   : > { %v8873_v1 = vadd.f32 %v8872_v3, %v8871_v61  ;;  %v8937_v22 = vadd.f32 %v8936_v16, %v8935_v30  ;;  %v8874_v8 = vpop.f32.mrb[58].mxu1  ;;  %v8938_v52 = vpop.f32.mrb[58].mxu0  ;;  %v2688_v20 = vrot.slane %v2686_v45, 1  ;;  %v2979_v61 = vrot.slane %v8213_v35, 1  ;;  %v12179_v3 = vld [vmem:[%s10659_s20 + $0xe8] sm:$0x11] }
 0x17d   : > { %v8875_v23 = vpop.f32.mrb[59].mxu1  ;;  %v8939_v48 = vpop.f32.mrb[59].mxu0  ;;  %v2980_v30 = vrot.slane %v8215_v14, 1  ;;  %v2671_v56 = vrot.slane %v2669_v54, 1  ;;  %v8214_v60 = vcombine.low %v12145_v57, %v12145_v57  ;;  %v2577_v0 = vsel %vm898_vm0, %v2572_v62, %v2576_v41  ;;  %v13789_v35 = vld [vmem:[#allocation15_spill] sm:$0xff] }
 0x17e   : > { %v12159_v18 = vadd.f32 %v8873_v1, %v11948_v17  ;;  %v12162_v9 = vadd.f32 %v8937_v22, %v13787_v32  ;;  %v8876_v38 = vadd.f32 %v8875_v23, %v8874_v8  ;;  %v8940_v37 = vadd.f32 %v8939_v48, %v8938_v52  ;;  %v13790_v32 = vld [vmem:[#allocation19_spill] sm:$0xff] }
 0x17f   : > { %6677 = vmatmul.mubr.bf16.gmra.mrb[164].mxu0 %v2553_v27  ;;  %6774 = vmatmul.mubr.bf16.gmra.mrb[164].mxu1 %v2966_v29  ;;  %v12176_v29 = vld [vmem:[%s10659_s20 + $0xd8] sm:$0xee]  ;;  %v2674_v1 = vshll.u32 %v8137_v36, 16  ;;  %v2972_v23 = vsel %vm1603_vm1, %v2970_v39, %v2971_v25  ;;  %v2689_v45 = vsel %vm898_vm0, %v2684_v13, %v2688_v20  ;;  %v2981_v10 = vsel %vm1603_vm1, %v2979_v61, %v2980_v30  ;;  %v12206_v61 = vld [vmem:[%s10659_s20 + $0x30] sm:$0xff] }
 0x180   : > { %v12169_v17 = vadd.f32 %v8876_v38, %v11958_v28  ;;  %v12172_v59 = vadd.f32 %v8940_v37, %v13788_v40  ;;  %6684 = vmatprep.mubr.bf16.mxu0 %v2589_v55  ;;  %6781 = vmatprep.mubr.bf16.mxu1 %v2975_v7  ;;  %v10449_v55 = vld [vmem:[%s10659_s20 + $0xc8] sm:$0xff]  ;;  %v8219_v57 = vcombine.high %v12179_v3, %v12179_v3  ;;  %v2977_v54 = vrot.slane %v8214_v60, 1  ;;  %v12209_v30 = vld [vmem:[%s10659_s20 + $0xf0] sm:$0xee] }
 0x181   : > { %v8212_v22 = vcombine.low %v12142_v34, %v10449_v55  ;;  %v8217_v34 = vcombine.high %v12176_v29, %v13789_v35  ;;  %v2672_v41 = vor.u32 %v2671_v56, %v2667_v42  ;;  %v2676_v39 = vrot.slane %v2674_v1, 1  ;;  %v10450_v1 = vld [vmem:[%s10659_s20 + $0xe0] sm:$0xff] }
 0x182   : > { %v8877_v27 = vpop.f32.mrb[60].mxu1  ;;  %v8941_v31 = vpop.f32.mrb[60].mxu0  ;;  %v2986_v20 = vrot.slane %v8219_v57, 1  ;;  %v8216_v55 = vcombine.low %v12176_v29, %v10450_v1  ;;  %v13792_v29 = vld [vmem:[#allocation17_spill] sm:$0xff] }
 0x183   : > { %v8878_v28 = vpop.f32.mrb[61].mxu1  ;;  %v8942_v16 = vpop.f32.mrb[61].mxu0  ;;  %v2976_v36 = vrot.slane %v8212_v22, 1  ;;  %v2985_v13 = vrot.slane %v8217_v34, 1  ;;  %v13794_v34 = vld [vmem:[#allocation21_spill] sm:$0xff] }
 0x184   : > { %v8879_v46 = vadd.f32 %v8878_v28, %v8877_v27  ;;  %v8943_v8 = vadd.f32 %v8942_v16, %v8941_v31  ;;  %v8880_v52 = vpop.f32.mrb[62].mxu1  ;;  %v8944_v7 = vpop.f32.mrb[62].mxu0  ;;  %v12212_v31 = vld [vmem:[%s10659_s20 + $0x100] sm:$0x11]  ;;  %v2677_v16 = vsel %vm898_vm0, %v2672_v41, %v2676_v39 }
 0x185   : > { %v8881_v48 = vpop.f32.mrb[63].mxu1  ;;  %v8945_v44 = vpop.f32.mrb[63].mxu0  ;;  %v2978_v56 = vsel %vm1603_vm1, %v2976_v36, %v2977_v54  ;;  %v13796_v41 = vld [vmem:[#allocation22_spill] sm:$0xff]  ;;  %v2982_v36 = vrot.slane %v8216_v55, 1  ;;  %v8220_v55 = vcombine.low %v12209_v30, %v13792_v29 }
 0x186   : > { %v12194_v14 = vadd.f32 %v8879_v46, %v12008_v24  ;;  %v12197_v62 = vadd.f32 %v8943_v8, %v13790_v32  ;;  %v8882_v38 = vadd.f32 %v8881_v48, %v8880_v52  ;;  %v8946_v37 = vadd.f32 %v8945_v44, %v8944_v7  ;;  %v13791_v24 = vld [vmem:[#allocation20_spill] sm:$0xff] }
 0x187   : > { %6685 = vmatmul.mubr.bf16.gmra.mrb[168].mxu0 %v2577_v0  ;;  %6782 = vmatmul.mubr.bf16.gmra.mrb[168].mxu1 %v2972_v23  ;;  %v8277_v52 = vcombine.high %v12206_v61, %v11789_v2  ;;  %v8218_v7 = vcombine.low %v12179_v3, %v12179_v3  ;;  %v2987_v48 = vsel %vm1603_vm1, %v2985_v13, %v2986_v20  ;;  %v12246_v20 = vld [vmem:[%s10659_s20 + $0x108] sm:$0xee] }
 0x188   : > { %v12200_v40 = vadd.f32 %v8882_v38, %v12018_v5  ;;  %v12203_v25 = vadd.f32 %v8946_v37, %v13791_v24  ;;  %6692 = vmatprep.mubr.bf16.mxu0 %v2689_v45  ;;  %6789 = vmatprep.mubr.bf16.mxu1 %v2981_v10  ;;  %v8221_v44 = vcombine.high %v12209_v30, %v13792_v29  ;;  %v13793_v10 = vld [vmem:[#allocation6_spill] sm:$0xff]  ;;  %v13795_v38 = vld [vmem:[#allocation7_spill] sm:$0xff] }
 0x189   : > { %v8223_v45 = vcombine.high %v12212_v31, %v12212_v31  ;;  %v2983_v54 = vrot.slane %v8218_v7, 1 }
 0x18a   : > { %v8883_v27 = vpop.f32.mrb[64].mxu1  ;;  %v8947_v42 = vpop.f32.mrb[64].mxu0  ;;  %v2991_v24 = vrot.slane %v8221_v44, 1 }
 0x18b   : > { %v8884_v28 = vpop.f32.mrb[65].mxu1  ;;  %v8948_v5 = vpop.f32.mrb[65].mxu0  ;;  %v2992_v13 = vrot.slane %v8223_v45, 1  ;;  %v10236_v45 = vld [vmem:[%s13744_s3 + $0x448] sm:$0xff]  }
 0x18c   : > { %v8885_v22 = vadd.f32 %v8884_v28, %v8883_v27  ;;  %v8949_v60 = vadd.f32 %v8948_v5, %v8947_v42  ;;  %v8886_v46 = vpop.f32.mrb[66].mxu1  ;;  %v8950_v8 = vpop.f32.mrb[66].mxu0  ;;  %v12249_v28 = vld [vmem:[%s10659_s20 + $0x48] sm:$0xff]  ;;  %v12252_v5 = vld [vmem:[%s10659_s20 + $0x110] sm:$0xff] }
 0x18d   : > { %v8887_v0 = vpop.f32.mrb[67].mxu1  ;;  %v8951_v23 = vpop.f32.mrb[67].mxu0  ;;  %v8279_v30 = vcombine.high %v12249_v28, %v11844_v53 }
 0x18e   : > { %v12234_v35 = vadd.f32 %v8885_v22, %v13793_v10  ;;  %v12237_v57 = vadd.f32 %v8949_v60, %v13794_v34  ;;  %v8888_v32 = vadd.f32 %v8887_v0, %v8886_v46  ;;  %v8952_v3 = vadd.f32 %v8951_v23, %v8950_v8  ;;  %v10221_v23 = vld [vmem:[%s13744_s3 + $0x400] sm:$0xff]   ;;  %v13797_v10 = vld [vmem:[#allocation8_spill] sm:$0xff] }
 0x18f   : > { %6693 = vmatmul.mubr.bf16.gmra.mrb[172].mxu0 %v2677_v16  ;;  %6790 = vmatmul.mubr.bf16.gmra.mrb[172].mxu1 %v2978_v56  ;;  %v12255_v16 = vld [vmem:[%s10659_s20 + $0x118] sm:$0x11]  ;;  %v8276_v22 = vcombine.low %v12206_v61, %v11789_v2  ;;  %v8222_v60 = vcombine.low %v12212_v31, %v12212_v31  ;;  %v2984_v0 = vsel %vm1603_vm1, %v2982_v36, %v2983_v54 }
 0x190   : > { %v12240_v37 = vadd.f32 %v8888_v32, %v13795_v38  ;;  %v12243_v39 = vadd.f32 %v8952_v3, %v13796_v41  ;;  %6797 = vmatprep.mubr.bf16.mxu1 %v2987_v48  ;;  %6894 = vmatprep.mubr.bf16.mxu0 %v8277_v52  ;;  %v2993_v2 = vsel %vm1603_vm1, %v2991_v24, %v2992_v13  ;;  %v2988_v41 = vrot.slane %v8220_v55, 1  ;;  %v13798_v54 = vld [vmem:[#allocation9_spill] sm:$0xff]  ;;  %v13799_v13 = vld [vmem:[#allocation23_spill] sm:$0xff]  ;;  %v10252_v55 = vld [vmem:[%s13744_s3 + $0x450] sm:$0xff]  }
 0x191   : > { %v8225_v31 = vcombine.high %v12246_v20, %v12252_v5  ;;  %v8227_v29 = vcombine.high %v12255_v16, %v12255_v16  ;;  %v2989_v36 = vrot.slane %v8222_v60, 1 }
 0x192   : > { %v8889_v27 = vpop.f32.mrb[68].mxu1  ;;  %v8953_v42 = vpop.f32.mrb[68].mxu0 }
 0x193   : > { %v8890_v56 = vpop.f32.mrb[69].mxu1  ;;  %v8954_v1 = vpop.f32.mrb[69].mxu0 }
 0x194   : > { %v8891_v46 = vadd.f32 %v8890_v56, %v8889_v27  ;;  %v8955_v8 = vadd.f32 %v8954_v1, %v8953_v42  ;;  %v8892_v52 = vpop.f32.mrb[70].mxu1  ;;  %v8956_v7 = vpop.f32.mrb[70].mxu0  ;;  %v2997_v42 = vrot.slane %v8225_v31, 1  ;;  %v2998_v56 = vrot.slane %v8227_v29, 1  ;;  %v12293_v1 = vld [vmem:[%s10659_s20 + $0x60] sm:$0xff] }
 0x195   : > { %v8893_v48 = vpop.f32.mrb[71].mxu1  ;;  %v8957_v44 = vpop.f32.mrb[71].mxu0 }
 0x196   : > { %v12278_v34 = vadd.f32 %v8891_v46, %v13797_v10  ;;  %v12281_v32 = vadd.f32 %v8955_v8, %v11912_v26  ;;  %v8894_v3 = vadd.f32 %v8893_v48, %v8892_v52  ;;  %v8958_v38 = vadd.f32 %v8957_v44, %v8956_v7  ;;  %v10237_v26 = vld [vmem:[%s13744_s3 + $0x408] sm:$0xff]   ;;  %v12305_v52 = vld [vmem:[%s10659_s20 + $0x130] sm:$0x11] }
 0x197   : > { %6798 = vmatmul.mubr.bf16.gmra.mrb[176].mxu1 %v2984_v0  ;;  %6895 = vmatmul.mubr.bf16.vlgmr.msra.gmra.mrb[176].mxu0 %v8276_v22  ;;  %v12296_v22 = vld [vmem:[%s10659_s20 + $0x120] sm:$0xee]  ;;  %v12302_v8 = vld [vmem:[%s10659_s20 + $0x128] sm:$0xff]  ;;  %v8278_v48 = vcombine.low %v12249_v28, %v11844_v53  ;;  %v8224_v44 = vcombine.low %v12246_v20, %v12252_v5  ;;  %v8226_v10 = vcombine.low %v12255_v16, %v12255_v16 }
 0x198   : > { %v12284_v24 = vadd.f32 %v8894_v3, %v13798_v54  ;;  %v12287_v27 = vadd.f32 %v8958_v38, %v13799_v13  ;;  %9580 = vmatpush3.bf16.msra.mxu0 %v10221_v23  ;;  %6805 = vmatprep.mubr.bf16.mxu1 %v2993_v2  ;;  %v2990_v23 = vsel %vm1603_vm1, %v2988_v41, %v2989_v36  ;;  %v10253_v36 = vld [vmem:[%s13744_s3 + $0x410] sm:$0xff]   ;;  %v13800_v54 = vld [vmem:[#allocation10_spill] sm:$0xff] }
 0x199   : > { %6902 = vmatprep.mubr.bf16.mxu0 %v8279_v30  ;;  %9581 = vmatprep.subr.bf16.mxu0 %v10236_v45  ;;  %v8281_v45 = vcombine.high %v12293_v1, %v11899_v21  ;;  %v2999_v41 = vsel %vm1603_vm1, %v2997_v42, %v2998_v56  ;;  %v8229_v53 = vcombine.high %v12296_v22, %v12302_v8  ;;  %v10271_v56 = vld [vmem:[%s13744_s3 + $0x458] sm:$0xff]  }
 0x19a   : > { %v8895_v60 = vpop.f32.mrb[72].mxu1  ;;  %v8959_v46 = vpop.f32.mrb[72].mxu0  ;;  %v8231_v20 = vcombine.high %v12305_v52, %v12305_v52 }
 0x19b   : > { %v8896_v7 = vpop.f32.mrb[73].mxu1  ;;  %v8960_v0 = vpop.f32.mrb[73].mxu0 }
 0x19c   : > { %v8897_v2 = vadd.f32 %v8896_v7, %v8895_v60  ;;  %v8961_v30 = vadd.f32 %v8960_v0, %v8959_v46  ;;  %v8898_v31 = vpop.f32.mrb[74].mxu1  ;;  %v8962_v29 = vpop.f32.mrb[74].mxu0  ;;  %9582 = vmatpush3.bf16.msra.mxu0 %v10237_v26  ;;  %v2995_v7 = vrot.slane %v8226_v10, 1  ;;  %v3003_v0 = vrot.slane %v8229_v53, 1 }
 0x19d   : > { %v8899_v3 = vpop.f32.mrb[75].mxu1  ;;  %v8963_v38 = vpop.f32.mrb[75].mxu0  ;;  %9583 = vmatprep.subr.bf16.mxu0 %v10252_v55  ;;  %v13801_v55 = vld [vmem:[#allocation11_spill] sm:$0xff]  ;;  %v8230_v53 = vcombine.low %v12305_v52, %v12305_v52  ;;  %v10295_v52 = vld [vmem:[%s13744_s3 + $0x420] sm:$0xff]  }
 0x19e   : > { %v12325_v13 = vadd.f32 %v8897_v2, %v13800_v54  ;;  %v12328_v16 = vadd.f32 %v8961_v30, %v11963_v47  ;;  %v8900_v26 = vadd.f32 %v8899_v3, %v8898_v31  ;;  %v8964_v42 = vadd.f32 %v8963_v38, %v8962_v29  ;;  %v12340_v30 = vld [vmem:[%s10659_s20 + $0x78] sm:$0xff]  ;;  %v12349_v3 = vld [vmem:[%s10659_s20 + $0x140] sm:$0xff] }
 0x19f   : > { %6806 = vmatmul.mubr.bf16.gmra.mrb[180].mxu1 %v2990_v23  ;;  %6903 = vmatmul.mubr.bf16.gmra.mrb[180].mxu0 %v8278_v48  ;;  %v2994_v47 = vrot.slane %v8224_v44, 1  ;;  %v3004_v2 = vrot.slane %v8231_v20, 1  ;;  %v12343_v31 = vld [vmem:[%s10659_s20 + $0x138] sm:$0xee]  ;;  %v10294_v44 = vld [vmem:[%s13744_s3 + $0x460] sm:$0xff]   ;;  %v8280_v38 = vcombine.low %v12293_v1, %v11899_v21 }
 0x1a0   : > { %v12334_v60 = vadd.f32 %v8900_v26, %v13801_v55  ;;  %v12337_v46 = vadd.f32 %v8964_v42, %v11985_v33  ;;  %6813 = vmatprep.mubr.bf16.mxu1 %v2999_v41  ;;  %6910 = vmatprep.mubr.bf16.mxu0 %v8281_v45  ;;  %v10273_v23 = vld [vmem:[%s13744_s3 + $0x418] sm:$0xff]   ;;  %v12352_v33 = vld [vmem:[%s10659_s20 + $0x148] sm:$0x11]  ;;  %v8228_v41 = vcombine.low %v12296_v22, %v12302_v8 }
 0x1a1   : > { %9584 = vmatpush3.bf16.msra.mxu0 %v10253_v36  ;;  %v2996_v42 = vsel %vm1603_vm1, %v2994_v47, %v2995_v7  ;;  %v8233_v21 = vcombine.high %v12343_v31, %v12349_v3  ;;  %v8235_v22 = vcombine.high %v12352_v33, %v12352_v33 }
 0x1a2   : > { %13802 = vst [vmem:[#allocation14_spill] sm:$0xff] %v12334_v60  ;;  %13803 = vst [vmem:[#allocation16_spill] sm:$0xff] %v12337_v46  ;;  %v8901_v48 = vpop.f32.mrb[76].mxu1  ;;  %v8965_v29 = vpop.f32.mrb[76].mxu0  ;;  %9585 = vmatprep.subr.bf16.mxu0 %v10271_v56  ;;  %v8283_v56 = vcombine.high %v12340_v30, %v11978_v63  ;;  %v3005_v60 = vsel %vm1603_vm1, %v3003_v0, %v3004_v2 }
 0x1a3   : > { %v8902_v45 = vpop.f32.mrb[77].mxu1  ;;  %v8966_v10 = vpop.f32.mrb[77].mxu0 }
 0x1a4   : > { %v8903_v20 = vadd.f32 %v8902_v45, %v8901_v48  ;;  %v8967_v36 = vadd.f32 %v8966_v10, %v8965_v29  ;;  %v8904_v54 = vpop.f32.mrb[78].mxu1  ;;  %v8968_v26 = vpop.f32.mrb[78].mxu0  ;;  %v13804_v48 = vld [vmem:[#allocation12_spill] sm:$0xff]  ;;  %v10308_v29 = vld [vmem:[%s13744_s3 + $0x468] sm:$0xff]   ;;  %v3001_v45 = vrot.slane %v8230_v53, 1  ;;  %v13805_v10 = vld [vmem:[#allocation13_spill] sm:$0xff] }
 0x1a5   : > { %v8905_v55 = vpop.f32.mrb[79].mxu1  ;;  %v8969_v46 = vpop.f32.mrb[79].mxu0  ;;  %9586 = vmatpush3.bf16.msra.mxu0 %v10273_v23  ;;  %v3000_v23 = vrot.slane %v8228_v41, 1 }
 0x1a6   : > { %v12375_v47 = vadd.f32 %v8903_v20, %v13804_v48  ;;  %v12378_v7 = vadd.f32 %v8967_v36, %v12023_v11  ;;  %v8906_v0 = vadd.f32 %v8905_v55, %v8904_v54  ;;  %v8970_v2 = vadd.f32 %v8969_v46, %v8968_v26  ;;  %9587 = vmatprep.subr.bf16.mxu0 %v10294_v44  ;;  %v12390_v36 = vld [vmem:[%s10659_s20 + $0x90] sm:$0xff]  ;;  %v12399_v26 = vld [vmem:[%s10659_s20 + $0x158] sm:$0xff] }
 0x1a7   : > { %6814 = vmatmul.mubr.bf16.gmra.mrb[184].mxu1 %v2996_v42  ;;  %6911 = vmatmul.mubr.bf16.gmra.mrb[184].mxu0 %v8280_v38  ;;  %v3009_v46 = vrot.slane %v8233_v21, 1  ;;  %v3010_v44 = vrot.slane %v8235_v22, 1  ;;  %v12393_v54 = vld [vmem:[%s10659_s20 + $0x150] sm:$0xee]  ;;  %v10309_v38 = vld [vmem:[%s13744_s3 + $0x428] sm:$0xff]   ;;  %v3002_v55 = vsel %vm1603_vm1, %v3000_v23, %v3001_v45  ;;  %v8282_v21 = vcombine.low %v12340_v30, %v11978_v63 }
 0x1a8   : > { %v12384_v20 = vadd.f32 %v8906_v0, %v13805_v10  ;;  %v12387_v11 = vadd.f32 %v8970_v2, %v12041_v43  ;;  %6821 = vmatprep.mubr.bf16.mxu1 %v3005_v60  ;;  %6918 = vmatprep.mubr.bf16.mxu0 %v8283_v56  ;;  %v12402_v42 = vld [vmem:[%s10659_s20 + $0x160] sm:$0x11]  ;;  %v10322_v43 = vld [vmem:[%s13744_s3 + $0x470] sm:$0xff]   ;;  %v8232_v22 = vcombine.low %v12343_v31, %v12349_v3 }
 0x1a9   : > { %9588 = vmatpush3.bf16.msra.mxu0 %v10295_v52  ;;  %v8234_v10 = vcombine.low %v12352_v33, %v12352_v33  ;;  %v3011_v23 = vsel %vm1603_vm1, %v3009_v46, %v3010_v44  ;;  %v8237_v63 = vcombine.high %v12393_v54, %v12399_v26  ;;  %v8239_v31 = vcombine.high %v12402_v42, %v12402_v42  ;;  %v10323_v45 = vld [vmem:[%s13744_s3 + $0x430] sm:$0xff]   ;;  %v10332_v44 = vld [vmem:[%s13744_s3 + $0x478] sm:$0xff]  }
 0x1aa   : > { %13806 = vst [vmem:[#allocation18_spill] sm:$0xff] %v12384_v20  ;;  %13807 = vst [vmem:[#allocation15_spill] sm:$0xff] %v12387_v11  ;;  %v8971_v41 = vpop.f32.mrb[80].mxu0  ;;  %v9035_v53 = vpop.f32.mrb[80].mxu1  ;;  %9589 = vmatprep.subr.bf16.mxu0 %v10308_v29  ;;  %v8285_v29 = vcombine.high %v12390_v36, %v12037_v50 }
 0x1ab   : > { %v8972_v60 = vpop.f32.mrb[81].mxu0  ;;  %v9036_v56 = vpop.f32.mrb[81].mxu1 }
 0x1ac   : > { %v8973_v52 = vadd.f32 %v8972_v60, %v8971_v41  ;;  %v9037_v48 = vadd.f32 %v9036_v56, %v9035_v53  ;;  %v8974_v0 = vpop.f32.mrb[82].mxu0  ;;  %v9038_v2 = vpop.f32.mrb[82].mxu1  ;;  %v8181_v60 = vld [vmem:[%s10659_s20 + $0x168] sm:$0xee]  ;;  %v10333_v56 = vld [vmem:[%s13744_s3 + $0x438] sm:$0xff]  }
 0x1ad   : > { %v8975_v11 = vpop.f32.mrb[83].mxu0  ;;  %v9039_v20 = vpop.f32.mrb[83].mxu1  ;;  %9590 = vmatpush3.bf16.msra.mxu0 %v10309_v38 }
 0x1ae   : > { %v12425_v41 = vadd.f32 %v8973_v52, %v12075_v15  ;;  %v12428_v33 = vadd.f32 %v9037_v48, %v12078_v6  ;;  %v8976_v53 = vadd.f32 %v8975_v11, %v8974_v0  ;;  %v9040_v46 = vadd.f32 %v9039_v20, %v9038_v2  ;;  %9591 = vmatprep.subr.bf16.mxu0 %v10322_v43  ;;  %v8183_v52 = vld [vmem:[%s10659_s20 + $0x178] sm:$0x11] }
 0x1af   : > { %6822 = vmatmul.mubr.bf16.gmra.mrb[188].mxu1 %v3002_v55  ;;  %6919 = vmatmul.mubr.bf16.gmra.mrb[188].mxu0 %v8282_v21  ;;  %v3006_v6 = vrot.slane %v8232_v22, 1  ;;  %v3007_v11 = vrot.slane %v8234_v10, 1  ;;  %v3015_v20 = vrot.slane %v8237_v63, 1  ;;  %v3016_v43 = vrot.slane %v8239_v31, 1 }
 0x1b0   : > { %v12434_v38 = vadd.f32 %v8976_v53, %v12087_v58  ;;  %v12437_v15 = vadd.f32 %v9040_v46, %v12090_v51  ;;  %6829 = vmatprep.mubr.bf16.mxu1 %v3011_v23  ;;  %6926 = vmatprep.mubr.bf16.mxu0 %v8285_v29  ;;  %v12444_v58 = vld [vmem:[%s10659_s20 + $0x170] sm:$0xff]  ;;  %v8284_v22 = vcombine.low %v12390_v36, %v12037_v50 }
 0x1b1   : > { %9592 = vmatpush3.bf16.msra.mxu0 %v10323_v45  ;;  %v8236_v0 = vcombine.low %v12393_v54, %v12399_v26  ;;  %v8238_v2 = vcombine.low %v12402_v42, %v12402_v42  ;;  %v3008_v31 = vsel %vm1603_vm1, %v3006_v6, %v3007_v11  ;;  %v12455_v45 = vld [vmem:[%s10659_s20 + $0xac] ss:$8 sps:$4 sm:$0xff]   ;;  %v8241_v50 = vcombine.high %v8181_v60, %v12444_v58 }
 0x1b2   : > { %13808 = vst [vmem:[#allocation19_spill] sm:$0xff] %v12437_v15  ;;  %v8977_v55 = vpop.f32.mrb[84].mxu0  ;;  %v9041_v21 = vpop.f32.mrb[84].mxu1  ;;  %9593 = vmatprep.subr.bf16.mxu0 %v10332_v44  ;;  %v3017_v44 = vsel %vm1603_vm1, %v3015_v20, %v3016_v43  ;;  %v8243_v15 = vcombine.high %v8183_v52, %v8183_v52  ;;  %v8240_v20 = vcombine.low %v8181_v60, %v12444_v58  ;;  %v3086_v60 = vld [vmem:[%s11327_s11 + $0x10] sm:$0x11] }
 0x1b3   : > { %v8978_v51 = vpop.f32.mrb[85].mxu0  ;;  %v9042_v48 = vpop.f32.mrb[85].mxu1  ;;  %v3012_v6 = vrot.slane %v8236_v0, 1  ;;  %v3013_v11 = vrot.slane %v8238_v2, 1  ;;  %v12475_v2 = vld [vmem:[%s11327_s11 + $0x8] sm:$0xff] }
 0x1b4   : > { %v8979_v29 = vadd.f32 %v8978_v51, %v8977_v55  ;;  %v9043_v10 = vadd.f32 %v9042_v48, %v9041_v21  ;;  %v8980_v23 = vpop.f32.mrb[86].mxu0  ;;  %v9044_v63 = vpop.f32.mrb[86].mxu1  ;;  %v3022_v51 = vrot.slane %v8243_v15, 1  ;;  %v3084_v48 = vld [vmem:[%s11327_s11] sm:$0xee]  ;;  %13811 = vst [vmem:[#allocation6_spill] sm:$0xff] %v12475_v2 }
 0x1b5   : > { %v8981_v53 = vpop.f32.mrb[87].mxu0  ;;  %v9045_v46 = vpop.f32.mrb[87].mxu1  ;;  %9594 = vmatpush3.bf16.msra.mxu0 %v10333_v56  ;;  %v3021_v56 = vrot.slane %v8241_v50, 1  ;;  %v12486_v15 = vld [vmem:[%s10659_s20 + $0xc4] ss:$8 sps:$4 sm:$0xff]  }
 0x1b6   : > { %v12460_v54 = vadd.f32 %v8979_v29, %v12119_v19  ;;  %v12463_v42 = vadd.f32 %v9043_v10, %v12122_v12  ;;  %v8982_v55 = vadd.f32 %v8981_v53, %v8980_v23  ;;  %v9046_v21 = vadd.f32 %v9045_v46, %v9044_v63  ;;  %v12479_v29 = vld [vmem:[%s10659_s20 + $0x38] sm:$0xff]  ;;  %v12483_v23 = vld [vmem:[%s10659_s20 + $0xa8] ss:$8 sps:$4 sm:$0xff]  }
 0x1b7   : > { %6830 = vmatmul.mubr.bf16.gmra.mrb[192].mxu1 %v3008_v31  ;;  %6927 = vmatmul.mubr.bf16.gmra.mrb[192].mxu0 %v8284_v22  ;;  %v8242_v12 = vcombine.low %v8183_v52, %v8183_v52  ;;  %13812 = vst [vmem:[#allocation21_spill] sm:$0xff] %v12479_v29  ;;  %v3018_v46 = vrot.slane %v8240_v20, 1 }
 0x1b8   : > { %v12467_v43 = vadd.f32 %v8982_v55, %v12129_v4  ;;  %v12470_v19 = vadd.f32 %v9046_v21, %v12132_v49  ;;  %6837 = vmatprep.mubr.bf16.mxu1 %v3017_v44  ;;  %6934 = vmatprep.mubr.bf16.mxu0 %v12455_v45  ;;  %v3014_v49 = vsel %vm1603_vm1, %v3012_v6, %v3013_v11 }
 0x1b9   : > { %v3019_v44 = vrot.slane %v8242_v12, 1  ;;  %v3023_v21 = vsel %vm1603_vm1, %v3021_v56, %v3022_v51  ;;  %v8351_v6 = vcombine.high %v12206_v61, %v12479_v29  ;;  %v8310_v12 = vld [vmem:[%s10659_s20 + $0x40] sm:$0x11]  ;;  %v8244_v56 = vcombine.low %v3084_v48, %v12475_v2 }
 0x1ba   : > { %13809 = vst [vmem:[#allocation20_spill] sm:$0xff] %v12467_v43  ;;  %13810 = vst [vmem:[#allocation17_spill] sm:$0xff] %v12470_v19  ;;  %v8983_v22 = vpop.f32.mrb[88].mxu0  ;;  %v9047_v0 = vpop.f32.mrb[88].mxu1  ;;  %v8245_v19 = vcombine.high %v3084_v48, %v12475_v2  ;;  %v8247_v43 = vcombine.high %v3086_v60, %v3086_v60  ;;  %v8246_v51 = vcombine.low %v3086_v60, %v3086_v60 }
 0x1bb   : > { %v8984_v4 = vpop.f32.mrb[89].mxu0  ;;  %v9048_v10 = vpop.f32.mrb[89].mxu1  ;;  %v3020_v60 = vsel %vm1603_vm1, %v3018_v46, %v3019_v44  ;;  %v12524_v44 = vld [vmem:[%s10659_s20 + $0xdc] ss:$8 sps:$4 sm:$0xff]  }
 0x1bc   : > { %v8985_v63 = vadd.f32 %v8984_v4, %v8983_v22  ;;  %v9049_v31 = vadd.f32 %v9048_v10, %v9047_v0  ;;  %v8986_v52 = vpop.f32.mrb[90].mxu0  ;;  %v9050_v53 = vpop.f32.mrb[90].mxu1 }
 0x1bd   : > { %v8987_v50 = vpop.f32.mrb[91].mxu0  ;;  %v9051_v55 = vpop.f32.mrb[91].mxu1 }
 0x1be   : > { %v12493_v11 = vadd.f32 %v8985_v63, %v12159_v18  ;;  %v12496_v22 = vadd.f32 %v9049_v31, %v12162_v9  ;;  %v8988_v0 = vadd.f32 %v8987_v50, %v8986_v52  ;;  %v9052_v20 = vadd.f32 %v9051_v55, %v9050_v53  ;;  %v12509_v18 = vld [vmem:[%s10659_s20 + $0x50] sm:$0xff]  ;;  %v12513_v50 = vld [vmem:[%s10659_s20 + $0xc0] ss:$8 sps:$4 sm:$0xff]  }
 0x1bf   : > { %6838 = vmatmul.mubr.bf16.gmra.mrb[196].mxu1 %v3014_v49  ;;  %6935 = vmatmul.mubr.bf16.gmra.mrb[196].mxu0 %v12483_v23  ;;  %13817 = vst [vmem:[#allocation23_spill] sm:$0xff] %v12509_v18  ;;  %v3103_v9 = vrot.slane %v8245_v19, 1  ;;  %v3104_v63 = vrot.slane %v8247_v43, 1  ;;  %v8353_v49 = vcombine.high %v8310_v12, %v8310_v12  ;;  %v3575_v31 = vshll.u32 %v8351_v6, 16 }
 0x1c0   : > { %13813 = vst [vmem:[#allocation7_spill] sm:$0xff] %v12493_v11  ;;  %13814 = vst [vmem:[#allocation22_spill] sm:$0xff] %v12496_v22  ;;  %v12502_v4 = vadd.f32 %v8988_v0, %v12169_v17  ;;  %v12505_v10 = vadd.f32 %v9052_v20, %v12172_v59  ;;  %6845 = vmatprep.mubr.bf16.mxu1 %v3023_v21  ;;  %6942 = vmatprep.mubr.bf16.mxu0 %v12486_v15  ;;  %v3100_v59 = vrot.slane %v8244_v56, 1 }
 0x1c1   : > { %v3101_v55 = vrot.slane %v8246_v51, 1  ;;  %v12517_v21 = vcombine.low %v12206_v61, %v12479_v29  ;;  %v12521_v43 = vcombine.high %v12249_v28, %v12509_v18  ;;  %v3105_v51 = vsel %vm1603_vm1, %v3103_v9, %v3104_v63  ;;  %v8313_v29 = vld [vmem:[%s10659_s20 + $0x58] sm:$0x11] }
 0x1c2   : > { %13815 = vst [vmem:[#allocation8_spill] sm:$0xff] %v12502_v4  ;;  %13816 = vst [vmem:[#allocation9_spill] sm:$0xff] %v12505_v10  ;;  %v8989_v52 = vpop.f32.mrb[92].mxu0  ;;  %v9053_v48 = vpop.f32.mrb[92].mxu1  ;;  %v8352_v10 = vcombine.low %v8310_v12, %v8310_v12  ;;  %v3573_v4 = vshrl.u32 %v8351_v6, 16  ;;  %v3577_v11 = vrot.slane %v3575_v31, 1 }
 0x1c3   : > { %v8990_v53 = vpop.f32.mrb[93].mxu0  ;;  %v9054_v17 = vpop.f32.mrb[93].mxu1  ;;  %v3580_v61 = vshll.u32 %v8353_v49, 16  ;;  %v3563_v6 = vshll.u32 %v12517_v21, 16  ;;  %v3599_v12 = vshll.u32 %v12521_v43, 16 }
 0x1c4   : > { %v8991_v19 = vadd.f32 %v8990_v53, %v8989_v52  ;;  %v9055_v0 = vadd.f32 %v9054_v17, %v9053_v48  ;;  %v8992_v20 = vpop.f32.mrb[94].mxu0  ;;  %v9056_v46 = vpop.f32.mrb[94].mxu1  ;;  %v12535_v17 = vld [vmem:[%s10659_s20 + $0x68] sm:$0xff]  ;;  %v12548_v63 = vld [vmem:[%s10659_s20 + $0xd8] ss:$8 sps:$4 sm:$0xff]   ;;  %v3578_v49 = vor.u32 %v3577_v11, %v3573_v4 }
 0x1c5   : > { %v8993_v56 = vpop.f32.mrb[95].mxu0  ;;  %v9057_v22 = vpop.f32.mrb[95].mxu1  ;;  %v3582_v31 = vrot.slane %v3580_v61, 1  ;;  %v3565_v4 = vrot.slane %v3563_v6, 1 }
 0x1c6   : > { %v12529_v2 = vadd.f32 %v8991_v19, %v12194_v14  ;;  %v12532_v52 = vadd.f32 %v9055_v0, %v12197_v62  ;;  %v8994_v48 = vadd.f32 %v8993_v56, %v8992_v20  ;;  %v9058_v53 = vadd.f32 %v9057_v22, %v9056_v46  ;;  %v12561_v20 = vld [vmem:[%s10659_s20 + $0x70] sm:$0x11] }
 0x1c7   : > { %6846 = vmatmul.mubr.bf16.gmra.mrb[200].mxu1 %v3020_v60  ;;  %6943 = vmatmul.mubr.bf16.gmra.mrb[200].mxu0 %v12513_v50  ;;  %v3568_v62 = vshll.u32 %v8352_v10, 16  ;;  %v8357_v22 = vcombine.high %v8313_v29, %v8313_v29  ;;  %v12552_v60 = vcombine.low %v12249_v28, %v12509_v18  ;;  %v3102_v0 = vsel %vm1603_vm1, %v3100_v59, %v3101_v55 }
 0x1c8   : > { %13818 = vst [vmem:[#allocation10_spill] sm:$0xff] %v12529_v2  ;;  %13819 = vst [vmem:[#allocation11_spill] sm:$0xff] %v12532_v52  ;;  %v12541_v9 = vadd.f32 %v8994_v48, %v12200_v40  ;;  %v12544_v14 = vadd.f32 %v9058_v53, %v12203_v25  ;;  %6853 = vmatprep.mubr.bf16.mxu1 %v3105_v51  ;;  %6950 = vmatprep.mubr.bf16.mxu0 %v12524_v44  ;;  %v3561_v10 = vshrl.u32 %v12517_v21, 16 }
 0x1c9   : > { %v12556_v40 = vcombine.high %v12293_v1, %v12535_v17  ;;  %v3597_v56 = vshrl.u32 %v12521_v43, 16  ;;  %v3601_v28 = vrot.slane %v3599_v12, 1  ;;  %v8356_v51 = vcombine.low %v8313_v29, %v8313_v29 }
 0x1ca   : > { %13820 = vst [vmem:[#allocation12_spill] sm:$0xff] %v12541_v9  ;;  %13821 = vst [vmem:[#allocation13_spill] sm:$0xff] %v12544_v14  ;;  %v8995_v25 = vpop.f32.mrb[96].mxu0  ;;  %v9059_v19 = vpop.f32.mrb[96].mxu1  ;;  %v12565_v9 = vld [vmem:[%s10659_s20 + $0xf4] ss:$8 sps:$4 sm:$0xff]   ;;  %v3583_v21 = vsel %vm898_vm0, %v3578_v49, %v3582_v31  ;;  %v8361_v6 = vcombine.high %v12561_v20, %v12561_v20  ;;  %v3566_v49 = vor.u32 %v3565_v4, %v3561_v10 }
 0x1cb   : > { %v8996_v46 = vpop.f32.mrb[97].mxu0  ;;  %v9060_v11 = vpop.f32.mrb[97].mxu1  ;;  %v3570_v52 = vrot.slane %v3568_v62, 1  ;;  %v3604_v2 = vshll.u32 %v8357_v22, 16  ;;  %v3587_v18 = vshll.u32 %v12552_v60, 16  ;;  %v3623_v29 = vshll.u32 %v12556_v40, 16 }
 0x1cc   : > { %v8997_v61 = vadd.f32 %v8996_v46, %v8995_v25  ;;  %v9061_v48 = vadd.f32 %v9060_v11, %v9059_v19  ;;  %v8998_v53 = vpop.f32.mrb[98].mxu0  ;;  %v9062_v14 = vpop.f32.mrb[98].mxu1  ;;  %v3602_v31 = vor.u32 %v3601_v28, %v3597_v56  ;;  %v3585_v25 = vshrl.u32 %v12552_v60, 16  ;;  %v12595_v10 = vld [vmem:[%s10659_s20 + $0x80] sm:$0xff] }
 0x1cd   : > { %v8999_v59 = vpop.f32.mrb[99].mxu0  ;;  %v9063_v55 = vpop.f32.mrb[99].mxu1  ;;  %v3592_v19 = vshll.u32 %v8356_v51, 16  ;;  %v3589_v60 = vrot.slane %v3587_v18, 1  ;;  %v3625_v11 = vrot.slane %v3623_v29, 1  ;;  %v3628_v4 = vshll.u32 %v8361_v6, 16 }
 0x1ce   : > { %v12573_v43 = vadd.f32 %v8997_v61, %v12234_v35  ;;  %v12576_v12 = vadd.f32 %v9061_v48, %v12237_v57  ;;  %v9000_v62 = vadd.f32 %v8999_v59, %v8998_v53  ;;  %v9064_v22 = vadd.f32 %v9063_v55, %v9062_v14  ;;  %v12588_v57 = vld [vmem:[%s10659_s20 + $0x108] sm:$0xff]  ;;  %v12599_v61 = vld [vmem:[%s10659_s20 + $0xf0] ss:$8 sps:$4 sm:$0xff]  }
 0x1cf   : > { %6854 = vmatmul.mubr.bf16.gmra.mrb[204].mxu1 %v3102_v0  ;;  %6951 = vmatmul.mubr.bf16.gmra.mrb[204].mxu0 %v12548_v63  ;;  %v3606_v14 = vrot.slane %v3604_v2, 1  ;;  %v12592_v0 = vcombine.low %v12293_v1, %v12535_v17  ;;  %v3571_v2 = vsel %vm898_vm0, %v3566_v49, %v3570_v52  ;;  %v8295_v1 = vcombine.high %v12588_v57, %v12252_v5  ;;  %v8319_v52 = vld [vmem:[%s10659_s20 + $0x88] sm:$0x11] }
 0x1d0   : > { %v12581_v46 = vadd.f32 %v9000_v62, %v12240_v37  ;;  %v12584_v35 = vadd.f32 %v9064_v22, %v12243_v39  ;;  %6958 = vmatprep.mubr.bf16.mxu0 %v12565_v9  ;;  %7055 = vmatprep.mubr.bf16.mxu1 %v3583_v21  ;;  %v3621_v37 = vshrl.u32 %v12556_v40, 16  ;;  %v3594_v48 = vrot.slane %v3592_v19, 1 }
 0x1d1   : > { %v12606_v18 = vcombine.high %v12340_v30, %v12595_v10  ;;  %v8360_v21 = vcombine.low %v12561_v20, %v12561_v20  ;;  %v3611_v6 = vshll.u32 %v12592_v0, 16  ;;  %v3607_v22 = vsel %vm898_vm0, %v3602_v31, %v3606_v14  ;;  %v12620_v20 = vld [vmem:[%s10659_s20 + $0x98] sm:$0xff] }
 0x1d2   : > { %13822 = vst [vmem:[#allocation24_spill] sm:$0xff] %v12581_v46  ;;  %13823 = vst [vmem:[#allocation25_spill] sm:$0xff] %v12584_v35  ;;  %v9001_v39 = vpop.f32.mrb[100].mxu0  ;;  %v9065_v56 = vpop.f32.mrb[100].mxu1  ;;  %v3590_v49 = vor.u32 %v3589_v60, %v3585_v25  ;;  %v3626_v19 = vor.u32 %v3625_v11, %v3621_v37  ;;  %v3630_v35 = vrot.slane %v3628_v4, 1  ;;  %v12624_v46 = vld [vmem:[%s10659_s20 + $0x120] sm:$0xff]  ;;  %v8365_v25 = vcombine.high %v8319_v52, %v8319_v52 }
 0x1d3   : > { %v9002_v28 = vpop.f32.mrb[101].mxu0  ;;  %v9066_v51 = vpop.f32.mrb[101].mxu1  ;;  %13824 = vst [vmem:[#allocation26_spill] sm:$0xff] %v12620_v20  ;;  %v3609_v31 = vshrl.u32 %v12592_v0, 16  ;;  %v3647_v14 = vshll.u32 %v12606_v18, 16  ;;  %v3613_v37 = vrot.slane %v3611_v6, 1  ;;  %v8294_v0 = vcombine.low %v12588_v57, %v12252_v5 }
 0x1d4   : > { %v9003_v40 = vadd.f32 %v9002_v28, %v9001_v39  ;;  %v9067_v53 = vadd.f32 %v9066_v51, %v9065_v56  ;;  %v9004_v59 = vpop.f32.mrb[102].mxu0  ;;  %v9068_v55 = vpop.f32.mrb[102].mxu1  ;;  %v3616_v11 = vshll.u32 %v8360_v21, 16  ;;  %v12642_v4 = vcombine.high %v12390_v36, %v12620_v20 }
 0x1d5   : > { %v9005_v29 = vpop.f32.mrb[103].mxu0  ;;  %v9069_v62 = vpop.f32.mrb[103].mxu1  ;;  %v3645_v21 = vshrl.u32 %v12606_v18, 16  ;;  %v3649_v5 = vrot.slane %v3647_v14, 1  ;;  %v3652_v6 = vshll.u32 %v8365_v25, 16  ;;  %v12655_v18 = vcombine.low %v12390_v36, %v12620_v20  ;;  %v13829_v20 = vld [vmem:[#allocation16_spill] sm:$0xff] }
 0x1d6   : > { %v12614_v39 = vadd.f32 %v9003_v40, %v12278_v34  ;;  %v12617_v56 = vadd.f32 %v9067_v53, %v12281_v32  ;;  %v9006_v28 = vadd.f32 %v9005_v29, %v9004_v59  ;;  %v9070_v51 = vadd.f32 %v9069_v62, %v9068_v55  ;;  %v8322_v53 = vld [vmem:[%s10659_s20 + $0xa0] sm:$0x11] }
 0x1d7   : > { %6959 = vmatmul.mubr.bf16.gmra.mrb[208].mxu0 %v12599_v61  ;;  %7056 = vmatmul.mubr.bf16.vlgmr.msra.gmra.mrb[208].mxu1 %v3571_v2  ;;  %v12630_v34 = vcombine.low %v12340_v30, %v12595_v10  ;;  %v3595_v40 = vsel %vm898_vm0, %v3590_v49, %v3594_v48  ;;  %v3614_v49 = vor.u32 %v3613_v37, %v3609_v31  ;;  %v12664_v37 = vld [vmem:[%s10659_s20 + $0x138] sm:$0xff] }
 0x1d8   : > { %v12633_v32 = vadd.f32 %v9006_v28, %v12284_v24  ;;  %v12636_v60 = vadd.f32 %v9070_v51, %v12287_v27  ;;  %6966 = vmatprep.mubr.bf16.mxu0 %v8295_v1  ;;  %7063 = vmatprep.mubr.bf16.mxu1 %v3607_v22  ;;  %v8297_v24 = vcombine.high %v12624_v46, %v12302_v8  ;;  %v3618_v51 = vrot.slane %v3616_v11, 1 }
 0x1d9   : > { %v3631_v27 = vsel %vm898_vm0, %v3626_v19, %v3630_v35  ;;  %v8364_v1 = vcombine.low %v8319_v52, %v8319_v52  ;;  %v3635_v29 = vshll.u32 %v12630_v34, 16  ;;  %v3633_v35 = vshrl.u32 %v12630_v34, 16 }
 0x1da   : > { %13825 = vst [vmem:[#allocation27_spill] sm:$0xff] %v12633_v32  ;;  %13826 = vst [vmem:[#allocation28_spill] sm:$0xff] %v12636_v60  ;;  %v9007_v2 = vpop.f32.mrb[104].mxu0  ;;  %v9071_v30 = vpop.f32.mrb[104].mxu1  ;;  %v8369_v52 = vcombine.high %v8322_v53, %v8322_v53  ;;  %v3671_v19 = vshll.u32 %v12642_v4, 16  ;;  %v3650_v34 = vor.u32 %v3649_v5, %v3645_v21  ;;  %v3654_v11 = vrot.slane %v3652_v6, 1 }
 0x1db   : > { %v9008_v59 = vpop.f32.mrb[105].mxu0  ;;  %v9072_v55 = vpop.f32.mrb[105].mxu1  ;;  %v3619_v6 = vsel %vm898_vm0, %v3614_v49, %v3618_v51 }
 0x1dc   : > { %v9009_v62 = vadd.f32 %v9008_v59, %v9007_v2  ;;  %v9073_v22 = vadd.f32 %v9072_v55, %v9071_v30  ;;  %v9010_v28 = vpop.f32.mrb[106].mxu0  ;;  %v9074_v48 = vpop.f32.mrb[106].mxu1  ;;  %v3637_v30 = vrot.slane %v3635_v29, 1  ;;  %v3640_v59 = vshll.u32 %v8364_v1, 16  ;;  %v13827_v55 = vld [vmem:[#allocation14_spill] sm:$0xff] }
 0x1dd   : > { %v9011_v60 = vpop.f32.mrb[107].mxu0  ;;  %v9075_v32 = vpop.f32.mrb[107].mxu1  ;;  %v8296_v1 = vcombine.low %v12624_v46, %v12302_v8 }
 0x1de   : > { %v12658_v25 = vadd.f32 %v9009_v62, %v12325_v13  ;;  %v12661_v14 = vadd.f32 %v9073_v22, %v12328_v16  ;;  %v9012_v2 = vadd.f32 %v9011_v60, %v9010_v28  ;;  %v9076_v31 = vadd.f32 %v9075_v32, %v9074_v48  ;;  %v8325_v62 = vld [vmem:[%s10659_s20 + $0xb8] sm:$0x11] }
 0x1df   : > { %6967 = vmatmul.mubr.bf16.gmra.mrb[212].mxu0 %v8294_v0  ;;  %7064 = vmatmul.mubr.bf16.gmra.mrb[212].mxu1 %v3595_v40  ;;  %v8368_v16 = vcombine.low %v8322_v53, %v8322_v53  ;;  %v3669_v32 = vshrl.u32 %v12642_v4, 16  ;;  %v3673_v60 = vrot.slane %v3671_v19, 1  ;;  %v3676_v0 = vshll.u32 %v8369_v52, 16 }
 0x1e0   : > { %v12667_v36 = vadd.f32 %v9012_v2, %v13827_v55  ;;  %v12670_v13 = vadd.f32 %v9076_v31, %v13829_v20  ;;  %6974 = vmatprep.mubr.bf16.mxu0 %v8297_v24  ;;  %7071 = vmatprep.mubr.bf16.mxu1 %v3631_v27  ;;  %v3659_v40 = vshll.u32 %v12655_v18, 16  ;;  %v8299_v20 = vcombine.high %v12664_v37, %v12349_v3 }
 0x1e1   : > { %v3655_v53 = vsel %vm898_vm0, %v3650_v34, %v3654_v11  ;;  %v3638_v4 = vor.u32 %v3637_v30, %v3633_v35  ;;  %v3642_v29 = vrot.slane %v3640_v59, 1  ;;  %v3657_v22 = vshrl.u32 %v12655_v18, 16  ;;  %v12690_v30 = vld [vmem:[%s10659_s20 + $0x150] sm:$0xff] }
 0x1e2   : > { %13828 = vst [vmem:[#allocation14_spill] sm:$0xff] %v12667_v36  ;;  %13830 = vst [vmem:[#allocation16_spill] sm:$0xff] %v12670_v13  ;;  %v9013_v21 = vpop.f32.mrb[108].mxu0  ;;  %v9077_v5 = vpop.f32.mrb[108].mxu1  ;;  %v3664_v2 = vshll.u32 %v8368_v16, 16  ;;  %v8373_v8 = vcombine.high %v8325_v62, %v8325_v62  ;;  %v3674_v51 = vor.u32 %v3673_v60, %v3669_v32  ;;  %v3678_v55 = vrot.slane %v3676_v0, 1 }
 0x1e3   : > { %v9014_v24 = vpop.f32.mrb[109].mxu0  ;;  %v9078_v27 = vpop.f32.mrb[109].mxu1  ;;  %v3661_v13 = vrot.slane %v3659_v40, 1  ;;  %v3695_v36 = vshll.u32 %v12455_v45, 16  ;;  %v3683_v59 = vshll.u32 %v12483_v23, 16  ;;  %v13831_v16 = vld [vmem:[#allocation18_spill] sm:$0xff]  ;;  %v8372_v40 = vcombine.low %v8325_v62, %v8325_v62 }
 0x1e4   : > { %v9015_v28 = vadd.f32 %v9014_v24, %v9013_v21  ;;  %v9079_v48 = vadd.f32 %v9078_v27, %v9077_v5  ;;  %v9016_v52 = vpop.f32.mrb[110].mxu0  ;;  %v9080_v19 = vpop.f32.mrb[110].mxu1  ;;  %v13832_v60 = vld [vmem:[#allocation15_spill] sm:$0xff]  ;;  %v8298_v21 = vcombine.low %v12664_v37, %v12349_v3  ;;  %v3643_v5 = vsel %vm898_vm0, %v3638_v4, %v3642_v29 }
 0x1e5   : > { %v9017_v31 = vpop.f32.mrb[111].mxu0  ;;  %v9081_v49 = vpop.f32.mrb[111].mxu1  ;;  %v3685_v3 = vrot.slane %v3683_v59, 1 }
 0x1e6   : > { %v12684_v35 = vadd.f32 %v9015_v28, %v12375_v47  ;;  %v12687_v18 = vadd.f32 %v9079_v48, %v12378_v7  ;;  %v9018_v34 = vadd.f32 %v9017_v31, %v9016_v52  ;;  %v9082_v11 = vadd.f32 %v9081_v49, %v9080_v19  ;;  %v8328_v7 = vld [vmem:[%s10659_s20 + $0xd0] sm:$0x11] }
 0x1e7   : > { %6975 = vmatmul.mubr.bf16.gmra.mrb[216].mxu0 %v8296_v1  ;;  %7072 = vmatmul.mubr.bf16.gmra.mrb[216].mxu1 %v3619_v6  ;;  %v3700_v47 = vshll.u32 %v8373_v8, 16  ;;  %v3693_v1 = vshrl.u32 %v12455_v45, 16  ;;  %v3697_v6 = vrot.slane %v3695_v36, 1  ;;  %v8301_v28 = vcombine.high %v12690_v30, %v12399_v26 }
 0x1e8   : > { %v12694_v32 = vadd.f32 %v9018_v34, %v13831_v16  ;;  %v12697_v0 = vadd.f32 %v9082_v11, %v13832_v60  ;;  %6982 = vmatprep.mubr.bf16.mxu0 %v8299_v20  ;;  %7079 = vmatprep.mubr.bf16.mxu1 %v3655_v53  ;;  %v3679_v48 = vsel %vm898_vm0, %v3674_v51, %v3678_v55  ;;  %v3666_v53 = vrot.slane %v3664_v2, 1  ;;  %v8331_v55 = vld [vmem:[%s10659_s20 + $0xe8] sm:$0x11] }
 0x1e9   : > { %v3662_v20 = vor.u32 %v3661_v13, %v3657_v22  ;;  %v3681_v19 = vshrl.u32 %v12483_v23, 16  ;;  %v8377_v8 = vcombine.high %v8328_v7, %v8328_v7  ;;  %v8376_v4 = vcombine.low %v8328_v7, %v8328_v7  ;;  %v12723_v7 = vld [vmem:[%s10659_s20 + $0x168] sm:$0xff] }
 0x1ea   : > { %v9083_v24 = vpop.f32.mrb[112].mxu1  ;;  %v9147_v27 = vpop.f32.mrb[112].mxu0  ;;  %v3702_v49 = vrot.slane %v3700_v47, 1  ;;  %v12708_v34 = vshll.u32 %v8372_v40, 16  ;;  %v8300_v13 = vcombine.low %v12690_v30, %v12399_v26  ;;  %v3698_v22 = vor.u32 %v3697_v6, %v3693_v1 }
 0x1eb   : > { %v9084_v52 = vpop.f32.mrb[113].mxu1  ;;  %v9148_v62 = vpop.f32.mrb[113].mxu0  ;;  %v3719_v23 = vshll.u32 %v12486_v15, 16  ;;  %v3707_v2 = vshll.u32 %v12513_v50, 16  ;;  %v3667_v40 = vsel %vm898_vm0, %v3662_v20, %v3666_v53  ;;  %v3717_v26 = vshrl.u32 %v12486_v15, 16 }
 0x1ec   : > { %v9085_v29 = vadd.f32 %v9084_v52, %v9083_v24  ;;  %v9149_v45 = vadd.f32 %v9148_v62, %v9147_v27  ;;  %v9086_v36 = vpop.f32.mrb[114].mxu1  ;;  %v9150_v31 = vpop.f32.mrb[114].mxu0  ;;  %v3724_v1 = vshll.u32 %v8377_v8, 16  ;;  %v3712_v6 = vshll.u32 %v8376_v4, 16 }
 0x1ed   : > { %v9087_v11 = vpop.f32.mrb[115].mxu1  ;;  %v9151_v51 = vpop.f32.mrb[115].mxu0  ;;  %v3705_v20 = vshrl.u32 %v12513_v50, 16  ;;  %v3709_v53 = vrot.slane %v3707_v2, 1  ;;  %v3731_v52 = vshll.u32 %v12548_v63, 16  ;;  %v3703_v8 = vsel %vm898_vm0, %v3698_v22, %v3702_v49 }
 0x1ee   : > { %v12716_v59 = vadd.f32 %v9085_v29, %v12425_v41  ;;  %v12719_v16 = vadd.f32 %v9149_v45, %v12428_v33  ;;  %v9088_v60 = vadd.f32 %v9087_v11, %v9086_v36  ;;  %v9152_v47 = vadd.f32 %v9151_v51, %v9150_v31  ;;  %v13833_v41 = vld [vmem:[#allocation19_spill] sm:$0xff] }
 0x1ef   : > { %6983 = vmatmul.mubr.bf16.gmra.mrb[220].mxu0 %v8298_v21  ;;  %7080 = vmatmul.mubr.bf16.gmra.mrb[220].mxu1 %v3643_v5  ;;  %v8381_v33 = vcombine.high %v8331_v55, %v8331_v55  ;;  %v3743_v21 = vshll.u32 %v12524_v44, 16  ;;  %v3721_v5 = vrot.slane %v3719_v23, 1  ;;  %v3686_v4 = vor.u32 %v3685_v3, %v3681_v19 }
 0x1f0   : > { %v12727_v24 = vadd.f32 %v9088_v60, %v12434_v38  ;;  %v12730_v27 = vadd.f32 %v9152_v47, %v13833_v41  ;;  %6990 = vmatprep.mubr.bf16.mxu0 %v8301_v28  ;;  %7087 = vmatprep.mubr.bf16.mxu1 %v3679_v48  ;;  %v8303_v38 = vcombine.high %v12723_v7, %v12444_v58  ;;  %v3690_v28 = vrot.slane %v12708_v34, 1  ;;  %v8334_v41 = vld [vmem:[%s10659_s20 + $0x100] sm:$0x11] }
 0x1f1   : > { %v3726_v45 = vrot.slane %v3724_v1, 1  ;;  %v3714_v36 = vrot.slane %v3712_v6, 1  ;;  %v3741_v50 = vshrl.u32 %v12524_v44, 16  ;;  %v8380_v31 = vcombine.low %v8331_v55, %v8331_v55 }
 0x1f2   : > { %v9089_v15 = vpop.f32.mrb[116].mxu1  ;;  %v9153_v62 = vpop.f32.mrb[116].mxu0  ;;  %v3745_v60 = vrot.slane %v3743_v21, 1  ;;  %v12740_v47 = vshll.u32 %v8381_v33, 16  ;;  %v3722_v3 = vor.u32 %v3721_v5, %v3717_v26  ;;  %v3710_v34 = vor.u32 %v3709_v53, %v3705_v20  ;;  %v12751_v21 = vld [vmem:[%s11327_s11] sm:$0xff] }
 0x1f3   : > { %v9090_v48 = vpop.f32.mrb[117].mxu1  ;;  %v9154_v29 = vpop.f32.mrb[117].mxu0  ;;  %v3729_v22 = vshrl.u32 %v12548_v63, 16  ;;  %v3733_v1 = vrot.slane %v3731_v52, 1  ;;  %v8302_v26 = vcombine.low %v12723_v7, %v12444_v58  ;;  %v12755_v33 = vshll.u32 %v8380_v31, 16  ;;  %v13836_v63 = vld [vmem:[#allocation20_spill] sm:$0xff] }
 0x1f4   : > { %v9091_v11 = vadd.f32 %v9090_v48, %v9089_v15  ;;  %v9155_v51 = vadd.f32 %v9154_v29, %v9153_v62  ;;  %v9092_v23 = vpop.f32.mrb[118].mxu1  ;;  %v9156_v2 = vpop.f32.mrb[118].mxu0  ;;  %v3767_v53 = vshll.u32 %v12565_v9, 16  ;;  %v3727_v52 = vsel %vm898_vm0, %v3722_v3, %v3726_v45  ;;  %v8414_v48 = vld [vmem:[%s10659_s20 + $0x30] sm:$0xee] }
 0x1f5   : > { %v9093_v49 = vpop.f32.mrb[119].mxu1  ;;  %v9157_v19 = vpop.f32.mrb[119].mxu0  ;;  %v3738_v45 = vrot.slane %v12755_v33, 1  ;;  %v3755_v3 = vshll.u32 %v12599_v61, 16  ;;  %v8337_v33 = vld [vmem:[%s10659_s20 + $0x118] sm:$0x11] }
 0x1f6   : > { %v12745_v6 = vadd.f32 %v9091_v11, %v12460_v54  ;;  %v12748_v44 = vadd.f32 %v9155_v51, %v12463_v42  ;;  %v9094_v55 = vadd.f32 %v9093_v49, %v9092_v23  ;;  %v9158_v15 = vadd.f32 %v9157_v19, %v9156_v2  ;;  %v13838_v54 = vld [vmem:[#allocation17_spill] sm:$0xff]  ;;  %v8416_v23 = vld [vmem:[%s10659_s20 + $0x40] sm:$0x11] }
 0x1f7   : > { %6991 = vmatmul.mubr.bf16.gmra.mrb[224].mxu0 %v8300_v13  ;;  %7088 = vmatmul.mubr.bf16.gmra.mrb[224].mxu1 %v3667_v40  ;;  %v8385_v42 = vcombine.high %v8334_v41, %v8334_v41  ;;  %v3691_v13 = vsel %vm898_vm0, %v3686_v4, %v3690_v28  ;;  %v13840_v40 = vld [vmem:[#allocation6_spill] sm:$0xff]  ;;  %v3750_v11 = vrot.slane %v12740_v47, 1  ;;  %v3734_v51 = vor.u32 %v3733_v1, %v3729_v22  ;;  %v12777_v4 = vld [vmem:[%s10659_s20 + $0x110] sm:$0xff] }
 0x1f8   : > { %13834 = vst [vmem:[#allocation18_spill] sm:$0xff] %v12745_v6  ;;  %13835 = vst [vmem:[#allocation15_spill] sm:$0xff] %v12748_v44  ;;  %v12758_v5 = vadd.f32 %v9094_v55, %v13836_v63  ;;  %v12761_v20 = vadd.f32 %v9158_v15, %v13838_v54  ;;  %6998 = vmatprep.mubr.bf16.mxu0 %v8303_v38  ;;  %7095 = vmatprep.mubr.bf16.mxu1 %v3703_v8  ;;  %v3765_v49 = vshrl.u32 %v12565_v9, 16  ;;  %v13842_v15 = vld [vmem:[#allocation21_spill] sm:$0xff] }
 0x1f9   : > { %v8305_v58 = vcombine.high %v12751_v21, %v13840_v40  ;;  %v12772_v38 = vsel %vm898_vm0, %v3710_v34, %v3714_v36  ;;  %v3746_v8 = vor.u32 %v3745_v60, %v3741_v50  ;;  %13841 = vst [vmem:[#allocation17_spill] sm:$0xff] %v12777_v4  ;;  %v8384_v19 = vcombine.low %v8334_v41, %v8334_v41  ;;  %v13843_v41 = vld [vmem:[#allocation7_spill] sm:$0xff]  ;;  %v13847_v6 = vld [vmem:[#allocation9_spill] sm:$0xff] }
 0x1fa   : > { %13837 = vst [vmem:[#allocation19_spill] sm:$0xff] %v12758_v5  ;;  %13839 = vst [vmem:[#allocation20_spill] sm:$0xff] %v12761_v20  ;;  %v9095_v29 = vpop.f32.mrb[120].mxu1  ;;  %v9159_v31 = vpop.f32.mrb[120].mxu0  ;;  %v3769_v60 = vrot.slane %v3767_v53, 1  ;;  %v12782_v47 = vshll.u32 %v8385_v42, 16  ;;  %v8456_v63 = vcombine.low %v8414_v48, %v13842_v15  ;;  %v8457_v54 = vcombine.high %v8414_v48, %v13842_v15 }
 0x1fb   : > { %v9096_v28 = vpop.f32.mrb[121].mxu1  ;;  %v9160_v2 = vpop.f32.mrb[121].mxu0  ;;  %v8458_v62 = vcombine.low %v8416_v23, %v8416_v23  ;;  %v12789_v9 = vcombine.high %v12588_v57, %v12777_v4  ;;  %v8459_v48 = vcombine.high %v8416_v23, %v8416_v23  ;;  %v3753_v15 = vshrl.u32 %v12599_v61, 16  ;;  %v13845_v5 = vld [vmem:[#allocation8_spill] sm:$0xff] }
 0x1fc   : > { %v9097_v55 = vadd.f32 %v9096_v28, %v9095_v29  ;;  %v9161_v36 = vadd.f32 %v9160_v2, %v9159_v31  ;;  %v9098_v34 = vpop.f32.mrb[122].mxu1  ;;  %v9162_v50 = vpop.f32.mrb[122].mxu0  ;;  %v13844_v31 = vld [vmem:[#allocation22_spill] sm:$0xff]  ;;  %v3751_v2 = vsel %vm898_vm0, %v3746_v8, %v3750_v11  ;;  %v3757_v20 = vrot.slane %v3755_v3, 1  ;;  %v8419_v3 = vld [vmem:[%s10659_s20 + $0x58] sm:$0x11] }
 0x1fd   : > { %v9099_v22 = vpop.f32.mrb[123].mxu1  ;;  %v9163_v1 = vpop.f32.mrb[123].mxu0  ;;  %v4267_v8 = vrot.slane %v8457_v54, 1  ;;  %v3791_v61 = vshll.u32 %v12789_v9, 16  ;;  %v12815_v23 = vsel %vm898_vm0, %v3734_v51, %v3738_v45 }
 0x1fe   : > { %v12792_v29 = vadd.f32 %v9097_v55, %v13843_v41  ;;  %v12795_v53 = vadd.f32 %v9161_v36, %v13844_v31  ;;  %v9100_v42 = vadd.f32 %v9099_v22, %v9098_v34  ;;  %v9164_v28 = vadd.f32 %v9163_v1, %v9162_v50  ;;  %v13849_v41 = vld [vmem:[#allocation23_spill] sm:$0xff] }
 0x1ff   : > { %6999 = vmatmul.mubr.bf16.gmra.mrb[228].mxu0 %v8302_v26  ;;  %7096 = vmatmul.mubr.bf16.gmra.mrb[228].mxu1 %v3691_v13  ;;  %v3760_v36 = vshll.u32 %v8384_v19, 16  ;;  %v8389_v34 = vcombine.high %v8337_v33, %v8337_v33  ;;  %v12806_v26 = vld [vmem:[%s10659_s20 + $0x48] sm:$0xee]  ;;  %v3774_v13 = vrot.slane %v12782_v47, 1  ;;  %v4265_v19 = vrot.slane %v8458_v62, 1 }
 0x200   : > { %v12800_v44 = vadd.f32 %v9100_v42, %v13845_v5  ;;  %v12803_v55 = vadd.f32 %v9164_v28, %v13847_v6  ;;  %7006 = vmatprep.mubr.bf16.mxu0 %v8305_v58  ;;  %7103 = vmatprep.mubr.bf16.mxu1 %v3727_v52  ;;  %v12812_v5 = vcombine.low %v12588_v57, %v12777_v4  ;;  %v4264_v52 = vrot.slane %v8456_v63, 1  ;;  %v12819_v47 = vld [vmem:[%s12222_s30 + $0x4] ss:$8 sps:$4 sm:$0xff]  }
 0x201   : > { %v3770_v58 = vor.u32 %v3769_v60, %v3765_v49  ;;  %v4268_v1 = vrot.slane %v8459_v48, 1  ;;  %v3758_v54 = vor.u32 %v3757_v20, %v3753_v15  ;;  %v8461_v57 = vcombine.high %v12806_v26, %v13849_v41  ;;  %v12826_v62 = vld [vmem:[%s10659_s20 + $0x128] sm:$0xff] }
 0x202   : > { %13846 = vst [vmem:[#allocation6_spill] sm:$0xff] %v12800_v44  ;;  %13848 = vst [vmem:[#allocation21_spill] sm:$0xff] %v12803_v55  ;;  %v9101_v11 = vpop.f32.mrb[124].mxu1  ;;  %v9165_v6 = vpop.f32.mrb[124].mxu0  ;;  %v8388_v31 = vcombine.low %v8337_v33, %v8337_v33  ;;  %v3762_v49 = vrot.slane %v3760_v36, 1  ;;  %v12823_v60 = vshll.u32 %v8389_v34, 16  ;;  %v8463_v20 = vcombine.high %v8419_v3, %v8419_v3 }
 0x203   : > { %v9102_v50 = vpop.f32.mrb[125].mxu1  ;;  %v9166_v22 = vpop.f32.mrb[125].mxu0  ;;  %13850 = vst [vmem:[#allocation7_spill] sm:$0xff] %v12826_v62  ;;  %v3789_v55 = vshrl.u32 %v12789_v9, 16  ;;  %v3793_v48 = vrot.slane %v3791_v61, 1  ;;  %v3779_v15 = vshll.u32 %v12812_v5, 16 }
 0x204   : > { %v9103_v42 = vadd.f32 %v9102_v50, %v9101_v11  ;;  %v9167_v28 = vadd.f32 %v9166_v22, %v9165_v6  ;;  %v9104_v51 = vpop.f32.mrb[126].mxu1  ;;  %v9168_v45 = vpop.f32.mrb[126].mxu0  ;;  %v13851_v44 = vld [vmem:[#allocation10_spill] sm:$0xff]  ;;  %v13853_v11 = vld [vmem:[#allocation11_spill] sm:$0xff]  ;;  %v12837_v34 = vld [vmem:[%s10659_s20 + $0x130] sm:$0x11]  ;;  %v13855_v22 = vcombine.low %v12751_v21, %v13840_v40 }
 0x205   : > { %v9105_v63 = vpop.f32.mrb[127].mxu1  ;;  %v9169_v4 = vpop.f32.mrb[127].mxu0  ;;  %v12843_v9 = vrot.slane %v8461_v57, 1  ;;  %v12845_v61 = vshll.u32 %v8388_v31, 16  ;;  %v8462_v57 = vcombine.low %v8419_v3, %v8419_v3  ;;  %v3781_v31 = vrot.slane %v3779_v15, 1 }
 0x206   : > { %v12831_v33 = vadd.f32 %v9103_v42, %v13851_v44  ;;  %v12834_v6 = vadd.f32 %v9167_v28, %v13853_v11  ;;  %v9106_v50 = vadd.f32 %v9105_v63, %v9104_v51  ;;  %v9170_v36 = vadd.f32 %v9169_v4, %v9168_v45  ;;  %v13856_v4 = vld [vmem:[#allocation12_spill] sm:$0xff]  ;;  %v13858_v51 = vld [vmem:[#allocation13_spill] sm:$0xff]  ;;  %v12873_v3 = vld [vmem:[%s10659_s20 + $0x60] sm:$0xee] }
 0x207   : > { %7007 = vmatmul.mubr.bf16.gmra.mrb[232].mxu0 %v13855_v22  ;;  %7104 = vmatmul.mubr.bf16.gmra.mrb[232].mxu1 %v12772_v38  ;;  %v8460_v44 = vcombine.low %v12806_v26, %v13849_v41  ;;  %v12851_v42 = vcombine.high %v12624_v46, %v12826_v62  ;;  %v3798_v38 = vrot.slane %v12823_v60, 1  ;;  %v4274_v26 = vrot.slane %v8463_v20, 1  ;;  %v12879_v15 = vld [vmem:[%s12222_s30] ss:$8 sps:$4 sm:$0xff]  }
 0x208   : > { %13852 = vst [vmem:[#allocation22_spill] sm:$0xff] %v12831_v33  ;;  %13854 = vst [vmem:[#allocation8_spill] sm:$0xff] %v12834_v6  ;;  %v12854_v28 = vadd.f32 %v9106_v50, %v13856_v4  ;;  %v12857_v40 = vadd.f32 %v9170_v36, %v13858_v51  ;;  %7014 = vmatprep.mubr.bf16.mxu0 %v12819_v47  ;;  %7111 = vmatprep.mubr.bf16.mxu1 %v3751_v2  ;;  %v3777_v41 = vshrl.u32 %v12812_v5, 16  ;;  %v12876_v5 = vld [vmem:[%s10659_s20 + $0x70] sm:$0x11] }
 0x209   : > { %v8393_v45 = vcombine.high %v12837_v34, %v12837_v34  ;;  %v3775_v50 = vsel %vm898_vm0, %v3770_v58, %v3774_v13  ;;  %v4269_v36 = vsel %vm1603_vm1, %v4267_v8, %v4268_v1  ;;  %v12867_v22 = vsel %vm898_vm0, %v3758_v54, %v3762_v49 }
 0x20a   : > { %13857 = vst [vmem:[#allocation9_spill] sm:$0xff] %v12854_v28  ;;  %13859 = vst [vmem:[#allocation23_spill] sm:$0xff] %v12857_v40  ;;  %v9107_v63 = vpop.f32.mrb[128].mxu1  ;;  %v9171_v11 = vpop.f32.mrb[128].mxu0  ;;  %v12870_v2 = vsel %vm1603_vm1, %v4264_v52, %v4265_v19  ;;  %v3794_v4 = vor.u32 %v3793_v48, %v3789_v55  ;;  %v3786_v13 = vrot.slane %v12845_v61, 1  ;;  %v3815_v8 = vshll.u32 %v12851_v42, 16 }
 0x20b   : > { %v9108_v60 = vpop.f32.mrb[129].mxu1  ;;  %v9172_v20 = vpop.f32.mrb[129].mxu0  ;;  %v12885_v58 = vcombine.low %v12624_v46, %v12826_v62  ;;  %v4270_v49 = vrot.slane %v8460_v44, 1  ;;  %v4271_v51 = vrot.slane %v8462_v57, 1  ;;  %v12888_v40 = vld [vmem:[%s10659_s20 + $0x140] sm:$0xff]  ;;  %v3782_v33 = vor.u32 %v3781_v31, %v3777_v41 }
 0x20c   : > { %v9109_v52 = vadd.f32 %v9108_v60, %v9107_v63  ;;  %v9173_v19 = vadd.f32 %v9172_v20, %v9171_v11  ;;  %v9110_v1 = vpop.f32.mrb[130].mxu1  ;;  %v9174_v54 = vpop.f32.mrb[130].mxu0  ;;  %13860 = vst [vmem:[#allocation10_spill] sm:$0xff] %v12888_v40  ;;  %v12890_v55 = vshll.u32 %v8393_v45, 16  ;;  %v8465_v48 = vcombine.high %v12873_v3, %v12535_v17 }
 0x20d   : > { %v9111_v28 = vpop.f32.mrb[131].mxu1  ;;  %v9175_v6 = vpop.f32.mrb[131].mxu0  ;;  %v8467_v46 = vcombine.high %v12876_v5, %v12876_v5  ;;  %v3813_v41 = vshrl.u32 %v12851_v42, 16  ;;  %v3817_v31 = vrot.slane %v3815_v8, 1  ;;  %v3803_v45 = vshll.u32 %v12885_v58, 16 }
 0x20e   : > { %v12897_v61 = vadd.f32 %v9109_v52, %v12573_v43  ;;  %v12900_v44 = vadd.f32 %v9173_v19, %v12576_v12  ;;  %v9112_v57 = vadd.f32 %v9111_v28, %v9110_v1  ;;  %v9176_v63 = vadd.f32 %v9175_v6, %v9174_v54  ;;  %v13861_v43 = vld [vmem:[#allocation24_spill] sm:$0xff]  ;;  %v13862_v12 = vld [vmem:[#allocation25_spill] sm:$0xff]  ;;  %v12919_v6 = vld [vmem:[%s10659_s20 + $0x148] sm:$0x11] }
 0x20f   : > { %7015 = vmatmul.mubr.bf16.gmra.mrb[236].mxu0 %v12879_v15  ;;  %7112 = vmatmul.mubr.bf16.gmra.mrb[236].mxu1 %v12815_v23  ;;  %v12908_v11 = vcombine.high %v12664_v37, %v12888_v40  ;;  %v8392_v23 = vcombine.low %v12837_v34, %v12837_v34  ;;  %v3822_v42 = vrot.slane %v12890_v55, 1  ;;  %v4279_v20 = vrot.slane %v8465_v48, 1  ;;  %v12936_v55 = vld [vmem:[%s10659_s20 + $0x88] sm:$0x11] }
 0x210   : > { %v12911_v60 = vadd.f32 %v9112_v57, %v13861_v43  ;;  %v12914_v28 = vadd.f32 %v9176_v63, %v13862_v12  ;;  %7119 = vmatprep.mubr.bf16.mxu1 %v3775_v50  ;;  %7216 = vmatprep.mubr.bf16.mxu0 %v4269_v36  ;;  %v4280_v8 = vrot.slane %v8467_v46, 1  ;;  %v3801_v52 = vshrl.u32 %v12885_v58, 16  ;;  %v12933_v36 = vld [vmem:[%s10659_s20 + $0x78] sm:$0xee] }
 0x211   : > { %v3799_v54 = vsel %vm898_vm0, %v3794_v4, %v3798_v38  ;;  %v4275_v57 = vsel %vm1603_vm1, %v12843_v9, %v4274_v26  ;;  %v12927_v50 = vsel %vm898_vm0, %v3782_v33, %v3786_v13  ;;  %v12930_v34 = vsel %vm1603_vm1, %v4270_v49, %v4271_v51 }
 0x212   : > { %v9113_v19 = vpop.f32.mrb[132].mxu1  ;;  %v9177_v1 = vpop.f32.mrb[132].mxu0  ;;  %v3818_v58 = vor.u32 %v3817_v31, %v3813_v41  ;;  %v3805_v63 = vrot.slane %v3803_v45, 1  ;;  %v8397_v38 = vcombine.high %v12919_v6, %v12919_v6  ;;  %v3839_v4 = vshll.u32 %v12908_v11, 16 }
 0x213   : > { %v9114_v48 = vpop.f32.mrb[133].mxu1  ;;  %v9178_v46 = vpop.f32.mrb[133].mxu0  ;;  %v3808_v43 = vshll.u32 %v8392_v23, 16  ;;  %v8464_v49 = vcombine.low %v12873_v3, %v12535_v17  ;;  %v8466_v62 = vcombine.low %v12876_v5, %v12876_v5  ;;  %v8469_v41 = vcombine.high %v12933_v36, %v12595_v10 }
 0x214   : > { %v9115_v9 = vadd.f32 %v9114_v48, %v9113_v19  ;;  %v9179_v26 = vadd.f32 %v9178_v46, %v9177_v1  ;;  %v9116_v33 = vpop.f32.mrb[134].mxu1  ;;  %v9180_v13 = vpop.f32.mrb[134].mxu0  ;;  %v8471_v31 = vcombine.high %v12936_v55, %v12936_v55  ;;  %v12951_v45 = vcombine.low %v12664_v37, %v12888_v40  ;;  %v13863_v46 = vld [vmem:[#allocation27_spill] sm:$0xff] }
 0x215   : > { %v9117_v51 = vpop.f32.mrb[135].mxu1  ;;  %v9181_v12 = vpop.f32.mrb[135].mxu0  ;;  %v4281_v5 = vsel %vm1603_vm1, %v4279_v20, %v4280_v8  ;;  %v3837_v1 = vshrl.u32 %v12908_v11, 16  ;;  %v3841_v48 = vrot.slane %v3839_v4, 1  ;;  %v3844_v37 = vshll.u32 %v8397_v38, 16 }
 0x216   : > { %v12954_v23 = vadd.f32 %v9115_v9, %v12614_v39  ;;  %v12957_v17 = vadd.f32 %v9179_v26, %v12617_v56  ;;  %v9118_v3 = vadd.f32 %v9117_v51, %v9116_v33  ;;  %v9182_v19 = vadd.f32 %v9181_v12, %v9180_v13  ;;  %v13864_v39 = vld [vmem:[#allocation28_spill] sm:$0xff]  ;;  %v8346_v12 = vld [vmem:[%s10659_s20 + $0x160] sm:$0x11] }
 0x217   : > { %7120 = vmatmul.mubr.bf16.gmra.mrb[240].mxu1 %v12867_v22  ;;  %7217 = vmatmul.mubr.bf16.vlgmr.msra.gmra.mrb[240].mxu0 %v12870_v2  ;;  %v8396_v56 = vcombine.low %v12919_v6, %v12919_v6  ;;  %v12972_v22 = vld [vmem:[%s10659_s20 + $0x158] sm:$0xff]  ;;  %v3810_v2 = vrot.slane %v3808_v43, 1  ;;  %v4276_v20 = vrot.slane %v8464_v49, 1  ;;  %v4277_v8 = vrot.slane %v8466_v62, 1 }
 0x218   : > { %v12964_v40 = vadd.f32 %v9118_v3, %v13863_v46  ;;  %v12967_v9 = vadd.f32 %v9182_v19, %v13864_v39  ;;  %7127 = vmatprep.mubr.bf16.mxu1 %v3799_v54  ;;  %7224 = vmatprep.mubr.bf16.mxu0 %v4275_v57  ;;  %v3827_v11 = vshll.u32 %v12951_v45, 16  ;;  %v3823_v26 = vsel %vm898_vm0, %v3818_v58, %v3822_v42 }
 0x219   : > { %v3806_v33 = vor.u32 %v3805_v63, %v3801_v52  ;;  %v4285_v13 = vrot.slane %v8469_v41, 1  ;;  %v4286_v51 = vrot.slane %v8471_v31, 1  ;;  %v3842_v3 = vor.u32 %v3841_v48, %v3837_v1 }
 0x21a   : > { %13865 = vst [vmem:[#allocation11_spill] sm:$0xff] %v12967_v9  ;;  %v9119_v38 = vpop.f32.mrb[136].mxu1  ;;  %v9183_v4 = vpop.f32.mrb[136].mxu0  ;;  %v3846_v19 = vrot.slane %v3844_v37, 1  ;;  %v3825_v6 = vshrl.u32 %v12951_v45, 16  ;;  %v12980_v43 = vcombine.high %v12690_v30, %v12972_v22  ;;  %v12982_v9 = vshll.u32 %v8396_v56, 16 }
 0x21b   : > { %v9120_v54 = vpop.f32.mrb[137].mxu1  ;;  %v9184_v57 = vpop.f32.mrb[137].mxu0  ;;  %v12986_v42 = vcombine.low %v12690_v30, %v12972_v22  ;;  %v3829_v63 = vrot.slane %v3827_v11, 1  ;;  %v8468_v41 = vcombine.low %v12933_v36, %v12595_v10  ;;  %v8470_v31 = vcombine.low %v12936_v55, %v12936_v55  ;;  %v13866_v56 = vld [vmem:[#allocation14_spill] sm:$0xff] }
 0x21c   : > { %v9121_v62 = vadd.f32 %v9120_v54, %v9119_v38  ;;  %v9185_v49 = vadd.f32 %v9184_v57, %v9183_v4  ;;  %v9122_v46 = vpop.f32.mrb[138].mxu1  ;;  %v9186_v39 = vpop.f32.mrb[138].mxu0  ;;  %v8401_v45 = vcombine.high %v8346_v12, %v8346_v12  ;;  %v3811_v10 = vsel %vm898_vm0, %v3806_v33, %v3810_v2  ;;  %v8426_v4 = vld [vmem:[%s10659_s20 + $0x90] sm:$0xee] }
 0x21d   : > { %v9123_v52 = vpop.f32.mrb[139].mxu1  ;;  %v9187_v58 = vpop.f32.mrb[139].mxu0  ;;  %v4278_v36 = vsel %vm1603_vm1, %v4276_v20, %v4277_v8  ;;  %v3863_v55 = vshll.u32 %v12980_v43, 16  ;;  %v3847_v2 = vsel %vm898_vm0, %v3842_v3, %v3846_v19  ;;  %v4287_v20 = vsel %vm1603_vm1, %v4285_v13, %v4286_v51  ;;  %v13868_v19 = vld [vmem:[#allocation26_spill] sm:$0xff] }
 0x21e   : > { %v12993_v1 = vadd.f32 %v9121_v62, %v12658_v25  ;;  %v12996_v48 = vadd.f32 %v9185_v49, %v12661_v14  ;;  %v9124_v30 = vadd.f32 %v9123_v52, %v9122_v46  ;;  %v9188_v37 = vadd.f32 %v9187_v58, %v9186_v39  ;;  %v13867_v25 = vld [vmem:[#allocation16_spill] sm:$0xff] }
 0x21f   : > { %7128 = vmatmul.mubr.bf16.gmra.mrb[244].mxu1 %v12927_v50  ;;  %7225 = vmatmul.mubr.bf16.gmra.mrb[244].mxu0 %v12930_v34  ;;  %v8400_v14 = vcombine.low %v8346_v12, %v8346_v12  ;;  %v3851_v50 = vshll.u32 %v12986_v42, 16  ;;  %v8428_v34 = vld [vmem:[%s10659_s20 + $0xa0] sm:$0x11]  ;;  %v3834_v8 = vrot.slane %v12982_v9, 1  ;;  %v3868_v33 = vshll.u32 %v8401_v45, 16 }
 0x220   : > { %v13004_v11 = vadd.f32 %v9124_v30, %v13866_v56  ;;  %v13007_v38 = vadd.f32 %v9188_v37, %v13867_v25  ;;  %7135 = vmatprep.mubr.bf16.mxu1 %v3823_v26  ;;  %7232 = vmatprep.mubr.bf16.mxu0 %v4281_v5  ;;  %v3830_v62 = vor.u32 %v3829_v63, %v3825_v6  ;;  %v4282_v49 = vrot.slane %v8468_v41, 1  ;;  %v13017_v5 = vld [vmem:[%s10659_s20 + $0x170] sm:$0xff]  ;;  %v8349_v25 = vld [vmem:[%s10659_s20 + $0x178] sm:$0x11] }
 0x221   : > { %v4283_v46 = vrot.slane %v8470_v31, 1  ;;  %v3849_v26 = vshrl.u32 %v12986_v42, 16  ;;  %v3861_v52 = vshrl.u32 %v12980_v43, 16  ;;  %v3865_v3 = vrot.slane %v3863_v55, 1 }
 0x222   : > { %v9125_v54 = vpop.f32.mrb[140].mxu1  ;;  %v9189_v57 = vpop.f32.mrb[140].mxu0  ;;  %v8473_v13 = vcombine.high %v8426_v4, %v13868_v19  ;;  %v8475_v51 = vcombine.high %v8428_v34, %v8428_v34  ;;  %v3853_v6 = vrot.slane %v3851_v50, 1  ;;  %v13021_v63 = vshll.u32 %v8400_v14, 16 }
 0x223   : > { %v9126_v12 = vpop.f32.mrb[141].mxu1  ;;  %v9190_v39 = vpop.f32.mrb[141].mxu0  ;;  %v3870_v31 = vrot.slane %v3868_v33, 1  ;;  %v8472_v37 = vcombine.low %v8426_v4, %v13868_v19  ;;  %v8474_v56 = vcombine.low %v8428_v34, %v8428_v34  ;;  %v13027_v43 = vcombine.high %v12723_v7, %v13017_v5 }
 0x224   : > { %v9127_v9 = vadd.f32 %v9126_v12, %v9125_v54  ;;  %v9191_v58 = vadd.f32 %v9190_v39, %v9189_v57  ;;  %v9128_v45 = vpop.f32.mrb[142].mxu1  ;;  %v9192_v30 = vpop.f32.mrb[142].mxu0  ;;  %v3866_v33 = vor.u32 %v3865_v3, %v3861_v52  ;;  %v4291_v57 = vrot.slane %v8473_v13, 1  ;;  %v13048_v52 = vld [vmem:[%s11327_s11 + $0x8] sm:$0xff] }
 0x225   : > { %v9129_v41 = vpop.f32.mrb[143].mxu1  ;;  %v9193_v42 = vpop.f32.mrb[143].mxu0  ;;  %v4292_v4 = vrot.slane %v8475_v51, 1  ;;  %v13037_v34 = vcombine.low %v12723_v7, %v13017_v5  ;;  %v3887_v39 = vshll.u32 %v13027_v43, 16  ;;  %v3835_v19 = vsel %vm898_vm0, %v3830_v62, %v3834_v8 }
 0x226   : > { %v13030_v55 = vadd.f32 %v9127_v9, %v12684_v35  ;;  %v13033_v54 = vadd.f32 %v9191_v58, %v12687_v18  ;;  %v9130_v50 = vadd.f32 %v9129_v41, %v9128_v45  ;;  %v9194_v14 = vadd.f32 %v9193_v42, %v9192_v30  ;;  %v10383_v45 = vld [vmem:[%s10659_s20 + $0xac] ss:$8 sps:$4 sm:$0xfe]  }
 0x227   : > { %7136 = vmatmul.mubr.bf16.gmra.mrb[248].mxu1 %v3811_v10  ;;  %7233 = vmatmul.mubr.bf16.gmra.mrb[248].mxu0 %v4278_v36  ;;  %v8404_v18 = vcombine.low %v8349_v25, %v8349_v25  ;;  %v4284_v10 = vsel %vm1603_vm1, %v4282_v49, %v4283_v46  ;;  %v8405_v36 = vcombine.high %v8349_v25, %v8349_v25  ;;  %v4289_v46 = vrot.slane %v8474_v56, 1  ;;  %v13062_v42 = vld [vmem:[%s11327_s11 + $0x10] sm:$0x11] }
 0x228   : > { %v13040_v12 = vadd.f32 %v9130_v50, %v12694_v32  ;;  %v13043_v35 = vadd.f32 %v9194_v14, %v12697_v0  ;;  %7143 = vmatprep.mubr.bf16.mxu1 %v3847_v2  ;;  %7240 = vmatprep.mubr.bf16.mxu0 %v4287_v20  ;;  %v3858_v32 = vrot.slane %v13021_v63, 1  ;;  %v4288_v0 = vrot.slane %v8472_v37, 1  ;;  %v13053_v2 = vld [vmem:[%s10659_s20 + $0xb8] sm:$0x11] }
 0x229   : > { %v3854_v13 = vor.u32 %v3853_v6, %v3849_v26  ;;  %v3871_v49 = vsel %vm898_vm0, %v3866_v33, %v3870_v31  ;;  %v4293_v9 = vsel %vm1603_vm1, %v4291_v57, %v4292_v4  ;;  %v3875_v58 = vshll.u32 %v13037_v34, 16 }
 0x22a   : > { %v9195_v7 = vpop.f32.mrb[144].mxu0  ;;  %v9259_v3 = vpop.f32.mrb[144].mxu1  ;;  %v13059_v63 = vshll.u32 %v8404_v18, 16  ;;  %v13066_v26 = vcombine.high %v12751_v21, %v13048_v52  ;;  %v3885_v37 = vshrl.u32 %v13027_v43, 16  ;;  %v3889_v56 = vrot.slane %v3887_v39, 1 }
 0x22b   : > { %v9196_v20 = vpop.f32.mrb[145].mxu0  ;;  %v9260_v51 = vpop.f32.mrb[145].mxu1  ;;  %v3892_v25 = vshll.u32 %v8405_v36, 16  ;;  %v8479_v50 = vcombine.high %v13053_v2, %v13053_v2  ;;  %v3873_v18 = vshrl.u32 %v13037_v34, 16  ;;  %v8409_v36 = vcombine.high %v13062_v42, %v13062_v42 }
 0x22c   : > { %v9197_v30 = vadd.f32 %v9196_v20, %v9195_v7  ;;  %v9261_v41 = vadd.f32 %v9260_v51, %v9259_v3  ;;  %v9198_v8 = vpop.f32.mrb[146].mxu0  ;;  %v9262_v62 = vpop.f32.mrb[146].mxu1  ;;  %v3877_v7 = vrot.slane %v3875_v58, 1  ;;  %v13079_v43 = vld [vmem:[%s10659_s20 + $0xa8] ss:$8 sps:$4 sm:$0xfe]  }
 0x22d   : > { %v9199_v6 = vpop.f32.mrb[147].mxu0  ;;  %v9263_v31 = vpop.f32.mrb[147].mxu1  ;;  %v3983_v34 = vshll.u32 %v13066_v26, 16  ;;  %v3894_v3 = vrot.slane %v3892_v25, 1  ;;  %v4298_v20 = vrot.slane %v8479_v50, 1 }
 0x22e   : > { %v13072_v14 = vadd.f32 %v9197_v30, %v12716_v59  ;;  %v13075_v33 = vadd.f32 %v9261_v41, %v12719_v16  ;;  %v9200_v57 = vadd.f32 %v9199_v6, %v9198_v8  ;;  %v9264_v4 = vadd.f32 %v9263_v31, %v9262_v62  ;;  %v13093_v51 = vld [vmem:[%s10659_s20 + $0xd0] sm:$0x11] }
 0x22f   : > { %7144 = vmatmul.mubr.bf16.gmra.mrb[252].mxu1 %v3835_v19  ;;  %7241 = vmatmul.mubr.bf16.gmra.mrb[252].mxu0 %v4284_v10  ;;  %v8478_v16 = vcombine.low %v13053_v2, %v13053_v2  ;;  %v3890_v10 = vor.u32 %v3889_v56, %v3885_v37  ;;  %v4297_v19 = vrot.slane %v10383_v45, 1  ;;  %v3859_v30 = vsel %vm898_vm0, %v3854_v13, %v3858_v32 }
 0x230   : > { %v13084_v39 = vadd.f32 %v9200_v57, %v12727_v24  ;;  %v13087_v59 = vadd.f32 %v9264_v4, %v12730_v27  ;;  %7151 = vmatprep.mubr.bf16.mxu1 %v3871_v49  ;;  %7248 = vmatprep.mubr.bf16.mxu0 %v4293_v9  ;;  %v4290_v27 = vsel %vm1603_vm1, %v4288_v0, %v4289_v46  ;;  %v3882_v49 = vrot.slane %v13059_v63, 1  ;;  %v10392_v9 = vld [vmem:[%s10659_s20 + $0xc4] ss:$8 sps:$4 sm:$0xfe]  }
 0x231   : > { %v4294_v2 = vrot.slane %v13079_v43, 1  ;;  %v13102_v62 = vcombine.low %v12751_v21, %v13048_v52  ;;  %v3981_v45 = vshrl.u32 %v13066_v26, 16  ;;  %v3988_v6 = vshll.u32 %v8409_v36, 16  ;;  %v13869_v4 = vld [vmem:[#allocation18_spill] sm:$0xff]  ;;  %v13870_v43 = vld [vmem:[#allocation15_spill] sm:$0xff] }
 0x232   : > { %v9201_v58 = vpop.f32.mrb[148].mxu0  ;;  %v9265_v24 = vpop.f32.mrb[148].mxu1  ;;  %v3985_v0 = vrot.slane %v3983_v34, 1  ;;  %v8483_v46 = vcombine.high %v13093_v51, %v13093_v51  ;;  %v3895_v25 = vsel %vm898_vm0, %v3890_v10, %v3894_v3  ;;  %v4295_v50 = vrot.slane %v8478_v16, 1 }
 0x233   : > { %v9202_v41 = vpop.f32.mrb[149].mxu0  ;;  %v9266_v8 = vpop.f32.mrb[149].mxu1  ;;  %v4299_v21 = vsel %vm1603_vm1, %v4297_v19, %v4298_v20  ;;  %v3878_v57 = vor.u32 %v3877_v7, %v3873_v18  ;;  %v8408_v10 = vcombine.low %v13062_v42, %v13062_v42  ;;  %v3971_v16 = vshll.u32 %v13102_v62, 16  ;;  %v13871_v7 = vld [vmem:[#allocation19_spill] sm:$0xff]  ;;  %v13872_v20 = vld [vmem:[#allocation20_spill] sm:$0xff] }
 0x234   : > { %v9203_v31 = vadd.f32 %v9202_v41, %v9201_v58  ;;  %v9267_v37 = vadd.f32 %v9266_v8, %v9265_v24  ;;  %v9204_v32 = vpop.f32.mrb[150].mxu0  ;;  %v9268_v13 = vpop.f32.mrb[150].mxu1  ;;  %v13116_v24 = vld [vmem:[%s12222_s30 + $0x10] sm:$0x11]  ;;  %v3990_v3 = vrot.slane %v3988_v6, 1  ;;  %v4303_v18 = vrot.slane %v10392_v9, 1 }
 0x235   : > { %v9205_v63 = vpop.f32.mrb[151].mxu0  ;;  %v9269_v56 = vpop.f32.mrb[151].mxu1  ;;  %v3986_v8 = vor.u32 %v3985_v0, %v3981_v45  ;;  %v10390_v42 = vld [vmem:[%s10659_s20 + $0xc0] ss:$8 sps:$4 sm:$0xfe]   ;;  %v4027_v9 = vshll.u32 %v12819_v47, 16 }
 0x236   : > { %v13110_v26 = vadd.f32 %v9203_v31, %v13869_v4  ;;  %v13113_v36 = vadd.f32 %v9267_v37, %v13870_v43  ;;  %v9206_v58 = vadd.f32 %v9205_v63, %v9204_v32  ;;  %v9270_v34 = vadd.f32 %v9269_v56, %v9268_v13  ;;  %v13137_v63 = vld [vmem:[%s10659_s20 + $0xe8] sm:$0x11] }
 0x237   : > { %7152 = vmatmul.mubr.bf16.gmra.mrb[0].mxu1 %v3859_v30  ;;  %7249 = vmatmul.mubr.bf16.gmra.mrb[0].mxu0 %v4290_v27  ;;  %v4304_v31 = vrot.slane %v8483_v46, 1  ;;  %v10436_v30 = vld [vmem:[%s13745_s4] sm:$0xff]   ;;  %v8413_v27 = vcombine.high %v13116_v24, %v13116_v24  ;;  %v3883_v32 = vsel %vm898_vm0, %v3878_v57, %v3882_v49  ;;  %v4296_v13 = vsel %vm1603_vm1, %v4294_v2, %v4295_v50 }
 0x238   : > { %v13122_v19 = vadd.f32 %v9206_v58, %v13871_v7  ;;  %v13125_v41 = vadd.f32 %v9270_v34, %v13872_v20  ;;  %7159 = vmatprep.mubr.bf16.mxu1 %v3895_v25  ;;  %7256 = vmatprep.mubr.bf16.mxu0 %v4299_v21  ;;  %v3969_v46 = vshrl.u32 %v13102_v62, 16  ;;  %v3973_v56 = vrot.slane %v3971_v16, 1  ;;  %v10399_v57 = vld [vmem:[%s10659_s20 + $0xdc] ss:$8 sps:$4 sm:$0xfe]  }
 0x239   : > { %9715 = vmatprep.subr.bf16.mxu1 %v10436_v30  ;;  %v3976_v25 = vshll.u32 %v8408_v10, 16  ;;  %v8482_v21 = vcombine.low %v13093_v51, %v13093_v51  ;;  %v3991_v2 = vsel %vm898_vm0, %v3986_v8, %v3990_v3  ;;  %v4305_v50 = vsel %vm1603_vm1, %v4303_v18, %v4304_v31 }
 0x23a   : > { %v9207_v6 = vpop.f32.mrb[152].mxu0  ;;  %v9271_v37 = vpop.f32.mrb[152].mxu1  ;;  %9716 = vmatpush3.bf16.msra.mxu1 %v10436_v30  ;;  %v4025_v20 = vshrl.u32 %v12819_v47, 16  ;;  %v4029_v62 = vrot.slane %v4027_v9, 1  ;;  %v4032_v16 = vshll.u32 %v8413_v27, 16  ;;  %v8487_v10 = vcombine.high %v13137_v63, %v13137_v63  ;;  %v13873_v9 = vld [vmem:[#allocation6_spill] sm:$0xff] }
 0x23b   : > { %v9208_v45 = vpop.f32.mrb[153].mxu0  ;;  %v9272_v0 = vpop.f32.mrb[153].mxu1  ;;  %v3978_v18 = vrot.slane %v3976_v25, 1  ;;  %v4300_v8 = vrot.slane %v10390_v42, 1  ;;  %v4301_v31 = vrot.slane %v8482_v21, 1  ;;  %v3974_v47 = vor.u32 %v3973_v56, %v3969_v46 }
 0x23c   : > { %v9209_v4 = vadd.f32 %v9208_v45, %v9207_v6  ;;  %v9273_v43 = vadd.f32 %v9272_v0, %v9271_v37  ;;  %v9210_v58 = vpop.f32.mrb[154].mxu0  ;;  %v9274_v49 = vpop.f32.mrb[154].mxu1  ;;  %v13874_v37 = vld [vmem:[#allocation21_spill] sm:$0xff]  ;;  %v4309_v0 = vrot.slane %v10399_v57, 1  ;;  %v4310_v42 = vrot.slane %v8487_v10, 1 }
 0x23d   : > { %v9211_v34 = vpop.f32.mrb[155].mxu0  ;;  %v9275_v7 = vpop.f32.mrb[155].mxu1  ;;  %v13164_v56 = vld [vmem:[%s10659_s20 + $0x100] sm:$0x11] }
 0x23e   : > { %v13149_v51 = vadd.f32 %v9209_v4, %v12792_v29  ;;  %v13152_v30 = vadd.f32 %v9273_v43, %v12795_v53  ;;  %v9212_v6 = vadd.f32 %v9211_v34, %v9210_v58  ;;  %v9276_v3 = vadd.f32 %v9275_v7, %v9274_v49 }
 0x23f   : > { %7160 = vmatmul.mubr.bf16.gmra.mrb[4].mxu1 %v3883_v32  ;;  %7257 = vmatmul.mubr.bf16.gmra.mrb[4].mxu0 %v4296_v13  ;;  %v8412_v29 = vcombine.low %v13116_v24, %v13116_v24  ;;  %v4015_v53 = vshll.u32 %v12879_v15, 16  ;;  %v4030_v32 = vor.u32 %v4029_v62, %v4025_v20  ;;  %v4034_v13 = vrot.slane %v4032_v16, 1  ;;  %v10397_v24 = vld [vmem:[%s10659_s20 + $0xd8] ss:$8 sps:$4 sm:$0xfe]  }
 0x240   : > { %v13155_v27 = vadd.f32 %v9212_v6, %v13873_v9  ;;  %v13158_v45 = vadd.f32 %v9276_v3, %v13874_v37  ;;  %7167 = vmatprep.mubr.bf16.mxu1 %v3991_v2  ;;  %7264 = vmatprep.mubr.bf16.mxu0 %v4305_v50  ;;  %v3979_v43 = vsel %vm898_vm0, %v3974_v47, %v3978_v18  ;;  %v4013_v49 = vshrl.u32 %v12879_v15, 16  ;;  %v10404_v18 = vld [vmem:[%s10659_s20 + $0xf4] ss:$8 sps:$4 sm:$0xfe]  }
 0x241   : > { %v4302_v58 = vsel %vm1603_vm1, %v4300_v8, %v4301_v31  ;;  %v8486_v2 = vcombine.low %v13137_v63, %v13137_v63  ;;  %v4017_v20 = vrot.slane %v4015_v53, 1  ;;  %v4020_v62 = vshll.u32 %v8412_v29, 16  ;;  %v13875_v8 = vld [vmem:[#allocation22_spill] sm:$0xff]  ;;  %v13876_v63 = vld [vmem:[#allocation8_spill] sm:$0xff] }
 0x242   : > { %v9213_v25 = vpop.f32.mrb[156].mxu0  ;;  %v9277_v46 = vpop.f32.mrb[156].mxu1  ;;  %v4035_v6 = vsel %vm898_vm0, %v4030_v32, %v4034_v13  ;;  %v4311_v3 = vsel %vm1603_vm1, %v4309_v0, %v4310_v42  ;;  %v8491_v15 = vcombine.high %v13164_v56, %v13164_v56  ;;  %v4306_v29 = vrot.slane %v10397_v24, 1  ;;  %v13877_v32 = vld [vmem:[#allocation9_spill] sm:$0xff]  ;;  %v13878_v0 = vld [vmem:[#allocation23_spill] sm:$0xff] }
 0x243   : > { %v9214_v21 = vpop.f32.mrb[157].mxu0  ;;  %v9278_v4 = vpop.f32.mrb[157].mxu1  ;;  %v4307_v53 = vrot.slane %v8486_v2, 1  ;;  %v8441_v2 = vld [vmem:[%s10659_s20 + $0x108] sm:$0xee] }
 0x244   : > { %v9215_v50 = vadd.f32 %v9214_v21, %v9213_v25  ;;  %v9279_v57 = vadd.f32 %v9278_v4, %v9277_v46  ;;  %v9216_v34 = vpop.f32.mrb[158].mxu0  ;;  %v9280_v7 = vpop.f32.mrb[158].mxu1  ;;  %v4022_v25 = vrot.slane %v4020_v62, 1  ;;  %v4018_v46 = vor.u32 %v4017_v20, %v4013_v49  ;;  %v10437_v21 = vld [vmem:[%s13745_s4 + $0x8] sm:$0xff]  }
 0x245   : > { %v9217_v16 = vpop.f32.mrb[159].mxu0  ;;  %v9281_v10 = vpop.f32.mrb[159].mxu1  ;;  %v4315_v4 = vrot.slane %v10404_v18, 1  ;;  %9717 = vmatprep.subr.bf16.mxu1 %v10437_v21 }
 0x246   : > { %v13178_v31 = vadd.f32 %v9215_v50, %v13875_v8  ;;  %v13181_v47 = vadd.f32 %v9279_v57, %v13876_v63  ;;  %v9218_v9 = vadd.f32 %v9217_v16, %v9216_v34  ;;  %v9282_v37 = vadd.f32 %v9281_v10, %v9280_v7  ;;  %v8443_v50 = vld [vmem:[%s10659_s20 + $0x118] sm:$0x11]  ;;  %9718 = vmatpush3.bf16.msra.mxu1 %v10437_v21 }
 0x247   : > { %7168 = vmatmul.mubr.bf16.gmra.mrb[8].mxu1 %v3979_v43  ;;  %7265 = vmatmul.mubr.bf16.gmra.mrb[8].mxu0 %v4302_v58  ;;  %v4316_v43 = vrot.slane %v8491_v15, 1  ;;  %v4308_v7 = vsel %vm1603_vm1, %v4306_v29, %v4307_v53  ;;  %v4023_v10 = vsel %vm898_vm0, %v4018_v46, %v4022_v25  ;;  %v13879_v63 = vld [vmem:[#allocation17_spill] sm:$0xff] }
 0x248   : > { %v13184_v13 = vadd.f32 %v9218_v9, %v13877_v32  ;;  %v13187_v42 = vadd.f32 %v9282_v37, %v13878_v0  ;;  %7175 = vmatprep.mubr.bf16.mxu1 %v4035_v6  ;;  %7272 = vmatprep.mubr.bf16.mxu0 %v4311_v3  ;;  %v10402_v6 = vld [vmem:[%s10659_s20 + $0xf0] ss:$8 sps:$4 sm:$0xfe]   ;;  %v8490_v3 = vcombine.low %v13164_v56, %v13164_v56 }
 0x249   : > { %v4317_v8 = vsel %vm1603_vm1, %v4315_v4, %v4316_v43  ;;  %v8493_v9 = vcombine.high %v8441_v2, %v13879_v63  ;;  %v8495_v37 = vcombine.high %v8443_v50, %v8443_v50  ;;  %v4312_v46 = vrot.slane %v10402_v6, 1 }
 0x24a   : > { %v9219_v58 = vpop.f32.mrb[160].mxu0  ;;  %v9283_v24 = vpop.f32.mrb[160].mxu1  ;;  %v4313_v21 = vrot.slane %v8490_v3, 1 }
 0x24b   : > { %v9220_v57 = vpop.f32.mrb[161].mxu0  ;;  %v9284_v34 = vpop.f32.mrb[161].mxu1  ;;  %v4321_v4 = vrot.slane %v8493_v9, 1 }
 0x24c   : > { %v9221_v62 = vadd.f32 %v9220_v57, %v9219_v58  ;;  %v9285_v16 = vadd.f32 %v9284_v34, %v9283_v24  ;;  %v9222_v49 = vpop.f32.mrb[162].mxu0  ;;  %v9286_v20 = vpop.f32.mrb[162].mxu1  ;;  %v8444_v24 = vld [vmem:[%s10659_s20 + $0x120] sm:$0xee] }
 0x24d   : > { %v9223_v18 = vpop.f32.mrb[163].mxu0  ;;  %v9287_v15 = vpop.f32.mrb[163].mxu1 }
 0x24e   : > { %v13202_v29 = vadd.f32 %v9221_v62, %v12897_v61  ;;  %v13205_v53 = vadd.f32 %v9285_v16, %v12900_v44  ;;  %v9224_v32 = vadd.f32 %v9223_v18, %v9222_v49  ;;  %v9288_v0 = vadd.f32 %v9287_v15, %v9286_v20  ;;  %v8446_v44 = vld [vmem:[%s10659_s20 + $0x130] sm:$0x11]  ;;  %v13880_v18 = vld [vmem:[#allocation7_spill] sm:$0xff] }
 0x24f   : > { %7176 = vmatmul.mubr.bf16.gmra.mrb[12].mxu1 %v4023_v10  ;;  %7273 = vmatmul.mubr.bf16.gmra.mrb[12].mxu0 %v4308_v7  ;;  %v4322_v61 = vrot.slane %v8495_v37, 1  ;;  %v8492_v62 = vcombine.low %v8441_v2, %v13879_v63  ;;  %v8494_v7 = vcombine.low %v8443_v50, %v8443_v50  ;;  %v8497_v15 = vcombine.high %v8444_v24, %v13880_v18 }
 0x250   : > { %v13208_v56 = vadd.f32 %v9224_v32, %v12911_v60  ;;  %v13211_v25 = vadd.f32 %v9288_v0, %v12914_v28  ;;  %7280 = vmatprep.mubr.bf16.mxu0 %v4317_v8  ;;  %v4314_v28 = vsel %vm1603_vm1, %v4312_v46, %v4313_v21  ;;  %v8499_v8 = vcombine.high %v8446_v44, %v8446_v44  ;;  %v13881_v46 = vld [vmem:[#allocation11_spill] sm:$0xff] }
 0x251   : > { %v4323_v3 = vsel %vm1603_vm1, %v4321_v4, %v4322_v61  ;;  %v4318_v37 = vrot.slane %v8492_v62, 1  ;;  %v4319_v32 = vrot.slane %v8494_v7, 1  ;;  %v4327_v4 = vrot.slane %v8497_v15, 1  ;;  %v13882_v15 = vld [vmem:[#allocation10_spill] sm:$0xff] }
 0x252   : > { %v9225_v43 = vpop.f32.mrb[164].mxu0  ;;  %v9289_v58 = vpop.f32.mrb[164].mxu1  ;;  %v4328_v61 = vrot.slane %v8499_v8, 1 }
 0x253   : > { %v9226_v57 = vpop.f32.mrb[165].mxu0  ;;  %v9290_v34 = vpop.f32.mrb[165].mxu1 }
 0x254   : > { %v9227_v16 = vadd.f32 %v9226_v57, %v9225_v43  ;;  %v9291_v60 = vadd.f32 %v9290_v34, %v9289_v58  ;;  %v9228_v49 = vpop.f32.mrb[166].mxu0  ;;  %v9292_v20 = vpop.f32.mrb[166].mxu1  ;;  %v8447_v58 = vld [vmem:[%s10659_s20 + $0x138] sm:$0xee]  ;;  %v8449_v57 = vld [vmem:[%s10659_s20 + $0x148] sm:$0x11] }
 0x255   : > { %v9229_v10 = vpop.f32.mrb[167].mxu0  ;;  %v9293_v6 = vpop.f32.mrb[167].mxu1  ;;  %v8501_v8 = vcombine.high %v8447_v58, %v13882_v15 }
 0x256   : > { %v13220_v9 = vadd.f32 %v9227_v16, %v12954_v23  ;;  %v13223_v2 = vadd.f32 %v9291_v60, %v12957_v17  ;;  %v9230_v50 = vadd.f32 %v9229_v10, %v9228_v49  ;;  %v9294_v63 = vadd.f32 %v9293_v6, %v9292_v20  ;;  %v10438_v23 = vld [vmem:[%s13745_s4 + $0x10] sm:$0xff]  }
 0x257   : > { %7281 = vmatmul.mubr.bf16.gmra.mrb[16].mxu0 %v4314_v28  ;;  %9719 = vmatprep.subr.bf16.mxu1 %v10438_v23  ;;  %v8496_v20 = vcombine.low %v8444_v24, %v13880_v18  ;;  %v8498_v28 = vcombine.low %v8446_v44, %v8446_v44 }
 0x258   : > { %v13226_v0 = vadd.f32 %v9230_v50, %v12964_v40  ;;  %v13229_v21 = vadd.f32 %v9294_v63, %v13881_v46  ;;  %7288 = vmatprep.mubr.bf16.mxu0 %v4323_v3  ;;  %v4320_v40 = vsel %vm1603_vm1, %v4318_v37, %v4319_v32  ;;  %9720 = vmatpush3.bf16.msra.mxu1 %v10438_v23 }
 0x259   : > { %v4329_v3 = vsel %vm1603_vm1, %v4327_v4, %v4328_v61  ;;  %v8503_v50 = vcombine.high %v8449_v57, %v8449_v57  ;;  %v4324_v18 = vrot.slane %v8496_v20, 1  ;;  %v4325_v23 = vrot.slane %v8498_v28, 1 }
 0x25a   : > { %v9231_v17 = vpop.f32.mrb[168].mxu0  ;;  %v9295_v43 = vpop.f32.mrb[168].mxu1  ;;  %v4333_v4 = vrot.slane %v8501_v8, 1 }
 0x25b   : > { %v9232_v34 = vpop.f32.mrb[169].mxu0  ;;  %v9296_v62 = vpop.f32.mrb[169].mxu1  ;;  %v4334_v61 = vrot.slane %v8503_v50, 1 }
 0x25c   : > { %v9233_v7 = vadd.f32 %v9232_v34, %v9231_v17  ;;  %v9297_v16 = vadd.f32 %v9296_v62, %v9295_v43  ;;  %v9234_v60 = vpop.f32.mrb[170].mxu0  ;;  %v9298_v49 = vpop.f32.mrb[170].mxu1  ;;  %v8450_v43 = vld [vmem:[%s10659_s20 + $0x150] sm:$0xee]  ;;  %v8452_v34 = vld [vmem:[%s10659_s20 + $0x160] sm:$0x11] }
 0x25d   : > { %v9235_v10 = vpop.f32.mrb[171].mxu0  ;;  %v9299_v6 = vpop.f32.mrb[171].mxu1 }
 0x25e   : > { %v13241_v63 = vadd.f32 %v9233_v7, %v12993_v1  ;;  %v13244_v37 = vadd.f32 %v9297_v16, %v12996_v48  ;;  %v9236_v32 = vadd.f32 %v9235_v10, %v9234_v60  ;;  %v9300_v46 = vadd.f32 %v9299_v6, %v9298_v49 }
 0x25f   : > { %7289 = vmatmul.mubr.bf16.gmra.mrb[20].mxu0 %v4320_v40  ;;  %v8500_v7 = vcombine.low %v8447_v58, %v13882_v15  ;;  %v8502_v40 = vcombine.low %v8449_v57, %v8449_v57  ;;  %v4335_v10 = vsel %vm1603_vm1, %v4333_v4, %v4334_v61  ;;  %v8505_v6 = vcombine.high %v8450_v43, %v12972_v22 }
 0x260   : > { %v13247_v24 = vadd.f32 %v9236_v32, %v13004_v11  ;;  %v13250_v44 = vadd.f32 %v9300_v46, %v13007_v38  ;;  %7296 = vmatprep.mubr.bf16.mxu0 %v4329_v3  ;;  %v4326_v38 = vsel %vm1603_vm1, %v4324_v18, %v4325_v23  ;;  %v8507_v3 = vcombine.high %v8452_v34, %v8452_v34 }
 0x261   : > { %v4330_v50 = vrot.slane %v8500_v7, 1  ;;  %v4331_v32 = vrot.slane %v8502_v40, 1  ;;  %v4339_v23 = vrot.slane %v8505_v6, 1 }
 0x262   : > { %v9237_v17 = vpop.f32.mrb[172].mxu0  ;;  %v9301_v1 = vpop.f32.mrb[172].mxu1  ;;  %v4340_v4 = vrot.slane %v8507_v3, 1 }
 0x263   : > { %v9238_v48 = vpop.f32.mrb[173].mxu0  ;;  %v9302_v62 = vpop.f32.mrb[173].mxu1 }
 0x264   : > { %v9239_v16 = vadd.f32 %v9238_v48, %v9237_v17  ;;  %v9303_v11 = vadd.f32 %v9302_v62, %v9301_v1  ;;  %v9240_v60 = vpop.f32.mrb[174].mxu0  ;;  %v9304_v49 = vpop.f32.mrb[174].mxu1  ;;  %v8453_v17 = vld [vmem:[%s10659_s20 + $0x168] sm:$0xee]  ;;  %v8455_v1 = vld [vmem:[%s10659_s20 + $0x178] sm:$0x11] }
 0x265   : > { %v9241_v20 = vpop.f32.mrb[175].mxu0  ;;  %v9305_v28 = vpop.f32.mrb[175].mxu1  ;;  %v8511_v6 = vcombine.high %v8455_v1, %v8455_v1 }
 0x266   : > { %v13259_v8 = vadd.f32 %v9239_v16, %v13030_v55  ;;  %v13262_v58 = vadd.f32 %v9303_v11, %v13033_v54  ;;  %v9242_v57 = vadd.f32 %v9241_v20, %v9240_v60  ;;  %v9306_v15 = vadd.f32 %v9305_v28, %v9304_v49  ;;  %v10439_v55 = vld [vmem:[%s13745_s4 + $0x18] sm:$0xff]   ;;  %v10440_v49 = vld [vmem:[%s13745_s4 + $0x20] sm:$0xff]  }
 0x267   : > { %7297 = vmatmul.mubr.bf16.gmra.mrb[24].mxu0 %v4326_v38  ;;  %9721 = vmatprep.subr.bf16.mxu1 %v10439_v55  ;;  %v8504_v11 = vcombine.low %v8450_v43, %v12972_v22  ;;  %v8506_v60 = vcombine.low %v8452_v34, %v8452_v34  ;;  %v4341_v28 = vsel %vm1603_vm1, %v4339_v23, %v4340_v4 }
 0x268   : > { %v13265_v46 = vadd.f32 %v9242_v57, %v13040_v12  ;;  %v13268_v18 = vadd.f32 %v9306_v15, %v13043_v35  ;;  %7304 = vmatprep.mubr.bf16.mxu0 %v4335_v10  ;;  %v4332_v12 = vsel %vm1603_vm1, %v4330_v50, %v4331_v32  ;;  %9722 = vmatpush3.bf16.msra.mxu1 %v10439_v55  ;;  %v4346_v55 = vrot.slane %v8511_v6, 1 }
 0x269   : > { %v8509_v10 = vcombine.high %v8453_v17, %v13017_v5  ;;  %9723 = vmatprep.subr.bf16.mxu1 %v10440_v49  ;;  %v4336_v50 = vrot.slane %v8504_v11, 1  ;;  %v4337_v32 = vrot.slane %v8506_v60, 1  ;;  %v10442_v11 = vld [vmem:[%s13745_s4 + $0x30] sm:$0xff]  }
 0x26a   : > { %v9307_v54 = vpop.f32.mrb[176].mxu1  ;;  %v9371_v61 = vpop.f32.mrb[176].mxu0 }
 0x26b   : > { %v9308_v48 = vpop.f32.mrb[177].mxu1  ;;  %v9372_v62 = vpop.f32.mrb[177].mxu0 }
 0x26c   : > { %v9309_v7 = vadd.f32 %v9308_v48, %v9307_v54  ;;  %v9373_v35 = vadd.f32 %v9372_v62, %v9371_v61  ;;  %v9310_v40 = vpop.f32.mrb[178].mxu1  ;;  %v9374_v16 = vpop.f32.mrb[178].mxu0  ;;  %9724 = vmatpush3.bf16.msra.mxu1 %v10440_v49  ;;  %v4404_v54 = vld [vmem:[%s11327_s11] sm:$0xee]  ;;  %v4406_v61 = vld [vmem:[%s11327_s11 + $0x10] sm:$0x11]  ;;  %v8508_v62 = vcombine.low %v8453_v17, %v13017_v5 }
 0x26d   : > { %v9311_v38 = vpop.f32.mrb[179].mxu1  ;;  %v9375_v20 = vpop.f32.mrb[179].mxu0  ;;  %s10455_s11 = sshll.u32 %s10531_s27, 4  ;;  %s10456_s11 = int_to_ptr.vmem [resolvable:$false] %s10455_s11 }
 0x26e   : > { %v13283_v3 = vadd.f32 %v9309_v7, %v13072_v14  ;;  %v13286_v57 = vadd.f32 %v9373_v35, %v13075_v33  ;;  %v9312_v22 = vadd.f32 %v9311_v38, %v9310_v40  ;;  %v9376_v43 = vadd.f32 %v9375_v20, %v9374_v16  ;;  %v10441_v14 = vld [vmem:[%s13745_s4 + $0x28] sm:$0xff]   ;;  %s10457_s28 = scalar_lea.vmem %s10456_s11, 8192 }
 0x26f   : > { %7305 = vmatmul.mubr.bf16.gmra.mrb[28].mxu0 %v4332_v12  ;;  %v4345_v33 = vrot.slane %v8509_v10, 1  ;;  %9725 = vmatprep.subr.bf16.mxu1 %v10441_v14  ;;  %v4338_v16 = vsel %vm1603_vm1, %v4336_v50, %v4337_v32  ;;  %v8513_v20 = vcombine.high %v4404_v54, %v13048_v52  ;;  %v4342_v6 = vrot.slane %v8508_v62, 1 }
 0x270   : > { %v13289_v34 = vadd.f32 %v9312_v22, %v13084_v39  ;;  %v13292_v15 = vadd.f32 %v9376_v43, %v13087_v59  ;;  %7312 = vmatprep.mubr.bf16.mxu0 %v4341_v28  ;;  %v8510_v59 = vcombine.low %v8455_v1, %v8455_v1  ;;  %9726 = vmatpush3.bf16.msra.mxu1 %v10441_v14 }
 0x271   : > { %v4347_v38 = vsel %vm1603_vm1, %v4345_v33, %v4346_v55  ;;  %v8515_v28 = vcombine.high %v4406_v61, %v4406_v61  ;;  %9727 = vmatprep.subr.bf16.mxu1 %v10442_v11  ;;  %v4432_v55 = vld [vmem:[%s12222_s30 + $0x10] sm:$0x11] }
 0x272   : > { %v9313_v23 = vpop.f32.mrb[180].mxu1  ;;  %v9377_v4 = vpop.f32.mrb[180].mxu0  ;;  %v4343_v22 = vrot.slane %v8510_v59, 1  ;;  %v8512_v59 = vcombine.low %v4404_v54, %v13048_v52 }
 0x273   : > { %v9314_v48 = vpop.f32.mrb[181].mxu1  ;;  %v9378_v39 = vpop.f32.mrb[181].mxu0  ;;  %v4424_v32 = vrot.slane %v8515_v28, 1 }
 0x274   : > { %v9315_v12 = vadd.f32 %v9314_v48, %v9313_v23  ;;  %v9379_v7 = vadd.f32 %v9378_v39, %v9377_v4  ;;  %v9316_v35 = vpop.f32.mrb[182].mxu1  ;;  %v9380_v40 = vpop.f32.mrb[182].mxu0  ;;  %9728 = vmatpush3.bf16.msra.mxu1 %v10442_v11  ;;  %v8519_v11 = vcombine.high %v4432_v55, %v4432_v55  ;;  %v4420_v54 = vrot.slane %v8512_v59, 1 }
 0x275   : > { %v9317_v60 = vpop.f32.mrb[183].mxu1  ;;  %v9381_v49 = vpop.f32.mrb[183].mxu0 }
 0x276   : > { %v13307_v5 = vadd.f32 %v9315_v12, %v13110_v26  ;;  %v13310_v17 = vadd.f32 %v9379_v7, %v13113_v36  ;;  %v9318_v1 = vadd.f32 %v9317_v60, %v9316_v35  ;;  %v9382_v10 = vadd.f32 %v9381_v49, %v9380_v40  ;;  %v10443_v26 = vld [vmem:[%s13745_s4 + $0x38] sm:$0xff]  }
 0x277   : > { %7313 = vmatmul.mubr.bf16.gmra.mrb[32].mxu0 %v4338_v16  ;;  %v4423_v36 = vrot.slane %v8513_v20, 1  ;;  %9729 = vmatprep.subr.bf16.mxu1 %v10443_v26  ;;  %v8514_v12 = vcombine.low %v4406_v61, %v4406_v61  ;;  %v10433_v16 = vld [vmem:[%s12222_s30 + $0x4] ss:$8 sps:$4 sm:$0xfe]  }
 0x278   : > { %v13313_v43 = vadd.f32 %v9318_v1, %v13122_v19  ;;  %v13316_v50 = vadd.f32 %v9382_v10, %v13125_v41  ;;  %7320 = vmatprep.mubr.bf16.mxu0 %v4347_v38  ;;  %v4344_v19 = vsel %vm1603_vm1, %v4342_v6, %v4343_v22  ;;  %9730 = vmatpush3.bf16.msra.mxu1 %v10443_v26  ;;  %v4449_v1 = vrot.slane %v10433_v16, 1 }
 0x279   : > { %v4425_v40 = vsel %vm1603_vm1, %v4423_v36, %v4424_v32  ;;  %v4421_v61 = vrot.slane %v8514_v12, 1  ;;  %v4450_v10 = vrot.slane %v8519_v11, 1 }
 0x27a   : > { %v9319_v14 = vpop.f32.mrb[184].mxu1  ;;  %v9383_v33 = vpop.f32.mrb[184].mxu0 }
 0x27b   : > { %v9320_v23 = vpop.f32.mrb[185].mxu1  ;;  %v9384_v4 = vpop.f32.mrb[185].mxu0 }
 0x27c   : > { %v9321_v48 = vadd.f32 %v9320_v23, %v9319_v14  ;;  %v9385_v41 = vadd.f32 %v9384_v4, %v9383_v33  ;;  %v9322_v39 = vpop.f32.mrb[186].mxu1  ;;  %v9386_v62 = vpop.f32.mrb[186].mxu0  ;;  %v10431_v33 = vld [vmem:[%s12222_s30] ss:$8 sps:$4 sm:$0xfe]   ;;  %v8518_v23 = vcombine.low %v4432_v55, %v4432_v55  ;;  %s362_s30 = sand.u32 1, %s10513_s22  }
 0x27d   : > { %v9323_v7 = vpop.f32.mrb[187].mxu1  ;;  %v9387_v35 = vpop.f32.mrb[187].mxu0  ;;  %v4446_v55 = vrot.slane %v10431_v33, 1  ;;  %s7804_s12 = sshll.u32 %s362_s30, 8  ;;  %s13695_s24 = scalar_lea.sflag [#allocation4], %s362_s30 }
 0x27e   : > { %v13327_v60 = vadd.f32 %v9321_v48, %v13149_v51  ;;  %v13330_v49 = vadd.f32 %v9385_v41, %v13152_v30  ;;  %v9324_v38 = vadd.f32 %v9323_v7, %v9322_v39  ;;  %v9388_v20 = vadd.f32 %v9387_v35, %v9386_v62  ;;  %s13588_s14 = scalar_lea.vmem [#allocation3], %s7804_s12 }
 0x27f   : > { %7321 = vmatmul.mubr.bf16.gmra.mrb[36].mxu0 %v4344_v19  ;;  %v4451_v19 = vsel %vm1603_vm1, %v4449_v1, %v4450_v10  ;;  %v4447_v7 = vrot.slane %v8518_v23, 1  ;;  %s7675_s16 = sshll.u32 %s13588_s14, 4  ;;  %s13684_s16 = int_to_ptr.vmem [resolvable:$true] %s7675_s16 }
 0x280   : > { %v13333_v28 = vadd.f32 %v9324_v38, %v13155_v27  ;;  %v13336_v52 = vadd.f32 %v9388_v20, %v13158_v45  ;;  %7328 = vmatprep.mubr.bf16.mxu0 %v4425_v40  ;;  %v4422_v27 = vsel %vm1603_vm1, %v4420_v54, %v4421_v61  ;;  %s10451_s19 = scalar_lea.vmem %s13684_s16, 4096  ;;  %p10458_p1 = scmp.lt.s32.totalorder %s13684_s16, %s10456_s11 }
 0x281   : > { %v4448_v54 = vsel %vm1603_vm1, %v4446_v55, %v4447_v7  ;;  %p10452_p12 = scmp.ne.s32.totalorder %s13684_s16, %s10451_s19  ;;  %p10459_p2 = scmp.lt.s32.totalorder %s10457_s28, %s10451_s19 }
 0x282   : > { %v9325_v51 = vpop.f32.mrb[188].mxu1  ;;  %v9389_v6 = vpop.f32.mrb[188].mxu0 }
 0x283   : > { %v9326_v22 = vpop.f32.mrb[189].mxu1  ;;  %v9390_v30 = vpop.f32.mrb[189].mxu0  ;;  %p10453_p13 = pnand %p10452_p12, %p10609_p4  ;;  %p10460_p3 = por %p10459_p2, %p10458_p1 }
 0x284   : > { %v9327_v26 = vadd.f32 %v9326_v22, %v9325_v51  ;;  %v9391_v36 = vadd.f32 %v9390_v30, %v9389_v6  ;;  %v9328_v32 = vpop.f32.mrb[190].mxu1  ;;  %v9392_v14 = vpop.f32.mrb[190].mxu0 }
 0x285   : > { %v9329_v4 = vpop.f32.mrb[191].mxu1  ;;  %v9393_v45 = vpop.f32.mrb[191].mxu0  ;;  %p10454_p0 = pneg %p10453_p13 }
 0x286   : > { %v13342_v48 = vadd.f32 %v9327_v26, %v13178_v31  ;;  %v13345_v41 = vadd.f32 %v9391_v36, %v13181_v47  ;;  %v9330_v39 = vadd.f32 %v9329_v4, %v9328_v32  ;;  %v9394_v62 = vadd.f32 %v9393_v45, %v9392_v14 }
 0x287   : > { %7329 = vmatmul.mubr.bf16.gmra.mrb[40].mxu0 %v4422_v27  ;;  %p10461_p5 = pnand %p10460_p3, %p10454_p0 }
 0x288   : > { %v13348_v59 = vadd.f32 %v9330_v39, %v13184_v13  ;;  %v13351_v12 = vadd.f32 %v9394_v62, %v13187_v42  ;;  %7336 = vmatprep.mubr.bf16.mxu0 %v4451_v19 }
 0x28a   : > { %v9331_v35 = vpop.f32.mrb[192].mxu1  ;;  %v9395_v40 = vpop.f32.mrb[192].mxu0 }
 0x28b   : > { %v9332_v16 = vpop.f32.mrb[193].mxu1  ;;  %v9396_v31 = vpop.f32.mrb[193].mxu0 }
 0x28c   : > { %v9333_v11 = vadd.f32 %v9332_v16, %v9331_v35  ;;  %v9397_v38 = vadd.f32 %v9396_v31, %v9395_v40  ;;  %v9334_v47 = vpop.f32.mrb[194].mxu1  ;;  %v9398_v20 = vpop.f32.mrb[194].mxu0 }
 0x28d   : > { %v9335_v61 = vpop.f32.mrb[195].mxu1  ;;  %v9399_v1 = vpop.f32.mrb[195].mxu0 }
 0x28e   : > { %v13355_v13 = vadd.f32 %v9333_v11, %v13202_v29  ;;  %v13358_v42 = vadd.f32 %v9397_v38, %v13205_v53  ;;  %v9336_v10 = vadd.f32 %v9335_v61, %v9334_v47  ;;  %v9400_v51 = vadd.f32 %v9399_v1, %v9398_v20 }
 0x28f   : > { %7337 = vmatmul.mubr.bf16.gmra.mrb[44].mxu0 %v4448_v54 }
 0x290   : > { %v13361_v6 = vadd.f32 %v9336_v10, %v13208_v56  ;;  %v13364_v22 = vadd.f32 %v9400_v51, %v13211_v25 }
 0x292   : > { %v9337_v30 = vpop.f32.mrb[196].mxu1  ;;  %v9401_v26 = vpop.f32.mrb[196].mxu0 }
 0x293   : > { %v9338_v36 = vpop.f32.mrb[197].mxu1  ;;  %v9402_v32 = vpop.f32.mrb[197].mxu0 }
 0x294   : > { %v9339_v14 = vadd.f32 %v9338_v36, %v9337_v30  ;;  %v9403_v27 = vadd.f32 %v9402_v32, %v9401_v26  ;;  %v9340_v29 = vpop.f32.mrb[198].mxu1  ;;  %v9404_v33 = vpop.f32.mrb[198].mxu0 }
 0x295   : > { %v9341_v23 = vpop.f32.mrb[199].mxu1  ;;  %v9405_v53 = vpop.f32.mrb[199].mxu0 }
 0x296   : > { %v13367_v4 = vadd.f32 %v9339_v14, %v13220_v9  ;;  %v13370_v45 = vadd.f32 %v9403_v27, %v13223_v2  ;;  %v9342_v56 = vadd.f32 %v9341_v23, %v9340_v29  ;;  %v9406_v19 = vadd.f32 %v9405_v53, %v9404_v33 }
 0x298   : > { %v13373_v25 = vadd.f32 %v9342_v56, %v13226_v0  ;;  %v13376_v39 = vadd.f32 %v9406_v19, %v13229_v21 }
 0x29a   : > { %v9343_v62 = vpop.f32.mrb[200].mxu1  ;;  %v9407_v55 = vpop.f32.mrb[200].mxu0 }
 0x29b   : > { %v9344_v7 = vpop.f32.mrb[201].mxu1  ;;  %v9408_v35 = vpop.f32.mrb[201].mxu0 }
 0x29c   : > { %v9345_v40 = vadd.f32 %v9344_v7, %v9343_v62  ;;  %v9409_v16 = vadd.f32 %v9408_v35, %v9407_v55  ;;  %v9346_v31 = vpop.f32.mrb[202].mxu1  ;;  %v9410_v9 = vpop.f32.mrb[202].mxu0 }
 0x29d   : > { %v9347_v11 = vpop.f32.mrb[203].mxu1  ;;  %v9411_v38 = vpop.f32.mrb[203].mxu0 }
 0x29e   : > { %v13379_v2 = vadd.f32 %v9345_v40, %v13241_v63  ;;  %v13382_v47 = vadd.f32 %v9409_v16, %v13244_v37  ;;  %v9348_v0 = vadd.f32 %v9347_v11, %v9346_v31  ;;  %v9412_v20 = vadd.f32 %v9411_v38, %v9410_v9 }
 0x2a0   : > { %v13385_v21 = vadd.f32 %v9348_v0, %v13247_v24  ;;  %v13388_v54 = vadd.f32 %v9412_v20, %v13250_v44 }
 0x2a2   : > { %v9349_v61 = vpop.f32.mrb[204].mxu1  ;;  %v9413_v1 = vpop.f32.mrb[204].mxu0 }
 0x2a3   : > { %v9350_v10 = vpop.f32.mrb[205].mxu1  ;;  %v9414_v51 = vpop.f32.mrb[205].mxu0 }
 0x2a4   : > { %v9351_v30 = vadd.f32 %v9350_v10, %v9349_v61  ;;  %v9415_v26 = vadd.f32 %v9414_v51, %v9413_v1  ;;  %v9352_v36 = vpop.f32.mrb[206].mxu1  ;;  %v9416_v63 = vpop.f32.mrb[206].mxu0 }
 0x2a5   : > { %v9353_v32 = vpop.f32.mrb[207].mxu1  ;;  %v9417_v14 = vpop.f32.mrb[207].mxu0 }
 0x2a6   : > { %v13391_v37 = vadd.f32 %v9351_v30, %v13259_v8  ;;  %v13394_v27 = vadd.f32 %v9415_v26, %v13262_v58  ;;  %v9354_v24 = vadd.f32 %v9353_v32, %v9352_v36  ;;  %v9418_v29 = vadd.f32 %v9417_v14, %v9416_v63 }
 0x2a8   : > { %v13397_v44 = vadd.f32 %v9354_v24, %v13265_v46  ;;  %v13400_v33 = vadd.f32 %v9418_v29, %v13268_v18 }
 0x2aa   : > { %v9419_v23 = vpop.f32.mrb[208].mxu0  ;;  %v9483_v53 = vpop.f32.mrb[208].mxu1 }
 0x2ab   : > { %v9420_v56 = vpop.f32.mrb[209].mxu0  ;;  %v9484_v19 = vpop.f32.mrb[209].mxu1 }
 0x2ac   : > { %v9421_v62 = vadd.f32 %v9420_v56, %v9419_v23  ;;  %v9485_v55 = vadd.f32 %v9484_v19, %v9483_v53  ;;  %v9422_v7 = vpop.f32.mrb[210].mxu0  ;;  %v9486_v8 = vpop.f32.mrb[210].mxu1 }
 0x2ad   : > { %v9423_v35 = vpop.f32.mrb[211].mxu0  ;;  %v9487_v40 = vpop.f32.mrb[211].mxu1 }
 0x2ae   : > { %v13403_v58 = vadd.f32 %v9421_v62, %v13283_v3  ;;  %v13406_v16 = vadd.f32 %v9485_v55, %v13286_v57  ;;  %v9424_v46 = vadd.f32 %v9423_v35, %v9422_v7  ;;  %v9488_v31 = vadd.f32 %v9487_v40, %v9486_v8 }
 0x2b0   : > { %v13409_v18 = vadd.f32 %v9424_v46, %v13289_v34  ;;  %v13412_v9 = vadd.f32 %v9488_v31, %v13292_v15 }
 0x2b2   : > { %v9425_v11 = vpop.f32.mrb[212].mxu0  ;;  %v9489_v38 = vpop.f32.mrb[212].mxu1 }
 0x2b3   : > { %v9426_v0 = vpop.f32.mrb[213].mxu0  ;;  %v9490_v20 = vpop.f32.mrb[213].mxu1 }
 0x2b4   : > { %v9427_v61 = vadd.f32 %v9426_v0, %v9425_v11  ;;  %v9491_v1 = vadd.f32 %v9490_v20, %v9489_v38  ;;  %v9428_v10 = vpop.f32.mrb[214].mxu0  ;;  %v9492_v3 = vpop.f32.mrb[214].mxu1 }
 0x2b5   : > { %v9429_v51 = vpop.f32.mrb[215].mxu0  ;;  %v9493_v30 = vpop.f32.mrb[215].mxu1 }
 0x2b6   : > { %v13415_v57 = vadd.f32 %v9427_v61, %v13307_v5  ;;  %v13418_v26 = vadd.f32 %v9491_v1, %v13310_v17  ;;  %v9430_v34 = vadd.f32 %v9429_v51, %v9428_v10  ;;  %v9494_v36 = vadd.f32 %v9493_v30, %v9492_v3 }
 0x2b8   : > { %v13421_v15 = vadd.f32 %v9430_v34, %v13313_v43  ;;  %v13424_v63 = vadd.f32 %v9494_v36, %v13316_v50 }
 0x2ba   : > { %v9431_v32 = vpop.f32.mrb[216].mxu0  ;;  %v9495_v14 = vpop.f32.mrb[216].mxu1 }
 0x2bb   : > { %v9432_v24 = vpop.f32.mrb[217].mxu0  ;;  %v9496_v29 = vpop.f32.mrb[217].mxu1 }
 0x2bc   : > { %v9433_v23 = vadd.f32 %v9432_v24, %v9431_v32  ;;  %v9497_v53 = vadd.f32 %v9496_v29, %v9495_v14  ;;  %v9434_v56 = vpop.f32.mrb[218].mxu0  ;;  %v9498_v5 = vpop.f32.mrb[218].mxu1 }
 0x2bd   : > { %v9435_v19 = vpop.f32.mrb[219].mxu0  ;;  %v9499_v62 = vpop.f32.mrb[219].mxu1 }
 0x2be   : > { %v13427_v17 = vadd.f32 %v9433_v23, %v13327_v60  ;;  %v13430_v55 = vadd.f32 %v9497_v53, %v13330_v49  ;;  %v9436_v43 = vadd.f32 %v9435_v19, %v9434_v56  ;;  %v9500_v7 = vadd.f32 %v9499_v62, %v9498_v5 }
 0x2c0   : > { %v13433_v50 = vadd.f32 %v9436_v43, %v13333_v28  ;;  %v13436_v8 = vadd.f32 %v9500_v7, %v13336_v52 }
 0x2c2   : > { %v9437_v35 = vpop.f32.mrb[220].mxu0  ;;  %v9501_v40 = vpop.f32.mrb[220].mxu1 }
 0x2c3   : > { %v9438_v46 = vpop.f32.mrb[221].mxu0  ;;  %v9502_v31 = vpop.f32.mrb[221].mxu1 }
 0x2c4   : > { %v9439_v11 = vadd.f32 %v9438_v46, %v9437_v35  ;;  %v9503_v38 = vadd.f32 %v9502_v31, %v9501_v40  ;;  %v9440_v0 = vpop.f32.mrb[222].mxu0  ;;  %v9504_v60 = vpop.f32.mrb[222].mxu1 }
 0x2c5   : > { %v9441_v20 = vpop.f32.mrb[223].mxu0  ;;  %v9505_v61 = vpop.f32.mrb[223].mxu1 }
 0x2c6   : > { %v13439_v49 = vadd.f32 %v9439_v11, %v13342_v48  ;;  %v13442_v1 = vadd.f32 %v9503_v38, %v13345_v41  ;;  %v9442_v28 = vadd.f32 %v9441_v20, %v9440_v0  ;;  %v9506_v10 = vadd.f32 %v9505_v61, %v9504_v60 }
 0x2c8   : > { %v13445_v52 = vadd.f32 %v9442_v28, %v13348_v59  ;;  %v13448_v3 = vadd.f32 %v9506_v10, %v13351_v12 }
 0x2ca   : > { %v9443_v51 = vpop.f32.mrb[224].mxu0  ;;  %v9507_v30 = vpop.f32.mrb[224].mxu1 }
 0x2cb   : > { %v9444_v34 = vpop.f32.mrb[225].mxu0  ;;  %v9508_v36 = vpop.f32.mrb[225].mxu1 }
 0x2cc   : > { %v9445_v32 = vadd.f32 %v9444_v34, %v9443_v51  ;;  %v9509_v14 = vadd.f32 %v9508_v36, %v9507_v30  ;;  %v9446_v24 = vpop.f32.mrb[226].mxu0  ;;  %v9510_v48 = vpop.f32.mrb[226].mxu1 }
 0x2cd   : > { %v9447_v29 = vpop.f32.mrb[227].mxu0  ;;  %v9511_v23 = vpop.f32.mrb[227].mxu1 }
 0x2ce   : > { %v13451_v41 = vadd.f32 %v9445_v32, %v13355_v13  ;;  %v13454_v53 = vadd.f32 %v9509_v14, %v13358_v42  ;;  %v9448_v59 = vadd.f32 %v9447_v29, %v9446_v24  ;;  %v9512_v56 = vadd.f32 %v9511_v23, %v9510_v48 }
 0x2d0   : > { %v13457_v12 = vadd.f32 %v9448_v59, %v13361_v6  ;;  %v13460_v5 = vadd.f32 %v9512_v56, %v13364_v22 }
 0x2d2   : > { %v9449_v19 = vpop.f32.mrb[228].mxu0  ;;  %v9513_v62 = vpop.f32.mrb[228].mxu1 }
 0x2d3   : > { %v9450_v43 = vpop.f32.mrb[229].mxu0  ;;  %v9514_v7 = vpop.f32.mrb[229].mxu1 }
 0x2d4   : > { %v9451_v35 = vadd.f32 %v9450_v43, %v9449_v19  ;;  %v9515_v40 = vadd.f32 %v9514_v7, %v9513_v62  ;;  %v9452_v46 = vpop.f32.mrb[230].mxu0  ;;  %v9516_v13 = vpop.f32.mrb[230].mxu1 }
 0x2d5   : > { %v9453_v31 = vpop.f32.mrb[231].mxu0  ;;  %v9517_v11 = vpop.f32.mrb[231].mxu1 }
 0x2d6   : > { %v13463_v42 = vadd.f32 %v9451_v35, %v13367_v4  ;;  %v13466_v38 = vadd.f32 %v9515_v40, %v13370_v45  ;;  %v9454_v6 = vadd.f32 %v9453_v31, %v9452_v46  ;;  %v9518_v0 = vadd.f32 %v9517_v11, %v9516_v13 }
 0x2d8   : > { %v13469_v22 = vadd.f32 %v9454_v6, %v13373_v25  ;;  %v13472_v60 = vadd.f32 %v9518_v0, %v13376_v39 }
 0x2da   : > { %v9455_v20 = vpop.f32.mrb[232].mxu0  ;;  %v9519_v61 = vpop.f32.mrb[232].mxu1 }
 0x2db   : > { %v9456_v28 = vpop.f32.mrb[233].mxu0  ;;  %v9520_v10 = vpop.f32.mrb[233].mxu1 }
 0x2dc   : > { %v9457_v51 = vadd.f32 %v9456_v28, %v9455_v20  ;;  %v9521_v30 = vadd.f32 %v9520_v10, %v9519_v61  ;;  %v9458_v34 = vpop.f32.mrb[234].mxu0  ;;  %v9522_v4 = vpop.f32.mrb[234].mxu1 }
 0x2dd   : > { %v9459_v36 = vpop.f32.mrb[235].mxu0  ;;  %v9523_v32 = vpop.f32.mrb[235].mxu1 }
 0x2de   : > { %v13475_v45 = vadd.f32 %v9457_v51, %v13379_v2  ;;  %v13478_v14 = vadd.f32 %v9521_v30, %v13382_v47  ;;  %v9460_v25 = vadd.f32 %v9459_v36, %v9458_v34  ;;  %v9524_v24 = vadd.f32 %v9523_v32, %v9522_v4 }
 0x2e0   : > { %v13481_v39 = vadd.f32 %v9460_v25, %v13385_v21  ;;  %v13484_v48 = vadd.f32 %v9524_v24, %v13388_v54 }
 0x2e2   : > { %v9461_v29 = vpop.f32.mrb[236].mxu0  ;;  %v9525_v23 = vpop.f32.mrb[236].mxu1 }
 0x2e3   : > { %v9462_v59 = vpop.f32.mrb[237].mxu0  ;;  %v9526_v56 = vpop.f32.mrb[237].mxu1 }
 0x2e4   : > { %v9463_v19 = vadd.f32 %v9462_v59, %v9461_v29  ;;  %v9527_v62 = vadd.f32 %v9526_v56, %v9525_v23  ;;  %v9464_v43 = vpop.f32.mrb[238].mxu0  ;;  %v9528_v2 = vpop.f32.mrb[238].mxu1 }
 0x2e5   : > { %v9465_v7 = vpop.f32.mrb[239].mxu0  ;;  %v9529_v35 = vpop.f32.mrb[239].mxu1 }
 0x2e6   : > { %v13487_v47 = vadd.f32 %v9463_v19, %v13391_v37  ;;  %v13490_v40 = vadd.f32 %v9527_v62, %v13394_v27  ;;  %v9466_v21 = vadd.f32 %v9465_v7, %v9464_v43  ;;  %v9530_v46 = vadd.f32 %v9529_v35, %v9528_v2 }
 0x2e8   : > { %v13493_v54 = vadd.f32 %v9466_v21, %v13397_v44  ;;  %v13496_v13 = vadd.f32 %v9530_v46, %v13400_v33 }
 0x2ea   : > { %v9531_v31 = vpop.f32.mrb[240].mxu1  ;;  %v9595_v11 = vpop.f32.mrb[240].mxu0 }
 0x2eb   : > { %v9532_v6 = vpop.f32.mrb[241].mxu1  ;;  %v9596_v0 = vpop.f32.mrb[241].mxu0 }
 0x2ec   : > { %v9533_v20 = vadd.f32 %v9532_v6, %v9531_v31  ;;  %v9597_v61 = vadd.f32 %v9596_v0, %v9595_v11  ;;  %v9534_v28 = vpop.f32.mrb[242].mxu1  ;;  %v9598_v37 = vpop.f32.mrb[242].mxu0 }
 0x2ed   : > { %v9535_v10 = vpop.f32.mrb[243].mxu1  ;;  %v9599_v51 = vpop.f32.mrb[243].mxu0 }
 0x2ee   : > { %v13499_v27 = vadd.f32 %v9533_v20, %v13403_v58  ;;  %v7219_v30 = vadd.f32 %v9597_v61, %v13406_v16  ;;  %v9536_v44 = vadd.f32 %v9535_v10, %v9534_v28  ;;  %v9600_v34 = vadd.f32 %v9599_v51, %v9598_v37 }
 0x2f0   : > { %v13503_v33 = vadd.f32 %v9536_v44, %v13409_v18  ;;  %v7222_v4 = vadd.f32 %v9600_v34, %v13412_v9  ;;  %v7345_v36 = vmax.f32 %v7219_v30, 0.0 }
 0x2f2   : > { %v7346_v32 = vmax.f32 %v7222_v4, 0.0  ;;  %v9537_v25 = vpop.f32.mrb[244].mxu1  ;;  %v9601_v24 = vpop.f32.mrb[244].mxu0 }
 0x2f3   : > { %v9538_v29 = vpop.f32.mrb[245].mxu1  ;;  %v9602_v23 = vpop.f32.mrb[245].mxu0 }
 0x2f4   : > { %v9539_v59 = vadd.f32 %v9538_v29, %v9537_v25  ;;  %v9603_v56 = vadd.f32 %v9602_v23, %v9601_v24  ;;  %v9540_v19 = vpop.f32.mrb[246].mxu1  ;;  %v9604_v58 = vpop.f32.mrb[246].mxu0  ;;  %v7377_v62 = vpack.c.bf16 %v7346_v32, %v7345_v36 }
 0x2f5   : > { %v9541_v43 = vpop.f32.mrb[247].mxu1  ;;  %v9605_v16 = vpop.f32.mrb[247].mxu0 }
 0x2f6   : > { %v13507_v2 = vadd.f32 %v9539_v59, %v13415_v57  ;;  %v7227_v18 = vadd.f32 %v9603_v56, %v13418_v26  ;;  %v9542_v7 = vadd.f32 %v9541_v43, %v9540_v19  ;;  %v9606_v9 = vadd.f32 %v9605_v16, %v9604_v58  ;;  %9731 = vmatprep.mubr.bf16.mxu1 %v7377_v62 }
 0x2f8   : > { %v13511_v35 = vadd.f32 %v9542_v7, %v13421_v15  ;;  %v7230_v21 = vadd.f32 %v9606_v9, %v13424_v63  ;;  %v7347_v46 = vmax.f32 %v7227_v18, 0.0 }
 0x2fa   : > { %v7348_v31 = vmax.f32 %v7230_v21, 0.0  ;;  %v9543_v11 = vpop.f32.mrb[248].mxu1  ;;  %v9607_v6 = vpop.f32.mrb[248].mxu0 }
 0x2fb   : > { %v9544_v0 = vpop.f32.mrb[249].mxu1  ;;  %v9608_v20 = vpop.f32.mrb[249].mxu0 }
 0x2fc   : > { %v7378_v61 = vpack.c.bf16 %v7348_v31, %v7347_v46  ;;  %v9545_v28 = vadd.f32 %v9544_v0, %v9543_v11  ;;  %v9609_v57 = vadd.f32 %v9608_v20, %v9607_v6  ;;  %v9546_v37 = vpop.f32.mrb[250].mxu1  ;;  %v9610_v10 = vpop.f32.mrb[250].mxu0 }
 0x2fd   : > { %v9547_v26 = vpop.f32.mrb[251].mxu1  ;;  %v9611_v51 = vpop.f32.mrb[251].mxu0 }
 0x2fe   : > { %v13515_v30 = vadd.f32 %v9545_v28, %v13427_v17  ;;  %v7235_v15 = vadd.f32 %v9609_v57, %v13430_v55  ;;  %v9548_v44 = vadd.f32 %v9547_v26, %v9546_v37  ;;  %v9612_v63 = vadd.f32 %v9611_v51, %v9610_v10  ;;  %9732 = vmatmul.mubr.bf16.vlgmr.msra.gmra.mrb[16].mxu1 %v7378_v61 }
 0x300   : > { %v13519_v34 = vadd.f32 %v9548_v44, %v13433_v50  ;;  %v7238_v4 = vadd.f32 %v9612_v63, %v13436_v8  ;;  %v7349_v36 = vmax.f32 %v7235_v15, 0.0 }
 0x302   : > { %v7350_v32 = vmax.f32 %v7238_v4, 0.0  ;;  %v9549_v25 = vpop.f32.mrb[252].mxu1  ;;  %v9613_v24 = vpop.f32.mrb[252].mxu0 }
 0x303   : > { %v9550_v29 = vpop.f32.mrb[253].mxu1  ;;  %v9614_v23 = vpop.f32.mrb[253].mxu0 }
 0x304   : > { %v9551_v59 = vadd.f32 %v9550_v29, %v9549_v25  ;;  %v9615_v56 = vadd.f32 %v9614_v23, %v9613_v24  ;;  %v9552_v17 = vpop.f32.mrb[254].mxu1  ;;  %v9616_v19 = vpop.f32.mrb[254].mxu0  ;;  %v7379_v58 = vpack.c.bf16 %v7350_v32, %v7349_v36 }
 0x305   : > { %v9553_v55 = vpop.f32.mrb[255].mxu1  ;;  %v9617_v62 = vpop.f32.mrb[255].mxu0 }
 0x306   : > { %v13523_v43 = vadd.f32 %v9551_v59, %v13439_v49  ;;  %v7243_v50 = vadd.f32 %v9615_v56, %v13442_v1  ;;  %v9554_v16 = vadd.f32 %v9553_v55, %v9552_v17  ;;  %v9618_v8 = vadd.f32 %v9617_v62, %v9616_v19  ;;  %9735 = vmatprep.mubr.bf16.mxu1 %v7379_v58 }
 0x308   : > { %v13527_v18 = vadd.f32 %v9554_v16, %v13445_v52  ;;  %v7246_v7 = vadd.f32 %v9618_v8, %v13448_v3  ;;  %v7351_v9 = vmax.f32 %v7243_v50, 0.0 }
 0x30a   : > { %v7352_v21 = vmax.f32 %v7246_v7, 0.0  ;;  %v9555_v46 = vpop.f32.mrb[0].mxu1  ;;  %v9619_v31 = vpop.f32.mrb[0].mxu0 }
 0x30b   : > { %v9556_v11 = vpop.f32.mrb[1].mxu1  ;;  %v9620_v6 = vpop.f32.mrb[1].mxu0 }
 0x30c   : > { %v7380_v0 = vpack.c.bf16 %v7352_v21, %v7351_v9  ;;  %v9557_v20 = vadd.f32 %v9556_v11, %v9555_v46  ;;  %v9621_v49 = vadd.f32 %v9620_v6, %v9619_v31  ;;  %v9558_v61 = vpop.f32.mrb[2].mxu1  ;;  %v9622_v28 = vpop.f32.mrb[2].mxu0 }
 0x30d   : > { %v9559_v1 = vpop.f32.mrb[3].mxu1  ;;  %v9623_v57 = vpop.f32.mrb[3].mxu0 }
 0x30e   : > { %v13531_v37 = vadd.f32 %v9557_v20, %v13451_v41  ;;  %v7251_v52 = vadd.f32 %v9621_v49, %v13454_v53  ;;  %v9560_v10 = vadd.f32 %v9559_v1, %v9558_v61  ;;  %v9624_v3 = vadd.f32 %v9623_v57, %v9622_v28  ;;  %9736 = vmatmul.mubr.bf16.gmra.mrb[20].mxu1 %v7380_v0 }
 0x310   : > { %v13535_v26 = vadd.f32 %v9560_v10, %v13457_v12  ;;  %v7254_v51 = vadd.f32 %v9624_v3, %v13460_v5  ;;  %v7353_v15 = vmax.f32 %v7251_v52, 0.0 }
 0x312   : > { %v7354_v44 = vmax.f32 %v7254_v51, 0.0  ;;  %v9561_v63 = vpop.f32.mrb[4].mxu1  ;;  %v9625_v4 = vpop.f32.mrb[4].mxu0 }
 0x313   : > { %v9562_v36 = vpop.f32.mrb[5].mxu1  ;;  %v9626_v32 = vpop.f32.mrb[5].mxu0 }
 0x314   : > { %v9563_v25 = vadd.f32 %v9562_v36, %v9561_v63  ;;  %v9627_v24 = vadd.f32 %v9626_v32, %v9625_v4  ;;  %v9564_v41 = vpop.f32.mrb[6].mxu1  ;;  %v9628_v29 = vpop.f32.mrb[6].mxu0  ;;  %v7381_v23 = vpack.c.bf16 %v7354_v44, %v7353_v15 }
 0x315   : > { %v9565_v53 = vpop.f32.mrb[7].mxu1  ;;  %v9629_v59 = vpop.f32.mrb[7].mxu0 }
 0x316   : > { %v13539_v56 = vadd.f32 %v9563_v25, %v13463_v42  ;;  %v7259_v12 = vadd.f32 %v9627_v24, %v13466_v38  ;;  %v9566_v17 = vadd.f32 %v9565_v53, %v9564_v41  ;;  %v9630_v5 = vadd.f32 %v9629_v59, %v9628_v29  ;;  %9739 = vmatprep.mubr.bf16.mxu1 %v7381_v23 }
 0x318   : > { %v13543_v19 = vadd.f32 %v9566_v17, %v13469_v22  ;;  %v7262_v58 = vadd.f32 %v9630_v5, %v13472_v60  ;;  %v7355_v55 = vmax.f32 %v7259_v12, 0.0 }
 0x31a   : > { %v7356_v62 = vmax.f32 %v7262_v58, 0.0  ;;  %v9567_v50 = vpop.f32.mrb[8].mxu1  ;;  %v9631_v16 = vpop.f32.mrb[8].mxu0 }
 0x31b   : > { %v9568_v8 = vpop.f32.mrb[9].mxu1  ;;  %v9632_v7 = vpop.f32.mrb[9].mxu0 }
 0x31c   : > { %v7382_v9 = vpack.c.bf16 %v7356_v62, %v7355_v55  ;;  %v9569_v21 = vadd.f32 %v9568_v8, %v9567_v50  ;;  %v9633_v42 = vadd.f32 %v9632_v7, %v9631_v16  ;;  %v9570_v46 = vpop.f32.mrb[10].mxu1  ;;  %v9634_v31 = vpop.f32.mrb[10].mxu0 }
 0x31d   : > { %v9571_v38 = vpop.f32.mrb[11].mxu1  ;;  %v9635_v11 = vpop.f32.mrb[11].mxu0 }
 0x31e   : > { %v13547_v6 = vadd.f32 %v9569_v21, %v13475_v45  ;;  %v7267_v22 = vadd.f32 %v9633_v42, %v13478_v14  ;;  %v9572_v0 = vadd.f32 %v9571_v38, %v9570_v46  ;;  %v9636_v60 = vadd.f32 %v9635_v11, %v9634_v31  ;;  %9740 = vmatmul.mubr.bf16.gmra.mrb[24].mxu1 %v7382_v9 }
 0x320   : > { %v13551_v20 = vadd.f32 %v9572_v0, %v13481_v39  ;;  %v7270_v49 = vadd.f32 %v9636_v60, %v13484_v48  ;;  %v7357_v61 = vmax.f32 %v7267_v22, 0.0 }
 0x322   : > { %v7358_v28 = vmax.f32 %v7270_v49, 0.0  ;;  %v9573_v1 = vpop.f32.mrb[12].mxu1  ;;  %v9637_v57 = vpop.f32.mrb[12].mxu0 }
 0x323   : > { %v9574_v52 = vpop.f32.mrb[13].mxu1  ;;  %v9638_v10 = vpop.f32.mrb[13].mxu0 }
 0x324   : > { %v9575_v3 = vadd.f32 %v9574_v52, %v9573_v1  ;;  %v9639_v51 = vadd.f32 %v9638_v10, %v9637_v57  ;;  %v9576_v45 = vpop.f32.mrb[14].mxu1  ;;  %v9640_v15 = vpop.f32.mrb[14].mxu0  ;;  %v7383_v44 = vpack.c.bf16 %v7358_v28, %v7357_v61 }
 0x325   : > { %v9577_v14 = vpop.f32.mrb[15].mxu1  ;;  %v9641_v63 = vpop.f32.mrb[15].mxu0 }
 0x326   : > { %v13555_v4 = vadd.f32 %v9575_v3, %v13487_v47  ;;  %v7275_v39 = vadd.f32 %v9639_v51, %v13490_v40  ;;  %v9578_v36 = vadd.f32 %v9577_v14, %v9576_v45  ;;  %v9642_v48 = vadd.f32 %v9641_v63, %v9640_v15  ;;  %9743 = vmatprep.mubr.bf16.mxu1 %v7383_v44 }
 0x328   : > { %v13559_v32 = vadd.f32 %v9578_v36, %v13493_v54  ;;  %v7278_v25 = vadd.f32 %v9642_v48, %v13496_v13  ;;  %v7359_v24 = vmax.f32 %v7275_v39, 0.0 }
 0x32a   : > { %v7360_v41 = vmax.f32 %v7278_v25, 0.0  ;;  %v9643_v29 = vpop.f32.mrb[16].mxu0 }
 0x32b   : > { %v9644_v23 = vpop.f32.mrb[17].mxu0 }
 0x32c   : > { %v7384_v53 = vpack.c.bf16 %v7360_v41, %v7359_v24  ;;  %v9645_v59 = vadd.f32 %v9644_v23, %v9643_v29  ;;  %v9646_v12 = vpop.f32.mrb[18].mxu0 }
 0x32d   : > { %v9647_v17 = vpop.f32.mrb[19].mxu0 }
 0x32e   : > { %v7283_v47 = vadd.f32 %v9645_v59, %v13499_v27  ;;  %v9648_v5 = vadd.f32 %v9647_v17, %v9646_v12  ;;  %9744 = vmatmul.mubr.bf16.gmra.mrb[28].mxu1 %v7384_v53 }
 0x330   : > { %v7286_v40 = vadd.f32 %v9648_v5, %v13503_v33  ;;  %v7361_v58 = vmax.f32 %v7283_v47, 0.0 }
 0x332   : > { %v7362_v55 = vmax.f32 %v7286_v40, 0.0  ;;  %v9649_v54 = vpop.f32.mrb[20].mxu0 }
 0x333   : > { %v9650_v62 = vpop.f32.mrb[21].mxu0 }
 0x334   : > { %v9651_v50 = vadd.f32 %v9650_v62, %v9649_v54  ;;  %v9652_v13 = vpop.f32.mrb[22].mxu0  ;;  %v7385_v16 = vpack.c.bf16 %v7362_v55, %v7361_v58 }
 0x335   : > { %v9653_v8 = vpop.f32.mrb[23].mxu0 }
 0x336   : > { %v7291_v7 = vadd.f32 %v9651_v50, %v13507_v2  ;;  %v9654_v9 = vadd.f32 %v9653_v8, %v9652_v13  ;;  %9747 = vmatprep.mubr.bf16.mxu1 %v7385_v16 }
 0x338   : > { %v7294_v21 = vadd.f32 %v9654_v9, %v13511_v35  ;;  %v7363_v42 = vmax.f32 %v7291_v7, 0.0 }
 0x33a   : > { %v7364_v27 = vmax.f32 %v7294_v21, 0.0  ;;  %v9655_v46 = vpop.f32.mrb[24].mxu0 }
 0x33b   : > { %v9656_v31 = vpop.f32.mrb[25].mxu0 }
 0x33c   : > { %v7386_v38 = vpack.c.bf16 %v7364_v27, %v7363_v42  ;;  %v9657_v33 = vadd.f32 %v9656_v31, %v9655_v46  ;;  %v9658_v11 = vpop.f32.mrb[26].mxu0 }
 0x33d   : > { %v9659_v22 = vpop.f32.mrb[27].mxu0 }
 0x33e   : > { %v7299_v0 = vadd.f32 %v9657_v33, %v13515_v30  ;;  %v9660_v60 = vadd.f32 %v9659_v22, %v9658_v11  ;;  %9748 = vmatmul.mubr.bf16.gmra.mrb[32].mxu1 %v7386_v38 }
 0x340   : > { %v7302_v49 = vadd.f32 %v9660_v60, %v13519_v34  ;;  %v7365_v61 = vmax.f32 %v7299_v0, 0.0 }
 0x342   : > { %v7366_v2 = vmax.f32 %v7302_v49, 0.0  ;;  %v9661_v28 = vpop.f32.mrb[28].mxu0 }
 0x343   : > { %v9662_v1 = vpop.f32.mrb[29].mxu0 }
 0x344   : > { %v9663_v57 = vadd.f32 %v9662_v1, %v9661_v28  ;;  %v9664_v35 = vpop.f32.mrb[30].mxu0  ;;  %v7387_v52 = vpack.c.bf16 %v7366_v2, %v7365_v61 }
 0x345   : > { %v9665_v10 = vpop.f32.mrb[31].mxu0 }
 0x346   : > { %v7307_v3 = vadd.f32 %v9663_v57, %v13523_v43  ;;  %v9666_v51 = vadd.f32 %v9665_v10, %v9664_v35  ;;  %9751 = vmatprep.mubr.bf16.mxu1 %v7387_v52 }
 0x348   : > { %v7310_v45 = vadd.f32 %v9666_v51, %v13527_v18  ;;  %v7367_v15 = vmax.f32 %v7307_v3, 0.0 }
 0x34a   : > { %v7368_v30 = vmax.f32 %v7310_v45, 0.0  ;;  %v9667_v44 = vpop.f32.mrb[32].mxu0 }
 0x34b   : > { %v9668_v14 = vpop.f32.mrb[33].mxu0 }
 0x34c   : > { %v7388_v63 = vpack.c.bf16 %v7368_v30, %v7367_v15  ;;  %v9669_v34 = vadd.f32 %v9668_v14, %v9667_v44  ;;  %v9670_v39 = vpop.f32.mrb[34].mxu0 }
 0x34d   : > { %v9671_v36 = vpop.f32.mrb[35].mxu0 }
 0x34e   : > { %v7315_v48 = vadd.f32 %v9669_v34, %v13531_v37  ;;  %v9672_v25 = vadd.f32 %v9671_v36, %v9670_v39  ;;  %9752 = vmatmul.mubr.bf16.gmra.mrb[36].mxu1 %v7388_v63 }
 0x350   : > { %v7318_v24 = vadd.f32 %v9672_v25, %v13535_v26  ;;  %v7369_v41 = vmax.f32 %v7315_v48, 0.0 }
 0x352   : > { %v7370_v43 = vmax.f32 %v7318_v24, 0.0  ;;  %v9673_v29 = vpop.f32.mrb[36].mxu0 }
 0x353   : > { %v9674_v23 = vpop.f32.mrb[37].mxu0 }
 0x354   : > { %v9675_v53 = vadd.f32 %v9674_v23, %v9673_v29  ;;  %v9676_v18 = vpop.f32.mrb[38].mxu0  ;;  %v7389_v59 = vpack.c.bf16 %v7370_v43, %v7369_v41 }
 0x355   : > { %v9677_v12 = vpop.f32.mrb[39].mxu0 }
 0x356   : > { %v7323_v17 = vadd.f32 %v9675_v53, %v13539_v56  ;;  %v9678_v47 = vadd.f32 %v9677_v12, %v9676_v18  ;;  %9755 = vmatprep.mubr.bf16.mxu1 %v7389_v59 }
 0x358   : > { %v7326_v5 = vadd.f32 %v9678_v47, %v13543_v19  ;;  %v7371_v40 = vmax.f32 %v7323_v17, 0.0 }
 0x35a   : > { %v7372_v37 = vmax.f32 %v7326_v5, 0.0  ;;  %v9679_v58 = vpop.f32.mrb[40].mxu0 }
 0x35b   : > { %v9680_v55 = vpop.f32.mrb[41].mxu0 }
 0x35c   : > { %v7390_v54 = vpack.c.bf16 %v7372_v37, %v7371_v40  ;;  %v9681_v26 = vadd.f32 %v9680_v55, %v9679_v58  ;;  %v9682_v62 = vpop.f32.mrb[42].mxu0 }
 0x35d   : > { %v9683_v50 = vpop.f32.mrb[43].mxu0 }
 0x35e   : > { %v7331_v13 = vadd.f32 %v9681_v26, %v13547_v6  ;;  %v9684_v16 = vadd.f32 %v9683_v50, %v9682_v62  ;;  %9756 = vmatmul.mubr.bf16.gmra.mrb[40].mxu1 %v7390_v54 }
 0x360   : > { %v7334_v8 = vadd.f32 %v9684_v16, %v13551_v20  ;;  %v7373_v7 = vmax.f32 %v7331_v13, 0.0  ;;  %v13584_v20 = vld [vmem:[%s13746_s5] ss:$0 sm:$0xff] }
 0x362   : > { %v7374_v56 = vmax.f32 %v7334_v8, 0.0  ;;  %v9685_v9 = vpop.f32.mrb[44].mxu0 }
 0x363   : > { %v9686_v19 = vpop.f32.mrb[45].mxu0 }
 0x364   : > { %v9687_v21 = vadd.f32 %v9686_v19, %v9685_v9  ;;  %v9688_v42 = vpop.f32.mrb[46].mxu0  ;;  %v7391_v27 = vpack.c.bf16 %v7374_v56, %v7373_v7 }
 0x365   : > { %v9689_v46 = vpop.f32.mrb[47].mxu0 }
 0x366   : > { %v7339_v31 = vadd.f32 %v9687_v21, %v13555_v4  ;;  %v9690_v38 = vadd.f32 %v9689_v46, %v9688_v42  ;;  %9759 = vmatprep.mubr.bf16.mxu1 %v7391_v27 }
 0x368   : > { %v7342_v6 = vadd.f32 %v9690_v38, %v13559_v32  ;;  %v7375_v33 = vmax.f32 %v7339_v31, 0.0 }
 0x36a   : > { %v7376_v11 = vmax.f32 %v7342_v6, 0.0 }
 0x36c   : > { %v7392_v22 = vpack.c.bf16 %v7376_v11, %v7375_v33 }
 0x36e   : > { %9760 = vmatmul.mubr.bf16.gmra.mrb[44].mxu1 %v7392_v22 }
 0x3d1   : > { %v9733_v0 = vpop.f32.mrb[16].mxu1 }
 0x3d2   : > { %v7507_v4 = vadd.f32 %v9733_v0, %v13584_v20  ;;  %v7498_v60 = vpop.f32.mrb[17].mxu1 }
 0x3d3   : > { %v7499_v49 = vadd.f32 %v13584_v20, %v7498_v60  ;;  %v9734_v32 = vpop.f32.mrb[18].mxu1 }
 0x3d4   : > { %7628 = vst.msk [vmem:[%s13588_s14 + $0x10] sm:$0xff] %vm7625_vm2, %v7507_v4  ;;  %v7510_v61 = vadd.f32 %v9734_v32, %v13584_v20  ;;  %v7501_v2 = vpop.f32.mrb[19].mxu1 }
 0x3d5   : > { %7626 = vst.msk [vmem:[%s13588_s14] sm:$0xff] %vm7625_vm2, %v7499_v49  ;;  %v7502_v28 = vadd.f32 %v13584_v20, %v7501_v2 }
 0x3d6   : > { %7629 = vst.msk [vmem:[%s13588_s14 + $0x18] sm:$0xff] %vm7625_vm2, %v7510_v61 }
 0x3d7   : > { %7627 = vst.msk [vmem:[%s13588_s14 + $0x8] sm:$0xff] %vm7625_vm2, %v7502_v28 }
 0x3e1   : > { %v9737_v1 = vpop.f32.mrb[20].mxu1 }
 0x3e2   : > { %v7523_v57 = vadd.f32 %v9737_v1, %v13584_v20  ;;  %v7514_v35 = vpop.f32.mrb[21].mxu1 }
 0x3e3   : > { %v7515_v52 = vadd.f32 %v13584_v20, %v7514_v35  ;;  %v9738_v10 = vpop.f32.mrb[22].mxu1 }
 0x3e4   : > { %7632 = vst.msk [vmem:[%s13588_s14 + $0x30] sm:$0xff] %vm7625_vm2, %v7523_v57  ;;  %v7526_v3 = vadd.f32 %v9738_v10, %v13584_v20  ;;  %v7517_v51 = vpop.f32.mrb[23].mxu1 }
 0x3e5   : > { %7630 = vst.msk [vmem:[%s13588_s14 + $0x20] sm:$0xff] %vm7625_vm2, %v7515_v52  ;;  %v7518_v45 = vadd.f32 %v13584_v20, %v7517_v51 }
 0x3e6   : > { %7633 = vst.msk [vmem:[%s13588_s14 + $0x38] sm:$0xff] %vm7625_vm2, %v7526_v3 }
 0x3e7   : > { %7631 = vst.msk [vmem:[%s13588_s14 + $0x28] sm:$0xff] %vm7625_vm2, %v7518_v45 }
 0x3f1   : > { %v9741_v15 = vpop.f32.mrb[24].mxu1 }
 0x3f2   : > { %v7539_v30 = vadd.f32 %v9741_v15, %v13584_v20  ;;  %v7530_v44 = vpop.f32.mrb[25].mxu1 }
 0x3f3   : > { %v7531_v14 = vadd.f32 %v13584_v20, %v7530_v44  ;;  %v9742_v63 = vpop.f32.mrb[26].mxu1 }
 0x3f4   : > { %7636 = vst.msk [vmem:[%s13588_s14 + $0x50] sm:$0xff] %vm7625_vm2, %v7539_v30  ;;  %v7542_v34 = vadd.f32 %v9742_v63, %v13584_v20  ;;  %v7533_v39 = vpop.f32.mrb[27].mxu1 }
 0x3f5   : > { %7634 = vst.msk [vmem:[%s13588_s14 + $0x40] sm:$0xff] %vm7625_vm2, %v7531_v14  ;;  %v7534_v36 = vadd.f32 %v13584_v20, %v7533_v39 }
 0x3f6   : > { %7637 = vst.msk [vmem:[%s13588_s14 + $0x58] sm:$0xff] %vm7625_vm2, %v7542_v34 }
 0x3f7   : > { %7635 = vst.msk [vmem:[%s13588_s14 + $0x48] sm:$0xff] %vm7625_vm2, %v7534_v36 }
 0x401   : > { %v9745_v48 = vpop.f32.mrb[28].mxu1 }
 0x402   : > { %v7555_v25 = vadd.f32 %v9745_v48, %v13584_v20  ;;  %v7546_v24 = vpop.f32.mrb[29].mxu1 }
 0x403   : > { %v7547_v41 = vadd.f32 %v13584_v20, %v7546_v24  ;;  %v9746_v43 = vpop.f32.mrb[30].mxu1 }
 0x404   : > { %7640 = vst.msk [vmem:[%s13588_s14 + $0x70] sm:$0xff] %vm7625_vm2, %v7555_v25  ;;  %v7558_v29 = vadd.f32 %v9746_v43, %v13584_v20  ;;  %v7549_v23 = vpop.f32.mrb[31].mxu1 }
 0x405   : > { %7638 = vst.msk [vmem:[%s13588_s14 + $0x60] sm:$0xff] %vm7625_vm2, %v7547_v41  ;;  %v7550_v53 = vadd.f32 %v13584_v20, %v7549_v23 }
 0x406   : > { %7641 = vst.msk [vmem:[%s13588_s14 + $0x78] sm:$0xff] %vm7625_vm2, %v7558_v29 }
 0x407   : > { %7639 = vst.msk [vmem:[%s13588_s14 + $0x68] sm:$0xff] %vm7625_vm2, %v7550_v53 }
 0x411   : > { %v9749_v18 = vpop.f32.mrb[32].mxu1 }
 0x412   : > { %v7571_v59 = vadd.f32 %v9749_v18, %v13584_v20  ;;  %v7562_v12 = vpop.f32.mrb[33].mxu1 }
 0x413   : > { %v7563_v17 = vadd.f32 %v13584_v20, %v7562_v12  ;;  %v9750_v47 = vpop.f32.mrb[34].mxu1 }
 0x414   : > { %7644 = vst.msk [vmem:[%s13588_s14 + $0x90] sm:$0xff] %vm7625_vm2, %v7571_v59  ;;  %v7574_v5 = vadd.f32 %v9750_v47, %v13584_v20  ;;  %v7565_v40 = vpop.f32.mrb[35].mxu1 }
 0x415   : > { %7642 = vst.msk [vmem:[%s13588_s14 + $0x80] sm:$0xff] %vm7625_vm2, %v7563_v17  ;;  %v7566_v37 = vadd.f32 %v13584_v20, %v7565_v40 }
 0x416   : > { %7645 = vst.msk [vmem:[%s13588_s14 + $0x98] sm:$0xff] %vm7625_vm2, %v7574_v5 }
 0x417   : > { %7643 = vst.msk [vmem:[%s13588_s14 + $0x88] sm:$0xff] %vm7625_vm2, %v7566_v37 }
 0x421   : > { %v9753_v58 = vpop.f32.mrb[36].mxu1 }
 0x422   : > { %v7587_v55 = vadd.f32 %v9753_v58, %v13584_v20  ;;  %v7578_v54 = vpop.f32.mrb[37].mxu1 }
 0x423   : > { %v7579_v26 = vadd.f32 %v13584_v20, %v7578_v54  ;;  %v9754_v62 = vpop.f32.mrb[38].mxu1 }
 0x424   : > { %7648 = vst.msk [vmem:[%s13588_s14 + $0xb0] sm:$0xff] %vm7625_vm2, %v7587_v55  ;;  %v7590_v50 = vadd.f32 %v9754_v62, %v13584_v20  ;;  %v7581_v13 = vpop.f32.mrb[39].mxu1 }
 0x425   : > { %7646 = vst.msk [vmem:[%s13588_s14 + $0xa0] sm:$0xff] %vm7625_vm2, %v7579_v26  ;;  %v7582_v16 = vadd.f32 %v13584_v20, %v7581_v13 }
 0x426   : > { %7649 = vst.msk [vmem:[%s13588_s14 + $0xb8] sm:$0xff] %vm7625_vm2, %v7590_v50 }
 0x427   : > { %7647 = vst.msk [vmem:[%s13588_s14 + $0xa8] sm:$0xff] %vm7625_vm2, %v7582_v16 }
 0x431   : > { %v9757_v8 = vpop.f32.mrb[40].mxu1 }
 0x432   : > { %v7603_v7 = vadd.f32 %v9757_v8, %v13584_v20  ;;  %v7594_v56 = vpop.f32.mrb[41].mxu1 }
 0x433   : > { %v7595_v9 = vadd.f32 %v13584_v20, %v7594_v56  ;;  %v9758_v19 = vpop.f32.mrb[42].mxu1 }
 0x434   : > { %7652 = vst.msk [vmem:[%s13588_s14 + $0xd0] sm:$0xff] %vm7625_vm2, %v7603_v7  ;;  %v7606_v21 = vadd.f32 %v9758_v19, %v13584_v20  ;;  %v7597_v42 = vpop.f32.mrb[43].mxu1 }
 0x435   : > { %7650 = vst.msk [vmem:[%s13588_s14 + $0xc0] sm:$0xff] %vm7625_vm2, %v7595_v9  ;;  %v7598_v27 = vadd.f32 %v13584_v20, %v7597_v42 }
 0x436   : > { %7653 = vst.msk [vmem:[%s13588_s14 + $0xd8] sm:$0xff] %vm7625_vm2, %v7606_v21 }
 0x437   : > { %7651 = vst.msk [vmem:[%s13588_s14 + $0xc8] sm:$0xff] %vm7625_vm2, %v7598_v27 }
 0x441   : > { %v9761_v46 = vpop.f32.mrb[44].mxu1 }
 0x442   : > { %v7619_v31 = vadd.f32 %v9761_v46, %v13584_v20  ;;  %v7610_v38 = vpop.f32.mrb[45].mxu1 }
 0x443   : > { %v7611_v6 = vadd.f32 %v13584_v20, %v7610_v38  ;;  %v9762_v33 = vpop.f32.mrb[46].mxu1 }
 0x444   : > { %7656 = vst.msk [vmem:[%s13588_s14 + $0xf0] sm:$0xff] %vm7625_vm2, %v7619_v31  ;;  %v7622_v11 = vadd.f32 %v9762_v33, %v13584_v20  ;;  %v7613_v22 = vpop.f32.mrb[47].mxu1 }
 0x445   : > { %7654 = vst.msk [vmem:[%s13588_s14 + $0xe0] sm:$0xff] %vm7625_vm2, %v7611_v6  ;;  %v7614_v0 = vadd.f32 %v13584_v20, %v7613_v22 }
 0x446   : > { %7657 = vst.msk [vmem:[%s13588_s14 + $0xf8] sm:$0xff] %vm7625_vm2, %v7622_v11 }
 0x447   : > { %7655 = vst.msk [vmem:[%s13588_s14 + $0xe8] sm:$0xff] %vm7625_vm2, %v7614_v0 }
 0x448   : > { %10464 = shalt.err (!%p10461_p5)
}
 0x449   : > { %s10465_s30 = scalar_lea.hbm %s13682_s18, 4096  ;;  %s10469_s13 = scalar_lea.hbm %s13747_s6, 8192 }
 0x44a   : > { %p10466_p6 = scmp.ne.s32.totalorder %s13682_s18, %s10465_s30  ;;  %p10470_p10 = scmp.lt.u32.totalorder %s13682_s18, %s13747_s6 }
 0x44b   : > { %p10471_p11 = scmp.lt.u32.totalorder %s10469_s13, %s10465_s30  ;;  %p10473_p13 = scmp.lt.u32.totalorder %s10465_s30, %s13682_s18 }
 0x44c   : > { %p10467_p7 = pnand %p10466_p6, %p10609_p4 }
 0x44d   : > { %p10472_p12 = por %p10471_p11, %p10470_p10 }
 0x44e   : > { %p10468_p9 = pneg %p10467_p7 }
 0x44f   : > { %p10474_p0 = por %p10473_p13, %p10472_p12 }
 0x451   : > { %p10475_p1 = pnand %p10474_p0, %p10468_p9 }
 0x453   : > { %10478 = shalt.err (!%p10475_p1)
}
 0x454   : > { %s10532_s17 = smov 128   ;;  %s10533_s20 = smov 8  }
 0x455   : > { %9781 = dma.vmem_to_hbm [thread:$0]  (%p10609_p4), %s13684_s16, 4096, %s13682_s18, %s13695_s24, %s10532_s17, %s10532_s17, %s10533_s20  }
 0x456 PF: > { %p9788_p2 = scmp.ge.s32.totalorder %s10529_s26, 2  ;;  %s7690_s19 = sand.u32 1, %s10509_s21  }
 0x457   : > { %s7691_s27 = scalar_lea.sflag [#allocation4], %s7690_s19 }
 0x458   : > { %p9784_p3 = pnand %p9788_p2, %p10616_p8 }
 0x45a   : > { %10504 = dma.done.wait (!%p9784_p3), %s7691_s27, 4096  }
 0x45b   : > { %10506 = vsyncadd (!%p9784_p3), %s7691_s27, 4294963200  ;;  %s19_s26 = sadd.s32 1, %s10529_s26   ;;  %s13883_s21 = smov %s10513_s22 }
 0x45c   : > { %p16_p5 = scmp.ge.s32.totalorder %s19_s26, 4   ;;  %s13884_s22 = smov %s10517_s23 }
 0x45d   : > { %s13885_s23 = smov %s10622_s10  ;;  %s13886_s24 = smov %s10525_s25 }
 0x45e   : > { %s13887_s25 = smov %s13889_s29  ;;  %18 = sbr.rel (!%p16_p5) target bundleno = 4 (0x4), region = 89 }
 0x465   :  { %7696 = vsyncpa [#allocation4], 1 }
 0x466   :  { %7698 = vsyncpa [#allocation4 + $0x1], 1 }

</bundles_post_ra>
